<compile_context>
chip_gen: v6e
topology: v6e:2x2x1
jax: 0.10.0
libtpu: 0.0.40
codegen_flags: <defaults>
</compile_context>

<pallas_src>
import functools

import jax
import jax.numpy as jnp
from jax.experimental import pallas as pl
from jax.experimental.pallas import tpu as pltpu


def _round_up(x, m):
    return (x + m - 1) // m * m


def _vmem_limit_bytes():
    # Generation-aware VMEM budget (~0.75x capacity): ~96 MiB on v5e/v6e,
    # ~48 MiB on v7x.  Falls back to a safe 64 MiB if the query is unavailable.
    try:
        cap = int(pltpu.get_tpu_info().vmem_capacity_bytes)
        return max(32 * 1024 * 1024, (cap * 3) // 4)
    except Exception:
        return 64 * 1024 * 1024


# ----------------------------- Pallas kernel --------------------------------
def _c5_head_kernel(x_ref, w1_ref, scale_ref, bias_ref, sel_ref, w2_ref,
                    o_ref, h_ref, *, shifts, chunk):
    """One sample per grid step, channel-major throughout.

    x_ref:     (C_in, S_in)       bf16 activation (flattened spatial, zero-padded)
    w1_ref:    (18, C_out, C_in)  bf16 conv1 weights, tap-major (kw, kh, kd)
    scale_ref: (C_out, 1)         f32  folded BN scale = gamma / sqrt(var + eps)
    bias_ref:  (C_out, 1)         f32  folded BN bias  = beta - mean * scale
    sel_ref:   (S_cols, S_valid)  bf16 0/1 compaction matrix (valid-column gather)
    w2_ref:    (C_out2, C_out)    bf16 conv2 (1x1x1) weights
    o_ref:     (C_out2, S_valid)  f32  compacted output (PyTorch flatten order)
    h_ref:     (C_out, S_cols)    bf16 VMEM scratch: conv1 + BN + ReLU activation
    """
    n_taps = w1_ref.shape[0]
    s_cols = h_ref.shape[-1]

    # conv1 as per-tap MXU matmuls accumulated in f32.  The spatial axis is
    # processed in `chunk`-column pieces so the accumulator stays in vregs
    # (no patch matrix, no accumulator VMEM round trips).
    for col0 in range(0, s_cols, chunk):
        acc = None
        for t in range(n_taps):
            sh = shifts[t]
            part = jnp.dot(w1_ref[t], x_ref[:, col0 + sh:col0 + sh + chunk],
                           preferred_element_type=jnp.float32)
            acc = part if acc is None else acc + part
        # Folded BatchNorm + ReLU in f32 on the VPU; bf16 only as MXU operand.
        acc = jnp.maximum(acc * scale_ref[...] + bias_ref[...], 0.0)
        h_ref[:, col0:col0 + chunk] = acc.astype(h_ref.dtype)

    # In-kernel compaction: gather only the valid output columns (in PyTorch's
    # (w, h, d) row-major order) with a 0/1 selection matmul — gathers are
    # cheapest on the MXU, and conv2 below only computes valid columns.
    hc = jnp.dot(h_ref[...], sel_ref[...], preferred_element_type=jnp.float32)

    # conv2 (1x1x1): second MXU matmul; operands bf16, accumulation f32.
    o_ref[...] = jnp.dot(w2_ref[...], hc.astype(w2_ref.dtype),
                         preferred_element_type=jnp.float32).astype(o_ref.dtype)


# ------------------------------ JAX wrapper ----------------------------------
@functools.partial(jax.jit, static_argnames=("bs",))
def c5_head_forward(x, params, bs):
    """Forward pass of the fused C5 head.  x: (N, C_in, W, H, D) float32."""
    w1 = params["conv1_w"]      # (C_out, C_in, 3, 3, 2)
    w2 = params["conv2_w"]      # (C_out2, C_out, 1, 1, 1)
    gamma, beta = params["bn_gamma"], params["bn_beta"]
    mean, var = params["bn_mean"], params["bn_var"]
    eps = 1e-5

    N, C, W, H, D = x.shape
    c_out = w1.shape[0]
    c_out2 = w2.shape[0]
    Wo, Ho, Do = W - 2, H - 2, D - 1
    S = W * H * D
    s_valid = Wo * Ho * Do

    # Static tap shifts over the flattened (W, H, D) spatial axis, loop order
    # (kw, kh, kd) matching the tap-major weight reordering below.
    shifts = tuple((kw * H + kh) * D + kd
                   for kw in range(3) for kh in range(3) for kd in range(2))
    max_shift = max(shifts)

    chunk = 128
    # conv1 only needs columns up to the largest valid base position.
    max_base = (Wo - 1) * H * D + (Ho - 1) * D + (Do - 1)
    s_cols = _round_up(max_base + 1, chunk)
    s_in = _round_up(s_cols + max_shift, 128)
    s_valid_pad = _round_up(s_valid, 128)

    x_flat = x.reshape(N, C, S).astype(jnp.bfloat16)
    x_flat = jnp.pad(x_flat, ((0, 0), (0, 0), (0, s_in - S)))

    # conv1 weights tap-major: (3,3,2,c_out,c_in) -> (18, c_out, c_in), bf16.
    w1_taps = jnp.transpose(w1, (2, 3, 4, 0, 1)).reshape(18, c_out, C)
    w1_taps = w1_taps.astype(jnp.bfloat16)
    w2_mat = w2.reshape(c_out2, c_out).astype(jnp.bfloat16)

    scale_vec = gamma * jax.lax.rsqrt(var + eps)
    bias_vec = beta - mean * scale_vec
    scale = scale_vec.astype(jnp.float32).reshape(c_out, 1)
    bias = bias_vec.astype(jnp.float32).reshape(c_out, 1)

    # 0/1 compaction matrix: compact column (w,h,d) row-major selects input
    # flat column (w*H + h)*D + d.  Exact in bf16; padded columns stay zero.
    ww = jnp.arange(Wo)[:, None, None]
    hh = jnp.arange(Ho)[None, :, None]
    dd = jnp.arange(Do)[None, None, :]
    in_flat = ((ww * H + hh) * D + dd).reshape(-1)                   # (s_valid,)
    sel = jax.nn.one_hot(in_flat, s_cols, dtype=jnp.bfloat16).T      # (s_cols, s_valid)
    sel = jnp.pad(sel, ((0, 0), (0, s_valid_pad - s_valid)))

    kernel = functools.partial(_c5_head_kernel, shifts=shifts, chunk=chunk)

    flops = 2 * N * (18 * C * c_out * s_cols
                     + c_out * s_cols * s_valid_pad
                     + c_out2 * c_out * s_valid_pad)
    bytes_accessed = (N * C * s_in * 2 + 18 * c_out * C * 2 + c_out2 * c_out * 2
                      + s_cols * s_valid_pad * 2 + 2 * c_out * 4
                      + N * c_out2 * s_valid_pad * 4)

    out = pl.pallas_call(
        kernel,
        out_shape=jax.ShapeDtypeStruct((N, c_out2, s_valid_pad), jnp.float32),
        grid_spec=pltpu.PrefetchScalarGridSpec(
            num_scalar_prefetch=0,
            grid=(N,),                                  # 8 steps -> 4/TC on v7x
            in_specs=[
                pl.BlockSpec((None, C, s_in), lambda n: (n, 0, 0)),
                pl.BlockSpec((18, c_out, C), lambda n: (0, 0, 0)),   # resident
                pl.BlockSpec((c_out, 1), lambda n: (0, 0)),
                pl.BlockSpec((c_out, 1), lambda n: (0, 0)),
                pl.BlockSpec((s_cols, s_valid_pad), lambda n: (0, 0)),
                pl.BlockSpec((c_out2, c_out), lambda n: (0, 0)),
            ],
            out_specs=pl.BlockSpec((None, c_out2, s_valid_pad),
                                   lambda n: (n, 0, 0)),
            scratch_shapes=[pltpu.VMEM((c_out, s_cols), jnp.bfloat16)],
        ),
        compiler_params=pltpu.CompilerParams(
            dimension_semantics=("parallel",),
            vmem_limit_bytes=_vmem_limit_bytes()),
        cost_estimate=pl.CostEstimate(flops=flops, transcendentals=0,
                                      bytes_accessed=bytes_accessed),
    )(x_flat, w1_taps, scale, bias, sel, w2_mat)

    # Output is already compact, valid-only, channel-major (PyTorch flatten
    # order); at demo shapes s_valid is a multiple of 128 so no slice at all.
    if s_valid_pad != s_valid:
        out = out[:, :, :s_valid]
    return out.reshape(bs, N // bs, c_out2 * s_valid)


# --------------------------- param construction ------------------------------
def init_params(key, c_in, c_out):
    k1, k2, k3, k4, k5, k6 = jax.random.split(key, 6)
    return {
        "conv1_w": 0.1 * jax.random.normal(k1, (c_out, c_in, 3, 3, 2), jnp.float32),
        "conv2_w": 0.1 * jax.random.normal(k2, (c_out, c_out, 1, 1, 1), jnp.float32),
        "bn_gamma": 1.0 + 0.1 * jax.random.normal(k3, (c_out,), jnp.float32),
        "bn_beta": 0.1 * jax.random.normal(k4, (c_out,), jnp.float32),
        "bn_mean": 0.1 * jax.random.normal(k5, (c_out,), jnp.float32),
        "bn_var": jnp.abs(jax.random.normal(k6, (c_out,), jnp.float32)) + 0.5,
    }


# ---------------------- pure-JAX reference (check only) ----------------------
def _reference_forward(x, params, bs):
    """f32 reference via explicit im2col (never materialized by the kernel)."""
    w1, w2 = params["conv1_w"], params["conv2_w"]
    N, C, W, H, D = x.shape
    c_out = w1.shape[0]
    c_out2 = w2.shape[0]
    Wo, Ho, Do = W - 2, H - 2, D - 1
    eps = 1e-5
    scale = params["bn_gamma"] / jnp.sqrt(params["bn_var"] + eps)
    bias = params["bn_beta"] - params["bn_mean"] * scale

    cols = []
    for kw in range(3):
        for kh in range(3):
            for kd in range(2):
                cols.append(x[:, :, kw:kw + Wo, kh:kh + Ho, kd:kd + Do])
    p = jnp.stack(cols, axis=1)                              # (N, 18, C, Wo, Ho, Do)
    p = p.transpose(0, 3, 4, 5, 1, 2).reshape(N * Wo * Ho * Do, 18 * C)
    w1_mat = jnp.transpose(w1, (0, 2, 3, 4, 1)).reshape(c_out, 18 * C)
    h = jnp.maximum(p @ w1_mat.T * scale[None, :] + bias[None, :], 0.0)
    out = h @ w2.reshape(c_out2, c_out).T                    # (M, C_out2)
    out = out.reshape(N, Wo, Ho, Do, c_out2).transpose(0, 4, 1, 2, 3)
    return out.reshape(bs, N // bs, c_out2 * Wo * Ho * Do)


# -------------------------------- main ---------------------------------------
if __name__ == "__main__":
    # Small shapes consistent with the module head (channel counts scaled down;
    # C_out kept lane-dense at 128; N = 8 so the grid has enough parallel steps
    # to keep both v7x TensorCores pipelined).
    bs_num, c_in, c_out = 8, 32, 128
    W, H, D = 10, 10, 5          # conv1 valid output: (8, 8, 4) -> 256 columns
    bs = 2

    key = jax.random.PRNGKey(0)
    kx, kp = jax.random.split(key)
    x = jax.random.normal(kx, (bs_num, c_in, W, H, D), jnp.float32)
    params = init_params(kp, c_in, c_out)

    out = c5_head_forward(x, params, bs)
    out = jax.block_until_ready(out)

    ref = _reference_forward(x, params, bs)

    assert out.shape == (bs, bs_num // bs, c_out * (W - 2) * (H - 2) * (D - 1))
    # bf16 matmul operands (f32 accumulation) -> looser tolerance than pure f32.
    err = jnp.max(jnp.abs(out - ref))
    mag = jnp.max(jnp.abs(ref))
    assert err <= 5e-2 * mag + 1e-2, (float(err), float(mag))
    print("KERNEL_OK")
</pallas_src>

<mosaic_0001>
module attributes {stable_mosaic.version = 11 : i64} {
  func.func @_c5_head_kernel(%arg0: i32, %arg1: memref<1x32x640xbf16, #tpu.memory_space<vmem>>, %arg2: memref<18x128x32xbf16, #tpu.memory_space<vmem>>, %arg3: memref<128x1xf32, #tpu.memory_space<vmem>>, %arg4: memref<128x1xf32, #tpu.memory_space<vmem>>, %arg5: memref<512x256xbf16, #tpu.memory_space<vmem>>, %arg6: memref<128x128xbf16, #tpu.memory_space<vmem>>, %arg7: memref<1x128x256xf32, #tpu.memory_space<vmem>>, %arg8: memref<128x512xbf16, #tpu.memory_space<vmem>>) attributes {dimension_semantics = [#tpu.dimension_semantics<parallel>], iteration_bounds = array<i64: 8>, scalar_prefetch = 0 : i64, scratch_operands = 1 : i64, tpu.core_type = #tpu.core_type<tc>, window_params = [{transform_indices = @transform_0, window_bounds = array<i64: 1, 32, 640>}, {pipeline_mode = #tpu.pipeline_mode<synchronous>, transform_indices = @transform_1, window_bounds = array<i64: 18, 128, 32>}, {pipeline_mode = #tpu.pipeline_mode<synchronous>, transform_indices = @transform_2, window_bounds = array<i64: 128, 1>}, {pipeline_mode = #tpu.pipeline_mode<synchronous>, transform_indices = @transform_3, window_bounds = array<i64: 128, 1>}, {pipeline_mode = #tpu.pipeline_mode<synchronous>, transform_indices = @transform_4, window_bounds = array<i64: 512, 256>}, {pipeline_mode = #tpu.pipeline_mode<synchronous>, transform_indices = @transform_5, window_bounds = array<i64: 128, 128>}, {transform_indices = @transform_6, window_bounds = array<i64: 1, 128, 256>}]} {
    %c0 = arith.constant 0 : index
    %c0_0 = arith.constant 0 : index
    %c0_1 = arith.constant 0 : index
    %0 = vector.load %arg2[%c0, %c0_0, %c0_1] : memref<18x128x32xbf16, #tpu.memory_space<vmem>>, vector<1x128x32xbf16>
    %1 = vector.shape_cast %0 : vector<1x128x32xbf16> to vector<128x32xbf16>
    %c0_2 = arith.constant 0 : index
    %c0_3 = arith.constant 0 : index
    %c0_4 = arith.constant 0 : index
    %2 = vector.load %arg1[%c0_2, %c0_3, %c0_4] : memref<1x32x640xbf16, #tpu.memory_space<vmem>>, vector<1x32x128xbf16>
    %3 = vector.shape_cast %2 : vector<1x32x128xbf16> to vector<32x128xbf16>
    %cst = arith.constant dense<0.000000e+00> : vector<128x128xf32>
    %4 = tpu.matmul %1, %3, %cst {dimension_numbers = #tpu.dot_dimension_numbers<[1], [0], [0], [1], [0, 0, 1, 1], [], []>} : vector<128x32xbf16>, vector<32x128xbf16>, vector<128x128xf32> -> vector<128x128xf32>
    %c1 = arith.constant 1 : index
    %c0_5 = arith.constant 0 : index
    %c0_6 = arith.constant 0 : index
    %5 = vector.load %arg2[%c1, %c0_5, %c0_6] : memref<18x128x32xbf16, #tpu.memory_space<vmem>>, vector<1x128x32xbf16>
    %6 = vector.shape_cast %5 : vector<1x128x32xbf16> to vector<128x32xbf16>
    %c0_7 = arith.constant 0 : index
    %c0_8 = arith.constant 0 : index
    %c1_9 = arith.constant 1 : index
    %7 = vector.load %arg1[%c0_7, %c0_8, %c1_9] : memref<1x32x640xbf16, #tpu.memory_space<vmem>>, vector<1x32x128xbf16>
    %8 = vector.shape_cast %7 : vector<1x32x128xbf16> to vector<32x128xbf16>
    %cst_10 = arith.constant dense<0.000000e+00> : vector<128x128xf32>
    %9 = tpu.matmul %6, %8, %cst_10 {dimension_numbers = #tpu.dot_dimension_numbers<[1], [0], [0], [1], [0, 0, 1, 1], [], []>} : vector<128x32xbf16>, vector<32x128xbf16>, vector<128x128xf32> -> vector<128x128xf32>
    %10 = arith.addf %4, %9 : vector<128x128xf32>
    %c2 = arith.constant 2 : index
    %c0_11 = arith.constant 0 : index
    %c0_12 = arith.constant 0 : index
    %11 = vector.load %arg2[%c2, %c0_11, %c0_12] : memref<18x128x32xbf16, #tpu.memory_space<vmem>>, vector<1x128x32xbf16>
    %12 = vector.shape_cast %11 : vector<1x128x32xbf16> to vector<128x32xbf16>
    %c0_13 = arith.constant 0 : index
    %c0_14 = arith.constant 0 : index
    %c5 = arith.constant 5 : index
    %13 = vector.load %arg1[%c0_13, %c0_14, %c5] : memref<1x32x640xbf16, #tpu.memory_space<vmem>>, vector<1x32x128xbf16>
    %14 = vector.shape_cast %13 : vector<1x32x128xbf16> to vector<32x128xbf16>
    %cst_15 = arith.constant dense<0.000000e+00> : vector<128x128xf32>
    %15 = tpu.matmul %12, %14, %cst_15 {dimension_numbers = #tpu.dot_dimension_numbers<[1], [0], [0], [1], [0, 0, 1, 1], [], []>} : vector<128x32xbf16>, vector<32x128xbf16>, vector<128x128xf32> -> vector<128x128xf32>
    %16 = arith.addf %10, %15 : vector<128x128xf32>
    %c3 = arith.constant 3 : index
    %c0_16 = arith.constant 0 : index
    %c0_17 = arith.constant 0 : index
    %17 = vector.load %arg2[%c3, %c0_16, %c0_17] : memref<18x128x32xbf16, #tpu.memory_space<vmem>>, vector<1x128x32xbf16>
    %18 = vector.shape_cast %17 : vector<1x128x32xbf16> to vector<128x32xbf16>
    %c0_18 = arith.constant 0 : index
    %c0_19 = arith.constant 0 : index
    %c6 = arith.constant 6 : index
    %19 = vector.load %arg1[%c0_18, %c0_19, %c6] : memref<1x32x640xbf16, #tpu.memory_space<vmem>>, vector<1x32x128xbf16>
    %20 = vector.shape_cast %19 : vector<1x32x128xbf16> to vector<32x128xbf16>
    %cst_20 = arith.constant dense<0.000000e+00> : vector<128x128xf32>
    %21 = tpu.matmul %18, %20, %cst_20 {dimension_numbers = #tpu.dot_dimension_numbers<[1], [0], [0], [1], [0, 0, 1, 1], [], []>} : vector<128x32xbf16>, vector<32x128xbf16>, vector<128x128xf32> -> vector<128x128xf32>
    %22 = arith.addf %16, %21 : vector<128x128xf32>
    %c4 = arith.constant 4 : index
    %c0_21 = arith.constant 0 : index
    %c0_22 = arith.constant 0 : index
    %23 = vector.load %arg2[%c4, %c0_21, %c0_22] : memref<18x128x32xbf16, #tpu.memory_space<vmem>>, vector<1x128x32xbf16>
    %24 = vector.shape_cast %23 : vector<1x128x32xbf16> to vector<128x32xbf16>
    %c0_23 = arith.constant 0 : index
    %c0_24 = arith.constant 0 : index
    %c10 = arith.constant 10 : index
    %25 = vector.load %arg1[%c0_23, %c0_24, %c10] : memref<1x32x640xbf16, #tpu.memory_space<vmem>>, vector<1x32x128xbf16>
    %26 = vector.shape_cast %25 : vector<1x32x128xbf16> to vector<32x128xbf16>
    %cst_25 = arith.constant dense<0.000000e+00> : vector<128x128xf32>
    %27 = tpu.matmul %24, %26, %cst_25 {dimension_numbers = #tpu.dot_dimension_numbers<[1], [0], [0], [1], [0, 0, 1, 1], [], []>} : vector<128x32xbf16>, vector<32x128xbf16>, vector<128x128xf32> -> vector<128x128xf32>
    %28 = arith.addf %22, %27 : vector<128x128xf32>
    %c5_26 = arith.constant 5 : index
    %c0_27 = arith.constant 0 : index
    %c0_28 = arith.constant 0 : index
    %29 = vector.load %arg2[%c5_26, %c0_27, %c0_28] : memref<18x128x32xbf16, #tpu.memory_space<vmem>>, vector<1x128x32xbf16>
    %30 = vector.shape_cast %29 : vector<1x128x32xbf16> to vector<128x32xbf16>
    %c0_29 = arith.constant 0 : index
    %c0_30 = arith.constant 0 : index
    %c11 = arith.constant 11 : index
    %31 = vector.load %arg1[%c0_29, %c0_30, %c11] : memref<1x32x640xbf16, #tpu.memory_space<vmem>>, vector<1x32x128xbf16>
    %32 = vector.shape_cast %31 : vector<1x32x128xbf16> to vector<32x128xbf16>
    %cst_31 = arith.constant dense<0.000000e+00> : vector<128x128xf32>
    %33 = tpu.matmul %30, %32, %cst_31 {dimension_numbers = #tpu.dot_dimension_numbers<[1], [0], [0], [1], [0, 0, 1, 1], [], []>} : vector<128x32xbf16>, vector<32x128xbf16>, vector<128x128xf32> -> vector<128x128xf32>
    %34 = arith.addf %28, %33 : vector<128x128xf32>
    %c6_32 = arith.constant 6 : index
    %c0_33 = arith.constant 0 : index
    %c0_34 = arith.constant 0 : index
    %35 = vector.load %arg2[%c6_32, %c0_33, %c0_34] : memref<18x128x32xbf16, #tpu.memory_space<vmem>>, vector<1x128x32xbf16>
    %36 = vector.shape_cast %35 : vector<1x128x32xbf16> to vector<128x32xbf16>
    %c0_35 = arith.constant 0 : index
    %c0_36 = arith.constant 0 : index
    %c50 = arith.constant 50 : index
    %37 = vector.load %arg1[%c0_35, %c0_36, %c50] : memref<1x32x640xbf16, #tpu.memory_space<vmem>>, vector<1x32x128xbf16>
    %38 = vector.shape_cast %37 : vector<1x32x128xbf16> to vector<32x128xbf16>
    %cst_37 = arith.constant dense<0.000000e+00> : vector<128x128xf32>
    %39 = tpu.matmul %36, %38, %cst_37 {dimension_numbers = #tpu.dot_dimension_numbers<[1], [0], [0], [1], [0, 0, 1, 1], [], []>} : vector<128x32xbf16>, vector<32x128xbf16>, vector<128x128xf32> -> vector<128x128xf32>
    %40 = arith.addf %34, %39 : vector<128x128xf32>
    %c7 = arith.constant 7 : index
    %c0_38 = arith.constant 0 : index
    %c0_39 = arith.constant 0 : index
    %41 = vector.load %arg2[%c7, %c0_38, %c0_39] : memref<18x128x32xbf16, #tpu.memory_space<vmem>>, vector<1x128x32xbf16>
    %42 = vector.shape_cast %41 : vector<1x128x32xbf16> to vector<128x32xbf16>
    %c0_40 = arith.constant 0 : index
    %c0_41 = arith.constant 0 : index
    %c51 = arith.constant 51 : index
    %43 = vector.load %arg1[%c0_40, %c0_41, %c51] : memref<1x32x640xbf16, #tpu.memory_space<vmem>>, vector<1x32x128xbf16>
    %44 = vector.shape_cast %43 : vector<1x32x128xbf16> to vector<32x128xbf16>
    %cst_42 = arith.constant dense<0.000000e+00> : vector<128x128xf32>
    %45 = tpu.matmul %42, %44, %cst_42 {dimension_numbers = #tpu.dot_dimension_numbers<[1], [0], [0], [1], [0, 0, 1, 1], [], []>} : vector<128x32xbf16>, vector<32x128xbf16>, vector<128x128xf32> -> vector<128x128xf32>
    %46 = arith.addf %40, %45 : vector<128x128xf32>
    %c8 = arith.constant 8 : index
    %c0_43 = arith.constant 0 : index
    %c0_44 = arith.constant 0 : index
    %47 = vector.load %arg2[%c8, %c0_43, %c0_44] : memref<18x128x32xbf16, #tpu.memory_space<vmem>>, vector<1x128x32xbf16>
    %48 = vector.shape_cast %47 : vector<1x128x32xbf16> to vector<128x32xbf16>
    %c0_45 = arith.constant 0 : index
    %c0_46 = arith.constant 0 : index
    %c55 = arith.constant 55 : index
    %49 = vector.load %arg1[%c0_45, %c0_46, %c55] : memref<1x32x640xbf16, #tpu.memory_space<vmem>>, vector<1x32x128xbf16>
    %50 = vector.shape_cast %49 : vector<1x32x128xbf16> to vector<32x128xbf16>
    %cst_47 = arith.constant dense<0.000000e+00> : vector<128x128xf32>
    %51 = tpu.matmul %48, %50, %cst_47 {dimension_numbers = #tpu.dot_dimension_numbers<[1], [0], [0], [1], [0, 0, 1, 1], [], []>} : vector<128x32xbf16>, vector<32x128xbf16>, vector<128x128xf32> -> vector<128x128xf32>
    %52 = arith.addf %46, %51 : vector<128x128xf32>
    %c9 = arith.constant 9 : index
    %c0_48 = arith.constant 0 : index
    %c0_49 = arith.constant 0 : index
    %53 = vector.load %arg2[%c9, %c0_48, %c0_49] : memref<18x128x32xbf16, #tpu.memory_space<vmem>>, vector<1x128x32xbf16>
    %54 = vector.shape_cast %53 : vector<1x128x32xbf16> to vector<128x32xbf16>
    %c0_50 = arith.constant 0 : index
    %c0_51 = arith.constant 0 : index
    %c56 = arith.constant 56 : index
    %55 = vector.load %arg1[%c0_50, %c0_51, %c56] : memref<1x32x640xbf16, #tpu.memory_space<vmem>>, vector<1x32x128xbf16>
    %56 = vector.shape_cast %55 : vector<1x32x128xbf16> to vector<32x128xbf16>
    %cst_52 = arith.constant dense<0.000000e+00> : vector<128x128xf32>
    %57 = tpu.matmul %54, %56, %cst_52 {dimension_numbers = #tpu.dot_dimension_numbers<[1], [0], [0], [1], [0, 0, 1, 1], [], []>} : vector<128x32xbf16>, vector<32x128xbf16>, vector<128x128xf32> -> vector<128x128xf32>
    %58 = arith.addf %52, %57 : vector<128x128xf32>
    %c10_53 = arith.constant 10 : index
    %c0_54 = arith.constant 0 : index
    %c0_55 = arith.constant 0 : index
    %59 = vector.load %arg2[%c10_53, %c0_54, %c0_55] : memref<18x128x32xbf16, #tpu.memory_space<vmem>>, vector<1x128x32xbf16>
    %60 = vector.shape_cast %59 : vector<1x128x32xbf16> to vector<128x32xbf16>
    %c0_56 = arith.constant 0 : index
    %c0_57 = arith.constant 0 : index
    %c60 = arith.constant 60 : index
    %61 = vector.load %arg1[%c0_56, %c0_57, %c60] : memref<1x32x640xbf16, #tpu.memory_space<vmem>>, vector<1x32x128xbf16>
    %62 = vector.shape_cast %61 : vector<1x32x128xbf16> to vector<32x128xbf16>
    %cst_58 = arith.constant dense<0.000000e+00> : vector<128x128xf32>
    %63 = tpu.matmul %60, %62, %cst_58 {dimension_numbers = #tpu.dot_dimension_numbers<[1], [0], [0], [1], [0, 0, 1, 1], [], []>} : vector<128x32xbf16>, vector<32x128xbf16>, vector<128x128xf32> -> vector<128x128xf32>
    %64 = arith.addf %58, %63 : vector<128x128xf32>
    %c11_59 = arith.constant 11 : index
    %c0_60 = arith.constant 0 : index
    %c0_61 = arith.constant 0 : index
    %65 = vector.load %arg2[%c11_59, %c0_60, %c0_61] : memref<18x128x32xbf16, #tpu.memory_space<vmem>>, vector<1x128x32xbf16>
    %66 = vector.shape_cast %65 : vector<1x128x32xbf16> to vector<128x32xbf16>
    %c0_62 = arith.constant 0 : index
    %c0_63 = arith.constant 0 : index
    %c61 = arith.constant 61 : index
    %67 = vector.load %arg1[%c0_62, %c0_63, %c61] : memref<1x32x640xbf16, #tpu.memory_space<vmem>>, vector<1x32x128xbf16>
    %68 = vector.shape_cast %67 : vector<1x32x128xbf16> to vector<32x128xbf16>
    %cst_64 = arith.constant dense<0.000000e+00> : vector<128x128xf32>
    %69 = tpu.matmul %66, %68, %cst_64 {dimension_numbers = #tpu.dot_dimension_numbers<[1], [0], [0], [1], [0, 0, 1, 1], [], []>} : vector<128x32xbf16>, vector<32x128xbf16>, vector<128x128xf32> -> vector<128x128xf32>
    %70 = arith.addf %64, %69 : vector<128x128xf32>
    %c12 = arith.constant 12 : index
    %c0_65 = arith.constant 0 : index
    %c0_66 = arith.constant 0 : index
    %71 = vector.load %arg2[%c12, %c0_65, %c0_66] : memref<18x128x32xbf16, #tpu.memory_space<vmem>>, vector<1x128x32xbf16>
    %72 = vector.shape_cast %71 : vector<1x128x32xbf16> to vector<128x32xbf16>
    %c0_67 = arith.constant 0 : index
    %c0_68 = arith.constant 0 : index
    %c100 = arith.constant 100 : index
    %73 = vector.load %arg1[%c0_67, %c0_68, %c100] : memref<1x32x640xbf16, #tpu.memory_space<vmem>>, vector<1x32x128xbf16>
    %74 = vector.shape_cast %73 : vector<1x32x128xbf16> to vector<32x128xbf16>
    %cst_69 = arith.constant dense<0.000000e+00> : vector<128x128xf32>
    %75 = tpu.matmul %72, %74, %cst_69 {dimension_numbers = #tpu.dot_dimension_numbers<[1], [0], [0], [1], [0, 0, 1, 1], [], []>} : vector<128x32xbf16>, vector<32x128xbf16>, vector<128x128xf32> -> vector<128x128xf32>
    %76 = arith.addf %70, %75 : vector<128x128xf32>
    %c13 = arith.constant 13 : index
    %c0_70 = arith.constant 0 : index
    %c0_71 = arith.constant 0 : index
    %77 = vector.load %arg2[%c13, %c0_70, %c0_71] : memref<18x128x32xbf16, #tpu.memory_space<vmem>>, vector<1x128x32xbf16>
    %78 = vector.shape_cast %77 : vector<1x128x32xbf16> to vector<128x32xbf16>
    %c0_72 = arith.constant 0 : index
    %c0_73 = arith.constant 0 : index
    %c101 = arith.constant 101 : index
    %79 = vector.load %arg1[%c0_72, %c0_73, %c101] : memref<1x32x640xbf16, #tpu.memory_space<vmem>>, vector<1x32x128xbf16>
    %80 = vector.shape_cast %79 : vector<1x32x128xbf16> to vector<32x128xbf16>
    %cst_74 = arith.constant dense<0.000000e+00> : vector<128x128xf32>
    %81 = tpu.matmul %78, %80, %cst_74 {dimension_numbers = #tpu.dot_dimension_numbers<[1], [0], [0], [1], [0, 0, 1, 1], [], []>} : vector<128x32xbf16>, vector<32x128xbf16>, vector<128x128xf32> -> vector<128x128xf32>
    %82 = arith.addf %76, %81 : vector<128x128xf32>
    %c14 = arith.constant 14 : index
    %c0_75 = arith.constant 0 : index
    %c0_76 = arith.constant 0 : index
    %83 = vector.load %arg2[%c14, %c0_75, %c0_76] : memref<18x128x32xbf16, #tpu.memory_space<vmem>>, vector<1x128x32xbf16>
    %84 = vector.shape_cast %83 : vector<1x128x32xbf16> to vector<128x32xbf16>
    %c0_77 = arith.constant 0 : index
    %c0_78 = arith.constant 0 : index
    %c105 = arith.constant 105 : index
    %85 = vector.load %arg1[%c0_77, %c0_78, %c105] : memref<1x32x640xbf16, #tpu.memory_space<vmem>>, vector<1x32x128xbf16>
    %86 = vector.shape_cast %85 : vector<1x32x128xbf16> to vector<32x128xbf16>
    %cst_79 = arith.constant dense<0.000000e+00> : vector<128x128xf32>
    %87 = tpu.matmul %84, %86, %cst_79 {dimension_numbers = #tpu.dot_dimension_numbers<[1], [0], [0], [1], [0, 0, 1, 1], [], []>} : vector<128x32xbf16>, vector<32x128xbf16>, vector<128x128xf32> -> vector<128x128xf32>
    %88 = arith.addf %82, %87 : vector<128x128xf32>
    %c15 = arith.constant 15 : index
    %c0_80 = arith.constant 0 : index
    %c0_81 = arith.constant 0 : index
    %89 = vector.load %arg2[%c15, %c0_80, %c0_81] : memref<18x128x32xbf16, #tpu.memory_space<vmem>>, vector<1x128x32xbf16>
    %90 = vector.shape_cast %89 : vector<1x128x32xbf16> to vector<128x32xbf16>
    %c0_82 = arith.constant 0 : index
    %c0_83 = arith.constant 0 : index
    %c106 = arith.constant 106 : index
    %91 = vector.load %arg1[%c0_82, %c0_83, %c106] : memref<1x32x640xbf16, #tpu.memory_space<vmem>>, vector<1x32x128xbf16>
    %92 = vector.shape_cast %91 : vector<1x32x128xbf16> to vector<32x128xbf16>
    %cst_84 = arith.constant dense<0.000000e+00> : vector<128x128xf32>
    %93 = tpu.matmul %90, %92, %cst_84 {dimension_numbers = #tpu.dot_dimension_numbers<[1], [0], [0], [1], [0, 0, 1, 1], [], []>} : vector<128x32xbf16>, vector<32x128xbf16>, vector<128x128xf32> -> vector<128x128xf32>
    %94 = arith.addf %88, %93 : vector<128x128xf32>
    %c16 = arith.constant 16 : index
    %c0_85 = arith.constant 0 : index
    %c0_86 = arith.constant 0 : index
    %95 = vector.load %arg2[%c16, %c0_85, %c0_86] : memref<18x128x32xbf16, #tpu.memory_space<vmem>>, vector<1x128x32xbf16>
    %96 = vector.shape_cast %95 : vector<1x128x32xbf16> to vector<128x32xbf16>
    %c0_87 = arith.constant 0 : index
    %c0_88 = arith.constant 0 : index
    %c110 = arith.constant 110 : index
    %97 = vector.load %arg1[%c0_87, %c0_88, %c110] : memref<1x32x640xbf16, #tpu.memory_space<vmem>>, vector<1x32x128xbf16>
    %98 = vector.shape_cast %97 : vector<1x32x128xbf16> to vector<32x128xbf16>
    %cst_89 = arith.constant dense<0.000000e+00> : vector<128x128xf32>
    %99 = tpu.matmul %96, %98, %cst_89 {dimension_numbers = #tpu.dot_dimension_numbers<[1], [0], [0], [1], [0, 0, 1, 1], [], []>} : vector<128x32xbf16>, vector<32x128xbf16>, vector<128x128xf32> -> vector<128x128xf32>
    %100 = arith.addf %94, %99 : vector<128x128xf32>
    %c17 = arith.constant 17 : index
    %c0_90 = arith.constant 0 : index
    %c0_91 = arith.constant 0 : index
    %101 = vector.load %arg2[%c17, %c0_90, %c0_91] : memref<18x128x32xbf16, #tpu.memory_space<vmem>>, vector<1x128x32xbf16>
    %102 = vector.shape_cast %101 : vector<1x128x32xbf16> to vector<128x32xbf16>
    %c0_92 = arith.constant 0 : index
    %c0_93 = arith.constant 0 : index
    %c111 = arith.constant 111 : index
    %103 = vector.load %arg1[%c0_92, %c0_93, %c111] : memref<1x32x640xbf16, #tpu.memory_space<vmem>>, vector<1x32x128xbf16>
    %104 = vector.shape_cast %103 : vector<1x32x128xbf16> to vector<32x128xbf16>
    %cst_94 = arith.constant dense<0.000000e+00> : vector<128x128xf32>
    %105 = tpu.matmul %102, %104, %cst_94 {dimension_numbers = #tpu.dot_dimension_numbers<[1], [0], [0], [1], [0, 0, 1, 1], [], []>} : vector<128x32xbf16>, vector<32x128xbf16>, vector<128x128xf32> -> vector<128x128xf32>
    %106 = arith.addf %100, %105 : vector<128x128xf32>
    %c0_95 = arith.constant 0 : index
    %c0_96 = arith.constant 0 : index
    %107 = vector.load %arg3[%c0_95, %c0_96] : memref<128x1xf32, #tpu.memory_space<vmem>>, vector<128x1xf32>
    %108 = vector.broadcast %107 : vector<128x1xf32> to vector<128x128xf32>
    %109 = arith.mulf %106, %108 : vector<128x128xf32>
    %c0_97 = arith.constant 0 : index
    %c0_98 = arith.constant 0 : index
    %110 = vector.load %arg4[%c0_97, %c0_98] : memref<128x1xf32, #tpu.memory_space<vmem>>, vector<128x1xf32>
    %111 = vector.broadcast %110 : vector<128x1xf32> to vector<128x128xf32>
    %112 = arith.addf %109, %111 : vector<128x128xf32>
    %cst_99 = arith.constant 0.000000e+00 : f32
    %113 = vector.broadcast %cst_99 : f32 to vector<128x128xf32>
    %114 = arith.maximumf %112, %113 : vector<128x128xf32>
    %115 = arith.truncf %114 : vector<128x128xf32> to vector<128x128xbf16>
    %c0_100 = arith.constant 0 : index
    %c0_101 = arith.constant 0 : index
    %116 = vector.load %arg8[%c0_100, %c0_101] : memref<128x512xbf16, #tpu.memory_space<vmem>>, vector<128x128xbf16>
    tpu.vector_store %arg8[%c0_100, %c0_101], %115 {strides = array<i32>} : memref<128x512xbf16, #tpu.memory_space<vmem>>, vector<128x128xbf16>,
    %c0_102 = arith.constant 0 : index
    %c0_103 = arith.constant 0 : index
    %c0_104 = arith.constant 0 : index
    %117 = vector.load %arg2[%c0_102, %c0_103, %c0_104] : memref<18x128x32xbf16, #tpu.memory_space<vmem>>, vector<1x128x32xbf16>
    %118 = vector.shape_cast %117 : vector<1x128x32xbf16> to vector<128x32xbf16>
    %c0_105 = arith.constant 0 : index
    %c0_106 = arith.constant 0 : index
    %c128 = arith.constant 128 : index
    %119 = vector.load %arg1[%c0_105, %c0_106, %c128] : memref<1x32x640xbf16, #tpu.memory_space<vmem>>, vector<1x32x128xbf16>
    %120 = vector.shape_cast %119 : vector<1x32x128xbf16> to vector<32x128xbf16>
    %cst_107 = arith.constant dense<0.000000e+00> : vector<128x128xf32>
    %121 = tpu.matmul %118, %120, %cst_107 {dimension_numbers = #tpu.dot_dimension_numbers<[1], [0], [0], [1], [0, 0, 1, 1], [], []>} : vector<128x32xbf16>, vector<32x128xbf16>, vector<128x128xf32> -> vector<128x128xf32>
    %c1_108 = arith.constant 1 : index
    %c0_109 = arith.constant 0 : index
    %c0_110 = arith.constant 0 : index
    %122 = vector.load %arg2[%c1_108, %c0_109, %c0_110] : memref<18x128x32xbf16, #tpu.memory_space<vmem>>, vector<1x128x32xbf16>
    %123 = vector.shape_cast %122 : vector<1x128x32xbf16> to vector<128x32xbf16>
    %c0_111 = arith.constant 0 : index
    %c0_112 = arith.constant 0 : index
    %c129 = arith.constant 129 : index
    %124 = vector.load %arg1[%c0_111, %c0_112, %c129] : memref<1x32x640xbf16, #tpu.memory_space<vmem>>, vector<1x32x128xbf16>
    %125 = vector.shape_cast %124 : vector<1x32x128xbf16> to vector<32x128xbf16>
    %cst_113 = arith.constant dense<0.000000e+00> : vector<128x128xf32>
    %126 = tpu.matmul %123, %125, %cst_113 {dimension_numbers = #tpu.dot_dimension_numbers<[1], [0], [0], [1], [0, 0, 1, 1], [], []>} : vector<128x32xbf16>, vector<32x128xbf16>, vector<128x128xf32> -> vector<128x128xf32>
    %127 = arith.addf %121, %126 : vector<128x128xf32>
    %c2_114 = arith.constant 2 : index
    %c0_115 = arith.constant 0 : index
    %c0_116 = arith.constant 0 : index
    %128 = vector.load %arg2[%c2_114, %c0_115, %c0_116] : memref<18x128x32xbf16, #tpu.memory_space<vmem>>, vector<1x128x32xbf16>
    %129 = vector.shape_cast %128 : vector<1x128x32xbf16> to vector<128x32xbf16>
    %c0_117 = arith.constant 0 : index
    %c0_118 = arith.constant 0 : index
    %c133 = arith.constant 133 : index
    %130 = vector.load %arg1[%c0_117, %c0_118, %c133] : memref<1x32x640xbf16, #tpu.memory_space<vmem>>, vector<1x32x128xbf16>
    %131 = vector.shape_cast %130 : vector<1x32x128xbf16> to vector<32x128xbf16>
    %cst_119 = arith.constant dense<0.000000e+00> : vector<128x128xf32>
    %132 = tpu.matmul %129, %131, %cst_119 {dimension_numbers = #tpu.dot_dimension_numbers<[1], [0], [0], [1], [0, 0, 1, 1], [], []>} : vector<128x32xbf16>, vector<32x128xbf16>, vector<128x128xf32> -> vector<128x128xf32>
    %133 = arith.addf %127, %132 : vector<128x128xf32>
    %c3_120 = arith.constant 3 : index
    %c0_121 = arith.constant 0 : index
    %c0_122 = arith.constant 0 : index
    %134 = vector.load %arg2[%c3_120, %c0_121, %c0_122] : memref<18x128x32xbf16, #tpu.memory_space<vmem>>, vector<1x128x32xbf16>
    %135 = vector.shape_cast %134 : vector<1x128x32xbf16> to vector<128x32xbf16>
    %c0_123 = arith.constant 0 : index
    %c0_124 = arith.constant 0 : index
    %c134 = arith.constant 134 : index
    %136 = vector.load %arg1[%c0_123, %c0_124, %c134] : memref<1x32x640xbf16, #tpu.memory_space<vmem>>, vector<1x32x128xbf16>
    %137 = vector.shape_cast %136 : vector<1x32x128xbf16> to vector<32x128xbf16>
    %cst_125 = arith.constant dense<0.000000e+00> : vector<128x128xf32>
    %138 = tpu.matmul %135, %137, %cst_125 {dimension_numbers = #tpu.dot_dimension_numbers<[1], [0], [0], [1], [0, 0, 1, 1], [], []>} : vector<128x32xbf16>, vector<32x128xbf16>, vector<128x128xf32> -> vector<128x128xf32>
    %139 = arith.addf %133, %138 : vector<128x128xf32>
    %c4_126 = arith.constant 4 : index
    %c0_127 = arith.constant 0 : index
    %c0_128 = arith.constant 0 : index
    %140 = vector.load %arg2[%c4_126, %c0_127, %c0_128] : memref<18x128x32xbf16, #tpu.memory_space<vmem>>, vector<1x128x32xbf16>
    %141 = vector.shape_cast %140 : vector<1x128x32xbf16> to vector<128x32xbf16>
    %c0_129 = arith.constant 0 : index
    %c0_130 = arith.constant 0 : index
    %c138 = arith.constant 138 : index
    %142 = vector.load %arg1[%c0_129, %c0_130, %c138] : memref<1x32x640xbf16, #tpu.memory_space<vmem>>, vector<1x32x128xbf16>
    %143 = vector.shape_cast %142 : vector<1x32x128xbf16> to vector<32x128xbf16>
    %cst_131 = arith.constant dense<0.000000e+00> : vector<128x128xf32>
    %144 = tpu.matmul %141, %143, %cst_131 {dimension_numbers = #tpu.dot_dimension_numbers<[1], [0], [0], [1], [0, 0, 1, 1], [], []>} : vector<128x32xbf16>, vector<32x128xbf16>, vector<128x128xf32> -> vector<128x128xf32>
    %145 = arith.addf %139, %144 : vector<128x128xf32>
    %c5_132 = arith.constant 5 : index
    %c0_133 = arith.constant 0 : index
    %c0_134 = arith.constant 0 : index
    %146 = vector.load %arg2[%c5_132, %c0_133, %c0_134] : memref<18x128x32xbf16, #tpu.memory_space<vmem>>, vector<1x128x32xbf16>
    %147 = vector.shape_cast %146 : vector<1x128x32xbf16> to vector<128x32xbf16>
    %c0_135 = arith.constant 0 : index
    %c0_136 = arith.constant 0 : index
    %c139 = arith.constant 139 : index
    %148 = vector.load %arg1[%c0_135, %c0_136, %c139] : memref<1x32x640xbf16, #tpu.memory_space<vmem>>, vector<1x32x128xbf16>
    %149 = vector.shape_cast %148 : vector<1x32x128xbf16> to vector<32x128xbf16>
    %cst_137 = arith.constant dense<0.000000e+00> : vector<128x128xf32>
    %150 = tpu.matmul %147, %149, %cst_137 {dimension_numbers = #tpu.dot_dimension_numbers<[1], [0], [0], [1], [0, 0, 1, 1], [], []>} : vector<128x32xbf16>, vector<32x128xbf16>, vector<128x128xf32> -> vector<128x128xf32>
    %151 = arith.addf %145, %150 : vector<128x128xf32>
    %c6_138 = arith.constant 6 : index
    %c0_139 = arith.constant 0 : index
    %c0_140 = arith.constant 0 : index
    %152 = vector.load %arg2[%c6_138, %c0_139, %c0_140] : memref<18x128x32xbf16, #tpu.memory_space<vmem>>, vector<1x128x32xbf16>
    %153 = vector.shape_cast %152 : vector<1x128x32xbf16> to vector<128x32xbf16>
    %c0_141 = arith.constant 0 : index
    %c0_142 = arith.constant 0 : index
    %c178 = arith.constant 178 : index
    %154 = vector.load %arg1[%c0_141, %c0_142, %c178] : memref<1x32x640xbf16, #tpu.memory_space<vmem>>, vector<1x32x128xbf16>
    %155 = vector.shape_cast %154 : vector<1x32x128xbf16> to vector<32x128xbf16>
    %cst_143 = arith.constant dense<0.000000e+00> : vector<128x128xf32>
    %156 = tpu.matmul %153, %155, %cst_143 {dimension_numbers = #tpu.dot_dimension_numbers<[1], [0], [0], [1], [0, 0, 1, 1], [], []>} : vector<128x32xbf16>, vector<32x128xbf16>, vector<128x128xf32> -> vector<128x128xf32>
    %157 = arith.addf %151, %156 : vector<128x128xf32>
    %c7_144 = arith.constant 7 : index
    %c0_145 = arith.constant 0 : index
    %c0_146 = arith.constant 0 : index
    %158 = vector.load %arg2[%c7_144, %c0_145, %c0_146] : memref<18x128x32xbf16, #tpu.memory_space<vmem>>, vector<1x128x32xbf16>
    %159 = vector.shape_cast %158 : vector<1x128x32xbf16> to vector<128x32xbf16>
    %c0_147 = arith.constant 0 : index
    %c0_148 = arith.constant 0 : index
    %c179 = arith.constant 179 : index
    %160 = vector.load %arg1[%c0_147, %c0_148, %c179] : memref<1x32x640xbf16, #tpu.memory_space<vmem>>, vector<1x32x128xbf16>
    %161 = vector.shape_cast %160 : vector<1x32x128xbf16> to vector<32x128xbf16>
    %cst_149 = arith.constant dense<0.000000e+00> : vector<128x128xf32>
    %162 = tpu.matmul %159, %161, %cst_149 {dimension_numbers = #tpu.dot_dimension_numbers<[1], [0], [0], [1], [0, 0, 1, 1], [], []>} : vector<128x32xbf16>, vector<32x128xbf16>, vector<128x128xf32> -> vector<128x128xf32>
    %163 = arith.addf %157, %162 : vector<128x128xf32>
    %c8_150 = arith.constant 8 : index
    %c0_151 = arith.constant 0 : index
    %c0_152 = arith.constant 0 : index
    %164 = vector.load %arg2[%c8_150, %c0_151, %c0_152] : memref<18x128x32xbf16, #tpu.memory_space<vmem>>, vector<1x128x32xbf16>
    %165 = vector.shape_cast %164 : vector<1x128x32xbf16> to vector<128x32xbf16>
    %c0_153 = arith.constant 0 : index
    %c0_154 = arith.constant 0 : index
    %c183 = arith.constant 183 : index
    %166 = vector.load %arg1[%c0_153, %c0_154, %c183] : memref<1x32x640xbf16, #tpu.memory_space<vmem>>, vector<1x32x128xbf16>
    %167 = vector.shape_cast %166 : vector<1x32x128xbf16> to vector<32x128xbf16>
    %cst_155 = arith.constant dense<0.000000e+00> : vector<128x128xf32>
    %168 = tpu.matmul %165, %167, %cst_155 {dimension_numbers = #tpu.dot_dimension_numbers<[1], [0], [0], [1], [0, 0, 1, 1], [], []>} : vector<128x32xbf16>, vector<32x128xbf16>, vector<128x128xf32> -> vector<128x128xf32>
    %169 = arith.addf %163, %168 : vector<128x128xf32>
    %c9_156 = arith.constant 9 : index
    %c0_157 = arith.constant 0 : index
    %c0_158 = arith.constant 0 : index
    %170 = vector.load %arg2[%c9_156, %c0_157, %c0_158] : memref<18x128x32xbf16, #tpu.memory_space<vmem>>, vector<1x128x32xbf16>
    %171 = vector.shape_cast %170 : vector<1x128x32xbf16> to vector<128x32xbf16>
    %c0_159 = arith.constant 0 : index
    %c0_160 = arith.constant 0 : index
    %c184 = arith.constant 184 : index
    %172 = vector.load %arg1[%c0_159, %c0_160, %c184] : memref<1x32x640xbf16, #tpu.memory_space<vmem>>, vector<1x32x128xbf16>
    %173 = vector.shape_cast %172 : vector<1x32x128xbf16> to vector<32x128xbf16>
    %cst_161 = arith.constant dense<0.000000e+00> : vector<128x128xf32>
    %174 = tpu.matmul %171, %173, %cst_161 {dimension_numbers = #tpu.dot_dimension_numbers<[1], [0], [0], [1], [0, 0, 1, 1], [], []>} : vector<128x32xbf16>, vector<32x128xbf16>, vector<128x128xf32> -> vector<128x128xf32>
    %175 = arith.addf %169, %174 : vector<128x128xf32>
    %c10_162 = arith.constant 10 : index
    %c0_163 = arith.constant 0 : index
    %c0_164 = arith.constant 0 : index
    %176 = vector.load %arg2[%c10_162, %c0_163, %c0_164] : memref<18x128x32xbf16, #tpu.memory_space<vmem>>, vector<1x128x32xbf16>
    %177 = vector.shape_cast %176 : vector<1x128x32xbf16> to vector<128x32xbf16>
    %c0_165 = arith.constant 0 : index
    %c0_166 = arith.constant 0 : index
    %c188 = arith.constant 188 : index
    %178 = vector.load %arg1[%c0_165, %c0_166, %c188] : memref<1x32x640xbf16, #tpu.memory_space<vmem>>, vector<1x32x128xbf16>
    %179 = vector.shape_cast %178 : vector<1x32x128xbf16> to vector<32x128xbf16>
    %cst_167 = arith.constant dense<0.000000e+00> : vector<128x128xf32>
    %180 = tpu.matmul %177, %179, %cst_167 {dimension_numbers = #tpu.dot_dimension_numbers<[1], [0], [0], [1], [0, 0, 1, 1], [], []>} : vector<128x32xbf16>, vector<32x128xbf16>, vector<128x128xf32> -> vector<128x128xf32>
    %181 = arith.addf %175, %180 : vector<128x128xf32>
    %c11_168 = arith.constant 11 : index
    %c0_169 = arith.constant 0 : index
    %c0_170 = arith.constant 0 : index
    %182 = vector.load %arg2[%c11_168, %c0_169, %c0_170] : memref<18x128x32xbf16, #tpu.memory_space<vmem>>, vector<1x128x32xbf16>
    %183 = vector.shape_cast %182 : vector<1x128x32xbf16> to vector<128x32xbf16>
    %c0_171 = arith.constant 0 : index
    %c0_172 = arith.constant 0 : index
    %c189 = arith.constant 189 : index
    %184 = vector.load %arg1[%c0_171, %c0_172, %c189] : memref<1x32x640xbf16, #tpu.memory_space<vmem>>, vector<1x32x128xbf16>
    %185 = vector.shape_cast %184 : vector<1x32x128xbf16> to vector<32x128xbf16>
    %cst_173 = arith.constant dense<0.000000e+00> : vector<128x128xf32>
    %186 = tpu.matmul %183, %185, %cst_173 {dimension_numbers = #tpu.dot_dimension_numbers<[1], [0], [0], [1], [0, 0, 1, 1], [], []>} : vector<128x32xbf16>, vector<32x128xbf16>, vector<128x128xf32> -> vector<128x128xf32>
    %187 = arith.addf %181, %186 : vector<128x128xf32>
    %c12_174 = arith.constant 12 : index
    %c0_175 = arith.constant 0 : index
    %c0_176 = arith.constant 0 : index
    %188 = vector.load %arg2[%c12_174, %c0_175, %c0_176] : memref<18x128x32xbf16, #tpu.memory_space<vmem>>, vector<1x128x32xbf16>
    %189 = vector.shape_cast %188 : vector<1x128x32xbf16> to vector<128x32xbf16>
    %c0_177 = arith.constant 0 : index
    %c0_178 = arith.constant 0 : index
    %c228 = arith.constant 228 : index
    %190 = vector.load %arg1[%c0_177, %c0_178, %c228] : memref<1x32x640xbf16, #tpu.memory_space<vmem>>, vector<1x32x128xbf16>
    %191 = vector.shape_cast %190 : vector<1x32x128xbf16> to vector<32x128xbf16>
    %cst_179 = arith.constant dense<0.000000e+00> : vector<128x128xf32>
    %192 = tpu.matmul %189, %191, %cst_179 {dimension_numbers = #tpu.dot_dimension_numbers<[1], [0], [0], [1], [0, 0, 1, 1], [], []>} : vector<128x32xbf16>, vector<32x128xbf16>, vector<128x128xf32> -> vector<128x128xf32>
    %193 = arith.addf %187, %192 : vector<128x128xf32>
    %c13_180 = arith.constant 13 : index
    %c0_181 = arith.constant 0 : index
    %c0_182 = arith.constant 0 : index
    %194 = vector.load %arg2[%c13_180, %c0_181, %c0_182] : memref<18x128x32xbf16, #tpu.memory_space<vmem>>, vector<1x128x32xbf16>
    %195 = vector.shape_cast %194 : vector<1x128x32xbf16> to vector<128x32xbf16>
    %c0_183 = arith.constant 0 : index
    %c0_184 = arith.constant 0 : index
    %c229 = arith.constant 229 : index
    %196 = vector.load %arg1[%c0_183, %c0_184, %c229] : memref<1x32x640xbf16, #tpu.memory_space<vmem>>, vector<1x32x128xbf16>
    %197 = vector.shape_cast %196 : vector<1x32x128xbf16> to vector<32x128xbf16>
    %cst_185 = arith.constant dense<0.000000e+00> : vector<128x128xf32>
    %198 = tpu.matmul %195, %197, %cst_185 {dimension_numbers = #tpu.dot_dimension_numbers<[1], [0], [0], [1], [0, 0, 1, 1], [], []>} : vector<128x32xbf16>, vector<32x128xbf16>, vector<128x128xf32> -> vector<128x128xf32>
    %199 = arith.addf %193, %198 : vector<128x128xf32>
    %c14_186 = arith.constant 14 : index
    %c0_187 = arith.constant 0 : index
    %c0_188 = arith.constant 0 : index
    %200 = vector.load %arg2[%c14_186, %c0_187, %c0_188] : memref<18x128x32xbf16, #tpu.memory_space<vmem>>, vector<1x128x32xbf16>
    %201 = vector.shape_cast %200 : vector<1x128x32xbf16> to vector<128x32xbf16>
    %c0_189 = arith.constant 0 : index
    %c0_190 = arith.constant 0 : index
    %c233 = arith.constant 233 : index
    %202 = vector.load %arg1[%c0_189, %c0_190, %c233] : memref<1x32x640xbf16, #tpu.memory_space<vmem>>, vector<1x32x128xbf16>
    %203 = vector.shape_cast %202 : vector<1x32x128xbf16> to vector<32x128xbf16>
    %cst_191 = arith.constant dense<0.000000e+00> : vector<128x128xf32>
    %204 = tpu.matmul %201, %203, %cst_191 {dimension_numbers = #tpu.dot_dimension_numbers<[1], [0], [0], [1], [0, 0, 1, 1], [], []>} : vector<128x32xbf16>, vector<32x128xbf16>, vector<128x128xf32> -> vector<128x128xf32>
    %205 = arith.addf %199, %204 : vector<128x128xf32>
    %c15_192 = arith.constant 15 : index
    %c0_193 = arith.constant 0 : index
    %c0_194 = arith.constant 0 : index
    %206 = vector.load %arg2[%c15_192, %c0_193, %c0_194] : memref<18x128x32xbf16, #tpu.memory_space<vmem>>, vector<1x128x32xbf16>
    %207 = vector.shape_cast %206 : vector<1x128x32xbf16> to vector<128x32xbf16>
    %c0_195 = arith.constant 0 : index
    %c0_196 = arith.constant 0 : index
    %c234 = arith.constant 234 : index
    %208 = vector.load %arg1[%c0_195, %c0_196, %c234] : memref<1x32x640xbf16, #tpu.memory_space<vmem>>, vector<1x32x128xbf16>
    %209 = vector.shape_cast %208 : vector<1x32x128xbf16> to vector<32x128xbf16>
    %cst_197 = arith.constant dense<0.000000e+00> : vector<128x128xf32>
    %210 = tpu.matmul %207, %209, %cst_197 {dimension_numbers = #tpu.dot_dimension_numbers<[1], [0], [0], [1], [0, 0, 1, 1], [], []>} : vector<128x32xbf16>, vector<32x128xbf16>, vector<128x128xf32> -> vector<128x128xf32>
    %211 = arith.addf %205, %210 : vector<128x128xf32>
    %c16_198 = arith.constant 16 : index
    %c0_199 = arith.constant 0 : index
    %c0_200 = arith.constant 0 : index
    %212 = vector.load %arg2[%c16_198, %c0_199, %c0_200] : memref<18x128x32xbf16, #tpu.memory_space<vmem>>, vector<1x128x32xbf16>
    %213 = vector.shape_cast %212 : vector<1x128x32xbf16> to vector<128x32xbf16>
    %c0_201 = arith.constant 0 : index
    %c0_202 = arith.constant 0 : index
    %c238 = arith.constant 238 : index
    %214 = vector.load %arg1[%c0_201, %c0_202, %c238] : memref<1x32x640xbf16, #tpu.memory_space<vmem>>, vector<1x32x128xbf16>
    %215 = vector.shape_cast %214 : vector<1x32x128xbf16> to vector<32x128xbf16>
    %cst_203 = arith.constant dense<0.000000e+00> : vector<128x128xf32>
    %216 = tpu.matmul %213, %215, %cst_203 {dimension_numbers = #tpu.dot_dimension_numbers<[1], [0], [0], [1], [0, 0, 1, 1], [], []>} : vector<128x32xbf16>, vector<32x128xbf16>, vector<128x128xf32> -> vector<128x128xf32>
    %217 = arith.addf %211, %216 : vector<128x128xf32>
    %c17_204 = arith.constant 17 : index
    %c0_205 = arith.constant 0 : index
    %c0_206 = arith.constant 0 : index
    %218 = vector.load %arg2[%c17_204, %c0_205, %c0_206] : memref<18x128x32xbf16, #tpu.memory_space<vmem>>, vector<1x128x32xbf16>
    %219 = vector.shape_cast %218 : vector<1x128x32xbf16> to vector<128x32xbf16>
    %c0_207 = arith.constant 0 : index
    %c0_208 = arith.constant 0 : index
    %c239 = arith.constant 239 : index
    %220 = vector.load %arg1[%c0_207, %c0_208, %c239] : memref<1x32x640xbf16, #tpu.memory_space<vmem>>, vector<1x32x128xbf16>
    %221 = vector.shape_cast %220 : vector<1x32x128xbf16> to vector<32x128xbf16>
    %cst_209 = arith.constant dense<0.000000e+00> : vector<128x128xf32>
    %222 = tpu.matmul %219, %221, %cst_209 {dimension_numbers = #tpu.dot_dimension_numbers<[1], [0], [0], [1], [0, 0, 1, 1], [], []>} : vector<128x32xbf16>, vector<32x128xbf16>, vector<128x128xf32> -> vector<128x128xf32>
    %223 = arith.addf %217, %222 : vector<128x128xf32>
    %c0_210 = arith.constant 0 : index
    %c0_211 = arith.constant 0 : index
    %224 = vector.load %arg3[%c0_210, %c0_211] : memref<128x1xf32, #tpu.memory_space<vmem>>, vector<128x1xf32>
    %225 = vector.broadcast %224 : vector<128x1xf32> to vector<128x128xf32>
    %226 = arith.mulf %223, %225 : vector<128x128xf32>
    %c0_212 = arith.constant 0 : index
    %c0_213 = arith.constant 0 : index
    %227 = vector.load %arg4[%c0_212, %c0_213] : memref<128x1xf32, #tpu.memory_space<vmem>>, vector<128x1xf32>
    %228 = vector.broadcast %227 : vector<128x1xf32> to vector<128x128xf32>
    %229 = arith.addf %226, %228 : vector<128x128xf32>
    %cst_214 = arith.constant 0.000000e+00 : f32
    %230 = vector.broadcast %cst_214 : f32 to vector<128x128xf32>
    %231 = arith.maximumf %229, %230 : vector<128x128xf32>
    %232 = arith.truncf %231 : vector<128x128xf32> to vector<128x128xbf16>
    %c0_215 = arith.constant 0 : index
    %c128_216 = arith.constant 128 : index
    %233 = vector.load %arg8[%c0_215, %c128_216] : memref<128x512xbf16, #tpu.memory_space<vmem>>, vector<128x128xbf16>
    tpu.vector_store %arg8[%c0_215, %c128_216], %232 {strides = array<i32>} : memref<128x512xbf16, #tpu.memory_space<vmem>>, vector<128x128xbf16>,
    %c0_217 = arith.constant 0 : index
    %c0_218 = arith.constant 0 : index
    %c0_219 = arith.constant 0 : index
    %234 = vector.load %arg2[%c0_217, %c0_218, %c0_219] : memref<18x128x32xbf16, #tpu.memory_space<vmem>>, vector<1x128x32xbf16>
    %235 = vector.shape_cast %234 : vector<1x128x32xbf16> to vector<128x32xbf16>
    %c0_220 = arith.constant 0 : index
    %c0_221 = arith.constant 0 : index
    %c256 = arith.constant 256 : index
    %236 = vector.load %arg1[%c0_220, %c0_221, %c256] : memref<1x32x640xbf16, #tpu.memory_space<vmem>>, vector<1x32x128xbf16>
    %237 = vector.shape_cast %236 : vector<1x32x128xbf16> to vector<32x128xbf16>
    %cst_222 = arith.constant dense<0.000000e+00> : vector<128x128xf32>
    %238 = tpu.matmul %235, %237, %cst_222 {dimension_numbers = #tpu.dot_dimension_numbers<[1], [0], [0], [1], [0, 0, 1, 1], [], []>} : vector<128x32xbf16>, vector<32x128xbf16>, vector<128x128xf32> -> vector<128x128xf32>
    %c1_223 = arith.constant 1 : index
    %c0_224 = arith.constant 0 : index
    %c0_225 = arith.constant 0 : index
    %239 = vector.load %arg2[%c1_223, %c0_224, %c0_225] : memref<18x128x32xbf16, #tpu.memory_space<vmem>>, vector<1x128x32xbf16>
    %240 = vector.shape_cast %239 : vector<1x128x32xbf16> to vector<128x32xbf16>
    %c0_226 = arith.constant 0 : index
    %c0_227 = arith.constant 0 : index
    %c257 = arith.constant 257 : index
    %241 = vector.load %arg1[%c0_226, %c0_227, %c257] : memref<1x32x640xbf16, #tpu.memory_space<vmem>>, vector<1x32x128xbf16>
    %242 = vector.shape_cast %241 : vector<1x32x128xbf16> to vector<32x128xbf16>
    %cst_228 = arith.constant dense<0.000000e+00> : vector<128x128xf32>
    %243 = tpu.matmul %240, %242, %cst_228 {dimension_numbers = #tpu.dot_dimension_numbers<[1], [0], [0], [1], [0, 0, 1, 1], [], []>} : vector<128x32xbf16>, vector<32x128xbf16>, vector<128x128xf32> -> vector<128x128xf32>
    %244 = arith.addf %238, %243 : vector<128x128xf32>
    %c2_229 = arith.constant 2 : index
    %c0_230 = arith.constant 0 : index
    %c0_231 = arith.constant 0 : index
    %245 = vector.load %arg2[%c2_229, %c0_230, %c0_231] : memref<18x128x32xbf16, #tpu.memory_space<vmem>>, vector<1x128x32xbf16>
    %246 = vector.shape_cast %245 : vector<1x128x32xbf16> to vector<128x32xbf16>
    %c0_232 = arith.constant 0 : index
    %c0_233 = arith.constant 0 : index
    %c261 = arith.constant 261 : index
    %247 = vector.load %arg1[%c0_232, %c0_233, %c261] : memref<1x32x640xbf16, #tpu.memory_space<vmem>>, vector<1x32x128xbf16>
    %248 = vector.shape_cast %247 : vector<1x32x128xbf16> to vector<32x128xbf16>
    %cst_234 = arith.constant dense<0.000000e+00> : vector<128x128xf32>
    %249 = tpu.matmul %246, %248, %cst_234 {dimension_numbers = #tpu.dot_dimension_numbers<[1], [0], [0], [1], [0, 0, 1, 1], [], []>} : vector<128x32xbf16>, vector<32x128xbf16>, vector<128x128xf32> -> vector<128x128xf32>
    %250 = arith.addf %244, %249 : vector<128x128xf32>
    %c3_235 = arith.constant 3 : index
    %c0_236 = arith.constant 0 : index
    %c0_237 = arith.constant 0 : index
    %251 = vector.load %arg2[%c3_235, %c0_236, %c0_237] : memref<18x128x32xbf16, #tpu.memory_space<vmem>>, vector<1x128x32xbf16>
    %252 = vector.shape_cast %251 : vector<1x128x32xbf16> to vector<128x32xbf16>
    %c0_238 = arith.constant 0 : index
    %c0_239 = arith.constant 0 : index
    %c262 = arith.constant 262 : index
    %253 = vector.load %arg1[%c0_238, %c0_239, %c262] : memref<1x32x640xbf16, #tpu.memory_space<vmem>>, vector<1x32x128xbf16>
    %254 = vector.shape_cast %253 : vector<1x32x128xbf16> to vector<32x128xbf16>
    %cst_240 = arith.constant dense<0.000000e+00> : vector<128x128xf32>
    %255 = tpu.matmul %252, %254, %cst_240 {dimension_numbers = #tpu.dot_dimension_numbers<[1], [0], [0], [1], [0, 0, 1, 1], [], []>} : vector<128x32xbf16>, vector<32x128xbf16>, vector<128x128xf32> -> vector<128x128xf32>
    %256 = arith.addf %250, %255 : vector<128x128xf32>
    %c4_241 = arith.constant 4 : index
    %c0_242 = arith.constant 0 : index
    %c0_243 = arith.constant 0 : index
    %257 = vector.load %arg2[%c4_241, %c0_242, %c0_243] : memref<18x128x32xbf16, #tpu.memory_space<vmem>>, vector<1x128x32xbf16>
    %258 = vector.shape_cast %257 : vector<1x128x32xbf16> to vector<128x32xbf16>
    %c0_244 = arith.constant 0 : index
    %c0_245 = arith.constant 0 : index
    %c266 = arith.constant 266 : index
    %259 = vector.load %arg1[%c0_244, %c0_245, %c266] : memref<1x32x640xbf16, #tpu.memory_space<vmem>>, vector<1x32x128xbf16>
    %260 = vector.shape_cast %259 : vector<1x32x128xbf16> to vector<32x128xbf16>
    %cst_246 = arith.constant dense<0.000000e+00> : vector<128x128xf32>
    %261 = tpu.matmul %258, %260, %cst_246 {dimension_numbers = #tpu.dot_dimension_numbers<[1], [0], [0], [1], [0, 0, 1, 1], [], []>} : vector<128x32xbf16>, vector<32x128xbf16>, vector<128x128xf32> -> vector<128x128xf32>
    %262 = arith.addf %256, %261 : vector<128x128xf32>
    %c5_247 = arith.constant 5 : index
    %c0_248 = arith.constant 0 : index
    %c0_249 = arith.constant 0 : index
    %263 = vector.load %arg2[%c5_247, %c0_248, %c0_249] : memref<18x128x32xbf16, #tpu.memory_space<vmem>>, vector<1x128x32xbf16>
    %264 = vector.shape_cast %263 : vector<1x128x32xbf16> to vector<128x32xbf16>
    %c0_250 = arith.constant 0 : index
    %c0_251 = arith.constant 0 : index
    %c267 = arith.constant 267 : index
    %265 = vector.load %arg1[%c0_250, %c0_251, %c267] : memref<1x32x640xbf16, #tpu.memory_space<vmem>>, vector<1x32x128xbf16>
    %266 = vector.shape_cast %265 : vector<1x32x128xbf16> to vector<32x128xbf16>
    %cst_252 = arith.constant dense<0.000000e+00> : vector<128x128xf32>
    %267 = tpu.matmul %264, %266, %cst_252 {dimension_numbers = #tpu.dot_dimension_numbers<[1], [0], [0], [1], [0, 0, 1, 1], [], []>} : vector<128x32xbf16>, vector<32x128xbf16>, vector<128x128xf32> -> vector<128x128xf32>
    %268 = arith.addf %262, %267 : vector<128x128xf32>
    %c6_253 = arith.constant 6 : index
    %c0_254 = arith.constant 0 : index
    %c0_255 = arith.constant 0 : index
    %269 = vector.load %arg2[%c6_253, %c0_254, %c0_255] : memref<18x128x32xbf16, #tpu.memory_space<vmem>>, vector<1x128x32xbf16>
    %270 = vector.shape_cast %269 : vector<1x128x32xbf16> to vector<128x32xbf16>
    %c0_256 = arith.constant 0 : index
    %c0_257 = arith.constant 0 : index
    %c306 = arith.constant 306 : index
    %271 = vector.load %arg1[%c0_256, %c0_257, %c306] : memref<1x32x640xbf16, #tpu.memory_space<vmem>>, vector<1x32x128xbf16>
    %272 = vector.shape_cast %271 : vector<1x32x128xbf16> to vector<32x128xbf16>
    %cst_258 = arith.constant dense<0.000000e+00> : vector<128x128xf32>
    %273 = tpu.matmul %270, %272, %cst_258 {dimension_numbers = #tpu.dot_dimension_numbers<[1], [0], [0], [1], [0, 0, 1, 1], [], []>} : vector<128x32xbf16>, vector<32x128xbf16>, vector<128x128xf32> -> vector<128x128xf32>
    %274 = arith.addf %268, %273 : vector<128x128xf32>
    %c7_259 = arith.constant 7 : index
    %c0_260 = arith.constant 0 : index
    %c0_261 = arith.constant 0 : index
    %275 = vector.load %arg2[%c7_259, %c0_260, %c0_261] : memref<18x128x32xbf16, #tpu.memory_space<vmem>>, vector<1x128x32xbf16>
    %276 = vector.shape_cast %275 : vector<1x128x32xbf16> to vector<128x32xbf16>
    %c0_262 = arith.constant 0 : index
    %c0_263 = arith.constant 0 : index
    %c307 = arith.constant 307 : index
    %277 = vector.load %arg1[%c0_262, %c0_263, %c307] : memref<1x32x640xbf16, #tpu.memory_space<vmem>>, vector<1x32x128xbf16>
    %278 = vector.shape_cast %277 : vector<1x32x128xbf16> to vector<32x128xbf16>
    %cst_264 = arith.constant dense<0.000000e+00> : vector<128x128xf32>
    %279 = tpu.matmul %276, %278, %cst_264 {dimension_numbers = #tpu.dot_dimension_numbers<[1], [0], [0], [1], [0, 0, 1, 1], [], []>} : vector<128x32xbf16>, vector<32x128xbf16>, vector<128x128xf32> -> vector<128x128xf32>
    %280 = arith.addf %274, %279 : vector<128x128xf32>
    %c8_265 = arith.constant 8 : index
    %c0_266 = arith.constant 0 : index
    %c0_267 = arith.constant 0 : index
    %281 = vector.load %arg2[%c8_265, %c0_266, %c0_267] : memref<18x128x32xbf16, #tpu.memory_space<vmem>>, vector<1x128x32xbf16>
    %282 = vector.shape_cast %281 : vector<1x128x32xbf16> to vector<128x32xbf16>
    %c0_268 = arith.constant 0 : index
    %c0_269 = arith.constant 0 : index
    %c311 = arith.constant 311 : index
    %283 = vector.load %arg1[%c0_268, %c0_269, %c311] : memref<1x32x640xbf16, #tpu.memory_space<vmem>>, vector<1x32x128xbf16>
    %284 = vector.shape_cast %283 : vector<1x32x128xbf16> to vector<32x128xbf16>
    %cst_270 = arith.constant dense<0.000000e+00> : vector<128x128xf32>
    %285 = tpu.matmul %282, %284, %cst_270 {dimension_numbers = #tpu.dot_dimension_numbers<[1], [0], [0], [1], [0, 0, 1, 1], [], []>} : vector<128x32xbf16>, vector<32x128xbf16>, vector<128x128xf32> -> vector<128x128xf32>
    %286 = arith.addf %280, %285 : vector<128x128xf32>
    %c9_271 = arith.constant 9 : index
    %c0_272 = arith.constant 0 : index
    %c0_273 = arith.constant 0 : index
    %287 = vector.load %arg2[%c9_271, %c0_272, %c0_273] : memref<18x128x32xbf16, #tpu.memory_space<vmem>>, vector<1x128x32xbf16>
    %288 = vector.shape_cast %287 : vector<1x128x32xbf16> to vector<128x32xbf16>
    %c0_274 = arith.constant 0 : index
    %c0_275 = arith.constant 0 : index
    %c312 = arith.constant 312 : index
    %289 = vector.load %arg1[%c0_274, %c0_275, %c312] : memref<1x32x640xbf16, #tpu.memory_space<vmem>>, vector<1x32x128xbf16>
    %290 = vector.shape_cast %289 : vector<1x32x128xbf16> to vector<32x128xbf16>
    %cst_276 = arith.constant dense<0.000000e+00> : vector<128x128xf32>
    %291 = tpu.matmul %288, %290, %cst_276 {dimension_numbers = #tpu.dot_dimension_numbers<[1], [0], [0], [1], [0, 0, 1, 1], [], []>} : vector<128x32xbf16>, vector<32x128xbf16>, vector<128x128xf32> -> vector<128x128xf32>
    %292 = arith.addf %286, %291 : vector<128x128xf32>
    %c10_277 = arith.constant 10 : index
    %c0_278 = arith.constant 0 : index
    %c0_279 = arith.constant 0 : index
    %293 = vector.load %arg2[%c10_277, %c0_278, %c0_279] : memref<18x128x32xbf16, #tpu.memory_space<vmem>>, vector<1x128x32xbf16>
    %294 = vector.shape_cast %293 : vector<1x128x32xbf16> to vector<128x32xbf16>
    %c0_280 = arith.constant 0 : index
    %c0_281 = arith.constant 0 : index
    %c316 = arith.constant 316 : index
    %295 = vector.load %arg1[%c0_280, %c0_281, %c316] : memref<1x32x640xbf16, #tpu.memory_space<vmem>>, vector<1x32x128xbf16>
    %296 = vector.shape_cast %295 : vector<1x32x128xbf16> to vector<32x128xbf16>
    %cst_282 = arith.constant dense<0.000000e+00> : vector<128x128xf32>
    %297 = tpu.matmul %294, %296, %cst_282 {dimension_numbers = #tpu.dot_dimension_numbers<[1], [0], [0], [1], [0, 0, 1, 1], [], []>} : vector<128x32xbf16>, vector<32x128xbf16>, vector<128x128xf32> -> vector<128x128xf32>
    %298 = arith.addf %292, %297 : vector<128x128xf32>
    %c11_283 = arith.constant 11 : index
    %c0_284 = arith.constant 0 : index
    %c0_285 = arith.constant 0 : index
    %299 = vector.load %arg2[%c11_283, %c0_284, %c0_285] : memref<18x128x32xbf16, #tpu.memory_space<vmem>>, vector<1x128x32xbf16>
    %300 = vector.shape_cast %299 : vector<1x128x32xbf16> to vector<128x32xbf16>
    %c0_286 = arith.constant 0 : index
    %c0_287 = arith.constant 0 : index
    %c317 = arith.constant 317 : index
    %301 = vector.load %arg1[%c0_286, %c0_287, %c317] : memref<1x32x640xbf16, #tpu.memory_space<vmem>>, vector<1x32x128xbf16>
    %302 = vector.shape_cast %301 : vector<1x32x128xbf16> to vector<32x128xbf16>
    %cst_288 = arith.constant dense<0.000000e+00> : vector<128x128xf32>
    %303 = tpu.matmul %300, %302, %cst_288 {dimension_numbers = #tpu.dot_dimension_numbers<[1], [0], [0], [1], [0, 0, 1, 1], [], []>} : vector<128x32xbf16>, vector<32x128xbf16>, vector<128x128xf32> -> vector<128x128xf32>
    %304 = arith.addf %298, %303 : vector<128x128xf32>
    %c12_289 = arith.constant 12 : index
    %c0_290 = arith.constant 0 : index
    %c0_291 = arith.constant 0 : index
    %305 = vector.load %arg2[%c12_289, %c0_290, %c0_291] : memref<18x128x32xbf16, #tpu.memory_space<vmem>>, vector<1x128x32xbf16>
    %306 = vector.shape_cast %305 : vector<1x128x32xbf16> to vector<128x32xbf16>
    %c0_292 = arith.constant 0 : index
    %c0_293 = arith.constant 0 : index
    %c356 = arith.constant 356 : index
    %307 = vector.load %arg1[%c0_292, %c0_293, %c356] : memref<1x32x640xbf16, #tpu.memory_space<vmem>>, vector<1x32x128xbf16>
    %308 = vector.shape_cast %307 : vector<1x32x128xbf16> to vector<32x128xbf16>
    %cst_294 = arith.constant dense<0.000000e+00> : vector<128x128xf32>
    %309 = tpu.matmul %306, %308, %cst_294 {dimension_numbers = #tpu.dot_dimension_numbers<[1], [0], [0], [1], [0, 0, 1, 1], [], []>} : vector<128x32xbf16>, vector<32x128xbf16>, vector<128x128xf32> -> vector<128x128xf32>
    %310 = arith.addf %304, %309 : vector<128x128xf32>
    %c13_295 = arith.constant 13 : index
    %c0_296 = arith.constant 0 : index
    %c0_297 = arith.constant 0 : index
    %311 = vector.load %arg2[%c13_295, %c0_296, %c0_297] : memref<18x128x32xbf16, #tpu.memory_space<vmem>>, vector<1x128x32xbf16>
    %312 = vector.shape_cast %311 : vector<1x128x32xbf16> to vector<128x32xbf16>
    %c0_298 = arith.constant 0 : index
    %c0_299 = arith.constant 0 : index
    %c357 = arith.constant 357 : index
    %313 = vector.load %arg1[%c0_298, %c0_299, %c357] : memref<1x32x640xbf16, #tpu.memory_space<vmem>>, vector<1x32x128xbf16>
    %314 = vector.shape_cast %313 : vector<1x32x128xbf16> to vector<32x128xbf16>
    %cst_300 = arith.constant dense<0.000000e+00> : vector<128x128xf32>
    %315 = tpu.matmul %312, %314, %cst_300 {dimension_numbers = #tpu.dot_dimension_numbers<[1], [0], [0], [1], [0, 0, 1, 1], [], []>} : vector<128x32xbf16>, vector<32x128xbf16>, vector<128x128xf32> -> vector<128x128xf32>
    %316 = arith.addf %310, %315 : vector<128x128xf32>
    %c14_301 = arith.constant 14 : index
    %c0_302 = arith.constant 0 : index
    %c0_303 = arith.constant 0 : index
    %317 = vector.load %arg2[%c14_301, %c0_302, %c0_303] : memref<18x128x32xbf16, #tpu.memory_space<vmem>>, vector<1x128x32xbf16>
    %318 = vector.shape_cast %317 : vector<1x128x32xbf16> to vector<128x32xbf16>
    %c0_304 = arith.constant 0 : index
    %c0_305 = arith.constant 0 : index
    %c361 = arith.constant 361 : index
    %319 = vector.load %arg1[%c0_304, %c0_305, %c361] : memref<1x32x640xbf16, #tpu.memory_space<vmem>>, vector<1x32x128xbf16>
    %320 = vector.shape_cast %319 : vector<1x32x128xbf16> to vector<32x128xbf16>
    %cst_306 = arith.constant dense<0.000000e+00> : vector<128x128xf32>
    %321 = tpu.matmul %318, %320, %cst_306 {dimension_numbers = #tpu.dot_dimension_numbers<[1], [0], [0], [1], [0, 0, 1, 1], [], []>} : vector<128x32xbf16>, vector<32x128xbf16>, vector<128x128xf32> -> vector<128x128xf32>
    %322 = arith.addf %316, %321 : vector<128x128xf32>
    %c15_307 = arith.constant 15 : index
    %c0_308 = arith.constant 0 : index
    %c0_309 = arith.constant 0 : index
    %323 = vector.load %arg2[%c15_307, %c0_308, %c0_309] : memref<18x128x32xbf16, #tpu.memory_space<vmem>>, vector<1x128x32xbf16>
    %324 = vector.shape_cast %323 : vector<1x128x32xbf16> to vector<128x32xbf16>
    %c0_310 = arith.constant 0 : index
    %c0_311 = arith.constant 0 : index
    %c362 = arith.constant 362 : index
    %325 = vector.load %arg1[%c0_310, %c0_311, %c362] : memref<1x32x640xbf16, #tpu.memory_space<vmem>>, vector<1x32x128xbf16>
    %326 = vector.shape_cast %325 : vector<1x32x128xbf16> to vector<32x128xbf16>
    %cst_312 = arith.constant dense<0.000000e+00> : vector<128x128xf32>
    %327 = tpu.matmul %324, %326, %cst_312 {dimension_numbers = #tpu.dot_dimension_numbers<[1], [0], [0], [1], [0, 0, 1, 1], [], []>} : vector<128x32xbf16>, vector<32x128xbf16>, vector<128x128xf32> -> vector<128x128xf32>
    %328 = arith.addf %322, %327 : vector<128x128xf32>
    %c16_313 = arith.constant 16 : index
    %c0_314 = arith.constant 0 : index
    %c0_315 = arith.constant 0 : index
    %329 = vector.load %arg2[%c16_313, %c0_314, %c0_315] : memref<18x128x32xbf16, #tpu.memory_space<vmem>>, vector<1x128x32xbf16>
    %330 = vector.shape_cast %329 : vector<1x128x32xbf16> to vector<128x32xbf16>
    %c0_316 = arith.constant 0 : index
    %c0_317 = arith.constant 0 : index
    %c366 = arith.constant 366 : index
    %331 = vector.load %arg1[%c0_316, %c0_317, %c366] : memref<1x32x640xbf16, #tpu.memory_space<vmem>>, vector<1x32x128xbf16>
    %332 = vector.shape_cast %331 : vector<1x32x128xbf16> to vector<32x128xbf16>
    %cst_318 = arith.constant dense<0.000000e+00> : vector<128x128xf32>
    %333 = tpu.matmul %330, %332, %cst_318 {dimension_numbers = #tpu.dot_dimension_numbers<[1], [0], [0], [1], [0, 0, 1, 1], [], []>} : vector<128x32xbf16>, vector<32x128xbf16>, vector<128x128xf32> -> vector<128x128xf32>
    %334 = arith.addf %328, %333 : vector<128x128xf32>
    %c17_319 = arith.constant 17 : index
    %c0_320 = arith.constant 0 : index
    %c0_321 = arith.constant 0 : index
    %335 = vector.load %arg2[%c17_319, %c0_320, %c0_321] : memref<18x128x32xbf16, #tpu.memory_space<vmem>>, vector<1x128x32xbf16>
    %336 = vector.shape_cast %335 : vector<1x128x32xbf16> to vector<128x32xbf16>
    %c0_322 = arith.constant 0 : index
    %c0_323 = arith.constant 0 : index
    %c367 = arith.constant 367 : index
    %337 = vector.load %arg1[%c0_322, %c0_323, %c367] : memref<1x32x640xbf16, #tpu.memory_space<vmem>>, vector<1x32x128xbf16>
    %338 = vector.shape_cast %337 : vector<1x32x128xbf16> to vector<32x128xbf16>
    %cst_324 = arith.constant dense<0.000000e+00> : vector<128x128xf32>
    %339 = tpu.matmul %336, %338, %cst_324 {dimension_numbers = #tpu.dot_dimension_numbers<[1], [0], [0], [1], [0, 0, 1, 1], [], []>} : vector<128x32xbf16>, vector<32x128xbf16>, vector<128x128xf32> -> vector<128x128xf32>
    %340 = arith.addf %334, %339 : vector<128x128xf32>
    %c0_325 = arith.constant 0 : index
    %c0_326 = arith.constant 0 : index
    %341 = vector.load %arg3[%c0_325, %c0_326] : memref<128x1xf32, #tpu.memory_space<vmem>>, vector<128x1xf32>
    %342 = vector.broadcast %341 : vector<128x1xf32> to vector<128x128xf32>
    %343 = arith.mulf %340, %342 : vector<128x128xf32>
    %c0_327 = arith.constant 0 : index
    %c0_328 = arith.constant 0 : index
    %344 = vector.load %arg4[%c0_327, %c0_328] : memref<128x1xf32, #tpu.memory_space<vmem>>, vector<128x1xf32>
    %345 = vector.broadcast %344 : vector<128x1xf32> to vector<128x128xf32>
    %346 = arith.addf %343, %345 : vector<128x128xf32>
    %cst_329 = arith.constant 0.000000e+00 : f32
    %347 = vector.broadcast %cst_329 : f32 to vector<128x128xf32>
    %348 = arith.maximumf %346, %347 : vector<128x128xf32>
    %349 = arith.truncf %348 : vector<128x128xf32> to vector<128x128xbf16>
    %c0_330 = arith.constant 0 : index
    %c256_331 = arith.constant 256 : index
    %350 = vector.load %arg8[%c0_330, %c256_331] : memref<128x512xbf16, #tpu.memory_space<vmem>>, vector<128x128xbf16>
    tpu.vector_store %arg8[%c0_330, %c256_331], %349 {strides = array<i32>} : memref<128x512xbf16, #tpu.memory_space<vmem>>, vector<128x128xbf16>,
    %c0_332 = arith.constant 0 : index
    %c0_333 = arith.constant 0 : index
    %c0_334 = arith.constant 0 : index
    %351 = vector.load %arg2[%c0_332, %c0_333, %c0_334] : memref<18x128x32xbf16, #tpu.memory_space<vmem>>, vector<1x128x32xbf16>
    %352 = vector.shape_cast %351 : vector<1x128x32xbf16> to vector<128x32xbf16>
    %c0_335 = arith.constant 0 : index
    %c0_336 = arith.constant 0 : index
    %c384 = arith.constant 384 : index
    %353 = vector.load %arg1[%c0_335, %c0_336, %c384] : memref<1x32x640xbf16, #tpu.memory_space<vmem>>, vector<1x32x128xbf16>
    %354 = vector.shape_cast %353 : vector<1x32x128xbf16> to vector<32x128xbf16>
    %cst_337 = arith.constant dense<0.000000e+00> : vector<128x128xf32>
    %355 = tpu.matmul %352, %354, %cst_337 {dimension_numbers = #tpu.dot_dimension_numbers<[1], [0], [0], [1], [0, 0, 1, 1], [], []>} : vector<128x32xbf16>, vector<32x128xbf16>, vector<128x128xf32> -> vector<128x128xf32>
    %c1_338 = arith.constant 1 : index
    %c0_339 = arith.constant 0 : index
    %c0_340 = arith.constant 0 : index
    %356 = vector.load %arg2[%c1_338, %c0_339, %c0_340] : memref<18x128x32xbf16, #tpu.memory_space<vmem>>, vector<1x128x32xbf16>
    %357 = vector.shape_cast %356 : vector<1x128x32xbf16> to vector<128x32xbf16>
    %c0_341 = arith.constant 0 : index
    %c0_342 = arith.constant 0 : index
    %c385 = arith.constant 385 : index
    %358 = vector.load %arg1[%c0_341, %c0_342, %c385] : memref<1x32x640xbf16, #tpu.memory_space<vmem>>, vector<1x32x128xbf16>
    %359 = vector.shape_cast %358 : vector<1x32x128xbf16> to vector<32x128xbf16>
    %cst_343 = arith.constant dense<0.000000e+00> : vector<128x128xf32>
    %360 = tpu.matmul %357, %359, %cst_343 {dimension_numbers = #tpu.dot_dimension_numbers<[1], [0], [0], [1], [0, 0, 1, 1], [], []>} : vector<128x32xbf16>, vector<32x128xbf16>, vector<128x128xf32> -> vector<128x128xf32>
    %361 = arith.addf %355, %360 : vector<128x128xf32>
    %c2_344 = arith.constant 2 : index
    %c0_345 = arith.constant 0 : index
    %c0_346 = arith.constant 0 : index
    %362 = vector.load %arg2[%c2_344, %c0_345, %c0_346] : memref<18x128x32xbf16, #tpu.memory_space<vmem>>, vector<1x128x32xbf16>
    %363 = vector.shape_cast %362 : vector<1x128x32xbf16> to vector<128x32xbf16>
    %c0_347 = arith.constant 0 : index
    %c0_348 = arith.constant 0 : index
    %c389 = arith.constant 389 : index
    %364 = vector.load %arg1[%c0_347, %c0_348, %c389] : memref<1x32x640xbf16, #tpu.memory_space<vmem>>, vector<1x32x128xbf16>
    %365 = vector.shape_cast %364 : vector<1x32x128xbf16> to vector<32x128xbf16>
    %cst_349 = arith.constant dense<0.000000e+00> : vector<128x128xf32>
    %366 = tpu.matmul %363, %365, %cst_349 {dimension_numbers = #tpu.dot_dimension_numbers<[1], [0], [0], [1], [0, 0, 1, 1], [], []>} : vector<128x32xbf16>, vector<32x128xbf16>, vector<128x128xf32> -> vector<128x128xf32>
    %367 = arith.addf %361, %366 : vector<128x128xf32>
    %c3_350 = arith.constant 3 : index
    %c0_351 = arith.constant 0 : index
    %c0_352 = arith.constant 0 : index
    %368 = vector.load %arg2[%c3_350, %c0_351, %c0_352] : memref<18x128x32xbf16, #tpu.memory_space<vmem>>, vector<1x128x32xbf16>
    %369 = vector.shape_cast %368 : vector<1x128x32xbf16> to vector<128x32xbf16>
    %c0_353 = arith.constant 0 : index
    %c0_354 = arith.constant 0 : index
    %c390 = arith.constant 390 : index
    %370 = vector.load %arg1[%c0_353, %c0_354, %c390] : memref<1x32x640xbf16, #tpu.memory_space<vmem>>, vector<1x32x128xbf16>
    %371 = vector.shape_cast %370 : vector<1x32x128xbf16> to vector<32x128xbf16>
    %cst_355 = arith.constant dense<0.000000e+00> : vector<128x128xf32>
    %372 = tpu.matmul %369, %371, %cst_355 {dimension_numbers = #tpu.dot_dimension_numbers<[1], [0], [0], [1], [0, 0, 1, 1], [], []>} : vector<128x32xbf16>, vector<32x128xbf16>, vector<128x128xf32> -> vector<128x128xf32>
    %373 = arith.addf %367, %372 : vector<128x128xf32>
    %c4_356 = arith.constant 4 : index
    %c0_357 = arith.constant 0 : index
    %c0_358 = arith.constant 0 : index
    %374 = vector.load %arg2[%c4_356, %c0_357, %c0_358] : memref<18x128x32xbf16, #tpu.memory_space<vmem>>, vector<1x128x32xbf16>
    %375 = vector.shape_cast %374 : vector<1x128x32xbf16> to vector<128x32xbf16>
    %c0_359 = arith.constant 0 : index
    %c0_360 = arith.constant 0 : index
    %c394 = arith.constant 394 : index
    %376 = vector.load %arg1[%c0_359, %c0_360, %c394] : memref<1x32x640xbf16, #tpu.memory_space<vmem>>, vector<1x32x128xbf16>
    %377 = vector.shape_cast %376 : vector<1x32x128xbf16> to vector<32x128xbf16>
    %cst_361 = arith.constant dense<0.000000e+00> : vector<128x128xf32>
    %378 = tpu.matmul %375, %377, %cst_361 {dimension_numbers = #tpu.dot_dimension_numbers<[1], [0], [0], [1], [0, 0, 1, 1], [], []>} : vector<128x32xbf16>, vector<32x128xbf16>, vector<128x128xf32> -> vector<128x128xf32>
    %379 = arith.addf %373, %378 : vector<128x128xf32>
    %c5_362 = arith.constant 5 : index
    %c0_363 = arith.constant 0 : index
    %c0_364 = arith.constant 0 : index
    %380 = vector.load %arg2[%c5_362, %c0_363, %c0_364] : memref<18x128x32xbf16, #tpu.memory_space<vmem>>, vector<1x128x32xbf16>
    %381 = vector.shape_cast %380 : vector<1x128x32xbf16> to vector<128x32xbf16>
    %c0_365 = arith.constant 0 : index
    %c0_366 = arith.constant 0 : index
    %c395 = arith.constant 395 : index
    %382 = vector.load %arg1[%c0_365, %c0_366, %c395] : memref<1x32x640xbf16, #tpu.memory_space<vmem>>, vector<1x32x128xbf16>
    %383 = vector.shape_cast %382 : vector<1x32x128xbf16> to vector<32x128xbf16>
    %cst_367 = arith.constant dense<0.000000e+00> : vector<128x128xf32>
    %384 = tpu.matmul %381, %383, %cst_367 {dimension_numbers = #tpu.dot_dimension_numbers<[1], [0], [0], [1], [0, 0, 1, 1], [], []>} : vector<128x32xbf16>, vector<32x128xbf16>, vector<128x128xf32> -> vector<128x128xf32>
    %385 = arith.addf %379, %384 : vector<128x128xf32>
    %c6_368 = arith.constant 6 : index
    %c0_369 = arith.constant 0 : index
    %c0_370 = arith.constant 0 : index
    %386 = vector.load %arg2[%c6_368, %c0_369, %c0_370] : memref<18x128x32xbf16, #tpu.memory_space<vmem>>, vector<1x128x32xbf16>
    %387 = vector.shape_cast %386 : vector<1x128x32xbf16> to vector<128x32xbf16>
    %c0_371 = arith.constant 0 : index
    %c0_372 = arith.constant 0 : index
    %c434 = arith.constant 434 : index
    %388 = vector.load %arg1[%c0_371, %c0_372, %c434] : memref<1x32x640xbf16, #tpu.memory_space<vmem>>, vector<1x32x128xbf16>
    %389 = vector.shape_cast %388 : vector<1x32x128xbf16> to vector<32x128xbf16>
    %cst_373 = arith.constant dense<0.000000e+00> : vector<128x128xf32>
    %390 = tpu.matmul %387, %389, %cst_373 {dimension_numbers = #tpu.dot_dimension_numbers<[1], [0], [0], [1], [0, 0, 1, 1], [], []>} : vector<128x32xbf16>, vector<32x128xbf16>, vector<128x128xf32> -> vector<128x128xf32>
    %391 = arith.addf %385, %390 : vector<128x128xf32>
    %c7_374 = arith.constant 7 : index
    %c0_375 = arith.constant 0 : index
    %c0_376 = arith.constant 0 : index
    %392 = vector.load %arg2[%c7_374, %c0_375, %c0_376] : memref<18x128x32xbf16, #tpu.memory_space<vmem>>, vector<1x128x32xbf16>
    %393 = vector.shape_cast %392 : vector<1x128x32xbf16> to vector<128x32xbf16>
    %c0_377 = arith.constant 0 : index
    %c0_378 = arith.constant 0 : index
    %c435 = arith.constant 435 : index
    %394 = vector.load %arg1[%c0_377, %c0_378, %c435] : memref<1x32x640xbf16, #tpu.memory_space<vmem>>, vector<1x32x128xbf16>
    %395 = vector.shape_cast %394 : vector<1x32x128xbf16> to vector<32x128xbf16>
    %cst_379 = arith.constant dense<0.000000e+00> : vector<128x128xf32>
    %396 = tpu.matmul %393, %395, %cst_379 {dimension_numbers = #tpu.dot_dimension_numbers<[1], [0], [0], [1], [0, 0, 1, 1], [], []>} : vector<128x32xbf16>, vector<32x128xbf16>, vector<128x128xf32> -> vector<128x128xf32>
    %397 = arith.addf %391, %396 : vector<128x128xf32>
    %c8_380 = arith.constant 8 : index
    %c0_381 = arith.constant 0 : index
    %c0_382 = arith.constant 0 : index
    %398 = vector.load %arg2[%c8_380, %c0_381, %c0_382] : memref<18x128x32xbf16, #tpu.memory_space<vmem>>, vector<1x128x32xbf16>
    %399 = vector.shape_cast %398 : vector<1x128x32xbf16> to vector<128x32xbf16>
    %c0_383 = arith.constant 0 : index
    %c0_384 = arith.constant 0 : index
    %c439 = arith.constant 439 : index
    %400 = vector.load %arg1[%c0_383, %c0_384, %c439] : memref<1x32x640xbf16, #tpu.memory_space<vmem>>, vector<1x32x128xbf16>
    %401 = vector.shape_cast %400 : vector<1x32x128xbf16> to vector<32x128xbf16>
    %cst_385 = arith.constant dense<0.000000e+00> : vector<128x128xf32>
    %402 = tpu.matmul %399, %401, %cst_385 {dimension_numbers = #tpu.dot_dimension_numbers<[1], [0], [0], [1], [0, 0, 1, 1], [], []>} : vector<128x32xbf16>, vector<32x128xbf16>, vector<128x128xf32> -> vector<128x128xf32>
    %403 = arith.addf %397, %402 : vector<128x128xf32>
    %c9_386 = arith.constant 9 : index
    %c0_387 = arith.constant 0 : index
    %c0_388 = arith.constant 0 : index
    %404 = vector.load %arg2[%c9_386, %c0_387, %c0_388] : memref<18x128x32xbf16, #tpu.memory_space<vmem>>, vector<1x128x32xbf16>
    %405 = vector.shape_cast %404 : vector<1x128x32xbf16> to vector<128x32xbf16>
    %c0_389 = arith.constant 0 : index
    %c0_390 = arith.constant 0 : index
    %c440 = arith.constant 440 : index
    %406 = vector.load %arg1[%c0_389, %c0_390, %c440] : memref<1x32x640xbf16, #tpu.memory_space<vmem>>, vector<1x32x128xbf16>
    %407 = vector.shape_cast %406 : vector<1x32x128xbf16> to vector<32x128xbf16>
    %cst_391 = arith.constant dense<0.000000e+00> : vector<128x128xf32>
    %408 = tpu.matmul %405, %407, %cst_391 {dimension_numbers = #tpu.dot_dimension_numbers<[1], [0], [0], [1], [0, 0, 1, 1], [], []>} : vector<128x32xbf16>, vector<32x128xbf16>, vector<128x128xf32> -> vector<128x128xf32>
    %409 = arith.addf %403, %408 : vector<128x128xf32>
    %c10_392 = arith.constant 10 : index
    %c0_393 = arith.constant 0 : index
    %c0_394 = arith.constant 0 : index
    %410 = vector.load %arg2[%c10_392, %c0_393, %c0_394] : memref<18x128x32xbf16, #tpu.memory_space<vmem>>, vector<1x128x32xbf16>
    %411 = vector.shape_cast %410 : vector<1x128x32xbf16> to vector<128x32xbf16>
    %c0_395 = arith.constant 0 : index
    %c0_396 = arith.constant 0 : index
    %c444 = arith.constant 444 : index
    %412 = vector.load %arg1[%c0_395, %c0_396, %c444] : memref<1x32x640xbf16, #tpu.memory_space<vmem>>, vector<1x32x128xbf16>
    %413 = vector.shape_cast %412 : vector<1x32x128xbf16> to vector<32x128xbf16>
    %cst_397 = arith.constant dense<0.000000e+00> : vector<128x128xf32>
    %414 = tpu.matmul %411, %413, %cst_397 {dimension_numbers = #tpu.dot_dimension_numbers<[1], [0], [0], [1], [0, 0, 1, 1], [], []>} : vector<128x32xbf16>, vector<32x128xbf16>, vector<128x128xf32> -> vector<128x128xf32>
    %415 = arith.addf %409, %414 : vector<128x128xf32>
    %c11_398 = arith.constant 11 : index
    %c0_399 = arith.constant 0 : index
    %c0_400 = arith.constant 0 : index
    %416 = vector.load %arg2[%c11_398, %c0_399, %c0_400] : memref<18x128x32xbf16, #tpu.memory_space<vmem>>, vector<1x128x32xbf16>
    %417 = vector.shape_cast %416 : vector<1x128x32xbf16> to vector<128x32xbf16>
    %c0_401 = arith.constant 0 : index
    %c0_402 = arith.constant 0 : index
    %c445 = arith.constant 445 : index
    %418 = vector.load %arg1[%c0_401, %c0_402, %c445] : memref<1x32x640xbf16, #tpu.memory_space<vmem>>, vector<1x32x128xbf16>
    %419 = vector.shape_cast %418 : vector<1x32x128xbf16> to vector<32x128xbf16>
    %cst_403 = arith.constant dense<0.000000e+00> : vector<128x128xf32>
    %420 = tpu.matmul %417, %419, %cst_403 {dimension_numbers = #tpu.dot_dimension_numbers<[1], [0], [0], [1], [0, 0, 1, 1], [], []>} : vector<128x32xbf16>, vector<32x128xbf16>, vector<128x128xf32> -> vector<128x128xf32>
    %421 = arith.addf %415, %420 : vector<128x128xf32>
    %c12_404 = arith.constant 12 : index
    %c0_405 = arith.constant 0 : index
    %c0_406 = arith.constant 0 : index
    %422 = vector.load %arg2[%c12_404, %c0_405, %c0_406] : memref<18x128x32xbf16, #tpu.memory_space<vmem>>, vector<1x128x32xbf16>
    %423 = vector.shape_cast %422 : vector<1x128x32xbf16> to vector<128x32xbf16>
    %c0_407 = arith.constant 0 : index
    %c0_408 = arith.constant 0 : index
    %c484 = arith.constant 484 : index
    %424 = vector.load %arg1[%c0_407, %c0_408, %c484] : memref<1x32x640xbf16, #tpu.memory_space<vmem>>, vector<1x32x128xbf16>
    %425 = vector.shape_cast %424 : vector<1x32x128xbf16> to vector<32x128xbf16>
    %cst_409 = arith.constant dense<0.000000e+00> : vector<128x128xf32>
    %426 = tpu.matmul %423, %425, %cst_409 {dimension_numbers = #tpu.dot_dimension_numbers<[1], [0], [0], [1], [0, 0, 1, 1], [], []>} : vector<128x32xbf16>, vector<32x128xbf16>, vector<128x128xf32> -> vector<128x128xf32>
    %427 = arith.addf %421, %426 : vector<128x128xf32>
    %c13_410 = arith.constant 13 : index
    %c0_411 = arith.constant 0 : index
    %c0_412 = arith.constant 0 : index
    %428 = vector.load %arg2[%c13_410, %c0_411, %c0_412] : memref<18x128x32xbf16, #tpu.memory_space<vmem>>, vector<1x128x32xbf16>
    %429 = vector.shape_cast %428 : vector<1x128x32xbf16> to vector<128x32xbf16>
    %c0_413 = arith.constant 0 : index
    %c0_414 = arith.constant 0 : index
    %c485 = arith.constant 485 : index
    %430 = vector.load %arg1[%c0_413, %c0_414, %c485] : memref<1x32x640xbf16, #tpu.memory_space<vmem>>, vector<1x32x128xbf16>
    %431 = vector.shape_cast %430 : vector<1x32x128xbf16> to vector<32x128xbf16>
    %cst_415 = arith.constant dense<0.000000e+00> : vector<128x128xf32>
    %432 = tpu.matmul %429, %431, %cst_415 {dimension_numbers = #tpu.dot_dimension_numbers<[1], [0], [0], [1], [0, 0, 1, 1], [], []>} : vector<128x32xbf16>, vector<32x128xbf16>, vector<128x128xf32> -> vector<128x128xf32>
    %433 = arith.addf %427, %432 : vector<128x128xf32>
    %c14_416 = arith.constant 14 : index
    %c0_417 = arith.constant 0 : index
    %c0_418 = arith.constant 0 : index
    %434 = vector.load %arg2[%c14_416, %c0_417, %c0_418] : memref<18x128x32xbf16, #tpu.memory_space<vmem>>, vector<1x128x32xbf16>
    %435 = vector.shape_cast %434 : vector<1x128x32xbf16> to vector<128x32xbf16>
    %c0_419 = arith.constant 0 : index
    %c0_420 = arith.constant 0 : index
    %c489 = arith.constant 489 : index
    %436 = vector.load %arg1[%c0_419, %c0_420, %c489] : memref<1x32x640xbf16, #tpu.memory_space<vmem>>, vector<1x32x128xbf16>
    %437 = vector.shape_cast %436 : vector<1x32x128xbf16> to vector<32x128xbf16>
    %cst_421 = arith.constant dense<0.000000e+00> : vector<128x128xf32>
    %438 = tpu.matmul %435, %437, %cst_421 {dimension_numbers = #tpu.dot_dimension_numbers<[1], [0], [0], [1], [0, 0, 1, 1], [], []>} : vector<128x32xbf16>, vector<32x128xbf16>, vector<128x128xf32> -> vector<128x128xf32>
    %439 = arith.addf %433, %438 : vector<128x128xf32>
    %c15_422 = arith.constant 15 : index
    %c0_423 = arith.constant 0 : index
    %c0_424 = arith.constant 0 : index
    %440 = vector.load %arg2[%c15_422, %c0_423, %c0_424] : memref<18x128x32xbf16, #tpu.memory_space<vmem>>, vector<1x128x32xbf16>
    %441 = vector.shape_cast %440 : vector<1x128x32xbf16> to vector<128x32xbf16>
    %c0_425 = arith.constant 0 : index
    %c0_426 = arith.constant 0 : index
    %c490 = arith.constant 490 : index
    %442 = vector.load %arg1[%c0_425, %c0_426, %c490] : memref<1x32x640xbf16, #tpu.memory_space<vmem>>, vector<1x32x128xbf16>
    %443 = vector.shape_cast %442 : vector<1x32x128xbf16> to vector<32x128xbf16>
    %cst_427 = arith.constant dense<0.000000e+00> : vector<128x128xf32>
    %444 = tpu.matmul %441, %443, %cst_427 {dimension_numbers = #tpu.dot_dimension_numbers<[1], [0], [0], [1], [0, 0, 1, 1], [], []>} : vector<128x32xbf16>, vector<32x128xbf16>, vector<128x128xf32> -> vector<128x128xf32>
    %445 = arith.addf %439, %444 : vector<128x128xf32>
    %c16_428 = arith.constant 16 : index
    %c0_429 = arith.constant 0 : index
    %c0_430 = arith.constant 0 : index
    %446 = vector.load %arg2[%c16_428, %c0_429, %c0_430] : memref<18x128x32xbf16, #tpu.memory_space<vmem>>, vector<1x128x32xbf16>
    %447 = vector.shape_cast %446 : vector<1x128x32xbf16> to vector<128x32xbf16>
    %c0_431 = arith.constant 0 : index
    %c0_432 = arith.constant 0 : index
    %c494 = arith.constant 494 : index
    %448 = vector.load %arg1[%c0_431, %c0_432, %c494] : memref<1x32x640xbf16, #tpu.memory_space<vmem>>, vector<1x32x128xbf16>
    %449 = vector.shape_cast %448 : vector<1x32x128xbf16> to vector<32x128xbf16>
    %cst_433 = arith.constant dense<0.000000e+00> : vector<128x128xf32>
    %450 = tpu.matmul %447, %449, %cst_433 {dimension_numbers = #tpu.dot_dimension_numbers<[1], [0], [0], [1], [0, 0, 1, 1], [], []>} : vector<128x32xbf16>, vector<32x128xbf16>, vector<128x128xf32> -> vector<128x128xf32>
    %451 = arith.addf %445, %450 : vector<128x128xf32>
    %c17_434 = arith.constant 17 : index
    %c0_435 = arith.constant 0 : index
    %c0_436 = arith.constant 0 : index
    %452 = vector.load %arg2[%c17_434, %c0_435, %c0_436] : memref<18x128x32xbf16, #tpu.memory_space<vmem>>, vector<1x128x32xbf16>
    %453 = vector.shape_cast %452 : vector<1x128x32xbf16> to vector<128x32xbf16>
    %c0_437 = arith.constant 0 : index
    %c0_438 = arith.constant 0 : index
    %c495 = arith.constant 495 : index
    %454 = vector.load %arg1[%c0_437, %c0_438, %c495] : memref<1x32x640xbf16, #tpu.memory_space<vmem>>, vector<1x32x128xbf16>
    %455 = vector.shape_cast %454 : vector<1x32x128xbf16> to vector<32x128xbf16>
    %cst_439 = arith.constant dense<0.000000e+00> : vector<128x128xf32>
    %456 = tpu.matmul %453, %455, %cst_439 {dimension_numbers = #tpu.dot_dimension_numbers<[1], [0], [0], [1], [0, 0, 1, 1], [], []>} : vector<128x32xbf16>, vector<32x128xbf16>, vector<128x128xf32> -> vector<128x128xf32>
    %457 = arith.addf %451, %456 : vector<128x128xf32>
    %c0_440 = arith.constant 0 : index
    %c0_441 = arith.constant 0 : index
    %458 = vector.load %arg3[%c0_440, %c0_441] : memref<128x1xf32, #tpu.memory_space<vmem>>, vector<128x1xf32>
    %459 = vector.broadcast %458 : vector<128x1xf32> to vector<128x128xf32>
    %460 = arith.mulf %457, %459 : vector<128x128xf32>
    %c0_442 = arith.constant 0 : index
    %c0_443 = arith.constant 0 : index
    %461 = vector.load %arg4[%c0_442, %c0_443] : memref<128x1xf32, #tpu.memory_space<vmem>>, vector<128x1xf32>
    %462 = vector.broadcast %461 : vector<128x1xf32> to vector<128x128xf32>
    %463 = arith.addf %460, %462 : vector<128x128xf32>
    %cst_444 = arith.constant 0.000000e+00 : f32
    %464 = vector.broadcast %cst_444 : f32 to vector<128x128xf32>
    %465 = arith.maximumf %463, %464 : vector<128x128xf32>
    %466 = arith.truncf %465 : vector<128x128xf32> to vector<128x128xbf16>
    %c0_445 = arith.constant 0 : index
    %c384_446 = arith.constant 384 : index
    %467 = vector.load %arg8[%c0_445, %c384_446] : memref<128x512xbf16, #tpu.memory_space<vmem>>, vector<128x128xbf16>
    tpu.vector_store %arg8[%c0_445, %c384_446], %466 {strides = array<i32>} : memref<128x512xbf16, #tpu.memory_space<vmem>>, vector<128x128xbf16>,
    %c0_447 = arith.constant 0 : index
    %c0_448 = arith.constant 0 : index
    %468 = vector.load %arg8[%c0_447, %c0_448] : memref<128x512xbf16, #tpu.memory_space<vmem>>, vector<128x512xbf16>
    %c0_449 = arith.constant 0 : index
    %c0_450 = arith.constant 0 : index
    %469 = vector.load %arg5[%c0_449, %c0_450] : memref<512x256xbf16, #tpu.memory_space<vmem>>, vector<512x256xbf16>
    %cst_451 = arith.constant dense<0.000000e+00> : vector<128x256xf32>
    %470 = tpu.matmul %468, %469, %cst_451 {dimension_numbers = #tpu.dot_dimension_numbers<[1], [0], [0], [1], [0, 0, 1, 1], [], []>} : vector<128x512xbf16>, vector<512x256xbf16>, vector<128x256xf32> -> vector<128x256xf32>
    %c0_452 = arith.constant 0 : index
    %c0_453 = arith.constant 0 : index
    %471 = vector.load %arg6[%c0_452, %c0_453] : memref<128x128xbf16, #tpu.memory_space<vmem>>, vector<128x128xbf16>
    %472 = arith.truncf %470 : vector<128x256xf32> to vector<128x256xbf16>
    %cst_454 = arith.constant dense<0.000000e+00> : vector<128x256xf32>
    %473 = tpu.matmul %471, %472, %cst_454 {dimension_numbers = #tpu.dot_dimension_numbers<[1], [0], [0], [1], [0, 0, 1, 1], [], []>} : vector<128x128xbf16>, vector<128x256xbf16>, vector<128x256xf32> -> vector<128x256xf32>
    %c0_455 = arith.constant 0 : index
    %c0_456 = arith.constant 0 : index
    %c0_457 = arith.constant 0 : index
    %474 = vector.load %arg7[%c0_455, %c0_456, %c0_457] : memref<1x128x256xf32, #tpu.memory_space<vmem>>, vector<1x128x256xf32>
    %475 = vector.shape_cast %474 : vector<1x128x256xf32> to vector<128x256xf32>
    %476 = vector.shape_cast %473 : vector<128x256xf32> to vector<1x128x256xf32>
    tpu.vector_store %arg7[%c0_455, %c0_456, %c0_457], %476 {strides = array<i32>} : memref<1x128x256xf32, #tpu.memory_space<vmem>>, vector<1x128x256xf32>,
    return
  }
  func.func @transform_0(%arg0: i32) -> (i32, i32, i32) {
    %c0_i32 = arith.constant 0 : i32
    %c0_i32_0 = arith.constant 0 : i32
    %c0_i32_1 = arith.constant 0 : i32
    return %arg0, %c0_i32, %c0_i32_0 : i32, i32, i32
  }
  func.func @transform_1(%arg0: i32) -> (i32, i32, i32) {
    %c0_i32 = arith.constant 0 : i32
    %c0_i32_0 = arith.constant 0 : i32
    %c0_i32_1 = arith.constant 0 : i32
    %c0_i32_2 = arith.constant 0 : i32
    return %c0_i32, %c0_i32_0, %c0_i32_1 : i32, i32, i32
  }
  func.func @transform_2(%arg0: i32) -> (i32, i32) {
    %c0_i32 = arith.constant 0 : i32
    %c0_i32_0 = arith.constant 0 : i32
    %c0_i32_1 = arith.constant 0 : i32
    return %c0_i32, %c0_i32_0 : i32, i32
  }
  func.func @transform_3(%arg0: i32) -> (i32, i32) {
    %c0_i32 = arith.constant 0 : i32
    %c0_i32_0 = arith.constant 0 : i32
    %c0_i32_1 = arith.constant 0 : i32
    return %c0_i32, %c0_i32_0 : i32, i32
  }
  func.func @transform_4(%arg0: i32) -> (i32, i32) {
    %c0_i32 = arith.constant 0 : i32
    %c0_i32_0 = arith.constant 0 : i32
    %c0_i32_1 = arith.constant 0 : i32
    return %c0_i32, %c0_i32_0 : i32, i32
  }
  func.func @transform_5(%arg0: i32) -> (i32, i32) {
    %c0_i32 = arith.constant 0 : i32
    %c0_i32_0 = arith.constant 0 : i32
    %c0_i32_1 = arith.constant 0 : i32
    return %c0_i32, %c0_i32_0 : i32, i32
  }
  func.func @transform_6(%arg0: i32) -> (i32, i32, i32) {
    %c0_i32 = arith.constant 0 : i32
    %c0_i32_0 = arith.constant 0 : i32
    %c0_i32_1 = arith.constant 0 : i32
    return %arg0, %c0_i32, %c0_i32_0 : i32, i32, i32
  }
}

</mosaic_0001>

<bundles_post_ra>
// kernel: c5_head_forward.1
= control target key start
LH: loop header
LB: loop body
LE: loop exit
PB: predicated region body
PF: predicated region fallthrough
CT: control target
= control target key end

     0   :  { %s22907_s21 = smov 0   ;;  %s31151_s0 = inlined_call_operand.vmem [shape: bf16[8,32,640], index: 0, kind: input, shape index: {}]   ;;  %s31152_s1 = inlined_call_operand.vmem [shape: bf16[18,128,32], index: 1, kind: input, shape index: {}]   ;;  %s31153_s2 = inlined_call_operand.vmem [shape: f32[128,1], index: 2, kind: input, shape index: {}]   ;;  %s31154_s3 = inlined_call_operand.vmem [shape: f32[128,1], index: 3, kind: input, shape index: {}]   ;;  %s31155_s4 = inlined_call_operand.vmem [shape: bf16[512,256], index: 4, kind: input, shape index: {}]   ;;  %s31156_s5 = inlined_call_operand.vmem [shape: bf16[128,128], index: 5, kind: input, shape index: {}]   ;;  %s31157_s6 = inlined_call_operand.vmem [shape: f32[8,128,256], index: 6, kind: output, shape index: {}]  }
   0x1 LB: > { %s17378_s22 = sadd.s32 4294967295, %s22852_s21   ;;  %p17382_p0 = scmp.ge.s32.totalorder %s22852_s21, 1  ;;  %s22852_s21 = sphi %s22907_s21, %s16_s21  }
   0x2   : > { %p212_p1 = scmp.lt.s32.totalorder %s22852_s21, 9 }
   0x4   : > { %p213_p2 = pnand %p17382_p0, %p212_p1 }
   0x6   : > { %216 = sbr.rel (%p213_p2) target bundleno = 2064 (0x810), region = 44 }
   0xb   : > { %p242_p3 = scmp.lt.s32.totalorder %s17378_s22, 7  ;;  %s22854_s27 = smov 127   ;;  %v22080_v4 = vld [vmem:[%s31152_s1 + $0x40] sm:$0xff]   ;;  %vm363_vm0 = vcmask 261120   ;;  %vm358_vm1 = vcmask 1039360   ;;  %vm723_vm2 = vcmask 1006592  }
   0xc   : > { %20609 = vmatprep.mubr.msk.bf16.mxu1 %vm363_vm0, %v22080_v4  ;;  %v22083_v5 = vld [vmem:[%s31152_s1 + $0x80] sm:$0xff]   ;;  %s22855_s8 = smov 123   ;;  %s31168_s9 = smov 122   ;;  %v22081_v14 = vld [vmem:[%s31152_s1 + $0x48] sm:$0xff]   ;;  %v22082_v17 = vld [vmem:[%s31152_s1 + $0x50] sm:$0xff]   ;;  %vm930_vm3 = vcmask 998400  }
   0xd   : > { %s31943_s22 = smov (!%p242_p3, %s17378_s22), 7  ;;  %20649 = vmatprep.mubr.msk.bf16.mxu0 %vm363_vm0, %v22083_v5  ;;  %s31166_s10 = smov 118   ;;  %v22087_v23 = vld [vmem:[%s31152_s1 + $0x58] sm:$0xff]   ;;  %v22088_v26 = vld [vmem:[%s31152_s1 + $0x88] sm:$0xff]   ;;  %v22092_v29 = vld [vmem:[%s31152_s1 + $0x60] sm:$0xff]   ;;  %vm1137_vm4 = vcmask 965632  }
   0xe   : > { %s22045_s23 = smul.u32 80, %s31943_s22  ;;  %s31164_s11 = smov 117   ;;  %v22093_v30 = vld [vmem:[%s31152_s1 + $0x90] sm:$0xff]   ;;  %v22094_v35 = vld [vmem:[%s31152_s1 + $0x68] sm:$0xff]   ;;  %v22095_v39 = vld [vmem:[%s31152_s1 + $0x98] sm:$0xff]   ;;  %vm1551_vm5 = vcmask 637952  }
   0xf   : > { %s31162_s12 = smov 78   ;;  %s22860_s13 = smov 77   ;;  %v22096_v40 = vld [vmem:[%s31152_s1 + $0x70] sm:$0xff]   ;;  %v22097_v41 = vld [vmem:[%s31152_s1 + $0xa0] sm:$0xff]   ;;  %v22098_v44 = vld [vmem:[%s31152_s1 + $0x78] sm:$0xff]   ;;  %vm1344_vm6 = vcmask 957440  }
  0x10   : > { %s22921_s26 = scalar_lea.vmem %s31151_s0, %s22045_s23  ;;  %s22861_s14 = smov 73   ;;  %v22100_v46 = vld [vmem:[%s31152_s1 + $0xa8] sm:$0xff]   ;;  %v22102_v49 = vld [vmem:[%s31152_s1] sm:$0xff]   ;;  %v22103_v50 = vld [vmem:[%s31152_s1 + $0xb0] sm:$0xff]   ;;  %vm1965_vm7 = vcmask 596992   ;;  %vm1758_vm8 = vcmask 629760  }
  0x11   : > { %v22924_v0 = vld [vmem:[%s22921_s26 + $0x28] ss:$20 sps:$4 sm:$0xff]   ;;  %v22927_v1 = vld [vmem:[%s22921_s26] ss:$20 sps:$4 sm:$0xff]   ;;  %v22937_v3 = vld [vmem:[%s22921_s26 + $0x4] ss:$20 sps:$4 sm:$0xff]  }
  0x12   : > { %354 = vrot.lane.b32.xlu0 %v22924_v0, %s22854_s27  ;;  %v22932_v2 = vld [vmem:[%s22921_s26 + $0x2c] ss:$20 sps:$4 sm:$0xff]   ;;  %350 = vrot.lane.b32.xlu1 %v22927_v1, %s22854_s27  ;;  %s22862_s15 = smov 72   ;;  %s22863_s16 = smov 68   ;;  %v22099_v11 = vld [vmem:[%s22921_s26 + $0x28] ss:$20 sps:$4 sm:$0xff]  }
  0x13   : > { %s22864_s17 = smov 67   ;;  %s22865_s18 = smov 28   ;;  %v22101_v20 = vld [vmem:[%s22921_s26] ss:$20 sps:$4 sm:$0xff]   ;;  %v23095_v25 = vld [vmem:[%s22921_s26 + $0x30] ss:$20 sps:$4 sm:$0xff]  }
  0x14   : > { %s22866_s19 = smov 27   ;;  %s22867_s20 = smov 23   ;;  %v23089_v22 = vld [vmem:[%s22921_s26 + $0x2c] ss:$20 sps:$4 sm:$0xff]   ;;  %v23115_v31 = vld [vmem:[%s22921_s26 + $0x4] ss:$20 sps:$4 sm:$0xff]  }
  0x15   : > { %s22868_s23 = smov 22   ;;  %s31158_s24 = smov 18   ;;  %v23120_v33 = vld [vmem:[%s22921_s26 + $0x8] ss:$20 sps:$4 sm:$0xff]   ;;  %v22106_v58 = vld [vmem:[%s31152_s1 + $0x100] sm:$0xff]   ;;  %v22107_v59 = vld [vmem:[%s31152_s1 + $0x10] sm:$0xff]  }
  0x16   : > { %356 = vrot.lane.b32.xlu0 %v22932_v2, %s22854_s27  ;;  %352 = vrot.lane.b32.xlu1 %v22937_v3, %s22854_s27  ;;  %s31160_s29 = smov 17   ;;  %v22104_v53 = vld [vmem:[%s31152_s1 + $0x8] sm:$0xff]   ;;  %v22105_v55 = vld [vmem:[%s31152_s1 + $0xb8] sm:$0xff]   ;;  %vm2379_vm9 = vcmask 556032   ;;  %vm2172_vm10 = vcmask 588800   ;;  %vm31174_vm11 = vcmask 228352  }
  0x17   : > { %v22108_v63 = vld [vmem:[%s31152_s1 + $0x18] sm:$0xff]   ;;  %v22111_v4 = vld [vmem:[%s31152_s1 + $0x20] sm:$0xff]   ;;  %vm2586_vm12 = vcmask 547840   ;;  %s31186_s25 = smov 17   ;;  %vm31170_vm13 = vcmask 187392   ;;  %vm3000_vm14 = vcmask 220160  }
  0x18   : > { %vm31171_vm15 = vcmask 146432   ;;  %s31197_s7 = smov 117   ;;  %s31204_s28 = smov 78  }
  0x1a   : > { %719 = vrot.lane.b32.xlu0 %v22924_v0, %s22855_s8  ;;  %721 = vrot.lane.b32.xlu1 %v22932_v2, %s22855_s8 }
  0x1e   : > { %926 = vrot.lane.b32.xlu0 %v22924_v0, %s31168_s9  ;;  %928 = vrot.lane.b32.xlu1 %v22932_v2, %s31168_s9 }
  0x22   : > { %715 = vrot.lane.b32.xlu0 %v22927_v1, %s22855_s8  ;;  %717 = vrot.lane.b32.xlu1 %v22937_v3, %s22855_s8 }
  0x26   : > { %922 = vrot.lane.b32.xlu0 %v22927_v1, %s31168_s9  ;;  %924 = vrot.lane.b32.xlu1 %v22937_v3, %s31168_s9 }
  0x2a   : > { %1133 = vrot.lane.b32.xlu0 %v22924_v0, %s31166_s10  ;;  %1135 = vrot.lane.b32.xlu1 %v22932_v2, %s31166_s10 }
  0x2e   : > { %1340 = vrot.lane.b32.xlu0 %v22924_v0, %s31164_s11  ;;  %1342 = vrot.lane.b32.xlu1 %v22932_v2, %s31164_s11 }
  0x32   : > { %1129 = vrot.lane.b32.xlu0 %v22927_v1, %s31166_s10  ;;  %1131 = vrot.lane.b32.xlu1 %v22937_v3, %s31166_s10 }
  0x36   : > { %1336 = vrot.lane.b32.xlu0 %v22927_v1, %s31164_s11  ;;  %1338 = vrot.lane.b32.xlu1 %v22937_v3, %s31164_s11 }
  0x3a   : > { %1547 = vrot.lane.b32.xlu0 %v22924_v0, %s31162_s12  ;;  %1549 = vrot.lane.b32.xlu1 %v22932_v2, %s31162_s12 }
  0x3e   : > { %1754 = vrot.lane.b32.xlu0 %v22924_v0, %s22860_s13  ;;  %1756 = vrot.lane.b32.xlu1 %v22932_v2, %s22860_s13 }
  0x42   : > { %1543 = vrot.lane.b32.xlu0 %v22927_v1, %s31162_s12  ;;  %1545 = vrot.lane.b32.xlu1 %v22937_v3, %s31162_s12 }
  0x46   : > { %1750 = vrot.lane.b32.xlu0 %v22927_v1, %s22860_s13  ;;  %1752 = vrot.lane.b32.xlu1 %v22937_v3, %s22860_s13 }
  0x4a   : > { %1961 = vrot.lane.b32.xlu0 %v22924_v0, %s22861_s14  ;;  %1963 = vrot.lane.b32.xlu1 %v22932_v2, %s22861_s14 }
  0x4e   : > { %2168 = vrot.lane.b32.xlu0 %v22924_v0, %s22862_s15  ;;  %2170 = vrot.lane.b32.xlu1 %v22932_v2, %s22862_s15 }
  0x52   : > { %1957 = vrot.lane.b32.xlu0 %v22927_v1, %s22861_s14  ;;  %1959 = vrot.lane.b32.xlu1 %v22937_v3, %s22861_s14 }
  0x56   : > { %2164 = vrot.lane.b32.xlu0 %v22927_v1, %s22862_s15  ;;  %2166 = vrot.lane.b32.xlu1 %v22937_v3, %s22862_s15 }
  0x5a   : > { %2375 = vrot.lane.b32.xlu0 %v22924_v0, %s22863_s16  ;;  %2377 = vrot.lane.b32.xlu1 %v22932_v2, %s22863_s16 }
  0x5e   : > { %2582 = vrot.lane.b32.xlu0 %v22924_v0, %s22864_s17  ;;  %2584 = vrot.lane.b32.xlu1 %v22932_v2, %s22864_s17 }
  0x62   : > { %2371 = vrot.lane.b32.xlu0 %v22927_v1, %s22863_s16  ;;  %2373 = vrot.lane.b32.xlu1 %v22937_v3, %s22863_s16 }
  0x66   : > { %2578 = vrot.lane.b32.xlu0 %v22927_v1, %s22864_s17  ;;  %2580 = vrot.lane.b32.xlu1 %v22937_v3, %s22864_s17 }
  0x6a   : > { %2789 = vrot.lane.b32.xlu0 %v22924_v0, %s22865_s18  ;;  %2791 = vrot.lane.b32.xlu1 %v22932_v2, %s22865_s18 }
  0x6e   : > { %2996 = vrot.lane.b32.xlu0 %v22924_v0, %s22866_s19  ;;  %2998 = vrot.lane.b32.xlu1 %v22932_v2, %s22866_s19 }
  0x72   : > { %2785 = vrot.lane.b32.xlu0 %v22927_v1, %s22865_s18  ;;  %2787 = vrot.lane.b32.xlu1 %v22937_v3, %s22865_s18 }
  0x76   : > { %2992 = vrot.lane.b32.xlu0 %v22927_v1, %s22866_s19  ;;  %2994 = vrot.lane.b32.xlu1 %v22937_v3, %s22866_s19 }
  0x7a   : > { %3203 = vrot.lane.b32.xlu0 %v22924_v0, %s22867_s20  ;;  %3205 = vrot.lane.b32.xlu1 %v22932_v2, %s22867_s20 }
  0x7e   : > { %3410 = vrot.lane.b32.xlu0 %v22924_v0, %s22868_s23  ;;  %3412 = vrot.lane.b32.xlu1 %v22932_v2, %s22868_s23 }
  0x82   : > { %3199 = vrot.lane.b32.xlu0 %v22927_v1, %s22867_s20  ;;  %3201 = vrot.lane.b32.xlu1 %v22937_v3, %s22867_s20 }
  0x84   : > { %v355_v6 = vpop.permute.xlu0 %354  ;;  %v351_v7 = vpop.permute.xlu1 %350 }
  0x86   : > { %3406 = vrot.lane.b32.xlu0 %v22927_v1, %s22868_s23  ;;  %3408 = vrot.lane.b32.xlu1 %v22937_v3, %s22868_s23 }
  0x88   : > { %v357_v8 = vpop.permute.xlu0 %356  ;;  %v353_v9 = vpop.permute.xlu1 %352 }
  0x89   : > { %v360_v10 = vsel %vm358_vm1, %v355_v6, %v357_v8  ;;  %v359_v12 = vsel %vm358_vm1, %v351_v7, %v353_v9  ;;  %v22112_v9 = vld [vmem:[%s31152_s1 + $0x28] sm:$0xff]  }
  0x8a   : > { %20605 = vmatprep.subr.bf16.mxu1 %v360_v10  ;;  %3617 = vrot.lane.b32.xlu0 %v22924_v0, %s31158_s24 }
  0x8b   : > { %3619 = vrot.lane.b32.xlu1 %v22932_v2, %s31158_s24  ;;  %20606 = vmatpush3.bf16.msra.mxu1 %v360_v10 }
  0x8c   : > { %v720_v13 = vpop.permute.xlu0 %719  ;;  %20607 = vmatprep.subr.bf16.mxu1 %v359_v12  ;;  %v722_v15 = vpop.permute.xlu1 %721 }
  0x8d   : > { %v725_v16 = vsel %vm723_vm2, %v720_v13, %v722_v15  ;;  %v22114_v13 = vld [vmem:[%s31152_s1 + $0x120] sm:$0xff]  }
  0x8e   : > { %3824 = vrot.lane.b32.xlu0 %v22924_v0, %s31160_s29  ;;  %20645 = vmatprep.subr.bf16.mxu0 %v725_v16 }
  0x8f   : > { %3826 = vrot.lane.b32.xlu1 %v22932_v2, %s31160_s29  ;;  %20608 = vmatpush3.bf16.msra.mxu1 %v359_v12 }
  0x90   : > { %v927_v18 = vpop.permute.xlu0 %926  ;;  %20625 = vmatprep.subr.bf16.mxu1 %v22099_v11  ;;  %v929_v19 = vpop.permute.xlu1 %928  ;;  %20646 = vmatpush3.bf16.msra.mxu0 %v725_v16 }
  0x91   : > { %v23104_v28 = vsel %vm930_vm3, %v927_v18, %v929_v19  ;;  %v22116_v18 = vld [vmem:[%s31152_s1 + $0x38] sm:$0xff]  }
  0x92   : > { %3613 = vrot.lane.b32.xlu0 %v22927_v1, %s31158_s24  ;;  %20610 = vmatmul.mubr.msk.bf16.vlgmr.msra.gmra.mxu1 %vm363_vm0, %v22081_v14  ;;  %v22115_v14 = vld [vmem:[%s31152_s1 + $0x30] sm:$0xff]  }
  0x93   : > { %3615 = vrot.lane.b32.xlu1 %v22937_v3, %s31158_s24  ;;  %20613 = vmatprep.mubr.msk.bf16.mxu1 %vm363_vm0, %v22082_v17 }
  0x94   : > { %v716_v21 = vpop.permute.xlu0 %715  ;;  %20626 = vmatpush3.bf16.msra.mxu1 %v22099_v11  ;;  %v718_v24 = vpop.permute.xlu1 %717  ;;  %v22113_v11 = vld [vmem:[%s31152_s1 + $0x118] sm:$0xff]  }
  0x95   : > { %20627 = vmatprep.subr.bf16.mxu1 %v22101_v20  ;;  %v724_v27 = vsel %vm723_vm2, %v716_v21, %v718_v24  ;;  %v22119_v24 = vld [vmem:[%s31152_s1 + $0xc0] sm:$0xff]  }
  0x96   : > { %3820 = vrot.lane.b32.xlu0 %v22927_v1, %s31160_s29  ;;  %20647 = vmatprep.subr.bf16.mxu0 %v724_v27  ;;  %v22109_v1 = vld [vmem:[%s31152_s1 + $0x108] sm:$0xff]  }
  0x97   : > { %3822 = vrot.lane.b32.xlu1 %v22937_v3, %s31160_s29  ;;  %20648 = vmatpush3.bf16.msra.mxu0 %v724_v27  ;;  %v22110_v3 = vld [vmem:[%s31152_s1 + $0x110] sm:$0xff]   ;;  %s31247_s29 = smov 122  }
  0x98   : > { %v23117_v32 = vpop.permute.xlu0 %922  ;;  %20628 = vmatpush3.bf16.msra.mxu1 %v22101_v20  ;;  %v23122_v34 = vpop.permute.xlu1 %924  ;;  %v22117_v20 = vld [vmem:[%s31152_s1 + $0x128] sm:$0xff]  }
  0x99   : > { %20665 = vmatprep.subr.bf16.mxu1 %v23104_v28  ;;  %v931_v62 = vsel %vm930_vm3, %v23117_v32, %v23122_v34  ;;  %v22122_v34 = vld [vmem:[%s31152_s1 + $0x180] sm:$0xff]  }
  0x9a   : > { %4390 = vrot.lane.b32.xlu0 %v23089_v22, %s22854_s27  ;;  %20614 = vmatmul.mubr.msk.bf16.gmra.mxu1 %vm363_vm0, %v22087_v23  ;;  %v22118_v23 = vld [vmem:[%s31152_s1 + $0x130] sm:$0xff]  }
  0x9b   : > { %4392 = vrot.lane.b32.xlu1 %v23095_v25, %s22854_s27  ;;  %20650 = vmatmul.mubr.msk.bf16.vlgmr.msra.gmra.mxu0 %vm363_vm0, %v22088_v26 }
  0x9c   : > { %20617 = vmatprep.mubr.msk.bf16.mxu1 %vm363_vm0, %v22092_v29  ;;  %20653 = vmatprep.mubr.msk.bf16.mxu0 %vm363_vm0, %v22093_v30  ;;  %v1134_v36 = vpop.permute.xlu0 %1133  ;;  %v1136_v37 = vpop.permute.xlu1 %1135  ;;  %v22121_v30 = vld [vmem:[%s31152_s1 + $0x138] sm:$0xff]  }
  0x9d   : > { %v1139_v38 = vsel %vm1137_vm4, %v1134_v36, %v1136_v37 }
  0x9e   : > { %4386 = vrot.lane.b32.xlu0 %v23115_v31, %s22854_s27  ;;  %20685 = vmatprep.subr.bf16.mxu0 %v1139_v38 }
  0x9f   : > { %4388 = vrot.lane.b32.xlu1 %v23120_v33, %s22854_s27  ;;  %20686 = vmatpush3.bf16.msra.mxu0 %v1139_v38 }
  0xa0   : > { %v23150_v42 = vpop.permute.xlu0 %1340  ;;  %v23152_v43 = vpop.permute.xlu1 %1342 }
  0xa1   : > { %v23250_v7 = vsel %vm1344_vm6, %v23150_v42, %v23152_v43 }
  0xa2   : > { %4752 = vrot.lane.b32.xlu0 %v23089_v22, %s22855_s8  ;;  %20618 = vmatmul.mubr.msk.bf16.gmra.mxu1 %vm363_vm0, %v22094_v35  ;;  %v22123_v35 = vld [vmem:[%s31152_s1 + $0xd0] sm:$0xff]  }
  0xa3   : > { %4754 = vrot.lane.b32.xlu1 %v23095_v25, %s22855_s8  ;;  %20654 = vmatmul.mubr.msk.bf16.gmra.mxu0 %vm363_vm0, %v22095_v39  ;;  %v22124_v39 = vld [vmem:[%s31152_s1 + $0xd8] sm:$0xff]  }
  0xa4   : > { %20621 = vmatprep.mubr.msk.bf16.mxu1 %vm363_vm0, %v22096_v40  ;;  %20657 = vmatprep.mubr.msk.bf16.mxu0 %vm363_vm0, %v22097_v41  ;;  %v1130_v45 = vpop.permute.xlu0 %1129  ;;  %v1132_v47 = vpop.permute.xlu1 %1131  ;;  %v22125_v41 = vld [vmem:[%s31152_s1 + $0x188] sm:$0xff]  }
  0xa5   : > { %v1138_v48 = vsel %vm1137_vm4, %v1130_v45, %v1132_v47  ;;  %v22127_v45 = vld [vmem:[%s31152_s1 + $0xe0] sm:$0xff]  }
  0xa6   : > { %4957 = vrot.lane.b32.xlu0 %v23089_v22, %s31168_s9  ;;  %20687 = vmatprep.subr.bf16.mxu0 %v1138_v48 }
  0xa7   : > { %4959 = vrot.lane.b32.xlu1 %v23095_v25, %s31168_s9  ;;  %20688 = vmatpush3.bf16.msra.mxu0 %v1138_v48 }
  0xa8   : > { %v23179_v51 = vpop.permute.xlu0 %1336  ;;  %v23181_v52 = vpop.permute.xlu1 %1338 }
  0xa9   : > { %v1345_v38 = vsel %vm1344_vm6, %v23179_v51, %v23181_v52  ;;  %v22129_v51 = vld [vmem:[%s31152_s1 + $0x198] sm:$0xff]  }
  0xaa   : > { %4748 = vrot.lane.b32.xlu0 %v23115_v31, %s22855_s8  ;;  %20622 = vmatmul.mubr.msk.bf16.gmra.mxu1 %vm363_vm0, %v22098_v44  ;;  %v22126_v44 = vld [vmem:[%s31152_s1 + $0x190] sm:$0xff]  }
  0xab   : > { %4750 = vrot.lane.b32.xlu1 %v23120_v33, %s22855_s8  ;;  %20658 = vmatmul.mubr.msk.bf16.gmra.mxu0 %vm363_vm0, %v22100_v46 }
  0xac   : > { %20629 = vmatprep.mubr.msk.bf16.mxu1 %vm363_vm0, %v22102_v49  ;;  %20661 = vmatprep.mubr.msk.bf16.mxu0 %vm363_vm0, %v22103_v50  ;;  %v1548_v54 = vpop.permute.xlu0 %1547  ;;  %v1550_v56 = vpop.permute.xlu1 %1549  ;;  %v22128_v49 = vld [vmem:[%s31152_s1 + $0xe8] sm:$0xff]  }
  0xad   : > { %v1553_v57 = vsel %vm1551_vm5, %v1548_v54, %v1550_v56  ;;  %v22130_v54 = vld [vmem:[%s31152_s1 + $0x1a0] sm:$0xff]  }
  0xae   : > { %4953 = vrot.lane.b32.xlu0 %v23115_v31, %s31168_s9  ;;  %20725 = vmatprep.subr.bf16.mxu0 %v1553_v57 }
  0xaf   : > { %4955 = vrot.lane.b32.xlu1 %v23120_v33, %s31168_s9 }
  0xb0   : > { %v23208_v60 = vpop.permute.xlu0 %1754  ;;  %v23210_v61 = vpop.permute.xlu1 %1756 }
  0xb1   : > { %v23381_v47 = vsel %vm1758_vm8, %v23208_v60, %v23210_v61  ;;  %v22133_v60 = vld [vmem:[%s31152_s1 + $0x1a8] sm:$0xff]  }
  0xb2   : > { %5162 = vrot.lane.b32.xlu0 %v23089_v22, %s31166_s10  ;;  %20630 = vmatmul.mubr.msk.bf16.vlgmr.msra.gmra.mxu1 %vm363_vm0, %v22104_v53 }
  0xb3   : > { %5164 = vrot.lane.b32.xlu1 %v23095_v25, %s31166_s10  ;;  %20662 = vmatmul.mubr.msk.bf16.gmra.mxu0 %vm363_vm0, %v22105_v55  ;;  %v22131_v55 = vld [vmem:[%s31152_s1 + $0xf0] sm:$0xff]  }
  0xb4   : > { %20689 = vmatprep.mubr.msk.bf16.mxu0 %vm363_vm0, %v22106_v58  ;;  %20633 = vmatprep.mubr.msk.bf16.mxu1 %vm363_vm0, %v22107_v59  ;;  %v1544_v0 = vpop.permute.xlu0 %1543  ;;  %v1546_v2 = vpop.permute.xlu1 %1545  ;;  %v22132_v58 = vld [vmem:[%s31152_s1 + $0xf8] sm:$0xff]  }
  0xb5   : > { %20666 = vmatpush3.bf16.msra.mxu1 %v23104_v28  ;;  %v1552_v8 = vsel %vm1551_vm5, %v1544_v0, %v1546_v2  ;;  %v22120_v28 = vld [vmem:[%s31152_s1 + $0xc8] sm:$0xff]   ;;  %v22135_v0 = vld [vmem:[%s31152_s1 + $0x140] sm:$0xff]  }
  0xb6   : > { %5367 = vrot.lane.b32.xlu0 %v23089_v22, %s31164_s11  ;;  %20667 = vmatprep.subr.bf16.mxu1 %v931_v62  ;;  %v22136_v2 = vld [vmem:[%s31152_s1 + $0x148] sm:$0xff]  }
  0xb7   : > { %5369 = vrot.lane.b32.xlu1 %v23095_v25, %s31164_s11 }
  0xb8   : > { %v23240_v5 = vpop.permute.xlu0 %1750  ;;  %v23242_v6 = vpop.permute.xlu1 %1752 }
  0xb9   : > { %20668 = vmatpush3.bf16.msra.mxu1 %v931_v62 }
  0xba   : > { %5158 = vrot.lane.b32.xlu0 %v23115_v31, %s31166_s10  ;;  %20634 = vmatmul.mubr.msk.bf16.gmra.mxu1 %vm363_vm0, %v22108_v63  ;;  %v22134_v63 = vld [vmem:[%s31152_s1 + $0x1b0] sm:$0xff]  }
  0xbb   : > { %5160 = vrot.lane.b32.xlu1 %v23120_v33, %s31166_s10  ;;  %20690 = vmatmul.mubr.msk.bf16.vlgmr.msra.gmra.mxu0 %vm363_vm0, %v22109_v1 }
  0xbc   : > { %20693 = vmatprep.mubr.msk.bf16.mxu0 %vm363_vm0, %v22110_v3  ;;  %20637 = vmatprep.mubr.msk.bf16.mxu1 %vm363_vm0, %v22111_v4  ;;  %v1962_v10 = vpop.permute.xlu0 %1961  ;;  %v1964_v12 = vpop.permute.xlu1 %1963  ;;  %v22137_v4 = vld [vmem:[%s31152_s1 + $0x1b8] sm:$0xff]  }
  0xbd   : > { %20726 = vmatpush3.bf16.msra.mxu0 %v1553_v57  ;;  %20705 = vmatprep.subr.bf16.mxu1 %v23250_v7  ;;  %v23283_v17 = vsel %vm1965_vm7, %v1962_v10, %v1964_v12  ;;  %v22139_v10 = vld [vmem:[%s31152_s1 + $0x150] sm:$0xff]   ;;  %v1759_v12 = vsel %vm1758_vm8, %v23240_v5, %v23242_v6 }
  0xbe   : > { %5363 = vrot.lane.b32.xlu0 %v23115_v31, %s31164_s11  ;;  %20727 = vmatprep.subr.bf16.mxu0 %v1552_v8  ;;  %v22142_v6 = vld [vmem:[%s31152_s1 + $0x210] sm:$0xff]  }
  0xbf   : > { %5365 = vrot.lane.b32.xlu1 %v23120_v33, %s31164_s11  ;;  %s31185_s11 = smov 18  }
  0xc0   : > { %v23275_v15 = vpop.permute.xlu0 %2168  ;;  %v23277_v16 = vpop.permute.xlu1 %2170 }
  0xc1   : > { %20728 = vmatpush3.bf16.msra.mxu0 %v1552_v8 }
  0xc2   : > { %5572 = vrot.lane.b32.xlu0 %v23089_v22, %s31162_s12  ;;  %20638 = vmatmul.mubr.msk.bf16.gmra.mxu1 %vm363_vm0, %v22112_v9  ;;  %v22138_v9 = vld [vmem:[%s31152_s1 + $0x200] sm:$0xff]  }
  0xc3   : > { %5574 = vrot.lane.b32.xlu1 %v23095_v25, %s31162_s12  ;;  %20694 = vmatmul.mubr.msk.bf16.gmra.mxu0 %vm363_vm0, %v22113_v11 }
  0xc4   : > { %20697 = vmatprep.mubr.msk.bf16.mxu0 %vm363_vm0, %v22114_v13  ;;  %20641 = vmatprep.mubr.msk.bf16.mxu1 %vm363_vm0, %v22115_v14  ;;  %v1958_v19 = vpop.permute.xlu0 %1957  ;;  %v1960_v21 = vpop.permute.xlu1 %1959  ;;  %v22140_v13 = vld [vmem:[%s31152_s1 + $0x158] sm:$0xff]  }
  0xc5   : > { %20765 = vmatprep.subr.bf16.mxu0 %v23283_v17  ;;  %v1966_v48 = vsel %vm1965_vm7, %v1958_v19, %v1960_v21  ;;  %v22143_v19 = vld [vmem:[%s31152_s1 + $0x160] sm:$0xff]   ;;  %v22144_v21 = vld [vmem:[%s31152_s1 + $0x168] sm:$0xff]  }
  0xc6   : > { %5777 = vrot.lane.b32.xlu0 %v23089_v22, %s22860_s13 }
  0xc7   : > { %5779 = vrot.lane.b32.xlu1 %v23095_v25, %s22860_s13 }
  0xc8   : > { %v23307_v26 = vpop.permute.xlu0 %2164  ;;  %v23309_v27 = vpop.permute.xlu1 %2166 }
  0xca   : > { %5568 = vrot.lane.b32.xlu0 %v23115_v31, %s31162_s12  ;;  %20642 = vmatmul.mubr.msk.bf16.gmra.mxu1 %vm363_vm0, %v22116_v18 }
  0xcb   : > { %5570 = vrot.lane.b32.xlu1 %v23120_v33, %s31162_s12  ;;  %20698 = vmatmul.mubr.msk.bf16.gmra.mxu0 %vm363_vm0, %v22117_v20 }
  0xcc   : > { %20701 = vmatprep.mubr.msk.bf16.mxu0 %vm363_vm0, %v22118_v23  ;;  %20669 = vmatprep.mubr.msk.bf16.mxu1 %vm363_vm0, %v22119_v24  ;;  %v2376_v29 = vpop.permute.xlu0 %2375  ;;  %v2378_v32 = vpop.permute.xlu1 %2377 }
  0xcd   : > { %v23419_v57 = vsel %vm2379_vm9, %v2376_v29, %v2378_v32  ;;  %v22147_v29 = vld [vmem:[%s31152_s1 + $0x170] sm:$0xff]   ;;  %v22834_v32 = vld [vmem:[%s22921_s26 + $0x2c] ss:$20 sps:$4 sm:$0xff]  }
  0xce   : > { %5773 = vrot.lane.b32.xlu0 %v23115_v31, %s22860_s13 }
  0xcf   : > { %5775 = vrot.lane.b32.xlu1 %v23120_v33, %s22860_s13 }
  0xd0   : > { %v23335_v36 = vpop.permute.xlu0 %2582  ;;  %v23337_v37 = vpop.permute.xlu1 %2584 }
  0xd2   : > { %5982 = vrot.lane.b32.xlu0 %v23089_v22, %s22861_s14  ;;  %20670 = vmatmul.mubr.msk.bf16.vlgmr.msra.gmra.mxu1 %vm363_vm0, %v22120_v28  ;;  %v22146_v28 = vld [vmem:[%s31152_s1 + $0x220] sm:$0xff]  }
  0xd3   : > { %5984 = vrot.lane.b32.xlu1 %v23095_v25, %s22861_s14  ;;  %20702 = vmatmul.mubr.msk.bf16.gmra.mxu0 %vm363_vm0, %v22121_v30 }
  0xd4   : > { %20729 = vmatprep.mubr.msk.bf16.mxu0 %vm363_vm0, %v22122_v34  ;;  %20673 = vmatprep.mubr.msk.bf16.mxu1 %vm363_vm0, %v22123_v35  ;;  %v23353_v40 = vpop.permute.xlu0 %2371  ;;  %v23358_v42 = vpop.permute.xlu1 %2373  ;;  %v22148_v34 = vld [vmem:[%s31152_s1 + $0x178] sm:$0xff]  }
  0xd5   : > { %20706 = vmatpush3.bf16.msra.mxu1 %v23250_v7 }
  0xd6   : > { %6187 = vrot.lane.b32.xlu0 %v23089_v22, %s22862_s15  ;;  %20707 = vmatprep.subr.bf16.mxu1 %v1345_v38 }
  0xd7   : > { %6189 = vrot.lane.b32.xlu1 %v23095_v25, %s22862_s15 }
  0xd8   : > { %v23365_v43 = vpop.permute.xlu0 %2578  ;;  %v23373_v46 = vpop.permute.xlu1 %2580 }
  0xd9   : > { %20708 = vmatpush3.bf16.msra.mxu1 %v1345_v38  ;;  %v22149_v38 = vld [vmem:[%s31152_s1 + $0x228] sm:$0xff]  }
  0xda   : > { %5978 = vrot.lane.b32.xlu0 %v23115_v31, %s22861_s14  ;;  %20674 = vmatmul.mubr.msk.bf16.gmra.mxu1 %vm363_vm0, %v22124_v39 }
  0xdb   : > { %5980 = vrot.lane.b32.xlu1 %v23120_v33, %s22861_s14  ;;  %20730 = vmatmul.mubr.msk.bf16.vlgmr.msra.gmra.mxu0 %vm363_vm0, %v22125_v41  ;;  %v22150_v41 = vld [vmem:[%s31152_s1 + $0x230] sm:$0xff]  }
  0xdc   : > { %20733 = vmatprep.mubr.msk.bf16.mxu0 %vm363_vm0, %v22126_v44  ;;  %20677 = vmatprep.mubr.msk.bf16.mxu1 %vm363_vm0, %v22127_v45  ;;  %v23392_v50 = vpop.permute.xlu0 %2789  ;;  %v23397_v52 = vpop.permute.xlu1 %2791  ;;  %v22836_v45 = vld [vmem:[%s22921_s26 + $0x4] ss:$20 sps:$4 sm:$0xff]  }
  0xdd   : > { %20766 = vmatpush3.bf16.msra.mxu0 %v23283_v17  ;;  %20745 = vmatprep.subr.bf16.mxu1 %v23381_v47  ;;  %v22141_v17 = vld [vmem:[%s31152_s1 + $0x208] sm:$0xff]  }
  0xde   : > { %6183 = vrot.lane.b32.xlu0 %v23115_v31, %s22862_s15  ;;  %20767 = vmatprep.subr.bf16.mxu0 %v1966_v48 }
  0xdf   : > { %6185 = vrot.lane.b32.xlu1 %v23120_v33, %s22862_s15 }
  0xe0   : > { %v23405_v53 = vpop.permute.xlu0 %2996  ;;  %v23413_v56 = vpop.permute.xlu1 %2998 }
  0xe1   : > { %20768 = vmatpush3.bf16.msra.mxu0 %v1966_v48  ;;  %v22152_v48 = vld [vmem:[%s31152_s1 + $0x1c8] sm:$0xff]  }
  0xe2   : > { %6392 = vrot.lane.b32.xlu0 %v23089_v22, %s22863_s16  ;;  %20678 = vmatmul.mubr.msk.bf16.gmra.mxu1 %vm363_vm0, %v22128_v49 }
  0xe3   : > { %6394 = vrot.lane.b32.xlu1 %v23095_v25, %s22863_s16  ;;  %20734 = vmatmul.mubr.msk.bf16.gmra.mxu0 %vm363_vm0, %v22129_v51 }
  0xe4   : > { %20737 = vmatprep.mubr.msk.bf16.mxu0 %vm363_vm0, %v22130_v54  ;;  %20681 = vmatprep.mubr.msk.bf16.mxu1 %vm363_vm0, %v22131_v55  ;;  %v23429_v59 = vpop.permute.xlu0 %2785  ;;  %v23434_v61 = vpop.permute.xlu1 %2787  ;;  %v22154_v54 = vld [vmem:[%s31152_s1 + $0x280] sm:$0xff]   ;;  %v22155_v55 = vld [vmem:[%s31152_s1 + $0x1d0] sm:$0xff]  }
  0xe5   : > { %20805 = vmatprep.subr.bf16.mxu0 %v23419_v57 }
  0xe6   : > { %6597 = vrot.lane.b32.xlu0 %v23089_v22, %s22864_s17 }
  0xe7   : > { %6599 = vrot.lane.b32.xlu1 %v23095_v25, %s22864_s17 }
  0xe8   : > { %v23441_v62 = vpop.permute.xlu0 %2992  ;;  %v23449_v1 = vpop.permute.xlu1 %2994 }
  0xea   : > { %6388 = vrot.lane.b32.xlu0 %v23115_v31, %s22863_s16  ;;  %20682 = vmatmul.mubr.msk.bf16.gmra.mxu1 %vm363_vm0, %v22132_v58  ;;  %v2173_v58 = vsel %vm2172_vm10, %v23307_v26, %v23309_v27  ;;  %v22158_v27 = vld [vmem:[%s31152_s1 + $0x290] sm:$0xff]  }
  0xeb   : > { %6390 = vrot.lane.b32.xlu1 %v23120_v33, %s22863_s16  ;;  %20738 = vmatmul.mubr.msk.bf16.gmra.mxu0 %vm363_vm0, %v22133_v60  ;;  %v22156_v60 = vld [vmem:[%s31152_s1 + $0x1d8] sm:$0xff]  }
  0xec   : > { %20741 = vmatprep.mubr.msk.bf16.mxu0 %vm363_vm0, %v22134_v63  ;;  %20709 = vmatprep.mubr.msk.bf16.mxu1 %vm363_vm0, %v22135_v0  ;;  %v23462_v3 = vpop.permute.xlu0 %3203  ;;  %v23467_v7 = vpop.permute.xlu1 %3205  ;;  %v22157_v0 = vld [vmem:[%s31152_s1 + $0x288] sm:$0xff]  }
  0xee   : > { %6593 = vrot.lane.b32.xlu0 %v23115_v31, %s22864_s17 }
  0xef   : > { %6595 = vrot.lane.b32.xlu1 %v23120_v33, %s22864_s17 }
  0xf0   : > { %v23473_v8 = vpop.permute.xlu0 %3410  ;;  %v23481_v11 = vpop.permute.xlu1 %3412 }
  0xf2   : > { %6802 = vrot.lane.b32.xlu0 %v23089_v22, %s22865_s18  ;;  %20710 = vmatmul.mubr.msk.bf16.vlgmr.msra.gmra.mxu1 %vm363_vm0, %v22136_v2 }
  0xf3   : > { %6804 = vrot.lane.b32.xlu1 %v23095_v25, %s22865_s18  ;;  %20742 = vmatmul.mubr.msk.bf16.gmra.mxu0 %vm363_vm0, %v22137_v4  ;;  %v22159_v4 = vld [vmem:[%s31152_s1 + $0x1e0] sm:$0xff]  }
  0xf4   : > { %20769 = vmatprep.mubr.msk.bf16.mxu0 %vm363_vm0, %v22138_v9  ;;  %20713 = vmatprep.mubr.msk.bf16.mxu1 %vm363_vm0, %v22139_v10  ;;  %v23497_v14 = vpop.permute.xlu0 %3199  ;;  %v23502_v18 = vpop.permute.xlu1 %3201  ;;  %v23664_v10 = vsel %vm2586_vm12, %v23335_v36, %v23337_v37  ;;  %v22163_v36 = vld [vmem:[%s31152_s1 + $0x1e8] sm:$0xff]  }
  0xf5   : > { %20746 = vmatpush3.bf16.msra.mxu1 %v23381_v47  ;;  %v22837_v47 = vld [vmem:[%s22921_s26 + $0x8] ss:$20 sps:$4 sm:$0xff]  }
  0xf6   : > { %7007 = vrot.lane.b32.xlu0 %v23089_v22, %s22866_s19  ;;  %20747 = vmatprep.subr.bf16.mxu1 %v1759_v12  ;;  %v23525_v22 = vsel %vm2172_vm10, %v23275_v15, %v23277_v16  ;;  %v22145_v16 = vld [vmem:[%s31152_s1 + $0x218] sm:$0xff]  }
  0xf7   : > { %7009 = vrot.lane.b32.xlu1 %v23095_v25, %s22866_s19  ;;  %v2380_v25 = vsel %vm2379_vm9, %v23353_v40, %v23358_v42  ;;  %v22151_v42 = vld [vmem:[%s31152_s1 + $0x1c0] sm:$0xff]  }
  0xf8   : > { %v23509_v5 = vpop.permute.xlu0 %3406  ;;  %v23517_v20 = vpop.permute.xlu1 %3408 }
  0xf9   : > { %20748 = vmatpush3.bf16.msra.mxu1 %v1759_v12  ;;  %v2794_v12 = vsel %vm31174_vm11, %v23429_v59, %v23434_v61  ;;  %v22164_v59 = vld [vmem:[%s31152_s1 + $0x298] sm:$0xff]  }
  0xfa   : > { %6798 = vrot.lane.b32.xlu0 %v23115_v31, %s22865_s18  ;;  %20714 = vmatmul.mubr.msk.bf16.gmra.mxu1 %vm363_vm0, %v22140_v13  ;;  %v23674_v13 = vld [vmem:[%s22921_s26 + $0x30] ss:$20 sps:$4 sm:$0xff]  }
  0xfb   : > { %6800 = vrot.lane.b32.xlu1 %v23120_v33, %s22865_s18  ;;  %20770 = vmatmul.mubr.msk.bf16.vlgmr.msra.gmra.mxu0 %vm363_vm0, %v22141_v17  ;;  %v23682_v17 = vld [vmem:[%s22921_s26 + $0x34] ss:$20 sps:$4 sm:$0xff]  }
  0xfc   : > { %20773 = vmatprep.mubr.msk.bf16.mxu0 %vm363_vm0, %v22142_v6  ;;  %20717 = vmatprep.mubr.msk.bf16.mxu1 %vm363_vm0, %v22143_v19  ;;  %v23538_v15 = vpop.permute.xlu0 %3617  ;;  %v22168_v19 = vld [vmem:[%s31152_s1 + $0x2a0] sm:$0xff]  }
  0xfd   : > { %v23543_v23 = vpop.permute.xlu1 %3619  ;;  %20806 = vmatpush3.bf16.msra.mxu0 %v23419_v57  ;;  %20785 = vmatprep.subr.bf16.mxu1 %v23525_v22 }
  0xfe   : > { %7003 = vrot.lane.b32.xlu0 %v23115_v31, %s22866_s19  ;;  %20807 = vmatprep.subr.bf16.mxu0 %v2380_v25  ;;  %v23567_v31 = vsel %vm31174_vm11, %v23392_v50, %v23397_v52  ;;  %v22153_v50 = vld [vmem:[%s31152_s1 + $0x238] sm:$0xff]  }
  0xff   : > { %7005 = vrot.lane.b32.xlu1 %v23120_v33, %s22866_s19  ;;  %v22835_v33 = vld [vmem:[%s22921_s26 + $0x30] ss:$20 sps:$4 sm:$0xff]  }
 0x100   : > { %v23551_v24 = vpop.permute.xlu0 %3824 }
 0x101   : > { %v23559_v30 = vpop.permute.xlu1 %3826  ;;  %20808 = vmatpush3.bf16.msra.mxu0 %v2380_v25  ;;  %v23702_v25 = vld [vmem:[%s22921_s26 + $0x8] ss:$20 sps:$4 sm:$0xff]  }
 0x102   : > { %7212 = vrot.lane.b32.xlu0 %v22834_v32, %s22867_s20  ;;  %20718 = vmatmul.mubr.msk.bf16.gmra.mxu1 %vm363_vm0, %v22144_v21  ;;  %v23705_v21 = vld [vmem:[%s22921_s26 + $0xc] ss:$20 sps:$4 sm:$0xff]  }
 0x103   : > { %7214 = vrot.lane.b32.xlu1 %v22835_v33, %s22867_s20  ;;  %20774 = vmatmul.mubr.msk.bf16.gmra.mxu0 %vm363_vm0, %v22145_v16 }
 0x104   : > { %20777 = vmatprep.mubr.msk.bf16.mxu0 %vm363_vm0, %v22146_v28  ;;  %20721 = vmatprep.mubr.msk.bf16.mxu1 %vm363_vm0, %v22147_v29  ;;  %v23577_v35 = vpop.permute.xlu0 %3613  ;;  %v23715_v28 = vsel %vm31170_vm13, %v23462_v3, %v23467_v7  ;;  %v22171_v29 = vld [vmem:[%s31152_s1 + $0x1f8] sm:$0xff]   ;;  %v22170_v3 = vld [vmem:[%s31152_s1 + $0x2a8] sm:$0xff]  }
 0x105   : > { %v23582_v39 = vpop.permute.xlu1 %3615  ;;  %20845 = vmatprep.subr.bf16.mxu0 %v23567_v31 }
 0x106   : > { %7417 = vrot.lane.b32.xlu0 %v22834_v32, %s22868_s23 }
 0x107   : > { %7419 = vrot.lane.b32.xlu1 %v22835_v33, %s22868_s23 }
 0x108   : > { %v23587_v40 = vpop.permute.xlu0 %3820 }
 0x109   : > { %v23595_v44 = vpop.permute.xlu1 %3822 }
 0x10a   : > { %7208 = vrot.lane.b32.xlu0 %v22836_v45, %s22867_s20  ;;  %20722 = vmatmul.mubr.msk.bf16.gmra.mxu1 %vm363_vm0, %v22148_v34  ;;  %v22173_v34 = vld [vmem:[%s31152_s1 + $0x240] sm:$0xff]  }
 0x10b   : > { %7210 = vrot.lane.b32.xlu1 %v22837_v47, %s22867_s20  ;;  %20778 = vmatmul.mubr.msk.bf16.gmra.mxu0 %vm363_vm0, %v22149_v38 }
 0x10c   : > { %20781 = vmatprep.mubr.msk.bf16.mxu0 %vm363_vm0, %v22150_v41  ;;  %20749 = vmatprep.mubr.msk.bf16.mxu1 %vm363_vm0, %v22151_v42  ;;  %v23608_v49 = vpop.permute.xlu0 %4390  ;;  %v22174_v42 = vld [vmem:[%s31152_s1 + $0x2b8] sm:$0xff]  }
 0x10d   : > { %v23613_v51 = vpop.permute.xlu1 %4392 }
 0x10e   : > { %7413 = vrot.lane.b32.xlu0 %v22836_v45, %s22868_s23 }
 0x10f   : > { %7415 = vrot.lane.b32.xlu1 %v22837_v47, %s22868_s23 }
 0x110   : > { %v23617_v52 = vpop.permute.xlu0 %4386 }
 0x111   : > { %v23625_v57 = vpop.permute.xlu1 %4388 }
 0x112   : > { %7622 = vrot.lane.b32.xlu0 %v22834_v32, %s31185_s11  ;;  %20750 = vmatmul.mubr.msk.bf16.vlgmr.msra.gmra.mxu1 %vm363_vm0, %v22152_v48 }
 0x113   : > { %7624 = vrot.lane.b32.xlu1 %v22835_v33, %s31185_s11  ;;  %20782 = vmatmul.mubr.msk.bf16.gmra.mxu0 %vm363_vm0, %v22153_v50  ;;  %v22176_v50 = vld [vmem:[%s31152_s1 + $0x300] sm:$0xff]  }
 0x114   : > { %20809 = vmatprep.mubr.msk.bf16.mxu0 %vm363_vm0, %v22154_v54  ;;  %20753 = vmatprep.mubr.msk.bf16.mxu1 %vm363_vm0, %v22155_v55  ;;  %v23639_v63 = vpop.permute.xlu0 %4752  ;;  %v22177_v54 = vld [vmem:[%s31152_s1 + $0x250] sm:$0xff]  }
 0x115   : > { %v23644_v2 = vpop.permute.xlu1 %4754  ;;  %20786 = vmatpush3.bf16.msra.mxu1 %v23525_v22  ;;  %v22169_v22 = vld [vmem:[%s31152_s1 + $0x1f0] sm:$0xff]  }
 0x116   : > { %7827 = vrot.lane.b32.xlu0 %v22834_v32, %s31186_s25  ;;  %20787 = vmatprep.subr.bf16.mxu1 %v2173_v58 }
 0x117   : > { %7829 = vrot.lane.b32.xlu1 %v22835_v33, %s31186_s25  ;;  %v22172_v33 = vld [vmem:[%s31152_s1 + $0x2b0] sm:$0xff]  }
 0x118   : > { %v23649_v26 = vpop.permute.xlu0 %4957 }
 0x119   : > { %v23657_v9 = vpop.permute.xlu1 %4959  ;;  %20788 = vmatpush3.bf16.msra.mxu1 %v2173_v58  ;;  %v2587_v58 = vsel %vm2586_vm12, %v23365_v43, %v23373_v46  ;;  %v22180_v46 = vld [vmem:[%s31152_s1 + $0x310] sm:$0xff]  }
 0x11a   : > { %7618 = vrot.lane.b32.xlu0 %v22836_v45, %s31185_s11  ;;  %20754 = vmatmul.mubr.msk.bf16.gmra.mxu1 %vm363_vm0, %v22156_v60  ;;  %v22179_v60 = vld [vmem:[%s31152_s1 + $0x258] sm:$0xff]  }
 0x11b   : > { %7620 = vrot.lane.b32.xlu1 %v22837_v47, %s31185_s11  ;;  %20810 = vmatmul.mubr.msk.bf16.vlgmr.msra.gmra.mxu0 %vm363_vm0, %v22157_v0 }
 0x11c   : > { %20813 = vmatprep.mubr.msk.bf16.mxu0 %vm363_vm0, %v22158_v27  ;;  %20757 = vmatprep.mubr.msk.bf16.mxu1 %vm363_vm0, %v22159_v4  ;;  %v23679_v37 = vpop.permute.xlu0 %4748  ;;  %v22178_v27 = vld [vmem:[%s31152_s1 + $0x308] sm:$0xff]  }
 0x11d   : > { %v23687_v61 = vpop.permute.xlu1 %4750  ;;  %20846 = vmatpush3.bf16.msra.mxu0 %v23567_v31  ;;  %20825 = vmatprep.subr.bf16.mxu1 %v23664_v10 }
 0x11e   : > { %7823 = vrot.lane.b32.xlu0 %v22836_v45, %s31186_s25  ;;  %20847 = vmatprep.subr.bf16.mxu0 %v2794_v12  ;;  %v22175_v45 = vld [vmem:[%s31152_s1 + $0x248] sm:$0xff]  }
 0x11f   : > { %7825 = vrot.lane.b32.xlu1 %v22837_v47, %s31186_s25 }
 0x120   : > { %v23693_v6 = vpop.permute.xlu0 %4953 }
 0x121   : > { %31187 = vst [vmem:[#allocation3_spill] sm:$0xff] %v23693_v6  ;;  %v23707_v16 = vpop.permute.xlu1 %4955  ;;  %20848 = vmatpush3.bf16.msra.mxu0 %v2794_v12  ;;  %v22181_v12 = vld [vmem:[%s31152_s1 + $0x260] sm:$0xff]  }
 0x122   : > { %31188 = vst [vmem:[#allocation4_spill] sm:$0xff] %v23707_v16  ;;  %8392 = vrot.lane.b32.xlu0 %v23674_v13, %s22854_s27  ;;  %20758 = vmatmul.mubr.msk.bf16.gmra.mxu1 %vm363_vm0, %v22163_v36 }
 0x123   : > { %8394 = vrot.lane.b32.xlu1 %v23682_v17, %s22854_s27  ;;  %20814 = vmatmul.mubr.msk.bf16.gmra.mxu0 %vm363_vm0, %v22164_v59  ;;  %v3208_v59 = vsel %vm31170_vm13, %v23497_v14, %v23502_v18  ;;  %v22184_v18 = vld [vmem:[%s31152_s1 + $0x320] sm:$0xff]   ;;  %vm3414_vm13 = vcmask 179200  }
 0x124   : > { %20817 = vmatprep.mubr.msk.bf16.mxu0 %vm363_vm0, %v22168_v19  ;;  %20761 = vmatprep.mubr.msk.bf16.mxu1 %vm363_vm0, %v22169_v22  ;;  %v23725_v32 = vpop.permute.xlu0 %5162  ;;  %v22183_v19 = vld [vmem:[%s31152_s1 + $0x268] sm:$0xff]  }
 0x125   : > { %v23730_v7 = vpop.permute.xlu1 %5164  ;;  %20885 = vmatprep.subr.bf16.mxu0 %v23715_v28 }
 0x126   : > { %8388 = vrot.lane.b32.xlu0 %v23702_v25, %s22854_s27 }
 0x127   : > { %8390 = vrot.lane.b32.xlu1 %v23705_v21, %s22854_s27 }
 0x128   : > { %v23737_v31 = vpop.permute.xlu0 %5367 }
 0x129   : > { %31189 = vst [vmem:[#allocation5_spill] sm:$0xff] %v23737_v31  ;;  %v23745_v38 = vpop.permute.xlu1 %5369 }
 0x12a   : > { %31190 = vst [vmem:[#allocation6_spill] sm:$0xff] %v23745_v38  ;;  %8754 = vrot.lane.b32.xlu0 %v23674_v13, %s22855_s8  ;;  %20762 = vmatmul.mubr.msk.bf16.gmra.mxu1 %vm363_vm0, %v22171_v29  ;;  %v22185_v29 = vld [vmem:[%s31152_s1 + $0x270] sm:$0xff]  }
 0x12b   : > { %20818 = vmatmul.mubr.msk.bf16.gmra.mxu0 %vm363_vm0, %v22170_v3  ;;  %8756 = vrot.lane.b32.xlu1 %v23682_v17, %s22855_s8  ;;  %v23863_v3 = vsel %vm31171_vm15, %v23538_v15, %v23543_v23  ;;  %v22186_v15 = vld [vmem:[%s31152_s1 + $0x328] sm:$0xff]  }
 0x12c   : > { %20821 = vmatprep.mubr.msk.bf16.mxu0 %vm363_vm0, %v22172_v33  ;;  %20789 = vmatprep.mubr.msk.bf16.mxu1 %vm363_vm0, %v22173_v34  ;;  %v23755_v41 = vpop.permute.xlu0 %5158  ;;  %v22187_v33 = vld [vmem:[%s31152_s1 + $0x278] sm:$0xff]  }
 0x12d   : > { %v23763_v47 = vpop.permute.xlu1 %5160 }
 0x12e   : > { %8959 = vrot.lane.b32.xlu0 %v23674_v13, %s31168_s9 }
 0x12f   : > { %8961 = vrot.lane.b32.xlu1 %v23682_v17, %s31168_s9 }
 0x130   : > { %v23769_v48 = vpop.permute.xlu0 %5363 }
 0x131   : > { %31191 = vst [vmem:[#allocation7_spill] sm:$0xff] %v23769_v48  ;;  %v23777_v55 = vpop.permute.xlu1 %5365 }
 0x132   : > { %31192 = vst [vmem:[#allocation8_spill] sm:$0xff] %v23777_v55  ;;  %8750 = vrot.lane.b32.xlu0 %v23702_v25, %s22855_s8  ;;  %20790 = vmatmul.mubr.msk.bf16.vlgmr.msra.gmra.mxu1 %vm363_vm0, %v22175_v45  ;;  %v22188_v45 = vld [vmem:[%s31152_s1 + $0x330] sm:$0xff]  }
 0x133   : > { %20822 = vmatmul.mubr.msk.bf16.gmra.mxu0 %vm363_vm0, %v22174_v42  ;;  %8752 = vrot.lane.b32.xlu1 %v23705_v21, %s22855_s8 }
 0x134   : > { %20849 = vmatprep.mubr.msk.bf16.mxu0 %vm363_vm0, %v22176_v50  ;;  %20793 = vmatprep.mubr.msk.bf16.mxu1 %vm363_vm0, %v22177_v54  ;;  %v23793_v0 = vpop.permute.xlu0 %5572  ;;  %v22189_v50 = vld [vmem:[%s31152_s1 + $0x2c0] sm:$0xff]  }
 0x135   : > { %v23798_v4 = vpop.permute.xlu1 %5574  ;;  %20826 = vmatpush3.bf16.msra.mxu1 %v23664_v10  ;;  %v23821_v10 = vsel %vm3000_vm14, %v23405_v53, %v23413_v56  ;;  %v22182_v53 = vld [vmem:[%s31152_s1 + $0x318] sm:$0xff]  }
 0x136   : > { %8955 = vrot.lane.b32.xlu0 %v23702_v25, %s31168_s9  ;;  %20827 = vmatprep.subr.bf16.mxu1 %v2587_v58 }
 0x137   : > { %8957 = vrot.lane.b32.xlu1 %v23705_v21, %s31168_s9 }
 0x138   : > { %v23805_v43 = vpop.permute.xlu0 %5777 }
 0x139   : > { %31193 = vst [vmem:[#allocation9_spill] sm:$0xff] %v23805_v43  ;;  %v23813_v36 = vpop.permute.xlu1 %5779  ;;  %20828 = vmatpush3.bf16.msra.mxu1 %v2587_v58 }
 0x13a   : > { %31194 = vst [vmem:[#allocation10_spill] sm:$0xff] %v23813_v36  ;;  %9164 = vrot.lane.b32.xlu0 %v23674_v13, %s31166_s10  ;;  %20794 = vmatmul.mubr.msk.bf16.gmra.mxu1 %vm363_vm0, %v22179_v60  ;;  %v22190_v60 = vld [vmem:[%s31152_s1 + $0x338] sm:$0xff]  }
 0x13b   : > { %20850 = vmatmul.mubr.msk.bf16.vlgmr.msra.gmra.mxu0 %vm363_vm0, %v22178_v27  ;;  %9166 = vrot.lane.b32.xlu1 %v23682_v17, %s31166_s10  ;;  %v22191_v27 = vld [vmem:[%s31152_s1 + $0x2c8] sm:$0xff]  }
 0x13c   : > { %20853 = vmatprep.mubr.msk.bf16.mxu0 %vm363_vm0, %v22180_v46  ;;  %20797 = vmatprep.mubr.msk.bf16.mxu1 %vm363_vm0, %v22181_v12  ;;  %v23834_v22 = vpop.permute.xlu0 %5568 }
 0x13d   : > { %31195 = vst [vmem:[#allocation11_spill] sm:$0xff] %v23834_v22  ;;  %v23839_v56 = vpop.permute.xlu1 %5570  ;;  %20886 = vmatpush3.bf16.msra.mxu0 %v23715_v28  ;;  %20865 = vmatprep.subr.bf16.mxu1 %v23821_v10 }
 0x13e   : > { %31196 = vst [vmem:[#allocation12_spill] sm:$0xff] %v23839_v56  ;;  %9369 = vrot.lane.b32.xlu0 %v23674_v13, %s31197_s7  ;;  %20887 = vmatprep.subr.bf16.mxu0 %v3208_v59 }
 0x13f   : > { %9371 = vrot.lane.b32.xlu1 %v23682_v17, %s31197_s7 }
 0x140   : > { %v23847_v14 = vpop.permute.xlu0 %5773 }
 0x141   : > { %31198 = vst [vmem:[#allocation13_spill] sm:$0xff] %v23847_v14  ;;  %v23855_v28 = vpop.permute.xlu1 %5775  ;;  %20888 = vmatpush3.bf16.msra.mxu0 %v3208_v59  ;;  %v22192_v59 = vld [vmem:[%s31152_s1 + $0x380] sm:$0xff]  }
 0x142   : > { %31199 = vst [vmem:[#allocation14_spill] sm:$0xff] %v23855_v28  ;;  %9160 = vrot.lane.b32.xlu0 %v23702_v25, %s31166_s10  ;;  %20798 = vmatmul.mubr.msk.bf16.gmra.mxu1 %vm363_vm0, %v22183_v19  ;;  %v22193_v19 = vld [vmem:[%s31152_s1 + $0x2d0] sm:$0xff]  }
 0x143   : > { %20854 = vmatmul.mubr.msk.bf16.gmra.mxu0 %vm363_vm0, %v22182_v53  ;;  %9162 = vrot.lane.b32.xlu1 %v23705_v21, %s31166_s10 }
 0x144   : > { %20857 = vmatprep.mubr.msk.bf16.mxu0 %vm363_vm0, %v22184_v18  ;;  %20801 = vmatprep.mubr.msk.bf16.mxu1 %vm363_vm0, %v22185_v29  ;;  %v23873_v34 = vpop.permute.xlu0 %5982  ;;  %v3001_v29 = vsel %vm3000_vm14, %v23441_v62, %v23449_v1 }
 0x145   : > { %31200 = vst [vmem:[#allocation15_spill] sm:$0xff] %v23873_v34  ;;  %v23878_v23 = vpop.permute.xlu1 %5984  ;;  %20925 = vmatprep.subr.bf16.mxu0 %v23863_v3 }
 0x146   : > { %31201 = vst [vmem:[#allocation16_spill] sm:$0xff] %v23878_v23  ;;  %9365 = vrot.lane.b32.xlu0 %v23702_v25, %s31197_s7  ;;  %v22209_v23 = vld [vmem:[%s31152_s1 + $0x350] sm:$0xff]  }
 0x147   : > { %9367 = vrot.lane.b32.xlu1 %v23705_v21, %s31197_s7 }
 0x148   : > { %v23885_v42 = vpop.permute.xlu0 %6187 }
 0x149   : > { %31202 = vst [vmem:[#allocation17_spill] sm:$0xff] %v23885_v42  ;;  %v23893_v54 = vpop.permute.xlu1 %6189 }
 0x14a   : > { %31203 = vst [vmem:[#allocation18_spill] sm:$0xff] %v23893_v54  ;;  %9574 = vrot.lane.b32.xlu0 %v23674_v13, %s31204_s28  ;;  %20802 = vmatmul.mubr.msk.bf16.gmra.mxu1 %vm363_vm0, %v22187_v33 }
 0x14b   : > { %20858 = vmatmul.mubr.msk.bf16.gmra.mxu0 %vm363_vm0, %v22186_v15  ;;  %9576 = vrot.lane.b32.xlu1 %v23682_v17, %s31204_s28  ;;  %v22195_v15 = vld [vmem:[%s31152_s1 + $0x2d8] sm:$0xff]  }
 0x14c   : > { %20861 = vmatprep.mubr.msk.bf16.mxu0 %vm363_vm0, %v22188_v45  ;;  %20829 = vmatprep.mubr.msk.bf16.mxu1 %vm363_vm0, %v22189_v50  ;;  %v23903_v58 = vpop.permute.xlu0 %5978  ;;  %v22194_v50 = vld [vmem:[%s31152_s1 + $0x388] sm:$0xff]  }
 0x14d   : > { %31205 = vst [vmem:[#allocation19_spill] sm:$0xff] %v23903_v58  ;;  %v23911_v46 = vpop.permute.xlu1 %5980 }
 0x14e   : > { %31206 = vst [vmem:[#allocation20_spill] sm:$0xff] %v23911_v46  ;;  %9779 = vrot.lane.b32.xlu0 %v23674_v13, %s22860_s13 }
 0x14f   : > { %9781 = vrot.lane.b32.xlu1 %v23682_v17, %s22860_s13 }
 0x150   : > { %v23917_v12 = vpop.permute.xlu0 %6183 }
 0x151   : > { %31207 = vst [vmem:[#allocation21_spill] sm:$0xff] %v23917_v12  ;;  %v23925_v53 = vpop.permute.xlu1 %6185 }
 0x152   : > { %31208 = vst [vmem:[#allocation22_spill] sm:$0xff] %v23925_v53  ;;  %9570 = vrot.lane.b32.xlu0 %v23702_v25, %s31204_s28  ;;  %v23929_v18 = vpop.f32.mrf.mxu1  ;;  %20830 = vmatmul.mubr.msk.bf16.vlgmr.msra.gmra.mxu1 %vm363_vm0, %v22191_v27 }
 0x153   : > { %20862 = vmatmul.mubr.msk.bf16.gmra.mxu0 %vm363_vm0, %v22190_v60  ;;  %9572 = vrot.lane.b32.xlu1 %v23705_v21, %s31204_s28 }
 0x154   : > { %v23938_v33 = vpop.f32.mrf.mxu1  ;;  %20889 = vmatprep.mubr.msk.bf16.mxu0 %vm363_vm0, %v22192_v59  ;;  %20833 = vmatprep.mubr.msk.bf16.mxu1 %vm363_vm0, %v22193_v19  ;;  %v23945_v45 = vpop.permute.xlu0 %6392  ;;  %v22196_v59 = vld [vmem:[%s31152_s1 + $0x390] sm:$0xff]  }
 0x155   : > { %31209 = vst [vmem:[#allocation23_spill] sm:$0xff] %v23945_v45  ;;  %v23950_v60 = vpop.permute.xlu1 %6394  ;;  %20866 = vmatpush3.bf16.msra.mxu1 %v23821_v10  ;;  %v22197_v10 = vld [vmem:[%s31152_s1 + $0x2e0] sm:$0xff]  }
 0x156   : > { %31210 = vst [vmem:[#allocation24_spill] sm:$0xff] %v23950_v60  ;;  %9775 = vrot.lane.b32.xlu0 %v23702_v25, %s22860_s13  ;;  %v23955_v62 = vpop.f32.mrf.mxu1  ;;  %20867 = vmatprep.subr.bf16.mxu1 %v3001_v29  ;;  %v22205_v60 = vld [vmem:[%s31152_s1 + $0x340] sm:$0xff]  }
 0x157   : > { %9777 = vrot.lane.b32.xlu1 %v23705_v21, %s22860_s13 }
 0x158   : > { %v23959_v1 = vpop.f32.mrf.mxu1  ;;  %v23961_v27 = vpop.permute.xlu0 %6597 }
 0x159   : > { %31211 = vst [vmem:[#allocation25_spill] sm:$0xff] %v23961_v27  ;;  %v23969_v19 = vpop.permute.xlu1 %6599  ;;  %20868 = vmatpush3.bf16.msra.mxu1 %v3001_v29  ;;  %v23979_v27 = vsel %vm3414_vm13, %v23473_v8, %v23481_v11  ;;  %v3622_v29 = vsel %vm31171_vm15, %v23577_v35, %v23582_v39  ;;  %v22199_v8 = vld [vmem:[%s31152_s1 + $0x2e8] sm:$0xff]   ;;  %vm3828_vm15 = vcmask 138240  }
 0x15a   : > { %31212 = vst [vmem:[#allocation26_spill] sm:$0xff] %v23969_v19  ;;  %9984 = vrot.lane.b32.xlu0 %v23674_v13, %s22861_s14  ;;  %v23973_v12 = vpop.f32.mrf.mxu1  ;;  %20834 = vmatmul.mubr.msk.bf16.gmra.mxu1 %vm363_vm0, %v22195_v15  ;;  %v22198_v15 = vld [vmem:[%s31152_s1 + $0x398] sm:$0xff]  }
 0x15b   : > { %20890 = vmatmul.mubr.msk.bf16.vlgmr.msra.gmra.mxu0 %vm363_vm0, %v22194_v50  ;;  %9986 = vrot.lane.b32.xlu1 %v23682_v17, %s22861_s14  ;;  %v23984_v53 = vpop.f32.mrf.mxu0 }
 0x15c   : > { %v23989_v19 = vpop.f32.mrf.mxu1  ;;  %20893 = vmatprep.mubr.msk.bf16.mxu0 %vm363_vm0, %v22196_v59  ;;  %20837 = vmatprep.mubr.msk.bf16.mxu1 %vm363_vm0, %v22197_v10  ;;  %v23996_v11 = vpop.permute.xlu0 %6388 }
 0x15d   : > { %31213 = vst [vmem:[#allocation27_spill] sm:$0xff] %v23996_v11  ;;  %v24001_v50 = vpop.permute.xlu1 %6390  ;;  %20926 = vmatpush3.bf16.msra.mxu0 %v23863_v3  ;;  %v24004_v35 = vpop.f32.mrf.mxu0  ;;  %20905 = vmatprep.subr.bf16.mxu1 %v23979_v27  ;;  %v22200_v3 = vld [vmem:[%s31152_s1 + $0x3a0] sm:$0xff]  }
 0x15e   : > { %31214 = vst [vmem:[#allocation28_spill] sm:$0xff] %v24001_v50  ;;  %10189 = vrot.lane.b32.xlu0 %v23674_v13, %s22862_s15  ;;  %v24009_v39 = vpop.f32.mrf.mxu1  ;;  %20927 = vmatprep.subr.bf16.mxu0 %v3622_v29  ;;  %v22201_v50 = vld [vmem:[%s31152_s1 + $0x2f0] sm:$0xff]  }
 0x15f   : > { %10191 = vrot.lane.b32.xlu1 %v23682_v17, %s22862_s15  ;;  %v24013_v59 = vpop.f32.mrf.mxu0 }
 0x160   : > { %v24015_v10 = vpop.f32.mrf.mxu1  ;;  %v24017_v11 = vpop.permute.xlu0 %6593 }
 0x161   : > { %31215 = vst [vmem:[#allocation29_spill] sm:$0xff] %v24017_v11  ;;  %v24025_v42 = vpop.permute.xlu1 %6595  ;;  %20928 = vmatpush3.bf16.msra.mxu0 %v3622_v29  ;;  %v24027_v54 = vpop.f32.mrf.mxu0  ;;  %v24037_v11 = vsel %vm358_vm1, %v23608_v49, %v23613_v51  ;;  %v22202_v49 = vld [vmem:[%s31152_s1 + $0x3a8] sm:$0xff]  }
 0x162   : > { %31216 = vst [vmem:[#allocation30_spill] sm:$0xff] %v24025_v42  ;;  %9980 = vrot.lane.b32.xlu0 %v23702_v25, %s22861_s14  ;;  %v24031_v14 = vpop.f32.mrf.mxu1  ;;  %20838 = vmatmul.mubr.msk.bf16.gmra.mxu1 %vm363_vm0, %v22199_v8  ;;  %v22203_v8 = vld [vmem:[%s31152_s1 + $0x2f8] sm:$0xff]  }
 0x163   : > { %20894 = vmatmul.mubr.msk.bf16.gmra.mxu0 %vm363_vm0, %v22198_v15  ;;  %9982 = vrot.lane.b32.xlu1 %v23705_v21, %s22861_s14  ;;  %v24042_v29 = vpop.f32.mrf.mxu0 }
 0x164   : > { %v24044_v42 = vpop.f32.mrf.mxu1  ;;  %20897 = vmatprep.mubr.msk.bf16.mxu0 %vm363_vm0, %v22200_v3  ;;  %20841 = vmatprep.mubr.msk.bf16.mxu1 %vm363_vm0, %v22201_v50  ;;  %v24051_v28 = vpop.permute.xlu0 %6802 }
 0x165   : > { %31217 = vst [vmem:[#allocation31_spill] sm:$0xff] %v24051_v28  ;;  %v24056_v51 = vpop.permute.xlu1 %6804  ;;  %v24058_v15 = vpop.f32.mrf.mxu0  ;;  %20965 = vmatprep.subr.bf16.mxu0 %v24037_v11 }
 0x166   : > { %31218 = vst [vmem:[#allocation32_spill] sm:$0xff] %v24056_v51  ;;  %10185 = vrot.lane.b32.xlu0 %v23702_v25, %s22862_s15  ;;  %v24063_v50 = vpop.f32.mrf.mxu1  ;;  %v22204_v51 = vld [vmem:[%s31152_s1 + $0x3b0] sm:$0xff]  }
 0x167   : > { %10187 = vrot.lane.b32.xlu1 %v23705_v21, %s22862_s15  ;;  %v24067_v3 = vpop.f32.mrf.mxu0 }
 0x168   : > { %v24069_v28 = vpop.f32.mrf.mxu1  ;;  %v24071_v45 = vpop.permute.xlu0 %7007 }
 0x169   : > { %31219 = vst [vmem:[#allocation33_spill] sm:$0xff] %v24071_v45  ;;  %v24079_v58 = vpop.permute.xlu1 %7009  ;;  %v24081_v46 = vpop.f32.mrf.mxu0 }
 0x16a   : > { %31220 = vst [vmem:[#allocation34_spill] sm:$0xff] %v24079_v58  ;;  %10394 = vrot.lane.b32.xlu0 %v23674_v13, %s22863_s16  ;;  %v24085_v43 = vpop.f32.mrf.mxu1  ;;  %20842 = vmatmul.mubr.msk.bf16.gmra.mxu1 %vm363_vm0, %v22203_v8  ;;  %v22207_v58 = vld [vmem:[%s31152_s1 + $0x348] sm:$0xff]   ;;  %v22206_v8 = vld [vmem:[%s31152_s1 + $0x3b8] sm:$0xff]  }
 0x16b   : > { %20898 = vmatmul.mubr.msk.bf16.gmra.mxu0 %vm363_vm0, %v22202_v49  ;;  %10396 = vrot.lane.b32.xlu1 %v23682_v17, %s22863_s16  ;;  %v24091_v45 = vpop.f32.mrf.mxu0 }
 0x16c   : > { %v24093_v36 = vpop.f32.mrf.mxu1  ;;  %20901 = vmatprep.mubr.msk.bf16.mxu0 %vm363_vm0, %v22204_v51  ;;  %20869 = vmatprep.mubr.msk.bf16.mxu1 %vm363_vm0, %v22205_v60  ;;  %v24100_v48 = vpop.permute.xlu0 %6798 }
 0x16d   : > { %31221 = vst [vmem:[#allocation35_spill] sm:$0xff] %v24100_v48  ;;  %v24105_v49 = vpop.permute.xlu1 %6800  ;;  %v24107_v55 = vpop.f32.mrf.mxu0 }
 0x16e   : > { %31222 = vst [vmem:[#allocation36_spill] sm:$0xff] %v24105_v49  ;;  %10599 = vrot.lane.b32.xlu0 %v23674_v13, %s22864_s17  ;;  %v24111_v51 = vpop.f32.mrf.mxu1  ;;  %v22208_v49 = vld [vmem:[%s31152_s1 + $0x400] sm:$0xff]  }
 0x16f   : > { %10601 = vrot.lane.b32.xlu1 %v23682_v17, %s22864_s17  ;;  %v24115_v60 = vpop.f32.mrf.mxu0 }
 0x170   : > { %v24117_v34 = vpop.f32.mrf.mxu1  ;;  %v24119_v48 = vpop.permute.xlu0 %7003 }
 0x171   : > { %31223 = vst [vmem:[#allocation37_spill] sm:$0xff] %v24119_v48  ;;  %v24127_v22 = vpop.permute.xlu1 %7005  ;;  %v24129_v56 = vpop.f32.mrf.mxu0 }
 0x172   : > { %31224 = vst [vmem:[#allocation38_spill] sm:$0xff] %v24127_v22  ;;  %10390 = vrot.lane.b32.xlu0 %v23702_v25, %s22863_s16  ;;  %v20631_v31 = vpop.f32.mrf.mxu1  ;;  %20870 = vmatmul.mubr.msk.bf16.vlgmr.msra.gmra.mxu1 %vm363_vm0, %v22207_v58  ;;  %v3415_v22 = vsel %vm3414_vm13, %v23509_v5, %v23517_v20  ;;  %v22211_v58 = vld [vmem:[%s31152_s1 + $0x358] sm:$0xff]   ;;  %v22210_v5 = vld [vmem:[%s31152_s1 + $0x408] sm:$0xff]  }
 0x173   : > { %20902 = vmatmul.mubr.msk.bf16.gmra.mxu0 %vm363_vm0, %v22206_v8  ;;  %10392 = vrot.lane.b32.xlu1 %v23705_v21, %s22863_s16  ;;  %v604_v48 = vadd.f32 %v20631_v31, %v23929_v18  ;;  %v24138_v38 = vpop.f32.mrf.mxu0 }
 0x174   : > { %v595_v6 = vpop.f32.mrf.mxu1  ;;  %20929 = vmatprep.mubr.msk.bf16.mxu0 %vm363_vm0, %v22208_v49  ;;  %20873 = vmatprep.mubr.msk.bf16.mxu1 %vm363_vm0, %v22209_v23  ;;  %v24148_v8 = vpop.permute.xlu0 %7212 }
 0x175   : > { %v596_v16 = vadd.f32 %v595_v6, %v23938_v33  ;;  %v24152_v31 = vadd.f32 %v23984_v53, %v604_v48  ;;  %v24157_v20 = vpop.permute.xlu1 %7214  ;;  %20906 = vmatpush3.bf16.msra.mxu1 %v23979_v27  ;;  %v24160_v23 = vpop.f32.mrf.mxu0  ;;  %v22212_v27 = vld [vmem:[%s31152_s1 + $0x410] sm:$0xff]  }
 0x176   : > { %10595 = vrot.lane.b32.xlu0 %v23702_v25, %s22864_s17  ;;  %v20632_v18 = vpop.f32.mrf.mxu1  ;;  %20907 = vmatprep.subr.bf16.mxu1 %v3415_v22  ;;  %v22213_v25 = vld [vmem:[%s31152_s1 + $0x360] sm:$0xff]  }
 0x177   : > { %v24165_v6 = vadd.f32 %v24004_v35, %v596_v16  ;;  %10597 = vrot.lane.b32.xlu1 %v23705_v21, %s22864_s17  ;;  %v607_v48 = vadd.f32 %v20632_v18, %v23955_v62  ;;  %v24170_v53 = vpop.f32.mrf.mxu0 }
 0x178   : > { %v598_v33 = vpop.f32.mrf.mxu1  ;;  %v24172_v49 = vpop.permute.xlu0 %7417 }
 0x179   : > { %31225 = vst [vmem:[#allocation39_spill] sm:$0xff] %v24172_v49  ;;  %v599_v16 = vadd.f32 %v598_v33, %v23959_v1  ;;  %v24182_v35 = vadd.f32 %v24013_v59, %v607_v48  ;;  %v24184_v21 = vpop.permute.xlu1 %7419  ;;  %20908 = vmatpush3.bf16.msra.mxu1 %v3415_v22  ;;  %v24186_v62 = vpop.f32.mrf.mxu0  ;;  %v24194_v49 = vsel %vm3828_vm15, %v23551_v24, %v23559_v30  ;;  %v22215_v24 = vld [vmem:[%s31152_s1 + $0x368] sm:$0xff]  }
 0x17a   : > { %31226 = vst [vmem:[#allocation40_spill] sm:$0xff] %v24184_v21  ;;  %10804 = vrot.lane.b32.xlu0 %v23674_v13, %s22865_s18  ;;  %v20635_v18 = vpop.f32.mrf.mxu1  ;;  %20874 = vmatmul.mubr.msk.bf16.gmra.mxu1 %vm363_vm0, %v22211_v58  ;;  %v4394_v59 = vsel %vm358_vm1, %v23617_v52, %v23625_v57  ;;  %v22214_v52 = vld [vmem:[%s31152_s1 + $0x418] sm:$0xff]   ;;  %v24237_v48 = vld [vmem:[%s22921_s26 + $0x34] ss:$20 sps:$4 sm:$0xff]  }
 0x17b   : > { %v24197_v1 = vadd.f32 %v24027_v54, %v599_v16  ;;  %20930 = vmatmul.mubr.msk.bf16.vlgmr.msra.gmra.mxu0 %vm363_vm0, %v22210_v5  ;;  %10806 = vrot.lane.b32.xlu1 %v23682_v17, %s22865_s18  ;;  %v620_v22 = vadd.f32 %v20635_v18, %v23973_v12  ;;  %v24203_v13 = vpop.f32.mrf.mxu0  ;;  %v24229_v5 = vld [vmem:[%s22921_s26 + $0x30] ss:$20 sps:$4 sm:$0xff]  }
 0x17c   : > { %v611_v58 = vpop.f32.mrf.mxu1  ;;  %20933 = vmatprep.mubr.msk.bf16.mxu0 %vm363_vm0, %v22212_v27  ;;  %20877 = vmatprep.mubr.msk.bf16.mxu1 %vm363_vm0, %v22213_v25  ;;  %v24213_v30 = vpop.permute.xlu0 %7208  ;;  %v22216_v16 = vld [vmem:[%s31152_s1 + $0x420] sm:$0xff]  }
 0x17d   : > { %v612_v17 = vadd.f32 %v611_v58, %v23989_v19  ;;  %v24217_v54 = vadd.f32 %v24042_v29, %v620_v22  ;;  %v24222_v57 = vpop.permute.xlu1 %7210  ;;  %20966 = vmatpush3.bf16.msra.mxu0 %v24037_v11  ;;  %v24225_v12 = vpop.f32.mrf.mxu0  ;;  %20945 = vmatprep.subr.bf16.mxu1 %v24194_v49 }
 0x17e   : > { %11009 = vrot.lane.b32.xlu0 %v24229_v5, %s22866_s19  ;;  %v20636_v19 = vpop.f32.mrf.mxu1  ;;  %20967 = vmatprep.subr.bf16.mxu0 %v4394_v59 }
 0x17f   : > { %v24234_v29 = vadd.f32 %v24058_v15, %v612_v17  ;;  %11011 = vrot.lane.b32.xlu1 %v24237_v48, %s22866_s19  ;;  %v623_v11 = vadd.f32 %v20636_v19, %v24009_v39  ;;  %v24242_v33 = vpop.f32.mrf.mxu0  ;;  %v22217_v15 = vld [vmem:[%s31152_s1 + $0x370] sm:$0xff]   ;;  %v24261_v17 = vld [vmem:[%s22921_s26 + $0x8] ss:$20 sps:$4 sm:$0xff]  }
 0x180   : > { %v614_v27 = vpop.f32.mrf.mxu1  ;;  %v24244_v25 = vpop.permute.xlu0 %7413 }
 0x181   : > { %31227 = vst [vmem:[#allocation41_spill] sm:$0xff] %v24244_v25  ;;  %v615_v18 = vadd.f32 %v614_v27, %v24015_v10  ;;  %v24254_v22 = vadd.f32 %v24067_v3, %v623_v11  ;;  %v24256_v39 = vpop.permute.xlu1 %7415  ;;  %20968 = vmatpush3.bf16.msra.mxu0 %v4394_v59  ;;  %v24258_v58 = vpop.f32.mrf.mxu0  ;;  %v24269_v10 = vsel %vm723_vm2, %v23639_v63, %v23644_v2  ;;  %v24276_v59 = vld [vmem:[%s22921_s26 + $0xc] ss:$20 sps:$4 sm:$0xff]   ;;  %v22219_v63 = vld [vmem:[%s31152_s1 + $0x378] sm:$0xff]   ;;  %v22220_v25 = vld [vmem:[%s31152_s1 + $0x430] sm:$0xff]  }
 0x182   : > { %31228 = vst [vmem:[#allocation42_spill] sm:$0xff] %v24256_v39  ;;  %10800 = vrot.lane.b32.xlu0 %v24261_v17, %s22865_s18  ;;  %v20639_v19 = vpop.f32.mrf.mxu1  ;;  %20878 = vmatmul.mubr.msk.bf16.gmra.mxu1 %vm363_vm0, %v22215_v24  ;;  %v22221_v39 = vld [vmem:[%s31152_s1 + $0x3c0] sm:$0xff]  }
 0x183   : > { %v24272_v3 = vadd.f32 %v24081_v46, %v615_v18  ;;  %20934 = vmatmul.mubr.msk.bf16.gmra.mxu0 %vm363_vm0, %v22214_v52  ;;  %10802 = vrot.lane.b32.xlu1 %v24276_v59, %s22865_s18  ;;  %v636_v11 = vadd.f32 %v20639_v19, %v24031_v14  ;;  %v24281_v27 = vpop.f32.mrf.mxu0  ;;  %v22218_v14 = vld [vmem:[%s31152_s1 + $0x428] sm:$0xff]  }
 0x184   : > { %v627_v24 = vpop.f32.mrf.mxu1  ;;  %20937 = vmatprep.mubr.msk.bf16.mxu0 %vm363_vm0, %v22216_v16  ;;  %20881 = vmatprep.mubr.msk.bf16.mxu1 %vm363_vm0, %v22217_v15  ;;  %v24288_v2 = vpop.permute.xlu0 %7622 }
 0x185   : > { %v628_v46 = vadd.f32 %v627_v24, %v24044_v42  ;;  %v24292_v52 = vadd.f32 %v24091_v45, %v636_v11  ;;  %v24297_v18 = vpop.permute.xlu1 %7624  ;;  %v24299_v16 = vpop.f32.mrf.mxu0  ;;  %21005 = vmatprep.subr.bf16.mxu0 %v24269_v10 }
 0x186   : > { %11005 = vrot.lane.b32.xlu0 %v24261_v17, %s22866_s19  ;;  %v20640_v15 = vpop.f32.mrf.mxu1 }
 0x187   : > { %v24305_v19 = vadd.f32 %v24107_v55, %v628_v46  ;;  %11007 = vrot.lane.b32.xlu1 %v24276_v59, %s22866_s19  ;;  %v639_v42 = vadd.f32 %v20640_v15, %v24063_v50  ;;  %v24310_v45 = vpop.f32.mrf.mxu0 }
 0x188   : > { %v630_v11 = vpop.f32.mrf.mxu1  ;;  %v24312_v24 = vpop.permute.xlu0 %7827 }
 0x189   : > { %31229 = vst [vmem:[#allocation43_spill] sm:$0xff] %v24312_v24  ;;  %v631_v55 = vadd.f32 %v630_v11, %v24069_v28  ;;  %v24322_v46 = vadd.f32 %v24115_v60, %v639_v42  ;;  %v24324_v21 = vpop.permute.xlu1 %7829  ;;  %v24326_v50 = vpop.f32.mrf.mxu0 }
 0x18a   : > { %31230 = vst [vmem:[#allocation44_spill] sm:$0xff] %v24324_v21  ;;  %11214 = vrot.lane.b32.xlu0 %v24229_v5, %s22867_s20  ;;  %v20643_v15 = vpop.f32.mrf.mxu1  ;;  %20882 = vmatmul.mubr.msk.bf16.gmra.mxu1 %vm363_vm0, %v22219_v63  ;;  %v22223_v63 = vld [vmem:[%s31152_s1 + $0x3c8] sm:$0xff]   ;;  %v22224_v21 = vld [vmem:[%s31152_s1 + $0x40] sm:$0xff]  }
 0x18b   : > { %v24332_v24 = vadd.f32 %v24129_v56, %v631_v55  ;;  %20938 = vmatmul.mubr.msk.bf16.gmra.mxu0 %vm363_vm0, %v22218_v14  ;;  %11216 = vrot.lane.b32.xlu1 %v24237_v48, %s22867_s20  ;;  %v652_v28 = vadd.f32 %v20643_v15, %v24085_v43  ;;  %v24338_v60 = vpop.f32.mrf.mxu0  ;;  %v22222_v43 = vld [vmem:[%s31152_s1 + $0x438] sm:$0xff]  }
 0x18c   : > { %v643_v42 = vpop.f32.mrf.mxu1  ;;  %20941 = vmatprep.mubr.msk.bf16.mxu0 %vm363_vm0, %v22220_v25  ;;  %20909 = vmatprep.mubr.msk.bf16.mxu1 %vm363_vm0, %v22221_v39  ;;  %v24345_v56 = vpop.permute.xlu0 %7618 }
 0x18d   : > { %31231 = vst [vmem:[#allocation45_spill] sm:$0xff] %v24345_v56  ;;  %v644_v14 = vadd.f32 %v643_v42, %v24093_v36  ;;  %v24349_v11 = vadd.f32 %v24138_v38, %v652_v28  ;;  %v24354_v55 = vpop.permute.xlu1 %7620  ;;  %v24356_v25 = vpop.f32.mrf.mxu0  ;;  %v22225_v56 = vld [vmem:[%s31152_s1 + $0x3d0] sm:$0xff]  }
 0x18e   : > { %31232 = vst [vmem:[#allocation46_spill] sm:$0xff] %v24354_v55  ;;  %11419 = vrot.lane.b32.xlu0 %v24229_v5, %s22868_s23  ;;  %v20644_v39 = vpop.f32.mrf.mxu1 }
 0x18f   : > { %v24361_v15 = vadd.f32 %v24160_v23, %v644_v14  ;;  %11421 = vrot.lane.b32.xlu1 %v24237_v48, %s22868_s23  ;;  %v655_v38 = vadd.f32 %v20644_v39, %v24111_v51  ;;  %v24366_v36 = vpop.f32.mrf.mxu0 }
 0x190   : > { %v646_v28 = vpop.f32.mrf.mxu1  ;;  %v24368_v42 = vpop.permute.xlu0 %7823 }
 0x191   : > { %31233 = vst [vmem:[#allocation47_spill] sm:$0xff] %v24368_v42  ;;  %v647_v23 = vadd.f32 %v646_v28, %v24117_v34  ;;  %v24378_v14 = vadd.f32 %v24170_v53, %v655_v38  ;;  %v24380_v55 = vpop.permute.xlu1 %7825  ;;  %v24382_v51 = vpop.f32.mrf.mxu0  ;;  %v3829_v38 = vsel %vm3828_vm15, %v23587_v40, %v23595_v44  ;;  %v22226_v40 = vld [vmem:[%s31152_s1 + $0x48] sm:$0xff]  }
 0x192   : > { %31234 = vst [vmem:[#allocation48_spill] sm:$0xff] %v24380_v55  ;;  %11210 = vrot.lane.b32.xlu0 %v24261_v17, %s22867_s20  ;;  %v20671_v39 = vpop.f32.mrf.mxu1  ;;  %20910 = vmatmul.mubr.msk.bf16.vlgmr.msra.gmra.mxu1 %vm363_vm0, %v22223_v63 }
 0x193   : > { %v24388_v42 = vadd.f32 %v24186_v62, %v647_v23  ;;  %20942 = vmatmul.mubr.msk.bf16.gmra.mxu0 %vm363_vm0, %v22222_v43  ;;  %11212 = vrot.lane.b32.xlu1 %v24276_v59, %s22867_s20  ;;  %v1058_v34 = vadd.f32 %v20671_v39, %v24152_v31  ;;  %v24394_v53 = vpop.f32.mrf.mxu0  ;;  %v22227_v62 = vld [vmem:[%s31152_s1 + $0x3d8] sm:$0xff]  }
 0x194   : > { %v993_v28 = vpop.f32.mrf.mxu1  ;;  %20969 = vmatprep.mubr.msk.bf16.mxu0 %vm363_vm0, %v22224_v21  ;;  %20913 = vmatprep.mubr.msk.bf16.mxu1 %vm363_vm0, %v22225_v56  ;;  %v24404_v63 = vpop.permute.xlu0 %8392 }
 0x195   : > { %31235 = vst [vmem:[#allocation49_spill] sm:$0xff] %v24404_v63  ;;  %v1056_v43 = vadd.f32 %v993_v28, %v24165_v6  ;;  %v24408_v31 = vadd.f32 %v24203_v13, %v1058_v34  ;;  %v24413_v44 = vpop.permute.xlu1 %8394  ;;  %20946 = vmatpush3.bf16.msra.mxu1 %v24194_v49  ;;  %v24416_v21 = vpop.f32.mrf.mxu0  ;;  %v22228_v34 = vld [vmem:[%s31152_s1 + $0x50] sm:$0xff]   ;;  %v22229_v28 = vld [vmem:[%s31152_s1 + $0x3e0] sm:$0xff]  }
 0x196   : > { %11415 = vrot.lane.b32.xlu0 %v24261_v17, %s22868_s23  ;;  %v20672_v56 = vpop.f32.mrf.mxu1  ;;  %20947 = vmatprep.subr.bf16.mxu1 %v3829_v38 }
 0x197   : > { %v24421_v6 = vadd.f32 %v24225_v12, %v1056_v43  ;;  %11417 = vrot.lane.b32.xlu1 %v24276_v59, %s22868_s23  ;;  %v1059_v13 = vadd.f32 %v20672_v56, %v24182_v35  ;;  %v24426_v23 = vpop.f32.mrf.mxu0  ;;  %v24445_v56 = vld [vmem:[%s22921_s26 + $0x2c] ss:$20 sps:$4 sm:$0xff]  }
 0x198   : > { %v996_v39 = vpop.f32.mrf.mxu1  ;;  %v24428_v49 = vpop.permute.xlu0 %8388 }
 0x199   : > { %31236 = vst [vmem:[#allocation50_spill] sm:$0xff] %v24428_v49  ;;  %v1057_v12 = vadd.f32 %v996_v39, %v24197_v1  ;;  %v24438_v43 = vadd.f32 %v24242_v33, %v1059_v13  ;;  %v24440_v55 = vpop.permute.xlu1 %8390  ;;  %20948 = vmatpush3.bf16.msra.mxu1 %v3829_v38  ;;  %v24442_v35 = vpop.f32.mrf.mxu0  ;;  %v4756_v38 = vsel %vm723_vm2, %v23679_v37, %v23687_v61  ;;  %v22230_v37 = vld [vmem:[%s31152_s1 + $0x58] sm:$0xff]  }
 0x19a   : > { %11624 = vrot.lane.b32.xlu0 %v24229_v5, %s31185_s11  ;;  %v20675_v49 = vpop.f32.mrf.mxu1  ;;  %20914 = vmatmul.mubr.msk.bf16.gmra.mxu1 %vm363_vm0, %v22227_v62 }
 0x19b   : > { %v24451_v63 = vadd.f32 %v24258_v58, %v1057_v12  ;;  %20970 = vmatmul.mubr.msk.bf16.vlgmr.msra.gmra.mxu0 %vm363_vm0, %v22226_v40  ;;  %11626 = vrot.lane.b32.xlu1 %v24237_v48, %s31185_s11  ;;  %v1062_v1 = vadd.f32 %v20675_v49, %v24217_v54  ;;  %v24457_v33 = vpop.f32.mrf.mxu0  ;;  %v22231_v58 = vld [vmem:[%s31152_s1 + $0x3e8] sm:$0xff]   ;;  %v22232_v12 = vld [vmem:[%s31152_s1 + $0x60] sm:$0xff]  }
 0x19c   : > { %v1009_v13 = vpop.f32.mrf.mxu1  ;;  %20973 = vmatprep.mubr.msk.bf16.mxu0 %vm363_vm0, %v22228_v34  ;;  %20917 = vmatprep.mubr.msk.bf16.mxu1 %vm363_vm0, %v22229_v28  ;;  %v24467_v62 = vpop.permute.xlu0 %8754 }
 0x19d   : > { %v1060_v40 = vadd.f32 %v1009_v13, %v24234_v29  ;;  %v24471_v54 = vadd.f32 %v24281_v27, %v1062_v1  ;;  %v24476_v61 = vpop.permute.xlu1 %8756  ;;  %21006 = vmatpush3.bf16.msra.mxu0 %v24269_v10  ;;  %v24479_v39 = vpop.f32.mrf.mxu0  ;;  %20985 = vmatprep.subr.bf16.mxu1 %v24445_v56 }
 0x19e   : > { %11829 = vrot.lane.b32.xlu0 %v24229_v5, %s31186_s25  ;;  %v20676_v49 = vpop.f32.mrf.mxu1  ;;  %21007 = vmatprep.subr.bf16.mxu0 %v4756_v38  ;;  %v22233_v5 = vld [vmem:[%s31152_s1 + $0x3f0] sm:$0xff]  }
 0x19f   : > { %v24485_v29 = vadd.f32 %v24299_v16, %v1060_v40  ;;  %11831 = vrot.lane.b32.xlu1 %v24237_v48, %s31186_s25  ;;  %v1063_v27 = vadd.f32 %v20676_v49, %v24254_v22  ;;  %v24490_v34 = vpop.f32.mrf.mxu0 }
 0x1a0   : > { %v1012_v10 = vpop.f32.mrf.mxu1  ;;  %v24492_v28 = vpop.permute.xlu0 %8959 }
 0x1a1   : > { %31237 = vst [vmem:[#allocation51_spill] sm:$0xff] %v24492_v28  ;;  %v1061_v16 = vadd.f32 %v1012_v10, %v24272_v3  ;;  %v24502_v1 = vadd.f32 %v24310_v45, %v1063_v27  ;;  %v24504_v48 = vpop.permute.xlu1 %8961  ;;  %21008 = vmatpush3.bf16.msra.mxu0 %v4756_v38  ;;  %v24506_v22 = vpop.f32.mrf.mxu0  ;;  %v24514_v3 = vsel %vm1137_vm4, %v23725_v32, %v23730_v7  ;;  %v22238_v32 = vld [vmem:[%s31152_s1 + $0x3f8] sm:$0xff]  }
 0x1a2   : > { %31238 = vst [vmem:[#allocation52_spill] sm:$0xff] %v24504_v48  ;;  %11620 = vrot.lane.b32.xlu0 %v24261_v17, %s31185_s11  ;;  %v20679_v13 = vpop.f32.mrf.mxu1  ;;  %20918 = vmatmul.mubr.msk.bf16.gmra.mxu1 %vm363_vm0, %v22231_v58  ;;  %v24528_v58 = vld [vmem:[%s22921_s26 + $0x34] ss:$20 sps:$4 sm:$0xff]   ;;  %v24543_v27 = vld [vmem:[%s22921_s26 + $0x38] ss:$20 sps:$4 sm:$0xff]  }
 0x1a3   : > { %v24517_v45 = vadd.f32 %v24326_v50, %v1061_v16  ;;  %20974 = vmatmul.mubr.msk.bf16.gmra.mxu0 %vm363_vm0, %v22230_v37  ;;  %11622 = vrot.lane.b32.xlu1 %v24276_v59, %s31185_s11  ;;  %v1066_v38 = vadd.f32 %v20679_v13, %v24292_v52  ;;  %v24523_v40 = vpop.f32.mrf.mxu0  ;;  %v22236_v52 = vld [vmem:[%s31152_s1 + $0x68] sm:$0xff]  }
 0x1a4   : > { %v1025_v49 = vpop.f32.mrf.mxu1  ;;  %20977 = vmatprep.mubr.msk.bf16.mxu0 %vm363_vm0, %v22232_v12  ;;  %20921 = vmatprep.mubr.msk.bf16.mxu1 %vm363_vm0, %v22233_v5  ;;  %v24533_v7 = vpop.permute.xlu0 %8750 }
 0x1a5   : > { %31239 = vst [vmem:[#allocation53_spill] sm:$0xff] %v24533_v7  ;;  %v1064_v50 = vadd.f32 %v1025_v49, %v24305_v19  ;;  %v24537_v37 = vadd.f32 %v24338_v60, %v1066_v38  ;;  %v24545_v10 = vpop.permute.xlu1 %8752  ;;  %v24547_v12 = vpop.f32.mrf.mxu0  ;;  %21045 = vmatprep.subr.bf16.mxu0 %v24514_v3  ;;  %v22242_v49 = vld [vmem:[%s31152_s1 + $0x70] sm:$0xff]  }
 0x1a6   : > { %11825 = vrot.lane.b32.xlu0 %v24261_v17, %s31186_s25  ;;  %v20680_v19 = vpop.f32.mrf.mxu1  ;;  %v22243_v17 = vld [vmem:[%s31152_s1 + $0x440] sm:$0xff]  }
 0x1a7   : > { %v24553_v60 = vadd.f32 %v24356_v25, %v1064_v50  ;;  %11827 = vrot.lane.b32.xlu1 %v24276_v59, %s31186_s25  ;;  %v1067_v5 = vadd.f32 %v20680_v19, %v24322_v46  ;;  %v24558_v16 = vpop.f32.mrf.mxu0  ;;  %v24573_v59 = vld [vmem:[%s22921_s26 + $0xc] ss:$20 sps:$4 sm:$0xff]   ;;  %v24576_v46 = vld [vmem:[%s22921_s26 + $0x10] ss:$20 sps:$4 sm:$0xff]  }
 0x1a8   : > { %v1028_v13 = vpop.f32.mrf.mxu1  ;;  %v24560_v38 = vpop.permute.xlu0 %8955 }
 0x1a9   : > { %31240 = vst [vmem:[#allocation54_spill] sm:$0xff] %v24560_v38  ;;  %v1065_v25 = vadd.f32 %v1028_v13, %v24332_v24  ;;  %v24570_v50 = vadd.f32 %v24366_v36, %v1067_v5  ;;  %v24578_v19 = vpop.permute.xlu1 %8957  ;;  %v24580_v38 = vpop.f32.mrf.mxu0 }
 0x1aa   : > { %31241 = vst [vmem:[#allocation55_spill] sm:$0xff] %v24578_v19  ;;  %12394 = vrot.lane.b32.xlu0 %v24528_v58, %s22854_s27  ;;  %v20683_v28 = vpop.f32.mrf.mxu1  ;;  %20922 = vmatmul.mubr.msk.bf16.gmra.mxu1 %vm363_vm0, %v22238_v32  ;;  %v22245_v32 = vld [vmem:[%s31152_s1 + $0x448] sm:$0xff]   ;;  %v22246_v19 = vld [vmem:[%s31152_s1 + $0x80] sm:$0xff]  }
 0x1ab   : > { %v24586_v48 = vadd.f32 %v24382_v51, %v1065_v25  ;;  %20978 = vmatmul.mubr.msk.bf16.gmra.mxu0 %vm363_vm0, %v22236_v52  ;;  %12396 = vrot.lane.b32.xlu1 %v24543_v27, %s22854_s27  ;;  %v1070_v24 = vadd.f32 %v20683_v28, %v24349_v11  ;;  %v24592_v36 = vpop.f32.mrf.mxu0  ;;  %v22244_v11 = vld [vmem:[%s31152_s1 + $0x78] sm:$0xff]  }
 0x1ac   : > { %v1041_v5 = vpop.f32.mrf.mxu1  ;;  %20981 = vmatprep.mubr.msk.bf16.mxu0 %vm363_vm0, %v22242_v49  ;;  %20949 = vmatprep.mubr.msk.bf16.mxu1 %vm363_vm0, %v22243_v17  ;;  %v24599_v51 = vpop.permute.xlu0 %9164 }
 0x1ad   : > { %31242 = vst [vmem:[#allocation56_spill] sm:$0xff] %v24599_v51  ;;  %v1068_v52 = vadd.f32 %v1041_v5, %v24361_v15  ;;  %v24603_v13 = vadd.f32 %v24394_v53, %v1070_v24  ;;  %v24608_v28 = vpop.permute.xlu1 %9166  ;;  %v24610_v49 = vpop.f32.mrf.mxu0  ;;  %v22247_v51 = vld [vmem:[%s31152_s1 + $0x450] sm:$0xff]  }
 0x1ae   : > { %31243 = vst [vmem:[#allocation57_spill] sm:$0xff] %v24608_v28  ;;  %12390 = vrot.lane.b32.xlu0 %v24573_v59, %s22854_s27  ;;  %v20684_v17 = vpop.f32.mrf.mxu1 }
 0x1af   : > { %v24615_v25 = vadd.f32 %v24416_v21, %v1068_v52  ;;  %12392 = vrot.lane.b32.xlu1 %v24576_v46, %s22854_s27  ;;  %v1071_v15 = vadd.f32 %v20684_v17, %v24378_v14  ;;  %v24620_v53 = vpop.f32.mrf.mxu0  ;;  %v22259_v17 = vld [vmem:[%s22921_s26 + $0x4] ss:$20 sps:$4 sm:$0xff]  }
 0x1b0   : > { %v1044_v24 = vpop.f32.mrf.mxu1  ;;  %v24622_v5 = vpop.permute.xlu0 %9369 }
 0x1b1   : > { %31244 = vst [vmem:[#allocation58_spill] sm:$0xff] %v24622_v5  ;;  %v1069_v21 = vadd.f32 %v1044_v24, %v24388_v42  ;;  %v24632_v52 = vadd.f32 %v24426_v23, %v1071_v15  ;;  %v24634_v28 = vpop.permute.xlu1 %9371  ;;  %v24636_v14 = vpop.f32.mrf.mxu0 }
 0x1b2   : > { %31245 = vst [vmem:[#allocation59_spill] sm:$0xff] %v24634_v28  ;;  %12756 = vrot.lane.b32.xlu0 %v24528_v58, %s22855_s8  ;;  %v20711_v5 = vpop.f32.mrf.mxu1  ;;  %20950 = vmatmul.mubr.msk.bf16.vlgmr.msra.gmra.mxu1 %vm363_vm0, %v22245_v32  ;;  %v22249_v32 = vld [vmem:[%s31152_s1 + $0x458] sm:$0xff]   ;;  %v22250_v28 = vld [vmem:[%s31152_s1 + $0x90] sm:$0xff]  }
 0x1b3   : > { %v24643_v7 = vadd.f32 %v24442_v35, %v1069_v21  ;;  %20982 = vmatmul.mubr.msk.bf16.gmra.mxu0 %vm363_vm0, %v22244_v11  ;;  %12758 = vrot.lane.b32.xlu1 %v24543_v27, %s22855_s8  ;;  %v1472_v42 = vadd.f32 %v20711_v5, %v24408_v31  ;;  %v24649_v23 = vpop.f32.mrf.mxu0  ;;  %v22248_v31 = vld [vmem:[%s31152_s1 + $0x88] sm:$0xff]  }
 0x1b4   : > { %v1407_v15 = vpop.f32.mrf.mxu1  ;;  %21009 = vmatprep.mubr.msk.bf16.mxu0 %vm363_vm0, %v22246_v19  ;;  %20953 = vmatprep.mubr.msk.bf16.mxu1 %vm363_vm0, %v22247_v51  ;;  %v24656_v35 = vpop.permute.xlu0 %9160  ;;  %v31172_v51 = vmov 0  }
 0x1b5   : > { %31246 = vst [vmem:[#allocation60_spill] sm:$0xff] %v24656_v35  ;;  %v1470_v11 = vadd.f32 %v1407_v15, %v24421_v6  ;;  %v24660_v24 = vadd.f32 %v24457_v33, %v1472_v42  ;;  %v24665_v5 = vpop.permute.xlu1 %9162  ;;  %20986 = vmatpush3.bf16.msra.mxu1 %v24445_v56  ;;  %v24668_v19 = vpop.f32.mrf.mxu0  ;;  %22073 = vset.pattern.permute.xlu1 %v31172_v51 }
 0x1b6   : > { %12961 = vrot.lane.b32.xlu0 %v24528_v58, %s31247_s29  ;;  %v20712_v6 = vpop.f32.mrf.mxu1  ;;  %20987 = vmatprep.subr.bf16.mxu1 %v22259_v17 }
 0x1b7   : > { %v24674_v33 = vadd.f32 %v24479_v39, %v1470_v11  ;;  %12963 = vrot.lane.b32.xlu1 %v24543_v27, %s31247_s29  ;;  %v1473_v21 = vadd.f32 %v20712_v6, %v24438_v43  ;;  %v24679_v42 = vpop.f32.mrf.mxu0  ;;  %22072 = vset.pattern.permute.xlu0 %v31172_v51  ;;  %v22251_v39 = vld [vmem:[%s31152_s1 + $0x460] sm:$0xff]  }
 0x1b8   : > { %v1410_v56 = vpop.f32.mrf.mxu1  ;;  %v24682_v15 = vpop.permute.xlu0 %9365 }
 0x1b9   : > { %31248 = vst [vmem:[#allocation61_spill] sm:$0xff] %v24682_v15  ;;  %v1471_v11 = vadd.f32 %v1410_v56, %v24451_v63  ;;  %v24692_v35 = vadd.f32 %v24490_v34, %v1473_v21  ;;  %v24694_v43 = vpop.permute.xlu1 %9367  ;;  %20988 = vmatpush3.bf16.msra.mxu1 %v22259_v17  ;;  %v24696_v6 = vpop.f32.mrf.mxu0  ;;  %v24704_v15 = vsel %vm930_vm3, %v23649_v26, %v23657_v9  ;;  %v22253_v26 = vld [vmem:[%s31152_s1 + $0x468] sm:$0xff]  }
 0x1ba   : > { %31249 = vst [vmem:[#allocation62_spill] sm:$0xff] %v24694_v43  ;;  %12752 = vrot.lane.b32.xlu0 %v24573_v59, %s22855_s8  ;;  %v20715_v51 = vpop.f32.mrf.mxu1  ;;  %20954 = vmatmul.mubr.msk.bf16.gmra.mxu1 %vm363_vm0, %v22249_v32  ;;  %v5166_v32 = vsel %vm1137_vm4, %v23755_v41, %v23763_v47  ;;  %v22252_v41 = vld [vmem:[%s31152_s1 + $0x98] sm:$0xff]  }
 0x1bb   : > { %v24707_v63 = vadd.f32 %v24506_v22, %v1471_v11  ;;  %21010 = vmatmul.mubr.msk.bf16.vlgmr.msra.gmra.mxu0 %vm363_vm0, %v22248_v31  ;;  %12754 = vrot.lane.b32.xlu1 %v24576_v46, %s22855_s8  ;;  %v1476_v34 = vadd.f32 %v20715_v51, %v24471_v54  ;;  %v24713_v17 = vpop.f32.mrf.mxu0  ;;  %v22255_v11 = vld [vmem:[%s31152_s1 + $0x470] sm:$0xff]  }
 0x1bc   : > { %v1423_v21 = vpop.f32.mrf.mxu1  ;;  %21013 = vmatprep.mubr.msk.bf16.mxu0 %vm363_vm0, %v22250_v28  ;;  %20957 = vmatprep.mubr.msk.bf16.mxu1 %vm363_vm0, %v22251_v39  ;;  %v24723_v9 = vpop.permute.xlu0 %9574  ;;  %v22254_v39 = vld [vmem:[%s31152_s1 + $0xa0] sm:$0xff]  }
 0x1bd   : > { %v1474_v22 = vadd.f32 %v1423_v21, %v24485_v29  ;;  %v24727_v54 = vadd.f32 %v24523_v40, %v1476_v34  ;;  %v24732_v47 = vpop.permute.xlu1 %9576  ;;  %21046 = vmatpush3.bf16.msra.mxu0 %v24514_v3  ;;  %v24735_v28 = vpop.f32.mrf.mxu0  ;;  %21025 = vmatprep.subr.bf16.mxu1 %v24704_v15 }
 0x1be   : > { %12957 = vrot.lane.b32.xlu0 %v24573_v59, %s31247_s29  ;;  %v20716_v31 = vpop.f32.mrf.mxu1  ;;  %21047 = vmatprep.subr.bf16.mxu0 %v5166_v32 }
 0x1bf   : > { %v24741_v29 = vadd.f32 %v24547_v12, %v1474_v22  ;;  %12959 = vrot.lane.b32.xlu1 %v24576_v46, %s31247_s29  ;;  %v1477_v40 = vadd.f32 %v20716_v31, %v24502_v1  ;;  %v24746_v51 = vpop.f32.mrf.mxu0  ;;  %s31252_s29 = smov 118   ;;  %v24770_v31 = vsel %vm1551_vm5, %v23793_v0, %v23798_v4  ;;  %v22257_v0 = vld [vmem:[%s31152_s1 + $0x478] sm:$0xff]  }
 0x1c0   : > { %v1426_v3 = vpop.f32.mrf.mxu1  ;;  %v24748_v56 = vpop.permute.xlu0 %9779 }
 0x1c1   : > { %31250 = vst [vmem:[#allocation63_spill] sm:$0xff] %v24748_v56  ;;  %v1475_v12 = vadd.f32 %v1426_v3, %v24517_v45  ;;  %v24758_v34 = vadd.f32 %v24558_v16, %v1477_v40  ;;  %v24760_v21 = vpop.permute.xlu1 %9781  ;;  %21048 = vmatpush3.bf16.msra.mxu0 %v5166_v32  ;;  %v24762_v1 = vpop.f32.mrf.mxu0 }
 0x1c2   : > { %31251 = vst [vmem:[#allocation64_spill] sm:$0xff] %v24760_v21  ;;  %13166 = vrot.lane.b32.xlu0 %v24528_v58, %s31252_s29  ;;  %v20719_v22 = vpop.f32.mrf.mxu1  ;;  %20958 = vmatmul.mubr.msk.bf16.gmra.mxu1 %vm363_vm0, %v22253_v26  ;;  %v22265_v21 = vld [vmem:[%s31152_s1 + $0x10] sm:$0xff]  }
 0x1c3   : > { %v24773_v45 = vadd.f32 %v24580_v38, %v1475_v12  ;;  %21014 = vmatmul.mubr.msk.bf16.gmra.mxu0 %vm363_vm0, %v22252_v41  ;;  %13168 = vrot.lane.b32.xlu1 %v24543_v27, %s31252_s29  ;;  %v1480_v16 = vadd.f32 %v20719_v22, %v24537_v37  ;;  %v24779_v32 = vpop.f32.mrf.mxu0  ;;  %v22256_v37 = vld [vmem:[%s31152_s1 + $0xa8] sm:$0xff]  }
 0x1c4   : > { %v1439_v40 = vpop.f32.mrf.mxu1  ;;  %21017 = vmatprep.mubr.msk.bf16.mxu0 %vm363_vm0, %v22254_v39  ;;  %20961 = vmatprep.mubr.msk.bf16.mxu1 %vm363_vm0, %v22255_v11  ;;  %v24786_v4 = vpop.permute.xlu0 %9570 }
 0x1c5   : > { %v1478_v38 = vadd.f32 %v1439_v40, %v24553_v60  ;;  %v24790_v26 = vadd.f32 %v24592_v36, %v1480_v16  ;;  %v24795_v41 = vpop.permute.xlu1 %9572  ;;  %v24797_v3 = vpop.f32.mrf.mxu0  ;;  %21085 = vmatprep.subr.bf16.mxu0 %v24770_v31  ;;  %v22260_v16 = vld [vmem:[%s31152_s1 + $0xb0] sm:$0xff]   ;;  %v22261_v40 = vld [vmem:[%s31152_s1] sm:$0xff]  }
 0x1c6   : > { %13371 = vrot.lane.b32.xlu0 %v24528_v58, %s31197_s7  ;;  %v20720_v39 = vpop.f32.mrf.mxu1 }
 0x1c7   : > { %v24803_v11 = vadd.f32 %v24610_v49, %v1478_v38  ;;  %13373 = vrot.lane.b32.xlu1 %v24543_v27, %s31197_s7  ;;  %v1481_v60 = vadd.f32 %v20720_v39, %v24570_v50  ;;  %v24808_v36 = vpop.f32.mrf.mxu0 }
 0x1c8   : > { %v1442_v12 = vpop.f32.mrf.mxu1  ;;  %v24810_v22 = vpop.permute.xlu0 %9775 }
 0x1c9   : > { %31253 = vst [vmem:[#allocation65_spill] sm:$0xff] %v24810_v22  ;;  %v1479_v49 = vadd.f32 %v1442_v12, %v24586_v48  ;;  %v24820_v38 = vadd.f32 %v24620_v53, %v1481_v60  ;;  %v24822_v56 = vpop.permute.xlu1 %9777  ;;  %v24824_v50 = vpop.f32.mrf.mxu0 }
 0x1ca   : > { %31254 = vst [vmem:[#allocation66_spill] sm:$0xff] %v24822_v56  ;;  %13162 = vrot.lane.b32.xlu0 %v24573_v59, %s31252_s29  ;;  %v20723_v39 = vpop.f32.mrf.mxu1  ;;  %20962 = vmatmul.mubr.msk.bf16.gmra.mxu1 %vm363_vm0, %v22257_v0  ;;  %v22263_v0 = vld [vmem:[%s31152_s1 + $0x8] sm:$0xff]   ;;  %v22264_v56 = vld [vmem:[%s31152_s1 + $0x100] sm:$0xff]  }
 0x1cb   : > { %v24830_v22 = vadd.f32 %v24636_v14, %v1479_v49  ;;  %21018 = vmatmul.mubr.msk.bf16.gmra.mxu0 %vm363_vm0, %v22256_v37  ;;  %13164 = vrot.lane.b32.xlu1 %v24576_v46, %s31252_s29  ;;  %v1484_v48 = vadd.f32 %v20723_v39, %v24603_v13  ;;  %v24836_v53 = vpop.f32.mrf.mxu0  ;;  %v22262_v13 = vld [vmem:[%s31152_s1 + $0xb8] sm:$0xff]  }
 0x1cc   : > { %v1455_v60 = vpop.f32.mrf.mxu1  ;;  %21021 = vmatprep.mubr.msk.bf16.mxu0 %vm363_vm0, %v22260_v16  ;;  %20989 = vmatprep.mubr.msk.bf16.mxu1 %vm363_vm0, %v22261_v40  ;;  %v24843_v14 = vpop.permute.xlu0 %9984 }
 0x1cd   : > { %31255 = vst [vmem:[#allocation67_spill] sm:$0xff] %v24843_v14  ;;  %v1482_v37 = vadd.f32 %v1455_v60, %v24615_v25  ;;  %v24847_v12 = vadd.f32 %v24649_v23, %v1484_v48  ;;  %v24852_v49 = vpop.permute.xlu1 %9986  ;;  %v24854_v16 = vpop.f32.mrf.mxu0 }
 0x1ce   : > { %31256 = vst [vmem:[#allocation68_spill] sm:$0xff] %v24852_v49  ;;  %13367 = vrot.lane.b32.xlu0 %v24573_v59, %s31197_s7  ;;  %v20724_v40 = vpop.f32.mrf.mxu1 }
 0x1cf   : > { %v24859_v39 = vadd.f32 %v24668_v19, %v1482_v37  ;;  %13369 = vrot.lane.b32.xlu1 %v24576_v46, %s31197_s7  ;;  %v1485_v25 = vadd.f32 %v20724_v40, %v24632_v52  ;;  %v24864_v23 = vpop.f32.mrf.mxu0 }
 0x1d0   : > { %v1458_v48 = vpop.f32.mrf.mxu1  ;;  %v24866_v60 = vpop.permute.xlu0 %10189 }
 0x1d1   : > { %31257 = vst [vmem:[#allocation69_spill] sm:$0xff] %v24866_v60  ;;  %v1483_v19 = vadd.f32 %v1458_v48, %v24643_v7  ;;  %v24876_v37 = vadd.f32 %v24679_v42, %v1485_v25  ;;  %v24878_v43 = vpop.permute.xlu1 %10191  ;;  %v24880_v52 = vpop.f32.mrf.mxu0  ;;  %v31259_v25 = vld [vmem:[#allocation4_spill] sm:$0xff]  ;;  %v31260_v48 = vld [vmem:[#allocation3_spill] sm:$0xff] }
 0x1d2   : > { %31258 = vst [vmem:[#allocation70_spill] sm:$0xff] %v24878_v43  ;;  %13576 = vrot.lane.b32.xlu0 %v24528_v58, %s31204_s28  ;;  %v20751_v40 = vpop.f32.mrf.mxu1  ;;  %20990 = vmatmul.mubr.msk.bf16.vlgmr.msra.gmra.mxu1 %vm363_vm0, %v22263_v0  ;;  %v4961_v43 = vsel %vm930_vm3, %v31260_v48, %v31259_v25  ;;  %v22269_v48 = vld [vmem:[%s31152_s1 + $0x20] sm:$0xff]  }
 0x1d3   : > { %v24886_v60 = vadd.f32 %v24696_v6, %v1483_v19  ;;  %21022 = vmatmul.mubr.msk.bf16.gmra.mxu0 %vm363_vm0, %v22262_v13  ;;  %13578 = vrot.lane.b32.xlu1 %v24543_v27, %s31204_s28  ;;  %v1886_v7 = vadd.f32 %v20751_v40, %v24660_v24  ;;  %v24892_v42 = vpop.f32.mrf.mxu0  ;;  %v22267_v6 = vld [vmem:[%s31152_s1 + $0x18] sm:$0xff]   ;;  %v22266_v19 = vld [vmem:[%s31152_s1 + $0x108] sm:$0xff]  }
 0x1d4   : > { %v1821_v14 = vpop.f32.mrf.mxu1  ;;  %21049 = vmatprep.mubr.msk.bf16.mxu0 %vm363_vm0, %v22264_v56  ;;  %20993 = vmatprep.mubr.msk.bf16.mxu1 %vm363_vm0, %v22265_v21  ;;  %v24902_v0 = vpop.permute.xlu0 %9980 }
 0x1d5   : > { %31261 = vst [vmem:[#allocation4_spill] sm:$0xff] %v24902_v0  ;;  %v1884_v13 = vadd.f32 %v1821_v14, %v24674_v33  ;;  %v24906_v24 = vadd.f32 %v24713_v17, %v1886_v7  ;;  %v24911_v40 = vpop.permute.xlu1 %9982  ;;  %21026 = vmatpush3.bf16.msra.mxu1 %v24704_v15  ;;  %v24914_v56 = vpop.f32.mrf.mxu0  ;;  %v22268_v15 = vld [vmem:[%s31152_s1 + $0x110] sm:$0xff]  }
 0x1d6   : > { %31262 = vst [vmem:[#allocation3_spill] sm:$0xff] %v24911_v40  ;;  %13781 = vrot.lane.b32.xlu0 %v24528_v58, %s22860_s13  ;;  %v20752_v21 = vpop.f32.mrf.mxu1  ;;  %21027 = vmatprep.subr.bf16.mxu1 %v4961_v43  ;;  %v31266_v40 = vld [vmem:[#allocation5_spill] sm:$0xff] }
 0x1d7   : > { %v24919_v33 = vadd.f32 %v24735_v28, %v1884_v13  ;;  %13783 = vrot.lane.b32.xlu1 %v24543_v27, %s22860_s13  ;;  %v1887_v17 = vadd.f32 %v20752_v21, %v24692_v35  ;;  %v24924_v14 = vpop.f32.mrf.mxu0 }
 0x1d8   : > { %v1824_v7 = vpop.f32.mrf.mxu1  ;;  %v24926_v25 = vpop.permute.xlu0 %10185 }
 0x1d9   : > { %31263 = vst [vmem:[#allocation71_spill] sm:$0xff] %v24926_v25  ;;  %v1885_v28 = vadd.f32 %v1824_v7, %v24707_v63  ;;  %v24936_v13 = vadd.f32 %v24746_v51, %v1887_v17  ;;  %v24938_v0 = vpop.permute.xlu1 %10187  ;;  %21028 = vmatpush3.bf16.msra.mxu1 %v4961_v43  ;;  %v24940_v35 = vpop.f32.mrf.mxu0  ;;  %v31265_v25 = vld [vmem:[#allocation6_spill] sm:$0xff]  ;;  %v31267_v17 = vld [vmem:[#allocation12_spill] sm:$0xff]  ;;  %v31268_v7 = vld [vmem:[#allocation11_spill] sm:$0xff] }
 0x1da   : > { %31264 = vst [vmem:[#allocation72_spill] sm:$0xff] %v24938_v0  ;;  %13572 = vrot.lane.b32.xlu0 %v24573_v59, %s31204_s28  ;;  %v20755_v21 = vpop.f32.mrf.mxu1  ;;  %20994 = vmatmul.mubr.msk.bf16.gmra.mxu1 %vm363_vm0, %v22267_v6  ;;  %v24948_v49 = vsel %vm1344_vm6, %v31266_v40, %v31265_v25  ;;  %v5576_v6 = vsel %vm1551_vm5, %v31268_v7, %v31267_v17  ;;  %v22270_v25 = vld [vmem:[%s31152_s1 + $0x118] sm:$0xff]   ;;  %v22273_v17 = vld [vmem:[%s31152_s1 + $0x30] sm:$0xff]  }
 0x1db   : > { %v24951_v63 = vadd.f32 %v24762_v1, %v1885_v28  ;;  %21050 = vmatmul.mubr.msk.bf16.vlgmr.msra.gmra.mxu0 %vm363_vm0, %v22266_v19  ;;  %13574 = vrot.lane.b32.xlu1 %v24576_v46, %s31204_s28  ;;  %v1890_v43 = vadd.f32 %v20755_v21, %v24727_v54  ;;  %v24957_v51 = vpop.f32.mrf.mxu0  ;;  %v22271_v1 = vld [vmem:[%s31152_s1 + $0x28] sm:$0xff]  }
 0x1dc   : > { %v1837_v0 = vpop.f32.mrf.mxu1  ;;  %21053 = vmatprep.mubr.msk.bf16.mxu0 %vm363_vm0, %v22268_v15  ;;  %20997 = vmatprep.mubr.msk.bf16.mxu1 %vm363_vm0, %v22269_v48  ;;  %v24967_v19 = vpop.permute.xlu0 %10394 }
 0x1dd   : > { %31269 = vst [vmem:[#allocation6_spill] sm:$0xff] %v24967_v19  ;;  %v1888_v40 = vadd.f32 %v1837_v0, %v24741_v29  ;;  %v24971_v54 = vadd.f32 %v24779_v32, %v1890_v43  ;;  %v24976_v28 = vpop.permute.xlu1 %10396  ;;  %21086 = vmatpush3.bf16.msra.mxu0 %v24770_v31  ;;  %v24979_v15 = vpop.f32.mrf.mxu0  ;;  %21065 = vmatprep.subr.bf16.mxu1 %v24948_v49  ;;  %v22272_v43 = vld [vmem:[%s31152_s1 + $0x120] sm:$0xff]  }
 0x1de   : > { %31270 = vst [vmem:[#allocation5_spill] sm:$0xff] %v24976_v28  ;;  %13777 = vrot.lane.b32.xlu0 %v24573_v59, %s22860_s13  ;;  %v20756_v48 = vpop.f32.mrf.mxu1  ;;  %21087 = vmatprep.subr.bf16.mxu0 %v5576_v6  ;;  %v31274_v19 = vld [vmem:[#allocation15_spill] sm:$0xff] }
 0x1df   : > { %v24985_v29 = vadd.f32 %v24797_v3, %v1888_v40  ;;  %13779 = vrot.lane.b32.xlu1 %v24576_v46, %s22860_s13  ;;  %v1891_v32 = vadd.f32 %v20756_v48, %v24758_v34  ;;  %v24990_v0 = vpop.f32.mrf.mxu0 }
 0x1e0   : > { %v1840_v31 = vpop.f32.mrf.mxu1  ;;  %v24992_v21 = vpop.permute.xlu0 %10599 }
 0x1e1   : > { %31271 = vst [vmem:[#allocation12_spill] sm:$0xff] %v24992_v21  ;;  %v1889_v3 = vadd.f32 %v1840_v31, %v24773_v45  ;;  %v25002_v7 = vadd.f32 %v24808_v36, %v1891_v32  ;;  %v25004_v40 = vpop.permute.xlu1 %10601  ;;  %21088 = vmatpush3.bf16.msra.mxu0 %v5576_v6  ;;  %v25006_v34 = vpop.f32.mrf.mxu0  ;;  %v31273_v21 = vld [vmem:[#allocation16_spill] sm:$0xff] }
 0x1e2   : > { %31272 = vst [vmem:[#allocation11_spill] sm:$0xff] %v25004_v40  ;;  %13986 = vrot.lane.b32.xlu0 %v24528_v58, %s22861_s14  ;;  %v20759_v48 = vpop.f32.mrf.mxu1  ;;  %20998 = vmatmul.mubr.msk.bf16.gmra.mxu1 %vm363_vm0, %v22271_v1  ;;  %v25014_v28 = vsel %vm1965_vm7, %v31274_v19, %v31273_v21  ;;  %v22275_v1 = vld [vmem:[%s31152_s1 + $0x38] sm:$0xff]  }
 0x1e3   : > { %v25017_v45 = vadd.f32 %v24824_v50, %v1889_v3  ;;  %21054 = vmatmul.mubr.msk.bf16.gmra.mxu0 %vm363_vm0, %v22270_v25  ;;  %13988 = vrot.lane.b32.xlu1 %v24543_v27, %s22861_s14  ;;  %v1894_v36 = vadd.f32 %v20759_v48, %v24790_v26  ;;  %v25023_v6 = vpop.f32.mrf.mxu0  ;;  %v22274_v26 = vld [vmem:[%s31152_s1 + $0x128] sm:$0xff]  }
 0x1e4   : > { %v1853_v32 = vpop.f32.mrf.mxu1  ;;  %21057 = vmatprep.mubr.msk.bf16.mxu0 %vm363_vm0, %v22272_v43  ;;  %21001 = vmatprep.mubr.msk.bf16.mxu1 %vm363_vm0, %v22273_v17  ;;  %v25030_v50 = vpop.permute.xlu0 %10390 }
 0x1e5   : > { %31275 = vst [vmem:[#allocation16_spill] sm:$0xff] %v25030_v50  ;;  %v1892_v19 = vadd.f32 %v1853_v32, %v24803_v11  ;;  %v25034_v25 = vadd.f32 %v24836_v53, %v1894_v36  ;;  %v25039_v31 = vpop.permute.xlu1 %10392  ;;  %v25041_v21 = vpop.f32.mrf.mxu0  ;;  %21125 = vmatprep.subr.bf16.mxu0 %v25014_v28  ;;  %v22276_v36 = vld [vmem:[%s31152_s1 + $0x130] sm:$0xff]  }
 0x1e6   : > { %31276 = vst [vmem:[#allocation15_spill] sm:$0xff] %v25039_v31  ;;  %14191 = vrot.lane.b32.xlu0 %v24528_v58, %s22862_s15  ;;  %v20760_v43 = vpop.f32.mrf.mxu1  ;;  %v22277_v58 = vld [vmem:[%s31152_s1 + $0xc0] sm:$0xff]  }
 0x1e7   : > { %v25047_v17 = vadd.f32 %v24854_v16, %v1892_v19  ;;  %14193 = vrot.lane.b32.xlu1 %v24543_v27, %s22862_s15  ;;  %v1895_v11 = vadd.f32 %v20760_v43, %v24820_v38  ;;  %v25052_v53 = vpop.f32.mrf.mxu0 }
 0x1e8   : > { %v1856_v3 = vpop.f32.mrf.mxu1  ;;  %v25054_v48 = vpop.permute.xlu0 %10595 }
 0x1e9   : > { %31277 = vst [vmem:[#allocation73_spill] sm:$0xff] %v25054_v48  ;;  %v1893_v16 = vadd.f32 %v1856_v3, %v24830_v22  ;;  %v25064_v32 = vadd.f32 %v24864_v23, %v1895_v11  ;;  %v25066_v27 = vpop.permute.xlu1 %10597  ;;  %v25068_v38 = vpop.f32.mrf.mxu0  ;;  %v22280_v48 = vld [vmem:[%s31152_s1 + $0x180] sm:$0xff]  }
 0x1ea   : > { %31278 = vst [vmem:[#allocation74_spill] sm:$0xff] %v25066_v27  ;;  %13982 = vrot.lane.b32.xlu0 %v24573_v59, %s22861_s14  ;;  %v20763_v19 = vpop.f32.mrf.mxu1  ;;  %21002 = vmatmul.mubr.msk.bf16.gmra.mxu1 %vm363_vm0, %v22275_v1  ;;  %v22279_v1 = vld [vmem:[%s31152_s1 + $0xc8] sm:$0xff]  }
 0x1eb   : > { %v25074_v43 = vadd.f32 %v24880_v52, %v1893_v16  ;;  %21058 = vmatmul.mubr.msk.bf16.gmra.mxu0 %vm363_vm0, %v22274_v26  ;;  %13984 = vrot.lane.b32.xlu1 %v24576_v46, %s22861_s14  ;;  %v1898_v22 = vadd.f32 %v20763_v19, %v24847_v12  ;;  %v25080_v23 = vpop.f32.mrf.mxu0  ;;  %v22278_v12 = vld [vmem:[%s31152_s1 + $0x138] sm:$0xff]  }
 0x1ec   : > { %v1869_v11 = vpop.f32.mrf.mxu1  ;;  %21061 = vmatprep.mubr.msk.bf16.mxu0 %vm363_vm0, %v22276_v36  ;;  %21029 = vmatprep.mubr.msk.bf16.mxu1 %vm363_vm0, %v22277_v58  ;;  %v25087_v52 = vpop.permute.xlu0 %10804 }
 0x1ed   : > { %31279 = vst [vmem:[#allocation75_spill] sm:$0xff] %v25087_v52  ;;  %v1896_v26 = vadd.f32 %v1869_v11, %v24859_v39  ;;  %v25091_v3 = vadd.f32 %v24892_v42, %v1898_v22  ;;  %v25096_v16 = vpop.permute.xlu1 %10806  ;;  %v25098_v36 = vpop.f32.mrf.mxu0 }
 0x1ee   : > { %31280 = vst [vmem:[#allocation76_spill] sm:$0xff] %v25096_v16  ;;  %14187 = vrot.lane.b32.xlu0 %v24573_v59, %s22862_s15  ;;  %v20764_v58 = vpop.f32.mrf.mxu1  ;;  %v22281_v59 = vld [vmem:[%s31152_s1 + $0xd0] sm:$0xff]  }
 0x1ef   : > { %v25103_v19 = vadd.f32 %v24914_v56, %v1896_v26  ;;  %14189 = vrot.lane.b32.xlu1 %v24576_v46, %s22862_s15  ;;  %v1899_v39 = vadd.f32 %v20764_v58, %v24876_v37  ;;  %v25108_v42 = vpop.f32.mrf.mxu0  ;;  %v25127_v58 = vld [vmem:[%s22921_s26 + $0x34] ss:$20 sps:$4 sm:$0xff]  }
 0x1f0   : > { %v1872_v22 = vpop.f32.mrf.mxu1  ;;  %v25110_v11 = vpop.permute.xlu0 %11009  ;;  %v31290_v16 = vld [vmem:[#allocation9_spill] sm:$0xff] }
 0x1f1   : > { %31281 = vst [vmem:[#allocation77_spill] sm:$0xff] %v25110_v11  ;;  %v1897_v56 = vadd.f32 %v1872_v22, %v24886_v60  ;;  %v25120_v46 = vadd.f32 %v24924_v14, %v1899_v39  ;;  %v25122_v37 = vpop.permute.xlu1 %11011  ;;  %v25124_v26 = vpop.f32.mrf.mxu0  ;;  %v25137_v60 = vld [vmem:[%s22921_s26 + $0x38] ss:$20 sps:$4 sm:$0xff]  }
 0x1f2   : > { %31282 = vst [vmem:[#allocation78_spill] sm:$0xff] %v25122_v37  ;;  %14396 = vrot.lane.b32.xlu0 %v25127_v58, %s22863_s16  ;;  %v20791_v11 = vpop.f32.mrf.mxu1  ;;  %21030 = vmatmul.mubr.msk.bf16.vlgmr.msra.gmra.mxu1 %vm363_vm0, %v22279_v1  ;;  %v31283_v22 = vld [vmem:[#allocation8_spill] sm:$0xff]  ;;  %v31284_v37 = vld [vmem:[#allocation7_spill] sm:$0xff] }
 0x1f3   : > { %v25133_v27 = vadd.f32 %v24940_v35, %v1897_v56  ;;  %21062 = vmatmul.mubr.msk.bf16.gmra.mxu0 %vm363_vm0, %v22278_v12  ;;  %14398 = vrot.lane.b32.xlu1 %v25137_v60, %s22863_s16  ;;  %v2300_v14 = vadd.f32 %v20791_v11, %v24906_v24  ;;  %v25142_v39 = vpop.f32.mrf.mxu0  ;;  %v5371_v40 = vsel %vm1344_vm6, %v31284_v37, %v31283_v22  ;;  %v22283_v35 = vld [vmem:[%s31152_s1 + $0xd8] sm:$0xff]   ;;  %v22282_v11 = vld [vmem:[%s31152_s1 + $0x188] sm:$0xff]  }
 0x1f4   : > { %v2235_v52 = vpop.f32.mrf.mxu1  ;;  %21089 = vmatprep.mubr.msk.bf16.mxu0 %vm363_vm0, %v22280_v48  ;;  %21033 = vmatprep.mubr.msk.bf16.mxu1 %vm363_vm0, %v22281_v59  ;;  %v25152_v1 = vpop.permute.xlu0 %10800 }
 0x1f5   : > { %31285 = vst [vmem:[#allocation8_spill] sm:$0xff] %v25152_v1  ;;  %v2298_v12 = vadd.f32 %v2235_v52, %v24919_v33  ;;  %v25156_v24 = vadd.f32 %v24957_v51, %v2300_v14  ;;  %v25161_v56 = vpop.permute.xlu1 %10802  ;;  %21066 = vmatpush3.bf16.msra.mxu1 %v24948_v49  ;;  %v25164_v48 = vpop.f32.mrf.mxu0  ;;  %v22284_v14 = vld [vmem:[%s31152_s1 + $0x190] sm:$0xff]   ;;  %v25193_v1 = vld [vmem:[%s22921_s26 + $0xc] ss:$20 sps:$4 sm:$0xff]  }
 0x1f6   : > { %31286 = vst [vmem:[#allocation7_spill] sm:$0xff] %v25161_v56  ;;  %14601 = vrot.lane.b32.xlu0 %v25127_v58, %s22864_s17  ;;  %v20792_v59 = vpop.f32.mrf.mxu1  ;;  %21067 = vmatprep.subr.bf16.mxu1 %v5371_v40  ;;  %v31289_v56 = vld [vmem:[#allocation10_spill] sm:$0xff] }
 0x1f7   : > { %v25169_v33 = vadd.f32 %v24979_v15, %v2298_v12  ;;  %14603 = vrot.lane.b32.xlu1 %v25137_v60, %s22864_s17  ;;  %v2301_v51 = vadd.f32 %v20792_v59, %v24936_v13  ;;  %v25174_v52 = vpop.f32.mrf.mxu0  ;;  %v22285_v15 = vld [vmem:[%s31152_s1 + $0xe0] sm:$0xff]  }
 0x1f8   : > { %v2238_v37 = vpop.f32.mrf.mxu1  ;;  %v25176_v49 = vpop.permute.xlu0 %11005 }
 0x1f9   : > { %31287 = vst [vmem:[#allocation79_spill] sm:$0xff] %v25176_v49  ;;  %v2299_v22 = vadd.f32 %v2238_v37, %v24951_v63  ;;  %v25186_v12 = vadd.f32 %v24990_v0, %v2301_v51  ;;  %v25188_v13 = vpop.permute.xlu1 %11007  ;;  %21068 = vmatpush3.bf16.msra.mxu1 %v5371_v40  ;;  %v25190_v59 = vpop.f32.mrf.mxu0  ;;  %v25201_v63 = vsel %vm1758_vm8, %v31290_v16, %v31289_v56  ;;  %v25208_v40 = vld [vmem:[%s22921_s26 + $0x10] ss:$20 sps:$4 sm:$0xff]  }
 0x1fa   : > { %31288 = vst [vmem:[#allocation80_spill] sm:$0xff] %v25188_v13  ;;  %14392 = vrot.lane.b32.xlu0 %v25193_v1, %s22863_s16  ;;  %v20795_v49 = vpop.f32.mrf.mxu1  ;;  %21034 = vmatmul.mubr.msk.bf16.gmra.mxu1 %vm363_vm0, %v22283_v35  ;;  %v31291_v35 = vld [vmem:[#allocation20_spill] sm:$0xff]  ;;  %v31292_v13 = vld [vmem:[#allocation19_spill] sm:$0xff] }
 0x1fb   : > { %v25204_v0 = vadd.f32 %v25006_v34, %v2299_v22  ;;  %21090 = vmatmul.mubr.msk.bf16.vlgmr.msra.gmra.mxu0 %vm363_vm0, %v22282_v11  ;;  %14394 = vrot.lane.b32.xlu1 %v25208_v40, %s22863_s16  ;;  %v2304_v51 = vadd.f32 %v20795_v49, %v24971_v54  ;;  %v25213_v37 = vpop.f32.mrf.mxu0  ;;  %v5986_v50 = vsel %vm1965_vm7, %v31292_v13, %v31291_v35  ;;  %v22287_v34 = vld [vmem:[%s31152_s1 + $0xe8] sm:$0xff]   ;;  %v22286_v49 = vld [vmem:[%s31152_s1 + $0x198] sm:$0xff]   ;;  %v22288_v35 = vld [vmem:[%s31152_s1 + $0x1a0] sm:$0xff]  }
 0x1fc   : > { %v2251_v16 = vpop.f32.mrf.mxu1  ;;  %21093 = vmatprep.mubr.msk.bf16.mxu0 %vm363_vm0, %v22284_v14  ;;  %21037 = vmatprep.mubr.msk.bf16.mxu1 %vm363_vm0, %v22285_v15  ;;  %v25223_v11 = vpop.permute.xlu0 %11214 }
 0x1fd   : > { %31293 = vst [vmem:[#allocation10_spill] sm:$0xff] %v25223_v11  ;;  %v2302_v56 = vadd.f32 %v2251_v16, %v24985_v29  ;;  %v25227_v54 = vadd.f32 %v25023_v6, %v2304_v51  ;;  %v25232_v22 = vpop.permute.xlu1 %11216  ;;  %21126 = vmatpush3.bf16.msra.mxu0 %v25014_v28  ;;  %v25235_v14 = vpop.f32.mrf.mxu0  ;;  %21105 = vmatprep.subr.bf16.mxu1 %v25201_v63  ;;  %v22289_v16 = vld [vmem:[%s31152_s1 + $0xf0] sm:$0xff]  }
 0x1fe   : > { %31294 = vst [vmem:[#allocation9_spill] sm:$0xff] %v25232_v22  ;;  %14597 = vrot.lane.b32.xlu0 %v25193_v1, %s22864_s17  ;;  %v20796_v15 = vpop.f32.mrf.mxu1  ;;  %21127 = vmatprep.subr.bf16.mxu0 %v5986_v50  ;;  %v31298_v22 = vld [vmem:[#allocation23_spill] sm:$0xff] }
 0x1ff   : > { %v25241_v29 = vadd.f32 %v25041_v21, %v2302_v56  ;;  %14599 = vrot.lane.b32.xlu1 %v25208_v40, %s22864_s17  ;;  %v2305_v6 = vadd.f32 %v20796_v15, %v25002_v7  ;;  %v25246_v13 = vpop.f32.mrf.mxu0 }
 0x200   : > { %v2254_v28 = vpop.f32.mrf.mxu1  ;;  %v25248_v51 = vpop.permute.xlu0 %11419 }
 0x201   : > { %31295 = vst [vmem:[#allocation20_spill] sm:$0xff] %v25248_v51  ;;  %v2303_v21 = vadd.f32 %v2254_v28, %v25017_v45  ;;  %v25258_v56 = vadd.f32 %v25052_v53, %v2305_v6  ;;  %v25260_v11 = vpop.permute.xlu1 %11421  ;;  %21128 = vmatpush3.bf16.msra.mxu0 %v5986_v50  ;;  %v25262_v7 = vpop.f32.mrf.mxu0  ;;  %v31297_v51 = vld [vmem:[#allocation24_spill] sm:$0xff] }
 0x202   : > { %31296 = vst [vmem:[#allocation19_spill] sm:$0xff] %v25260_v11  ;;  %14806 = vrot.lane.b32.xlu0 %v25127_v58, %s22865_s18  ;;  %v20799_v15 = vpop.f32.mrf.mxu1  ;;  %21038 = vmatmul.mubr.msk.bf16.gmra.mxu1 %vm363_vm0, %v22287_v34  ;;  %v25270_v31 = vsel %vm2379_vm9, %v31298_v22, %v31297_v51  ;;  %v22291_v34 = vld [vmem:[%s31152_s1 + $0xf8] sm:$0xff]  }
 0x203   : > { %v25273_v45 = vadd.f32 %v25068_v38, %v2303_v21  ;;  %21094 = vmatmul.mubr.msk.bf16.gmra.mxu0 %vm363_vm0, %v22286_v49  ;;  %14808 = vrot.lane.b32.xlu1 %v25137_v60, %s22865_s18  ;;  %v2308_v50 = vadd.f32 %v20799_v15, %v25034_v25  ;;  %v25279_v53 = vpop.f32.mrf.mxu0  ;;  %v22290_v25 = vld [vmem:[%s31152_s1 + $0x1a8] sm:$0xff]  }
 0x204   : > { %v2267_v6 = vpop.f32.mrf.mxu1  ;;  %21097 = vmatprep.mubr.msk.bf16.mxu0 %vm363_vm0, %v22288_v35  ;;  %21041 = vmatprep.mubr.msk.bf16.mxu1 %vm363_vm0, %v22289_v16  ;;  %v25286_v38 = vpop.permute.xlu0 %11210 }
 0x205   : > { %31299 = vst [vmem:[#allocation24_spill] sm:$0xff] %v25286_v38  ;;  %v2306_v49 = vadd.f32 %v2267_v6, %v25047_v17  ;;  %v25290_v22 = vadd.f32 %v25080_v23, %v2308_v50  ;;  %v25295_v28 = vpop.permute.xlu1 %11212  ;;  %v25297_v51 = vpop.f32.mrf.mxu0  ;;  %21165 = vmatprep.subr.bf16.mxu0 %v25270_v31  ;;  %v22292_v50 = vld [vmem:[%s31152_s1 + $0x1b0] sm:$0xff]   ;;  %v22293_v6 = vld [vmem:[%s31152_s1 + $0x140] sm:$0xff]  }
 0x206   : > { %31300 = vst [vmem:[#allocation23_spill] sm:$0xff] %v25295_v28  ;;  %15011 = vrot.lane.b32.xlu0 %v25127_v58, %s22866_s19  ;;  %v20800_v35 = vpop.f32.mrf.mxu1 }
 0x207   : > { %v25303_v16 = vadd.f32 %v25098_v36, %v2306_v49  ;;  %15013 = vrot.lane.b32.xlu1 %v25137_v60, %s22866_s19  ;;  %v2309_v17 = vadd.f32 %v20800_v35, %v25064_v32  ;;  %v25308_v23 = vpop.f32.mrf.mxu0 }
 0x208   : > { %v2270_v21 = vpop.f32.mrf.mxu1  ;;  %v25310_v15 = vpop.permute.xlu0 %11415 }
 0x209   : > { %31301 = vst [vmem:[#allocation81_spill] sm:$0xff] %v25310_v15  ;;  %v2307_v36 = vadd.f32 %v2270_v21, %v25074_v43  ;;  %v25320_v49 = vadd.f32 %v25108_v42, %v2309_v17  ;;  %v25322_v11 = vpop.permute.xlu1 %11417  ;;  %v25324_v32 = vpop.f32.mrf.mxu0 }
 0x20a   : > { %31302 = vst [vmem:[#allocation82_spill] sm:$0xff] %v25322_v11  ;;  %14802 = vrot.lane.b32.xlu0 %v25193_v1, %s22865_s18  ;;  %v20803_v35 = vpop.f32.mrf.mxu1  ;;  %21042 = vmatmul.mubr.msk.bf16.gmra.mxu1 %vm363_vm0, %v22291_v34  ;;  %v22295_v34 = vld [vmem:[%s31152_s1 + $0x148] sm:$0xff]   ;;  %v22296_v11 = vld [vmem:[%s31152_s1 + $0x200] sm:$0xff]  }
 0x20b   : > { %v25330_v15 = vadd.f32 %v25124_v26, %v2307_v36  ;;  %21098 = vmatmul.mubr.msk.bf16.gmra.mxu0 %vm363_vm0, %v22290_v25  ;;  %14804 = vrot.lane.b32.xlu1 %v25208_v40, %s22865_s18  ;;  %v2312_v43 = vadd.f32 %v20803_v35, %v25091_v3  ;;  %v25336_v42 = vpop.f32.mrf.mxu0  ;;  %v22294_v3 = vld [vmem:[%s31152_s1 + $0x1b8] sm:$0xff]  }
 0x20c   : > { %v2283_v17 = vpop.f32.mrf.mxu1  ;;  %21101 = vmatprep.mubr.msk.bf16.mxu0 %vm363_vm0, %v22292_v50  ;;  %21069 = vmatprep.mubr.msk.bf16.mxu1 %vm363_vm0, %v22293_v6  ;;  %v25343_v26 = vpop.permute.xlu0 %11624 }
 0x20d   : > { %31303 = vst [vmem:[#allocation83_spill] sm:$0xff] %v25343_v26  ;;  %v2310_v25 = vadd.f32 %v2283_v17, %v25103_v19  ;;  %v25347_v21 = vadd.f32 %v25142_v39, %v2312_v43  ;;  %v25352_v36 = vpop.permute.xlu1 %11626  ;;  %v25354_v50 = vpop.f32.mrf.mxu0  ;;  %v22297_v26 = vld [vmem:[%s31152_s1 + $0x150] sm:$0xff]  }
 0x20e   : > { %31304 = vst [vmem:[#allocation84_spill] sm:$0xff] %v25352_v36  ;;  %15007 = vrot.lane.b32.xlu0 %v25193_v1, %s22866_s19  ;;  %v20804_v6 = vpop.f32.mrf.mxu1 }
 0x20f   : > { %v25359_v35 = vadd.f32 %v25164_v48, %v2310_v25  ;;  %15009 = vrot.lane.b32.xlu1 %v25208_v40, %s22866_s19  ;;  %v2313_v19 = vadd.f32 %v20804_v6, %v25120_v46  ;;  %v25364_v39 = vpop.f32.mrf.mxu0 }
 0x210   : > { %v2286_v43 = vpop.f32.mrf.mxu1  ;;  %v25366_v17 = vpop.permute.xlu0 %11829 }
 0x211   : > { %31305 = vst [vmem:[#allocation85_spill] sm:$0xff] %v25366_v17  ;;  %v2311_v48 = vadd.f32 %v2286_v43, %v25133_v27  ;;  %v25376_v25 = vadd.f32 %v25174_v52, %v2313_v19  ;;  %v25378_v36 = vpop.permute.xlu1 %11831  ;;  %v25380_v46 = vpop.f32.mrf.mxu0  ;;  %v31307_v19 = vld [vmem:[#allocation14_spill] sm:$0xff]  ;;  %v31308_v43 = vld [vmem:[#allocation13_spill] sm:$0xff] }
 0x212   : > { %31306 = vst [vmem:[#allocation86_spill] sm:$0xff] %v25378_v36  ;;  %15216 = vrot.lane.b32.xlu0 %v25127_v58, %s22867_s20  ;;  %v20831_v6 = vpop.f32.mrf.mxu1  ;;  %21070 = vmatmul.mubr.msk.bf16.vlgmr.msra.gmra.mxu1 %vm363_vm0, %v22295_v34  ;;  %v5781_v36 = vsel %vm1758_vm8, %v31308_v43, %v31307_v19  ;;  %v22300_v19 = vld [vmem:[%s31152_s1 + $0x210] sm:$0xff]  }
 0x213   : > { %v25386_v17 = vadd.f32 %v25190_v59, %v2311_v48  ;;  %21102 = vmatmul.mubr.msk.bf16.gmra.mxu0 %vm363_vm0, %v22294_v3  ;;  %15218 = vrot.lane.b32.xlu1 %v25137_v60, %s22867_s20  ;;  %v2714_v27 = vadd.f32 %v20831_v6, %v25156_v24  ;;  %v25392_v52 = vpop.f32.mrf.mxu0 }
 0x214   : > { %v2649_v38 = vpop.f32.mrf.mxu1  ;;  %21129 = vmatprep.mubr.msk.bf16.mxu0 %vm363_vm0, %v22296_v11  ;;  %21073 = vmatprep.mubr.msk.bf16.mxu1 %vm363_vm0, %v22297_v26  ;;  %v25399_v59 = vpop.permute.xlu0 %11620  ;;  %v22299_v11 = vld [vmem:[%s31152_s1 + $0x158] sm:$0xff]  }
 0x215   : > { %31309 = vst [vmem:[#allocation14_spill] sm:$0xff] %v25399_v59  ;;  %v2712_v34 = vadd.f32 %v2649_v38, %v25169_v33  ;;  %v25403_v3 = vadd.f32 %v25213_v37, %v2714_v27  ;;  %v25405_v48 = vpop.permute.xlu1 %11622  ;;  %21106 = vmatpush3.bf16.msra.mxu1 %v25201_v63  ;;  %v25408_v24 = vpop.f32.mrf.mxu0  ;;  %v22298_v63 = vld [vmem:[%s31152_s1 + $0x208] sm:$0xff]   ;;  %v31313_v59 = vld [vmem:[#allocation18_spill] sm:$0xff] }
 0x216   : > { %31310 = vst [vmem:[#allocation13_spill] sm:$0xff] %v25405_v48  ;;  %15421 = vrot.lane.b32.xlu0 %v25127_v58, %s22868_s23  ;;  %v20832_v6 = vpop.f32.mrf.mxu1  ;;  %21107 = vmatprep.subr.bf16.mxu1 %v5781_v36  ;;  %v31314_v48 = vld [vmem:[#allocation17_spill] sm:$0xff] }
 0x217   : > { %v25416_v33 = vadd.f32 %v25235_v14, %v2712_v34  ;;  %15423 = vrot.lane.b32.xlu1 %v25137_v60, %s22868_s23  ;;  %v2715_v37 = vadd.f32 %v20832_v6, %v25186_v12  ;;  %v25424_v38 = vpop.f32.mrf.mxu0  ;;  %v22301_v14 = vld [vmem:[%s31152_s1 + $0x160] sm:$0xff]   ;;  %v25448_v28 = vsel %vm2172_vm10, %v31314_v48, %v31313_v59 }
 0x218   : > { %v2652_v26 = vpop.f32.mrf.mxu1  ;;  %v25426_v27 = vpop.permute.xlu0 %11825 }
 0x219   : > { %31311 = vst [vmem:[#allocation87_spill] sm:$0xff] %v25426_v27  ;;  %v2713_v43 = vadd.f32 %v2652_v26, %v25204_v0  ;;  %v25436_v12 = vadd.f32 %v25246_v13, %v2715_v37  ;;  %v25438_v34 = vpop.permute.xlu1 %11827  ;;  %21108 = vmatpush3.bf16.msra.mxu1 %v5781_v36  ;;  %v25440_v6 = vpop.f32.mrf.mxu0  ;;  %v31315_v37 = vld [vmem:[#allocation28_spill] sm:$0xff]  ;;  %v31316_v26 = vld [vmem:[#allocation27_spill] sm:$0xff] }
 0x21a   : > { %31312 = vst [vmem:[#allocation88_spill] sm:$0xff] %v25438_v34  ;;  %15212 = vrot.lane.b32.xlu0 %v25193_v1, %s22867_s20  ;;  %v20835_v27 = vpop.f32.mrf.mxu1  ;;  %21074 = vmatmul.mubr.msk.bf16.gmra.mxu1 %vm363_vm0, %v22299_v11  ;;  %v6396_v11 = vsel %vm2379_vm9, %v31316_v26, %v31315_v37 }
 0x21b   : > { %v25451_v0 = vadd.f32 %v25262_v7, %v2713_v43  ;;  %21130 = vmatmul.mubr.msk.bf16.vlgmr.msra.gmra.mxu0 %vm363_vm0, %v22298_v63  ;;  %15214 = vrot.lane.b32.xlu1 %v25208_v40, %s22867_s20  ;;  %v2718_v13 = vadd.f32 %v20835_v27, %v25227_v54  ;;  %v25457_v36 = vpop.f32.mrf.mxu0  ;;  %s19820_s20 = sshll.u32 %s31943_s22, 8 }
 0x21c   : > { %v2665_v34 = vpop.f32.mrf.mxu1  ;;  %21133 = vmatprep.mubr.msk.bf16.mxu0 %vm363_vm0, %v22300_v19  ;;  %21077 = vmatprep.mubr.msk.bf16.mxu1 %vm363_vm0, %v22301_v14  ;;  %v25464_v7 = vpop.permute.xlu0 %12394  ;;  %v22303_v19 = vld [vmem:[%s31152_s1 + $0x168] sm:$0xff]   ;;  %s31114_s16 = scalar_lea.vmem %s31157_s6, %s19820_s20 }
 0x21d   : > { %31317 = vst [vmem:[#allocation18_spill] sm:$0xff] %v25464_v7  ;;  %v2716_v59 = vadd.f32 %v2665_v34, %v25241_v29  ;;  %v25468_v48 = vadd.f32 %v25279_v53, %v2718_v13  ;;  %v25470_v63 = vpop.permute.xlu1 %12396  ;;  %21166 = vmatpush3.bf16.msra.mxu0 %v25270_v31  ;;  %v25473_v54 = vpop.f32.mrf.mxu0  ;;  %21145 = vmatprep.subr.bf16.mxu1 %v25448_v28  ;;  %v22302_v53 = vld [vmem:[%s31152_s1 + $0x218] sm:$0xff]   ;;  %v22304_v13 = vld [vmem:[%s31152_s1 + $0x220] sm:$0xff]  }
 0x21e   : > { %31318 = vst [vmem:[#allocation17_spill] sm:$0xff] %v25470_v63  ;;  %15417 = vrot.lane.b32.xlu0 %v25193_v1, %s22868_s23  ;;  %v20836_v27 = vpop.f32.mrf.mxu1  ;;  %21167 = vmatprep.subr.bf16.mxu0 %v6396_v11  ;;  %v31322_v7 = vld [vmem:[#allocation31_spill] sm:$0xff] }
 0x21f   : > { %v25482_v29 = vadd.f32 %v25297_v51, %v2716_v59  ;;  %15419 = vrot.lane.b32.xlu1 %v25208_v40, %s22868_s23  ;;  %v2719_v31 = vadd.f32 %v20836_v27, %v25258_v56  ;;  %v25490_v14 = vpop.f32.mrf.mxu0  ;;  %v22305_v51 = vld [vmem:[%s31152_s1 + $0x170] sm:$0xff]  }
 0x220   : > { %v2668_v43 = vpop.f32.mrf.mxu1  ;;  %v25492_v34 = vpop.permute.xlu0 %12390 }
 0x221   : > { %31319 = vst [vmem:[#allocation28_spill] sm:$0xff] %v25492_v34  ;;  %v2717_v37 = vadd.f32 %v2668_v43, %v25273_v45  ;;  %v25502_v56 = vadd.f32 %v25308_v23, %v2719_v31  ;;  %v25504_v26 = vpop.permute.xlu1 %12392  ;;  %21168 = vmatpush3.bf16.msra.mxu0 %v6396_v11  ;;  %v25506_v59 = vpop.f32.mrf.mxu0  ;;  %v31321_v34 = vld [vmem:[#allocation32_spill] sm:$0xff] }
 0x222   : > { %31320 = vst [vmem:[#allocation27_spill] sm:$0xff] %v25504_v26  ;;  %15626 = vrot.lane.b32.xlu0 %v25127_v58, %s31185_s11  ;;  %v20839_v27 = vpop.f32.mrf.mxu1  ;;  %21078 = vmatmul.mubr.msk.bf16.gmra.mxu1 %vm363_vm0, %v22303_v19  ;;  %v25514_v63 = vsel %vm31174_vm11, %v31322_v7, %v31321_v34  ;;  %v22307_v34 = vld [vmem:[%s31152_s1 + $0x178] sm:$0xff]  }
 0x223   : > { %v25517_v45 = vadd.f32 %v25324_v32, %v2717_v37  ;;  %21134 = vmatmul.mubr.msk.bf16.gmra.mxu0 %vm363_vm0, %v22302_v53  ;;  %15628 = vrot.lane.b32.xlu1 %v25137_v60, %s31185_s11  ;;  %v2722_v23 = vadd.f32 %v20839_v27, %v25290_v22  ;;  %v25523_v11 = vpop.f32.mrf.mxu0  ;;  %v22308_v27 = vld [vmem:[%s31152_s1 + $0x230] sm:$0xff]  }
 0x224   : > { %v2681_v31 = vpop.f32.mrf.mxu1  ;;  %21137 = vmatprep.mubr.msk.bf16.mxu0 %vm363_vm0, %v22304_v13  ;;  %21081 = vmatprep.mubr.msk.bf16.mxu1 %vm363_vm0, %v22305_v51  ;;  %v25527_v19 = vpop.permute.xlu0 %12756 }
 0x225   : > { %31323 = vst [vmem:[#allocation32_spill] sm:$0xff] %v25527_v19  ;;  %v2720_v7 = vadd.f32 %v2681_v31, %v25303_v16  ;;  %v25531_v32 = vadd.f32 %v25336_v42, %v2722_v23  ;;  %v25533_v53 = vpop.permute.xlu1 %12758  ;;  %v25535_v43 = vpop.f32.mrf.mxu0  ;;  %21205 = vmatprep.subr.bf16.mxu0 %v25514_v63  ;;  %v22306_v42 = vld [vmem:[%s31152_s1 + $0x228] sm:$0xff]  }
 0x226   : > { %31324 = vst [vmem:[#allocation31_spill] sm:$0xff] %v25533_v53  ;;  %15831 = vrot.lane.b32.xlu0 %v25127_v58, %s31186_s25  ;;  %v20840_v22 = vpop.f32.mrf.mxu1 }
 0x227   : > { %v25544_v13 = vadd.f32 %v25354_v50, %v2720_v7  ;;  %15833 = vrot.lane.b32.xlu1 %v25137_v60, %s31186_s25  ;;  %v2723_v16 = vadd.f32 %v20840_v22, %v25320_v49  ;;  %v25552_v51 = vpop.f32.mrf.mxu0  ;;  %v22309_v50 = vld [vmem:[%s31152_s1 + $0x1c0] sm:$0xff]  }
 0x228   : > { %v2684_v58 = vpop.f32.mrf.mxu1  ;;  %v25554_v37 = vpop.permute.xlu0 %12961 }
 0x229   : > { %31325 = vst [vmem:[#allocation89_spill] sm:$0xff] %v25554_v37  ;;  %v2721_v60 = vadd.f32 %v2684_v58, %v25330_v15  ;;  %v25564_v49 = vadd.f32 %v25364_v39, %v2723_v16  ;;  %v25566_v23 = vpop.permute.xlu1 %12963  ;;  %v25568_v31 = vpop.f32.mrf.mxu0 }
 0x22a   : > { %31326 = vst [vmem:[#allocation90_spill] sm:$0xff] %v25566_v23  ;;  %15622 = vrot.lane.b32.xlu0 %v25193_v1, %s31185_s11  ;;  %v20843_v7 = vpop.f32.mrf.mxu1  ;;  %21082 = vmatmul.mubr.msk.bf16.gmra.mxu1 %vm363_vm0, %v22307_v34 }
 0x22b   : > { %v25574_v22 = vadd.f32 %v25380_v46, %v2721_v60  ;;  %21138 = vmatmul.mubr.msk.bf16.gmra.mxu0 %vm363_vm0, %v22306_v42  ;;  %15624 = vrot.lane.b32.xlu1 %v25208_v40, %s31185_s11  ;;  %v2726_v15 = vadd.f32 %v20843_v7, %v25347_v21  ;;  %v25580_v39 = vpop.f32.mrf.mxu0 }
 0x22c   : > { %v2697_v16 = vpop.f32.mrf.mxu1  ;;  %21141 = vmatprep.mubr.msk.bf16.mxu0 %vm363_vm0, %v22308_v27  ;;  %21109 = vmatprep.mubr.msk.bf16.mxu1 %vm363_vm0, %v22309_v50  ;;  %v25584_v58 = vpop.permute.xlu0 %12752  ;;  %v22311_v27 = vld [vmem:[%s31152_s1 + $0x1c8] sm:$0xff]  }
 0x22d   : > { %31327 = vst [vmem:[#allocation91_spill] sm:$0xff] %v25584_v58  ;;  %v2724_v34 = vadd.f32 %v2697_v16, %v25359_v35  ;;  %v25588_v46 = vadd.f32 %v25392_v52, %v2726_v15  ;;  %v25590_v42 = vpop.permute.xlu1 %12754  ;;  %v25592_v60 = vpop.f32.mrf.mxu0  ;;  %v25608_v52 = vld [vmem:[%s31153_s2] sm:$0xff]  ;;  %v22313_v16 = vld [vmem:[%s31152_s1 + $0x1d0] sm:$0xff]  }
 0x22e   : > { %31328 = vst [vmem:[#allocation92_spill] sm:$0xff] %v25590_v42  ;;  %15827 = vrot.lane.b32.xlu0 %v25193_v1, %s31186_s25  ;;  %v20844_v21 = vpop.f32.mrf.mxu1  ;;  %v22310_v1 = vld [vmem:[%s31152_s1 + $0x238] sm:$0xff]  }
 0x22f   : > { %v25600_v50 = vadd.f32 %v25408_v24, %v2724_v34  ;;  %15829 = vrot.lane.b32.xlu1 %v25208_v40, %s31186_s25  ;;  %v2727_v35 = vadd.f32 %v20844_v21, %v25376_v25  ;;  %v25613_v7 = vpop.f32.mrf.mxu0  ;;  %v25618_v24 = vld [vmem:[%s31153_s2 + $0x8] sm:$0xff]  ;;  %v22312_v25 = vld [vmem:[%s31152_s1 + $0x280] sm:$0xff]  }
 0x230   : > { %v2700_v15 = vpop.f32.mrf.mxu1  ;;  %v25620_v40 = vpop.permute.xlu0 %12957 }
 0x231   : > { %31329 = vst [vmem:[#allocation93_spill] sm:$0xff] %v25620_v40  ;;  %v2725_v34 = vadd.f32 %v2700_v15, %v25386_v17  ;;  %v25630_v21 = vadd.f32 %v25424_v38, %v2727_v35  ;;  %v25632_v37 = vpop.permute.xlu1 %12959  ;;  %v25634_v23 = vpop.f32.mrf.mxu0  ;;  %v31331_v35 = vld [vmem:[#allocation22_spill] sm:$0xff]  ;;  %v31332_v15 = vld [vmem:[#allocation21_spill] sm:$0xff] }
 0x232   : > { %31330 = vst [vmem:[#allocation94_spill] sm:$0xff] %v25632_v37  ;;  %3988 = vperm.xlu0 %22072, %v25608_v52   ;;  %v20871_v40 = vpop.f32.mrf.mxu1  ;;  %21110 = vmatmul.mubr.msk.bf16.vlgmr.msra.gmra.mxu1 %vm363_vm0, %v22311_v27  ;;  %v6191_v37 = vsel %vm2172_vm10, %v31332_v15, %v31331_v35  ;;  %v22316_v35 = vld [vmem:[%s31152_s1 + $0x290] sm:$0xff]  }
 0x233   : > { %v25639_v58 = vadd.f32 %v25440_v6, %v2725_v34  ;;  %21142 = vmatmul.mubr.msk.bf16.gmra.mxu0 %vm363_vm0, %v22310_v1  ;;  %3993 = vperm.xlu1 %22073, %v25618_v24   ;;  %v3128_v17 = vadd.f32 %v20871_v40, %v25403_v3  ;;  %v25644_v38 = vpop.f32.mrf.mxu0 }
 0x234   : > { %v3063_v42 = vpop.f32.mrf.mxu1  ;;  %21169 = vmatprep.mubr.msk.bf16.mxu0 %vm363_vm0, %v22312_v25  ;;  %21113 = vmatprep.mubr.msk.bf16.mxu1 %vm363_vm0, %v22313_v16  ;;  %v25651_v27 = vpop.permute.xlu0 %13166  ;;  %v22315_v25 = vld [vmem:[%s31152_s1 + $0x1d8] sm:$0xff]  }
 0x235   : > { %31333 = vst [vmem:[#allocation22_spill] sm:$0xff] %v25651_v27  ;;  %v3126_v6 = vadd.f32 %v3063_v42, %v25416_v33  ;;  %v25655_v1 = vadd.f32 %v25457_v36, %v3128_v17  ;;  %v25657_v34 = vpop.permute.xlu1 %13168  ;;  %21146 = vmatpush3.bf16.msra.mxu1 %v25448_v28  ;;  %v25660_v3 = vpop.f32.mrf.mxu0  ;;  %v22314_v28 = vld [vmem:[%s31152_s1 + $0x288] sm:$0xff]   ;;  %v31337_v27 = vld [vmem:[#allocation26_spill] sm:$0xff] }
 0x236   : > { %31334 = vst [vmem:[#allocation21_spill] sm:$0xff] %v25657_v34  ;;  %7995 = vperm.xlu0 %22072, %v25618_v24   ;;  %v20872_v40 = vpop.f32.mrf.mxu1  ;;  %21147 = vmatprep.subr.bf16.mxu1 %v6191_v37  ;;  %v31338_v34 = vld [vmem:[#allocation25_spill] sm:$0xff] }
 0x237   : > { %v25667_v16 = vadd.f32 %v25473_v54, %v3126_v6  ;;  %7990 = vperm.xlu1 %22073, %v25608_v52   ;;  %v3129_v33 = vadd.f32 %v20872_v40, %v25436_v12  ;;  %v25674_v36 = vpop.f32.mrf.mxu0  ;;  %v22317_v54 = vld [vmem:[%s31152_s1 + $0x1e0] sm:$0xff]   ;;  %v25697_v19 = vsel %vm2586_vm12, %v31338_v34, %v31337_v27 }
 0x238   : > { %v3066_v42 = vpop.f32.mrf.mxu1  ;;  %v25676_v17 = vpop.permute.xlu0 %13371 }
 0x239   : > { %31335 = vst [vmem:[#allocation95_spill] sm:$0xff] %v25676_v17  ;;  %v3127_v15 = vadd.f32 %v3066_v42, %v25451_v0  ;;  %v25686_v12 = vadd.f32 %v25490_v14, %v3129_v33  ;;  %v25688_v6 = vpop.permute.xlu1 %13373  ;;  %21148 = vmatpush3.bf16.msra.mxu1 %v6191_v37  ;;  %v25690_v40 = vpop.f32.mrf.mxu0  ;;  %v31339_v33 = vld [vmem:[#allocation36_spill] sm:$0xff]  ;;  %v31340_v42 = vld [vmem:[#allocation35_spill] sm:$0xff] }
 0x23a   : > { %31336 = vst [vmem:[#allocation96_spill] sm:$0xff] %v25688_v6  ;;  %11997 = vperm.xlu0 %22072, %v25618_v24   ;;  %v20875_v17 = vpop.f32.mrf.mxu1  ;;  %21114 = vmatmul.mubr.msk.bf16.gmra.mxu1 %vm363_vm0, %v22315_v25  ;;  %v6806_v25 = vsel %vm31174_vm11, %v31340_v42, %v31339_v33  ;;  %vm31345_vm11 = vcmask 187392  }
 0x23b   : > { %v25700_v0 = vadd.f32 %v25506_v59, %v3127_v15  ;;  %21170 = vmatmul.mubr.msk.bf16.vlgmr.msra.gmra.mxu0 %vm363_vm0, %v22314_v28  ;;  %11992 = vperm.xlu1 %22073, %v25608_v52   ;;  %v3132_v14 = vadd.f32 %v20875_v17, %v25468_v48  ;;  %v25705_v37 = vpop.f32.mrf.mxu0 }
 0x23c   : > { %v3079_v6 = vpop.f32.mrf.mxu1  ;;  %21173 = vmatprep.mubr.msk.bf16.mxu0 %vm363_vm0, %v22316_v35  ;;  %21117 = vmatprep.mubr.msk.bf16.mxu1 %vm363_vm0, %v22317_v54  ;;  %v25712_v27 = vpop.permute.xlu0 %13162  ;;  %v22319_v35 = vld [vmem:[%s31152_s1 + $0x1e8] sm:$0xff]  }
 0x23d   : > { %31341 = vst [vmem:[#allocation26_spill] sm:$0xff] %v25712_v27  ;;  %v3130_v59 = vadd.f32 %v3079_v6, %v25482_v29  ;;  %v25716_v34 = vadd.f32 %v25523_v11, %v3132_v14  ;;  %v25718_v28 = vpop.permute.xlu1 %13164  ;;  %21206 = vmatpush3.bf16.msra.mxu0 %v25514_v63  ;;  %v25721_v48 = vpop.f32.mrf.mxu0  ;;  %21185 = vmatprep.subr.bf16.mxu1 %v25697_v19  ;;  %v4083_v63 = vld [vmem:[%s31154_s3 + $0x8] sm:$0xff] }
 0x23e   : > { %31342 = vst [vmem:[#allocation25_spill] sm:$0xff] %v25718_v28  ;;  %15999 = vperm.xlu0 %22072, %v25618_v24   ;;  %v20876_v17 = vpop.f32.mrf.mxu1  ;;  %21207 = vmatprep.subr.bf16.mxu0 %v6806_v25  ;;  %v22318_v24 = vld [vmem:[%s31152_s1 + $0x298] sm:$0xff]  }
 0x23f   : > { %v25729_v29 = vadd.f32 %v25535_v43, %v3130_v59  ;;  %15994 = vperm.xlu1 %22073, %v25608_v52   ;;  %v3133_v11 = vadd.f32 %v20876_v17, %v25502_v56  ;;  %v25739_v54 = vpop.f32.mrf.mxu0  ;;  %v25744_v43 = vld [vmem:[%s31154_s3] sm:$0xff]  ;;  %v22321_v52 = vld [vmem:[%s31152_s1 + $0x1f0] sm:$0xff]  }
 0x240   : > { %v3082_v15 = vpop.f32.mrf.mxu1  ;;  %v25746_v6 = vpop.permute.xlu0 %13367  ;;  %v22320_v56 = vld [vmem:[%s31152_s1 + $0x2a0] sm:$0xff]  }
 0x241   : > { %31343 = vst [vmem:[#allocation36_spill] sm:$0xff] %v25746_v6  ;;  %v3131_v14 = vadd.f32 %v3082_v15, %v25517_v45  ;;  %v25756_v33 = vadd.f32 %v25552_v51, %v3133_v11  ;;  %v25758_v42 = vpop.permute.xlu1 %13369  ;;  %21208 = vmatpush3.bf16.msra.mxu0 %v6806_v25  ;;  %v25760_v59 = vpop.f32.mrf.mxu0  ;;  %v25766_v6 = vsel %vm31345_vm11, %v24148_v8, %v24157_v20 }
 0x242   : > { %31344 = vst [vmem:[#allocation35_spill] sm:$0xff] %v25758_v42  ;;  %4105 = vperm.xlu0 %22072, %v4083_v63   ;;  %v20879_v17 = vpop.f32.mrf.mxu1  ;;  %21118 = vmatmul.mubr.msk.bf16.gmra.mxu1 %vm363_vm0, %v22319_v35 }
 0x243   : > { %v25769_v27 = vadd.f32 %v25568_v31, %v3131_v14  ;;  %21174 = vmatmul.mubr.msk.bf16.gmra.mxu0 %vm363_vm0, %v22318_v24  ;;  %4100 = vperm.xlu1 %22073, %v25744_v43   ;;  %v3136_v45 = vadd.f32 %v20879_v17, %v25531_v32  ;;  %v25774_v51 = vpop.f32.mrf.mxu0  ;;  %v22323_v24 = vld [vmem:[%s31152_s1 + $0x1f8] sm:$0xff]   ;;  %v22324_v17 = vld [vmem:[%s31152_s1 + $0x2b0] sm:$0xff]  }
 0x244   : > { %v3095_v25 = vpop.f32.mrf.mxu1  ;;  %21177 = vmatprep.mubr.msk.bf16.mxu0 %vm363_vm0, %v22320_v56  ;;  %21121 = vmatprep.mubr.msk.bf16.mxu1 %vm363_vm0, %v22321_v52  ;;  %v25778_v35 = vpop.permute.xlu0 %13576 }
 0x245   : > { %31346 = vst [vmem:[#allocation97_spill] sm:$0xff] %v25778_v35  ;;  %v3134_v8 = vadd.f32 %v3095_v25, %v25544_v13  ;;  %v25782_v20 = vadd.f32 %v25580_v39, %v3136_v45  ;;  %v25784_v31 = vpop.permute.xlu1 %13578  ;;  %v25786_v11 = vpop.f32.mrf.mxu0  ;;  %21245 = vmatprep.subr.bf16.mxu0 %v25766_v6  ;;  %v22322_v39 = vld [vmem:[%s31152_s1 + $0x2a8] sm:$0xff]  }
 0x246   : > { %31347 = vst [vmem:[#allocation98_spill] sm:$0xff] %v25784_v31  ;;  %8107 = vperm.xlu0 %22072, %v4083_v63   ;;  %v20880_v32 = vpop.f32.mrf.mxu1 }
 0x247   : > { %v25793_v15 = vadd.f32 %v25592_v60, %v3134_v8  ;;  %8102 = vperm.xlu1 %22073, %v25744_v43   ;;  %v3137_v13 = vadd.f32 %v20880_v32, %v25564_v49  ;;  %v25800_v56 = vpop.f32.mrf.mxu0  ;;  %v22325_v60 = vld [vmem:[%s31152_s1 + $0x240] sm:$0xff]  }
 0x248   : > { %v3098_v52 = vpop.f32.mrf.mxu1  ;;  %v25802_v14 = vpop.permute.xlu0 %13781 }
 0x249   : > { %31348 = vst [vmem:[#allocation99_spill] sm:$0xff] %v25802_v14  ;;  %v3135_v45 = vadd.f32 %v3098_v52, %v25574_v22  ;;  %v25812_v49 = vadd.f32 %v25613_v7, %v3137_v13  ;;  %v25814_v25 = vpop.permute.xlu1 %13783  ;;  %v25816_v8 = vpop.f32.mrf.mxu0 }
 0x24a   : > { %31349 = vst [vmem:[#allocation100_spill] sm:$0xff] %v25814_v25  ;;  %12109 = vperm.xlu0 %22072, %v4083_v63   ;;  %v20883_v32 = vpop.f32.mrf.mxu1  ;;  %21122 = vmatmul.mubr.msk.bf16.gmra.mxu1 %vm363_vm0, %v22323_v24 }
 0x24b   : > { %v25820_v14 = vadd.f32 %v25634_v23, %v3135_v45  ;;  %21178 = vmatmul.mubr.msk.bf16.gmra.mxu0 %vm363_vm0, %v22322_v39  ;;  %12104 = vperm.xlu1 %22073, %v25744_v43   ;;  %v3140_v22 = vadd.f32 %v20883_v32, %v25588_v46  ;;  %v25825_v52 = vpop.f32.mrf.mxu0  ;;  %v22327_v32 = vld [vmem:[%s31152_s1 + $0x248] sm:$0xff]  }
 0x24c   : > { %v3111_v7 = vpop.f32.mrf.mxu1  ;;  %21181 = vmatprep.mubr.msk.bf16.mxu0 %vm363_vm0, %v22324_v17  ;;  %21149 = vmatprep.mubr.msk.bf16.mxu1 %vm363_vm0, %v22325_v60  ;;  %v25829_v13 = vpop.permute.xlu0 %13572 }
 0x24d   : > { %31350 = vst [vmem:[#allocation101_spill] sm:$0xff] %v25829_v13  ;;  %v3138_v24 = vadd.f32 %v3111_v7, %v25600_v50  ;;  %v25833_v23 = vadd.f32 %v25644_v38, %v3140_v22  ;;  %v25835_v45 = vpop.permute.xlu1 %13574  ;;  %v25837_v39 = vpop.f32.mrf.mxu0  ;;  %v25850_v38 = vld [vmem:[%s31153_s2 + $0x18] sm:$0xff]  ;;  %v22329_v7 = vld [vmem:[%s31152_s1 + $0x250] sm:$0xff]  }
 0x24e   : > { %31351 = vst [vmem:[#allocation102_spill] sm:$0xff] %v25835_v45  ;;  %16111 = vperm.xlu0 %22072, %v4083_v63   ;;  %v20884_v46 = vpop.f32.mrf.mxu1  ;;  %v22326_v63 = vld [vmem:[%s31152_s1 + $0x2b8] sm:$0xff]  }
 0x24f   : > { %v25843_v17 = vadd.f32 %v25660_v3, %v3138_v24  ;;  %16106 = vperm.xlu1 %22073, %v25744_v43   ;;  %v3141_v50 = vadd.f32 %v20884_v46, %v25630_v21  ;;  %v25855_v60 = vpop.f32.mrf.mxu0  ;;  %v25860_v3 = vld [vmem:[%s31153_s2 + $0x10] sm:$0xff]  ;;  %v22328_v21 = vld [vmem:[%s31152_s1 + $0x300] sm:$0xff]  }
 0x250   : > { %v3114_v22 = vpop.f32.mrf.mxu1  ;;  %v25862_v43 = vpop.permute.xlu0 %13777 }
 0x251   : > { %31352 = vst [vmem:[#allocation103_spill] sm:$0xff] %v25862_v43  ;;  %v3139_v24 = vadd.f32 %v3114_v22, %v25639_v58  ;;  %v25872_v46 = vadd.f32 %v25674_v36, %v3141_v50  ;;  %v25874_v25 = vpop.permute.xlu1 %13779  ;;  %v25876_v42 = vpop.f32.mrf.mxu0  ;;  %v31354_v50 = vld [vmem:[#allocation30_spill] sm:$0xff]  ;;  %v31355_v22 = vld [vmem:[#allocation29_spill] sm:$0xff] }
 0x252   : > { %31353 = vst [vmem:[#allocation104_spill] sm:$0xff] %v25874_v25  ;;  %4003 = vperm.xlu0 %22072, %v25850_v38   ;;  %v20911_v43 = vpop.f32.mrf.mxu1  ;;  %21150 = vmatmul.mubr.msk.bf16.vlgmr.msra.gmra.mxu1 %vm363_vm0, %v22327_v32  ;;  %v6601_v25 = vsel %vm2586_vm12, %v31355_v22, %v31354_v50  ;;  %v22332_v50 = vld [vmem:[%s31152_s1 + $0x310] sm:$0xff]  }
 0x253   : > { %v25881_v13 = vadd.f32 %v25690_v40, %v3139_v24  ;;  %21182 = vmatmul.mubr.msk.bf16.gmra.mxu0 %vm363_vm0, %v22326_v63  ;;  %3998 = vperm.xlu1 %22073, %v25860_v3   ;;  %v3542_v58 = vadd.f32 %v20911_v43, %v25655_v1  ;;  %v25886_v36 = vpop.f32.mrf.mxu0 }
 0x254   : > { %v3477_v45 = vpop.f32.mrf.mxu1  ;;  %21209 = vmatprep.mubr.msk.bf16.mxu0 %vm363_vm0, %v22328_v21  ;;  %21153 = vmatprep.mubr.msk.bf16.mxu1 %vm363_vm0, %v22329_v7  ;;  %v25893_v32 = vpop.permute.xlu0 %13986  ;;  %v22331_v21 = vld [vmem:[%s31152_s1 + $0x258] sm:$0xff]  }
 0x255   : > { %31356 = vst [vmem:[#allocation30_spill] sm:$0xff] %v25893_v32  ;;  %v3540_v40 = vadd.f32 %v3477_v45, %v25667_v16  ;;  %v25897_v63 = vadd.f32 %v25705_v37, %v3542_v58  ;;  %v25899_v24 = vpop.permute.xlu1 %13988  ;;  %21186 = vmatpush3.bf16.msra.mxu1 %v25697_v19  ;;  %v25902_v1 = vpop.f32.mrf.mxu0  ;;  %v22330_v19 = vld [vmem:[%s31152_s1 + $0x308] sm:$0xff]   ;;  %v31360_v32 = vld [vmem:[#allocation34_spill] sm:$0xff] }
 0x256   : > { %31357 = vst [vmem:[#allocation29_spill] sm:$0xff] %v25899_v24  ;;  %8005 = vperm.xlu0 %22072, %v25850_v38   ;;  %v20912_v43 = vpop.f32.mrf.mxu1  ;;  %21187 = vmatprep.subr.bf16.mxu1 %v6601_v25  ;;  %v31361_v24 = vld [vmem:[#allocation33_spill] sm:$0xff] }
 0x257   : > { %v25909_v7 = vadd.f32 %v25721_v48, %v3540_v40  ;;  %8000 = vperm.xlu1 %22073, %v25860_v3   ;;  %v3543_v16 = vadd.f32 %v20912_v43, %v25686_v12  ;;  %v25916_v37 = vpop.f32.mrf.mxu0  ;;  %v22333_v48 = vld [vmem:[%s31152_s1 + $0x260] sm:$0xff]   ;;  %v25939_v35 = vsel %vm3000_vm14, %v31361_v24, %v31360_v32 }
 0x258   : > { %v3480_v45 = vpop.f32.mrf.mxu1  ;;  %v25918_v58 = vpop.permute.xlu0 %14191 }
 0x259   : > { %31358 = vst [vmem:[#allocation105_spill] sm:$0xff] %v25918_v58  ;;  %v3541_v22 = vadd.f32 %v3480_v45, %v25700_v0  ;;  %v25928_v12 = vadd.f32 %v25739_v54, %v3543_v16  ;;  %v25930_v40 = vpop.permute.xlu1 %14193  ;;  %21188 = vmatpush3.bf16.msra.mxu1 %v6601_v25  ;;  %v25932_v43 = vpop.f32.mrf.mxu0 }
 0x25a   : > { %31359 = vst [vmem:[#allocation106_spill] sm:$0xff] %v25930_v40  ;;  %12007 = vperm.xlu0 %22072, %v25850_v38   ;;  %v20915_v58 = vpop.f32.mrf.mxu1  ;;  %21154 = vmatmul.mubr.msk.bf16.gmra.mxu1 %vm363_vm0, %v22331_v21  ;;  %v7216_v21 = vsel %vm31345_vm11, %v24213_v30, %v24222_v57  ;;  %v22335_v57 = vld [vmem:[%s31152_s1 + $0x268] sm:$0xff]   ;;  %vm31366_vm11 = vcmask 146432   ;;  %v31382_v40 = vld [vmem:[#allocation39_spill] sm:$0xff] }
 0x25b   : > { %v25942_v0 = vadd.f32 %v25760_v59, %v3541_v22  ;;  %21210 = vmatmul.mubr.msk.bf16.vlgmr.msra.gmra.mxu0 %vm363_vm0, %v22330_v19  ;;  %12002 = vperm.xlu1 %22073, %v25860_v3   ;;  %v3546_v54 = vadd.f32 %v20915_v58, %v25716_v34  ;;  %v25947_v25 = vpop.f32.mrf.mxu0 }
 0x25c   : > { %v3493_v16 = vpop.f32.mrf.mxu1  ;;  %21213 = vmatprep.mubr.msk.bf16.mxu0 %vm363_vm0, %v22332_v50  ;;  %21157 = vmatprep.mubr.msk.bf16.mxu1 %vm363_vm0, %v22333_v48  ;;  %v25954_v32 = vpop.permute.xlu0 %13982 }
 0x25d   : > { %31362 = vst [vmem:[#allocation34_spill] sm:$0xff] %v25954_v32  ;;  %v3544_v59 = vadd.f32 %v3493_v16, %v25729_v29  ;;  %v25958_v24 = vadd.f32 %v25774_v51, %v3546_v54  ;;  %v25960_v19 = vpop.permute.xlu1 %13984  ;;  %21246 = vmatpush3.bf16.msra.mxu0 %v25766_v6  ;;  %v25963_v34 = vpop.f32.mrf.mxu0  ;;  %21225 = vmatprep.subr.bf16.mxu1 %v25939_v35  ;;  %v4085_v6 = vld [vmem:[%s31154_s3 + $0x18] sm:$0xff] }
 0x25e   : > { %31363 = vst [vmem:[#allocation33_spill] sm:$0xff] %v25960_v19  ;;  %16009 = vperm.xlu0 %22072, %v25850_v38   ;;  %v20916_v30 = vpop.f32.mrf.mxu1  ;;  %21247 = vmatprep.subr.bf16.mxu0 %v7216_v21  ;;  %v22334_v38 = vld [vmem:[%s31152_s1 + $0x318] sm:$0xff]  }
 0x25f   : > { %v25971_v29 = vadd.f32 %v25786_v11, %v3544_v59  ;;  %16004 = vperm.xlu1 %22073, %v25860_v3   ;;  %v3547_v51 = vadd.f32 %v20916_v30, %v25756_v33  ;;  %v25981_v45 = vpop.f32.mrf.mxu0  ;;  %v25986_v11 = vld [vmem:[%s31154_s3 + $0x10] sm:$0xff]  ;;  %v22336_v33 = vld [vmem:[%s31152_s1 + $0x320] sm:$0xff]   ;;  %v26008_v30 = vsel %vm31366_vm11, %v24288_v2, %v24297_v18 }
 0x260   : > { %v3496_v58 = vpop.f32.mrf.mxu1  ;;  %v25988_v50 = vpop.permute.xlu0 %14187  ;;  %v22337_v3 = vld [vmem:[%s31152_s1 + $0x270] sm:$0xff]  }
 0x261   : > { %31364 = vst [vmem:[#allocation107_spill] sm:$0xff] %v25988_v50  ;;  %v3545_v48 = vadd.f32 %v3496_v58, %v25769_v27  ;;  %v25998_v22 = vadd.f32 %v25800_v56, %v3547_v51  ;;  %v26000_v54 = vpop.permute.xlu1 %14189  ;;  %21248 = vmatpush3.bf16.msra.mxu0 %v7216_v21  ;;  %v26002_v16 = vpop.f32.mrf.mxu0 }
 0x262   : > { %31365 = vst [vmem:[#allocation108_spill] sm:$0xff] %v26000_v54  ;;  %4115 = vperm.xlu0 %22072, %v4085_v6   ;;  %v20919_v59 = vpop.f32.mrf.mxu1  ;;  %21158 = vmatmul.mubr.msk.bf16.gmra.mxu1 %vm363_vm0, %v22335_v57 }
 0x263   : > { %v26011_v50 = vadd.f32 %v25816_v8, %v3545_v48  ;;  %21214 = vmatmul.mubr.msk.bf16.gmra.mxu0 %vm363_vm0, %v22334_v38  ;;  %4110 = vperm.xlu1 %22073, %v25986_v11   ;;  %v3550_v27 = vadd.f32 %v20919_v59, %v25782_v20  ;;  %v26016_v56 = vpop.f32.mrf.mxu0  ;;  %v22339_v38 = vld [vmem:[%s31152_s1 + $0x278] sm:$0xff]   ;;  %v22340_v59 = vld [vmem:[%s31152_s1 + $0x330] sm:$0xff]  }
 0x264   : > { %v3509_v21 = vpop.f32.mrf.mxu1  ;;  %21217 = vmatprep.mubr.msk.bf16.mxu0 %vm363_vm0, %v22336_v33  ;;  %21161 = vmatprep.mubr.msk.bf16.mxu1 %vm363_vm0, %v22337_v3  ;;  %v26020_v57 = vpop.permute.xlu0 %14396 }
 0x265   : > { %31367 = vst [vmem:[#allocation109_spill] sm:$0xff] %v26020_v57  ;;  %v3548_v2 = vadd.f32 %v3509_v21, %v25793_v15  ;;  %v26024_v18 = vadd.f32 %v25825_v52, %v3550_v27  ;;  %v26026_v8 = vpop.permute.xlu1 %14398  ;;  %v26028_v51 = vpop.f32.mrf.mxu0  ;;  %21285 = vmatprep.subr.bf16.mxu0 %v26008_v30  ;;  %v22338_v52 = vld [vmem:[%s31152_s1 + $0x328] sm:$0xff]  }
 0x266   : > { %31368 = vst [vmem:[#allocation110_spill] sm:$0xff] %v26026_v8  ;;  %8117 = vperm.xlu0 %22072, %v4085_v6   ;;  %v20920_v20 = vpop.f32.mrf.mxu1 }
 0x267   : > { %v26035_v58 = vadd.f32 %v25837_v39, %v3548_v2  ;;  %8112 = vperm.xlu1 %22073, %v25986_v11   ;;  %v3551_v15 = vadd.f32 %v20920_v20, %v25812_v49  ;;  %v26042_v33 = vpop.f32.mrf.mxu0  ;;  %v22341_v39 = vld [vmem:[%s31152_s1 + $0x2c0] sm:$0xff]  }
 0x268   : > { %v3512_v3 = vpop.f32.mrf.mxu1  ;;  %v26044_v48 = vpop.permute.xlu0 %14601 }
 0x269   : > { %31369 = vst [vmem:[#allocation111_spill] sm:$0xff] %v26044_v48  ;;  %v3549_v27 = vadd.f32 %v3512_v3, %v25820_v14  ;;  %v26054_v49 = vadd.f32 %v25855_v60, %v3551_v15  ;;  %v26056_v21 = vpop.permute.xlu1 %14603  ;;  %v26058_v2 = vpop.f32.mrf.mxu0 }
 0x26a   : > { %31370 = vst [vmem:[#allocation112_spill] sm:$0xff] %v26056_v21  ;;  %12119 = vperm.xlu0 %22072, %v4085_v6   ;;  %v20923_v20 = vpop.f32.mrf.mxu1  ;;  %21162 = vmatmul.mubr.msk.bf16.gmra.mxu1 %vm363_vm0, %v22339_v38 }
 0x26b   : > { %v26062_v48 = vadd.f32 %v25876_v42, %v3549_v27  ;;  %21218 = vmatmul.mubr.msk.bf16.gmra.mxu0 %vm363_vm0, %v22338_v52  ;;  %12114 = vperm.xlu1 %22073, %v25986_v11   ;;  %v3554_v14 = vadd.f32 %v20923_v20, %v25833_v23  ;;  %v26067_v3 = vpop.f32.mrf.mxu0  ;;  %v22343_v20 = vld [vmem:[%s31152_s1 + $0x2c8] sm:$0xff]  }
 0x26c   : > { %v3525_v60 = vpop.f32.mrf.mxu1  ;;  %21221 = vmatprep.mubr.msk.bf16.mxu0 %vm363_vm0, %v22340_v59  ;;  %21189 = vmatprep.mubr.msk.bf16.mxu1 %vm363_vm0, %v22341_v39  ;;  %v26071_v15 = vpop.permute.xlu0 %14392 }
 0x26d   : > { %31371 = vst [vmem:[#allocation113_spill] sm:$0xff] %v26071_v15  ;;  %v3552_v38 = vadd.f32 %v3525_v60, %v25843_v17  ;;  %v26075_v42 = vadd.f32 %v25886_v36, %v3554_v14  ;;  %v26077_v27 = vpop.permute.xlu1 %14394  ;;  %v26079_v52 = vpop.f32.mrf.mxu0  ;;  %v3975_v36 = vld [vmem:[%s31153_s2 + $0x28] sm:$0xff] }
 0x26e   : > { %31372 = vst [vmem:[#allocation114_spill] sm:$0xff] %v26077_v27  ;;  %16121 = vperm.xlu0 %22072, %v4085_v6   ;;  %v20924_v23 = vpop.f32.mrf.mxu1  ;;  %v22342_v6 = vld [vmem:[%s31152_s1 + $0x338] sm:$0xff]  }
 0x26f   : > { %v26085_v59 = vadd.f32 %v25902_v1, %v3552_v38  ;;  %16116 = vperm.xlu1 %22073, %v25986_v11   ;;  %v3555_v17 = vadd.f32 %v20924_v23, %v25872_v46  ;;  %v26095_v39 = vpop.f32.mrf.mxu0  ;;  %v3974_v1 = vld [vmem:[%s31153_s2 + $0x20] sm:$0xff]  ;;  %v22345_v11 = vld [vmem:[%s31152_s1 + $0x2d0] sm:$0xff]  }
 0x270   : > { %v3528_v14 = vpop.f32.mrf.mxu1  ;;  %v26100_v60 = vpop.permute.xlu0 %14597  ;;  %v22344_v46 = vld [vmem:[%s31152_s1 + $0x380] sm:$0xff]  }
 0x271   : > { %31373 = vst [vmem:[#allocation115_spill] sm:$0xff] %v26100_v60  ;;  %v3553_v38 = vadd.f32 %v3528_v14, %v25881_v13  ;;  %v26110_v23 = vadd.f32 %v25916_v37, %v3555_v17  ;;  %v26112_v21 = vpop.permute.xlu1 %14599  ;;  %v26114_v54 = vpop.f32.mrf.mxu0  ;;  %v31375_v37 = vld [vmem:[#allocation38_spill] sm:$0xff]  ;;  %v31376_v17 = vld [vmem:[#allocation37_spill] sm:$0xff] }
 0x272   : > { %31374 = vst [vmem:[#allocation116_spill] sm:$0xff] %v26112_v21  ;;  %4013 = vperm.xlu0 %22072, %v3975_v36   ;;  %v20951_v15 = vpop.f32.mrf.mxu1  ;;  %21190 = vmatmul.mubr.msk.bf16.vlgmr.msra.gmra.mxu1 %vm363_vm0, %v22343_v20  ;;  %v7011_v14 = vsel %vm3000_vm14, %v31376_v17, %v31375_v37  ;;  %v22348_v37 = vld [vmem:[%s31152_s1 + $0x390] sm:$0xff]   ;;  %v22349_v17 = vld [vmem:[%s31152_s1 + $0x2e0] sm:$0xff]  }
 0x273   : > { %v26118_v60 = vadd.f32 %v25932_v43, %v3553_v38  ;;  %21222 = vmatmul.mubr.msk.bf16.gmra.mxu0 %vm363_vm0, %v22342_v6  ;;  %4008 = vperm.xlu1 %22073, %v3974_v1   ;;  %v26122_v27 = vadd.f32 %v20951_v15, %v25897_v63  ;;  %v26124_v13 = vpop.f32.mrf.mxu0  ;;  %v22347_v38 = vld [vmem:[%s31152_s1 + $0x2d8] sm:$0xff]  }
 0x274   : > { %v3891_v21 = vpop.f32.mrf.mxu1  ;;  %21249 = vmatprep.mubr.msk.bf16.mxu0 %vm363_vm0, %v22344_v46  ;;  %21193 = vmatprep.mubr.msk.bf16.mxu1 %vm363_vm0, %v22345_v11  ;;  %v26131_v20 = vpop.permute.xlu0 %14806 }
 0x275   : > { %31377 = vst [vmem:[#allocation38_spill] sm:$0xff] %v26131_v20  ;;  %v26134_v43 = vadd.f32 %v3891_v21, %v25909_v7  ;;  %v26136_v6 = vpop.permute.xlu1 %14808  ;;  %21226 = vmatpush3.bf16.msra.mxu1 %v25939_v35  ;;  %v26139_v63 = vpop.f32.mrf.mxu0  ;;  %v22346_v7 = vld [vmem:[%s31152_s1 + $0x388] sm:$0xff]  }
 0x276   : > { %31378 = vst [vmem:[#allocation37_spill] sm:$0xff] %v26136_v6  ;;  %8015 = vperm.xlu0 %22072, %v3975_v36   ;;  %v20952_v15 = vpop.f32.mrf.mxu1  ;;  %21227 = vmatprep.subr.bf16.mxu1 %v7011_v14 }
 0x277   : > { %8010 = vperm.xlu1 %22073, %v3974_v1   ;;  %v26145_v46 = vadd.f32 %v20952_v15, %v25928_v12  ;;  %v26150_v21 = vpop.f32.mrf.mxu0 }
 0x278   : > { %v3894_v35 = vpop.f32.mrf.mxu1  ;;  %v26152_v11 = vpop.permute.xlu0 %15011 }
 0x279   : > { %31379 = vst [vmem:[#allocation117_spill] sm:$0xff] %v26152_v11  ;;  %v26161_v12 = vadd.f32 %v3894_v35, %v25942_v0  ;;  %v26163_v15 = vpop.permute.xlu1 %15013  ;;  %21228 = vmatpush3.bf16.msra.mxu1 %v7011_v14  ;;  %v26165_v20 = vpop.f32.mrf.mxu0  ;;  %v31381_v11 = vld [vmem:[#allocation40_spill] sm:$0xff]  ;;  %v31383_v14 = vld [vmem:[#allocation46_spill] sm:$0xff] }
 0x27a   : > { %31380 = vst [vmem:[#allocation118_spill] sm:$0xff] %v26163_v15  ;;  %12017 = vperm.xlu0 %22072, %v3975_v36   ;;  %v20955_v6 = vpop.f32.mrf.mxu1  ;;  %21194 = vmatmul.mubr.msk.bf16.gmra.mxu1 %vm363_vm0, %v22347_v38  ;;  %v26171_v57 = vsel %vm3414_vm13, %v31382_v40, %v31381_v11  ;;  %v31384_v15 = vld [vmem:[#allocation45_spill] sm:$0xff]  ;;  %v22351_v11 = vld [vmem:[%s31152_s1 + $0x2e8] sm:$0xff]  }
 0x27b   : > { %21250 = vmatmul.mubr.msk.bf16.vlgmr.msra.gmra.mxu0 %vm363_vm0, %v22346_v7  ;;  %12012 = vperm.xlu1 %22073, %v3974_v1   ;;  %v26175_v0 = vadd.f32 %v20955_v6, %v25958_v24  ;;  %v26177_v35 = vpop.f32.mrf.mxu0  ;;  %v7626_v8 = vsel %vm31366_vm11, %v31384_v15, %v31383_v14  ;;  %vm31503_vm11 = vcmask 228352  }
 0x27c   : > { %v3907_v32 = vpop.f32.mrf.mxu1  ;;  %21253 = vmatprep.mubr.msk.bf16.mxu0 %vm363_vm0, %v22348_v37  ;;  %21197 = vmatprep.mubr.msk.bf16.mxu1 %vm363_vm0, %v22349_v17  ;;  %v26184_v38 = vpop.permute.xlu0 %14802  ;;  %v4086_v17 = vld [vmem:[%s31154_s3 + $0x20] sm:$0xff] }
 0x27d   : > { %31385 = vst [vmem:[#allocation40_spill] sm:$0xff] %v26184_v38  ;;  %v26187_v40 = vadd.f32 %v3907_v32, %v25971_v29  ;;  %v26189_v7 = vpop.permute.xlu1 %14804  ;;  %21286 = vmatpush3.bf16.msra.mxu0 %v26008_v30  ;;  %v26192_v24 = vpop.f32.mrf.mxu0  ;;  %21265 = vmatprep.subr.bf16.mxu1 %v26171_v57  ;;  %v4087_v32 = vld [vmem:[%s31154_s3 + $0x28] sm:$0xff]  ;;  %v22350_v29 = vld [vmem:[%s31152_s1 + $0x398] sm:$0xff]  }
 0x27e   : > { %31386 = vst [vmem:[#allocation39_spill] sm:$0xff] %v26189_v7  ;;  %16019 = vperm.xlu0 %22072, %v3975_v36   ;;  %v20956_v6 = vpop.f32.mrf.mxu1  ;;  %21287 = vmatprep.subr.bf16.mxu0 %v7626_v8 }
 0x27f   : > { %16014 = vperm.xlu1 %22073, %v3974_v1   ;;  %v26199_v37 = vadd.f32 %v20956_v6, %v25998_v22  ;;  %v26207_v30 = vpop.f32.mrf.mxu0  ;;  %v22352_v22 = vld [vmem:[%s31152_s1 + $0x3a0] sm:$0xff]   ;;  %v22353_v1 = vld [vmem:[%s31152_s1 + $0x2f0] sm:$0xff]  }
 0x280   : > { %v3910_v36 = vpop.f32.mrf.mxu1  ;;  %v26212_v15 = vpop.permute.xlu0 %15007 }
 0x281   : > { %31387 = vst [vmem:[#allocation46_spill] sm:$0xff] %v26212_v15  ;;  %v26221_v14 = vadd.f32 %v3910_v36, %v26011_v50  ;;  %v26223_v6 = vpop.permute.xlu1 %15009  ;;  %21288 = vmatpush3.bf16.msra.mxu0 %v7626_v8  ;;  %v26225_v38 = vpop.f32.mrf.mxu0  ;;  %v31389_v15 = vld [vmem:[#allocation49_spill] sm:$0xff] }
 0x282   : > { %31388 = vst [vmem:[#allocation45_spill] sm:$0xff] %v26223_v6  ;;  %4125 = vperm.xlu0 %22072, %v4087_v32   ;;  %v20959_v7 = vpop.f32.mrf.mxu1  ;;  %21198 = vmatmul.mubr.msk.bf16.gmra.mxu1 %vm363_vm0, %v22351_v11  ;;  %v26231_v19 = vsel %vm358_vm1, %v31389_v15, %v24413_v44 }
 0x283   : > { %21254 = vmatmul.mubr.msk.bf16.gmra.mxu0 %vm363_vm0, %v22350_v29  ;;  %4120 = vperm.xlu1 %22073, %v4086_v17   ;;  %v26235_v50 = vadd.f32 %v20959_v7, %v26024_v18  ;;  %v26237_v36 = vpop.f32.mrf.mxu0  ;;  %v22355_v7 = vld [vmem:[%s31152_s1 + $0x2f8] sm:$0xff]  }
 0x284   : > { %v3923_v8 = vpop.f32.mrf.mxu1  ;;  %21257 = vmatprep.mubr.msk.bf16.mxu0 %vm363_vm0, %v22352_v22  ;;  %21201 = vmatprep.mubr.msk.bf16.mxu1 %vm363_vm0, %v22353_v1  ;;  %v26241_v6 = vpop.permute.xlu0 %15216 }
 0x285   : > { %31390 = vst [vmem:[#allocation49_spill] sm:$0xff] %v26235_v50  ;;  %31391 = vst [vmem:[#allocation119_spill] sm:$0xff] %v26241_v6  ;;  %v26244_v11 = vadd.f32 %v3923_v8, %v26035_v58  ;;  %v26246_v44 = vpop.permute.xlu1 %15218  ;;  %v26248_v15 = vpop.f32.mrf.mxu0  ;;  %21325 = vmatprep.subr.bf16.mxu0 %v26231_v19  ;;  %v22354_v58 = vld [vmem:[%s31152_s1 + $0x3a8] sm:$0xff]   ;;  %v22356_v6 = vld [vmem:[%s31152_s1 + $0x3b0] sm:$0xff]  }
 0x286   : > { %31393 = vst [vmem:[#allocation121_spill] sm:$0xff] %v26246_v44  ;;  %8127 = vperm.xlu0 %22072, %v4087_v32   ;;  %v20960_v18 = vpop.f32.mrf.mxu1  ;;  %v22357_v44 = vld [vmem:[%s31152_s1 + $0x340] sm:$0xff]   ;;  %v31405_v50 = vld [vmem:[#allocation42_spill] sm:$0xff] }
 0x287   : > { %31392 = vst [vmem:[#allocation120_spill] sm:$0xff] %v26244_v11  ;;  %8122 = vperm.xlu1 %22073, %v4086_v17   ;;  %v26255_v29 = vadd.f32 %v20960_v18, %v26054_v49  ;;  %v26260_v22 = vpop.f32.mrf.mxu0 }
 0x288   : > { %v3926_v1 = vpop.f32.mrf.mxu1  ;;  %v26262_v8 = vpop.permute.xlu0 %15421 }
 0x289   : > { %31394 = vst [vmem:[#allocation122_spill] sm:$0xff] %v26255_v29  ;;  %31395 = vst [vmem:[#allocation123_spill] sm:$0xff] %v26262_v8  ;;  %v26271_v49 = vadd.f32 %v3926_v1, %v26062_v48  ;;  %v26273_v18 = vpop.permute.xlu1 %15423  ;;  %v26275_v31 = vpop.f32.mrf.mxu0 }
 0x28a   : > { %31396 = vst [vmem:[#allocation124_spill] sm:$0xff] %v26273_v18  ;;  %12129 = vperm.xlu0 %22072, %v4087_v32   ;;  %v20963_v28 = vpop.f32.mrf.mxu1  ;;  %21202 = vmatmul.mubr.msk.bf16.gmra.mxu1 %vm363_vm0, %v22355_v7 }
 0x28b   : > { %21258 = vmatmul.mubr.msk.bf16.gmra.mxu0 %vm363_vm0, %v22354_v58  ;;  %12124 = vperm.xlu1 %22073, %v4086_v17   ;;  %v26280_v8 = vadd.f32 %v20963_v28, %v26075_v42  ;;  %v26282_v53 = vpop.f32.mrf.mxu0  ;;  %v22359_v28 = vld [vmem:[%s31152_s1 + $0x348] sm:$0xff]  }
 0x28c   : > { %v3939_v26 = vpop.f32.mrf.mxu1  ;;  %21261 = vmatprep.mubr.msk.bf16.mxu0 %vm363_vm0, %v22356_v6  ;;  %21229 = vmatprep.mubr.msk.bf16.mxu1 %vm363_vm0, %v22357_v44  ;;  %v26286_v48 = vpop.permute.xlu0 %15212  ;;  %v26304_v6 = vld [vmem:[%s31153_s2 + $0x38] sm:$0xff]  ;;  %v26314_v44 = vld [vmem:[%s31153_s2 + $0x30] sm:$0xff] }
 0x28d   : > { %31397 = vst [vmem:[#allocation125_spill] sm:$0xff] %v26280_v8  ;;  %31398 = vst [vmem:[#allocation126_spill] sm:$0xff] %v26286_v48  ;;  %v26289_v1 = vadd.f32 %v3939_v26, %v26085_v59  ;;  %v26291_v18 = vpop.permute.xlu1 %15214  ;;  %v26293_v7 = vpop.f32.mrf.mxu0  ;;  %v22358_v26 = vld [vmem:[%s31152_s1 + $0x3b8] sm:$0xff]  }
 0x28e   : > { %31400 = vst [vmem:[#allocation128_spill] sm:$0xff] %v26291_v18  ;;  %16131 = vperm.xlu0 %22072, %v4087_v32   ;;  %v20964_v58 = vpop.f32.mrf.mxu1 }
 0x28f   : > { %31399 = vst [vmem:[#allocation127_spill] sm:$0xff] %v26289_v1  ;;  %16126 = vperm.xlu1 %22073, %v4086_v17   ;;  %v26299_v42 = vadd.f32 %v20964_v58, %v26110_v23  ;;  %v26309_v59 = vpop.f32.mrf.mxu0  ;;  %v22360_v23 = vld [vmem:[%s31152_s1 + $0x400] sm:$0xff]   ;;  %v22361_v58 = vld [vmem:[%s31152_s1 + $0x350] sm:$0xff]  }
 0x290   : > { %v3942_v32 = vpop.f32.mrf.mxu1  ;;  %v26316_v17 = vpop.permute.xlu0 %15417 }
 0x291   : > { %31401 = vst [vmem:[#allocation129_spill] sm:$0xff] %v26299_v42  ;;  %31402 = vst [vmem:[#allocation130_spill] sm:$0xff] %v26316_v17  ;;  %v26325_v48 = vadd.f32 %v3942_v32, %v26118_v60  ;;  %v26327_v18 = vpop.permute.xlu1 %15419  ;;  %v26329_v8 = vpop.f32.mrf.mxu0  ;;  %v31406_v60 = vld [vmem:[#allocation41_spill] sm:$0xff] }
 0x292   : > { %31404 = vst [vmem:[#allocation132_spill] sm:$0xff] %v26327_v18  ;;  %4023 = vperm.xlu0 %22072, %v26304_v6   ;;  %v20991_v42 = vpop.f32.mrf.mxu1  ;;  %21230 = vmatmul.mubr.msk.bf16.vlgmr.msra.gmra.mxu1 %vm363_vm0, %v22359_v28  ;;  %v7421_v32 = vsel %vm3414_vm13, %v31406_v60, %v31405_v50  ;;  %v22363_v50 = vld [vmem:[%s31152_s1 + $0x358] sm:$0xff]  }
 0x293   : > { %31403 = vst [vmem:[#allocation131_spill] sm:$0xff] %v26325_v48  ;;  %21262 = vmatmul.mubr.msk.bf16.gmra.mxu0 %vm363_vm0, %v22358_v26  ;;  %4018 = vperm.xlu1 %22073, %v26314_v44   ;;  %v4638_v17 = vadd.f32 %v20991_v42, %v25947_v25  ;;  %v26336_v1 = vpop.f32.mrf.mxu0 }
 0x294   : > { %v4629_v18 = vpop.f32.mrf.mxu1  ;;  %21289 = vmatprep.mubr.msk.bf16.mxu0 %vm363_vm0, %v22360_v23  ;;  %21233 = vmatprep.mubr.msk.bf16.mxu1 %vm363_vm0, %v22361_v58  ;;  %v26347_v26 = vpop.permute.xlu0 %15626  ;;  %v22364_v58 = vld [vmem:[%s31152_s1 + $0x410] sm:$0xff]  }
 0x295   : > { %v4630_v48 = vadd.f32 %v4629_v18, %v25963_v34  ;;  %v26345_v28 = vadd.f32 %v26177_v35, %v4638_v17  ;;  %31407 = vst [vmem:[#allocation42_spill] sm:$0xff] %v26347_v26  ;;  %21266 = vmatpush3.bf16.msra.mxu1 %v26171_v57  ;;  %v26350_v25 = vpop.f32.mrf.mxu0  ;;  %v26356_v23 = vpop.permute.xlu1 %15628  ;;  %v22362_v57 = vld [vmem:[%s31152_s1 + $0x408] sm:$0xff]  }
 0x296   : > { %8025 = vperm.xlu0 %22072, %v26304_v6   ;;  %v20992_v42 = vpop.f32.mrf.mxu1  ;;  %31408 = vst [vmem:[#allocation41_spill] sm:$0xff] %v26356_v23  ;;  %21267 = vmatprep.subr.bf16.mxu1 %v7421_v32  ;;  %v31409_v26 = vld [vmem:[#allocation44_spill] sm:$0xff]  ;;  %v31410_v23 = vld [vmem:[#allocation43_spill] sm:$0xff] }
 0x297   : > { %v26359_v34 = vadd.f32 %v26192_v24, %v4630_v48  ;;  %8020 = vperm.xlu1 %22073, %v26314_v44   ;;  %v4641_v35 = vadd.f32 %v20992_v42, %v25981_v45  ;;  %v26366_v18 = vpop.f32.mrf.mxu0  ;;  %v22365_v24 = vld [vmem:[%s31152_s1 + $0x360] sm:$0xff]   ;;  %v26385_v29 = vsel %vm3828_vm15, %v31410_v23, %v31409_v26 }
 0x298   : > { %v4632_v17 = vpop.f32.mrf.mxu1 }
 0x299   : > { %v4633_v48 = vadd.f32 %v4632_v17, %v26002_v16  ;;  %v26376_v60 = vadd.f32 %v26207_v30, %v4641_v35  ;;  %21268 = vmatpush3.bf16.msra.mxu1 %v7421_v32  ;;  %v26378_v45 = vpop.f32.mrf.mxu0  ;;  %v26393_v30 = vpop.permute.xlu0 %15831 }
 0x29a   : > { %12027 = vperm.xlu0 %22072, %v26304_v6   ;;  %v20995_v42 = vpop.f32.mrf.mxu1  ;;  %21234 = vmatmul.mubr.msk.bf16.gmra.mxu1 %vm363_vm0, %v22363_v50  ;;  %31411 = vst [vmem:[#allocation44_spill] sm:$0xff] %v26393_v30  ;;  %v31412_v50 = vld [vmem:[#allocation50_spill] sm:$0xff]  ;;  %v26401_v26 = vpop.permute.xlu1 %15833 }
 0x29b   : > { %v26388_v11 = vadd.f32 %v26225_v38, %v4633_v48  ;;  %21290 = vmatmul.mubr.msk.bf16.vlgmr.msra.gmra.mxu0 %vm363_vm0, %v22362_v57  ;;  %12022 = vperm.xlu1 %22073, %v26314_v44   ;;  %v4654_v16 = vadd.f32 %v20995_v42, %v26016_v56  ;;  %v26395_v32 = vpop.f32.mrf.mxu0  ;;  %v8396_v35 = vsel %vm358_vm1, %v31412_v50, %v24440_v55  ;;  %v22367_v57 = vld [vmem:[%s31152_s1 + $0x368] sm:$0xff]  }
 0x29c   : > { %v4645_v17 = vpop.f32.mrf.mxu1  ;;  %21293 = vmatprep.mubr.msk.bf16.mxu0 %vm363_vm0, %v22364_v58  ;;  %31413 = vst [vmem:[#allocation43_spill] sm:$0xff] %v26401_v26  ;;  %21237 = vmatprep.mubr.msk.bf16.mxu1 %vm363_vm0, %v22365_v24 }
 0x29d   : > { %v4646_v38 = vadd.f32 %v4645_v17, %v26028_v51  ;;  %v26406_v23 = vadd.f32 %v26237_v36, %v4654_v16  ;;  %21326 = vmatpush3.bf16.msra.mxu0 %v26231_v19  ;;  %v26409_v56 = vpop.f32.mrf.mxu0  ;;  %21305 = vmatprep.subr.bf16.mxu1 %v26385_v29  ;;  %v4089_v19 = vld [vmem:[%s31154_s3 + $0x38] sm:$0xff]  ;;  %v26442_v16 = vpop.permute.xlu0 %15622 }
 0x29e   : > { %16029 = vperm.xlu0 %22072, %v26304_v6   ;;  %v20996_v55 = vpop.f32.mrf.mxu1  ;;  %21327 = vmatprep.subr.bf16.mxu0 %v8396_v35  ;;  %v22366_v36 = vld [vmem:[%s31152_s1 + $0x418] sm:$0xff]   ;;  %31414 = vst [vmem:[#allocation50_spill] sm:$0xff] %v26442_v16 }
 0x29f   : > { %v26417_v58 = vadd.f32 %v26248_v15, %v4646_v38  ;;  %16024 = vperm.xlu1 %22073, %v26314_v44   ;;  %v4657_v51 = vadd.f32 %v20996_v55, %v26042_v33  ;;  %v26427_v6 = vpop.f32.mrf.mxu0  ;;  %v4088_v15 = vld [vmem:[%s31154_s3 + $0x30] sm:$0xff]  ;;  %v22368_v44 = vld [vmem:[%s31152_s1 + $0x420] sm:$0xff]   ;;  %v26447_v38 = vpop.permute.xlu1 %15624  ;;  %v26452_v55 = vsel %vm723_vm2, %v24467_v62, %v24476_v61 }
 0x2a0   : > { %v4648_v24 = vpop.f32.mrf.mxu1  ;;  %v22369_v33 = vld [vmem:[%s31152_s1 + $0x370] sm:$0xff]   ;;  %31415 = vst [vmem:[#allocation133_spill] sm:$0xff] %v26447_v38 }
 0x2a1   : > { %v4649_v48 = vadd.f32 %v4648_v24, %v26058_v2  ;;  %v26440_v42 = vadd.f32 %v26260_v22, %v4657_v51  ;;  %21328 = vmatpush3.bf16.msra.mxu0 %v8396_v35  ;;  %v26444_v50 = vpop.f32.mrf.mxu0 }
 0x2a2   : > { %4135 = vperm.xlu0 %22072, %v4089_v19   ;;  %v20999_v17 = vpop.f32.mrf.mxu1  ;;  %21238 = vmatmul.mubr.msk.bf16.gmra.mxu1 %vm363_vm0, %v22367_v57 }
 0x2a3   : > { %v26455_v2 = vadd.f32 %v26275_v31, %v4649_v48  ;;  %21294 = vmatmul.mubr.msk.bf16.gmra.mxu0 %vm363_vm0, %v22366_v36  ;;  %4130 = vperm.xlu1 %22073, %v4088_v15   ;;  %v4670_v22 = vadd.f32 %v20999_v17, %v26067_v3  ;;  %v26459_v35 = vpop.f32.mrf.mxu0  ;;  %v22371_v3 = vld [vmem:[%s31152_s1 + $0x378] sm:$0xff]   ;;  %v26484_v48 = vpop.permute.xlu1 %15829  ;;  %v22372_v17 = vld [vmem:[%s31152_s1 + $0x430] sm:$0xff]  }
 0x2a4   : > { %v4661_v51 = vpop.f32.mrf.mxu1  ;;  %21297 = vmatprep.mubr.msk.bf16.mxu0 %vm363_vm0, %v22368_v44  ;;  %21241 = vmatprep.mubr.msk.bf16.mxu1 %vm363_vm0, %v22369_v33  ;;  %31417 = vst [vmem:[#allocation135_spill] sm:$0xff] %v26484_v48 }
 0x2a5   : > { %v4662_v57 = vadd.f32 %v4661_v51, %v26079_v52  ;;  %v26465_v62 = vadd.f32 %v26282_v53, %v4670_v22  ;;  %v26467_v61 = vpop.f32.mrf.mxu0  ;;  %21365 = vmatprep.subr.bf16.mxu0 %v26452_v55  ;;  %v26477_v52 = vpop.permute.xlu0 %15827  ;;  %v22370_v53 = vld [vmem:[%s31152_s1 + $0x428] sm:$0xff]  }
 0x2a6   : > { %8137 = vperm.xlu0 %22072, %v4089_v19   ;;  %v21000_v31 = vpop.f32.mrf.mxu1  ;;  %31416 = vst [vmem:[#allocation134_spill] sm:$0xff] %v26477_v52 }
 0x2a7   : > { %v26474_v36 = vadd.f32 %v26293_v7, %v4662_v57  ;;  %8132 = vperm.xlu1 %22073, %v4088_v15   ;;  %v4673_v24 = vadd.f32 %v21000_v31, %v26095_v39  ;;  %v26482_v44 = vpop.f32.mrf.mxu0  ;;  %v22373_v7 = vld [vmem:[%s31152_s1 + $0x3c0] sm:$0xff]  }
 0x2a8   : > { %v4664_v33 = vpop.f32.mrf.mxu1 }
 0x2a9   : > { %v4665_v39 = vadd.f32 %v4664_v33, %v26114_v54  ;;  %v26494_v22 = vadd.f32 %v26309_v59, %v4673_v24  ;;  %v26496_v51 = vpop.f32.mrf.mxu0  ;;  %v22375_v33 = vld [vmem:[%s31152_s1 + $0x3c8] sm:$0xff]  }
 0x2aa   : > { %12139 = vperm.xlu0 %22072, %v4089_v19   ;;  %v21003_v57 = vpop.f32.mrf.mxu1  ;;  %21242 = vmatmul.mubr.msk.bf16.gmra.mxu1 %vm363_vm0, %v22371_v3 }
 0x2ab   : > { %v26500_v31 = vadd.f32 %v26329_v8, %v4665_v39  ;;  %21298 = vmatmul.mubr.msk.bf16.gmra.mxu0 %vm363_vm0, %v22370_v53  ;;  %12134 = vperm.xlu1 %22073, %v4088_v15   ;;  %v4686_v52 = vadd.f32 %v21003_v57, %v26124_v13  ;;  %v26504_v48 = vpop.f32.mrf.mxu0 }
 0x2ac   : > { %v4677_v54 = vpop.f32.mrf.mxu1  ;;  %21301 = vmatprep.mubr.msk.bf16.mxu0 %vm363_vm0, %v22372_v17  ;;  %21269 = vmatprep.mubr.msk.bf16.mxu1 %vm363_vm0, %v22373_v7 }
 0x2ad   : > { %v4678_v59 = vadd.f32 %v4677_v54, %v26139_v63  ;;  %v26510_v24 = vadd.f32 %v26336_v1, %v4686_v52  ;;  %v26512_v3 = vpop.permute.xlu0 %3988  ;;  %v26514_v8 = vpop.f32.mrf.mxu0  ;;  %v26528_v1 = vld [vmem:[%s31153_s2 + $0x48] sm:$0xff] }
 0x2ae   : > { %v26516_v53 = vpop.permute.xlu1 %3993  ;;  %16141 = vperm.xlu0 %22072, %v4089_v19   ;;  %v21004_v13 = vpop.f32.mrf.mxu1  ;;  %v22374_v19 = vld [vmem:[%s31152_s1 + $0x438] sm:$0xff]  }
 0x2af   : > { %v26522_v17 = vadd.f32 %v26350_v25, %v4678_v59  ;;  %16136 = vperm.xlu1 %22073, %v4088_v15   ;;  %v4689_v63 = vadd.f32 %v21004_v13, %v26150_v21  ;;  %v26533_v52 = vpop.f32.mrf.mxu0  ;;  %v26538_v25 = vld [vmem:[%s31153_s2 + $0x40] sm:$0xff]  ;;  %v22377_v15 = vld [vmem:[%s31152_s1 + $0x3d0] sm:$0xff]  }
 0x2b0   : > { %v4680_v7 = vpop.f32.mrf.mxu1  ;;  %v22376_v21 = vld [vmem:[%s31152_s1 + $0x40] sm:$0xff]  }
 0x2b1   : > { %v4681_v39 = vadd.f32 %v4680_v7, %v26165_v20  ;;  %v26548_v57 = vadd.f32 %v26366_v18, %v4689_v63  ;;  %v26550_v54 = vpop.permute.xlu0 %7995  ;;  %v26552_v59 = vpop.f32.mrf.mxu0  ;;  %v31420_v63 = vld [vmem:[#allocation48_spill] sm:$0xff]  ;;  %v31421_v7 = vld [vmem:[#allocation47_spill] sm:$0xff] }
 0x2b2   : > { %31418 = vst [vmem:[#allocation136_spill] sm:$0xff] %v26550_v54  ;;  %v26554_v13 = vpop.permute.xlu1 %7990  ;;  %4033 = vperm.xlu0 %22072, %v26528_v1   ;;  %v21031_v30 = vpop.f32.mrf.mxu1  ;;  %21270 = vmatmul.mubr.msk.bf16.vlgmr.msra.gmra.mxu1 %vm363_vm0, %v22375_v33  ;;  %v7831_v16 = vsel %vm3828_vm15, %v31421_v7, %v31420_v63 }
 0x2b3   : > { %31419 = vst [vmem:[#allocation137_spill] sm:$0xff] %v26554_v13  ;;  %v26559_v26 = vadd.f32 %v26378_v45, %v4681_v39  ;;  %21302 = vmatmul.mubr.msk.bf16.gmra.mxu0 %vm363_vm0, %v22374_v19  ;;  %4028 = vperm.xlu1 %22073, %v26538_v25   ;;  %v5088_v20 = vadd.f32 %v21031_v30, %v26345_v28  ;;  %v26564_v18 = vpop.f32.mrf.mxu0  ;;  %v31554_v13 = vld [vmem:[#allocation74_spill] sm:$0xff] }
 0x2b4   : > { %v5023_v38 = vpop.f32.mrf.mxu1  ;;  %21329 = vmatprep.mubr.msk.bf16.mxu0 %vm363_vm0, %v22376_v21  ;;  %21273 = vmatprep.mubr.msk.bf16.mxu1 %vm363_vm0, %v22377_v15  ;;  %v22379_v21 = vld [vmem:[%s31152_s1 + $0x3d8] sm:$0xff]  }
 0x2b5   : > { %v5086_v45 = vadd.f32 %v5023_v38, %v26359_v34  ;;  %v26573_v33 = vadd.f32 %v26395_v32, %v5088_v20  ;;  %v26575_v19 = vpop.permute.xlu0 %11997  ;;  %21306 = vmatpush3.bf16.msra.mxu1 %v26385_v29  ;;  %v26578_v28 = vpop.f32.mrf.mxu0  ;;  %v22378_v32 = vld [vmem:[%s31152_s1 + $0x48] sm:$0xff]   ;;  %v22380_v20 = vld [vmem:[%s31152_s1 + $0x50] sm:$0xff]  }
 0x2b6   : > { %31422 = vst [vmem:[#allocation48_spill] sm:$0xff] %v26575_v19  ;;  %v26580_v30 = vpop.permute.xlu1 %11992  ;;  %8035 = vperm.xlu0 %22072, %v26528_v1   ;;  %v21032_v39 = vpop.f32.mrf.mxu1  ;;  %21307 = vmatprep.subr.bf16.mxu1 %v7831_v16 }
 0x2b7   : > { %31423 = vst [vmem:[#allocation47_spill] sm:$0xff] %v26580_v30  ;;  %v26587_v34 = vadd.f32 %v26409_v56, %v5086_v45  ;;  %8030 = vperm.xlu1 %22073, %v26538_v25   ;;  %v5089_v29 = vadd.f32 %v21032_v39, %v26376_v60  ;;  %v26594_v38 = vpop.f32.mrf.mxu0  ;;  %v22381_v56 = vld [vmem:[%s31152_s1 + $0x3e0] sm:$0xff]  }
 0x2b8   : > { %v5026_v15 = vpop.f32.mrf.mxu1  ;;  %v26611_v39 = vld [vmem:[%s22921_s26 + $0x30] ss:$20 sps:$4 sm:$0xff]  }
 0x2b9   : > { %v5087_v63 = vadd.f32 %v5026_v15, %v26388_v11  ;;  %v26604_v7 = vadd.f32 %v26427_v6, %v5089_v29  ;;  %v26606_v60 = vpop.permute.xlu0 %15999  ;;  %21308 = vmatpush3.bf16.msra.mxu1 %v7831_v16  ;;  %v26608_v45 = vpop.f32.mrf.mxu0  ;;  %v31426_v16 = vld [vmem:[#allocation53_spill] sm:$0xff]  ;;  %v4067_v15 = vmul.f32 %v26516_v53, %v26161_v12 }
 0x2ba   : > { %31424 = vst [vmem:[#allocation138_spill] sm:$0xff] %v26606_v60  ;;  %v26613_v19 = vpop.permute.xlu1 %15994  ;;  %12037 = vperm.xlu0 %22072, %v26528_v1   ;;  %v21035_v30 = vpop.f32.mrf.mxu1  ;;  %21274 = vmatmul.mubr.msk.bf16.gmra.mxu1 %vm363_vm0, %v22379_v21  ;;  %v8758_v29 = vsel %vm723_vm2, %v31426_v16, %v24545_v10 }
 0x2bb   : > { %31425 = vst [vmem:[#allocation139_spill] sm:$0xff] %v26613_v19  ;;  %v26618_v54 = vadd.f32 %v26444_v50, %v5087_v63  ;;  %21330 = vmatmul.mubr.msk.bf16.vlgmr.msra.gmra.mxu0 %vm363_vm0, %v22378_v32  ;;  %12032 = vperm.xlu1 %22073, %v26538_v25   ;;  %v5092_v11 = vadd.f32 %v21035_v30, %v26406_v23  ;;  %v26623_v6 = vpop.f32.mrf.mxu0  ;;  %v22405_v19 = vld [vmem:[%s22921_s26 + $0x8] ss:$20 sps:$4 sm:$0xff]  }
 0x2bc   : > { %v5039_v60 = vpop.f32.mrf.mxu1  ;;  %21333 = vmatprep.mubr.msk.bf16.mxu0 %vm363_vm0, %v22380_v20  ;;  %21277 = vmatprep.mubr.msk.bf16.mxu1 %vm363_vm0, %v22381_v56  ;;  %v4066_v50 = vmul.f32 %v26512_v3, %v26134_v43  ;;  %v22383_v43 = vld [vmem:[%s31152_s1 + $0x3e8] sm:$0xff]  }
 0x2bd   : > { %v5090_v21 = vadd.f32 %v5039_v60, %v26417_v58  ;;  %v26636_v23 = vadd.f32 %v26459_v35, %v5092_v11  ;;  %v4106_v30 = vpop.permute.xlu0 %4105  ;;  %21366 = vmatpush3.bf16.msra.mxu0 %v26452_v55  ;;  %v26639_v10 = vpop.f32.mrf.mxu0  ;;  %21345 = vmatprep.subr.bf16.mxu1 %v26611_v39  ;;  %v26654_v3 = vld [vmem:[%s31154_s3 + $0x48] sm:$0xff] }
 0x2be   : > { %v4179_v12 = vadd.f32 %v4106_v30, %v4067_v15  ;;  %v4101_v53 = vpop.permute.xlu1 %4100  ;;  %16039 = vperm.xlu0 %22072, %v26528_v1   ;;  %v21036_v32 = vpop.f32.mrf.mxu1  ;;  %21367 = vmatprep.subr.bf16.mxu0 %v8758_v29  ;;  %v22382_v1 = vld [vmem:[%s31152_s1 + $0x58] sm:$0xff]  }
 0x2bf   : > { %v4178_v58 = vadd.f32 %v4101_v53, %v4066_v50  ;;  %v26647_v35 = vadd.f32 %v26467_v61, %v5090_v21  ;;  %16034 = vperm.xlu1 %22073, %v26538_v25   ;;  %v5093_v55 = vadd.f32 %v21036_v32, %v26440_v42  ;;  %v26659_v20 = vpop.f32.mrf.mxu0  ;;  %v26664_v61 = vld [vmem:[%s31154_s3 + $0x40] sm:$0xff]  ;;  %v22385_v25 = vld [vmem:[%s31152_s1 + $0x3f0] sm:$0xff]   ;;  %v31430_v32 = vld [vmem:[#allocation56_spill] sm:$0xff] }
 0x2c0   : > { %v4195_v56 = vmax.f32 %v4179_v12, 0.0  ;;  %v5042_v63 = vpop.f32.mrf.mxu1  ;;  %v22384_v42 = vld [vmem:[%s31152_s1 + $0x60] sm:$0xff]   ;;  %v31429_v53 = vld [vmem:[#allocation57_spill] sm:$0xff] }
 0x2c1   : > { %v4194_v60 = vmax.f32 %v4178_v58, 0.0  ;;  %v5091_v11 = vadd.f32 %v5042_v63, %v26455_v2  ;;  %v26674_v16 = vadd.f32 %v26482_v44, %v5093_v55  ;;  %v26676_v15 = vpop.permute.xlu0 %8107  ;;  %21368 = vmatpush3.bf16.msra.mxu0 %v8758_v29  ;;  %v26678_v50 = vpop.f32.mrf.mxu0  ;;  %v26687_v2 = vsel %vm1137_vm4, %v31430_v32, %v31429_v53 }
 0x2c2   : > { %31427 = vst [vmem:[#allocation53_spill] sm:$0xff] %v26676_v15  ;;  %v19822_v21 = vpack.c.bf16 %v4195_v56, %v4195_v56  ;;  %v26680_v30 = vpop.permute.xlu1 %8102  ;;  %4145 = vperm.xlu0 %22072, %v26654_v3   ;;  %v21039_v12 = vpop.f32.mrf.mxu1  ;;  %21278 = vmatmul.mubr.msk.bf16.gmra.mxu1 %vm363_vm0, %v22383_v43  ;;  %v31442_v15 = vld [vmem:[#allocation51_spill] sm:$0xff] }
 0x2c3   : > { %31428 = vst [vmem:[#allocation140_spill] sm:$0xff] %v26680_v30  ;;  %v19821_v44 = vpack.c.bf16 %v4194_v60, %v4194_v60  ;;  %v26690_v58 = vadd.f32 %v26496_v51, %v5091_v11  ;;  %21334 = vmatmul.mubr.msk.bf16.gmra.mxu0 %vm363_vm0, %v22382_v1  ;;  %4140 = vperm.xlu1 %22073, %v26664_v61   ;;  %v26695_v55 = vpop.f32.mrf.mxu0 }
 0x2c4   : > { %v5096_v29 = vadd.f32 %v21039_v12, %v26465_v62  ;;  %4275 = vst [vmem:[#allocation2 + $0x10] sm:$0xf] %v19822_v21  ;;  %v5055_v56 = vpop.f32.mrf.mxu1  ;;  %21337 = vmatprep.mubr.msk.bf16.mxu0 %vm363_vm0, %v22384_v42  ;;  %21281 = vmatprep.mubr.msk.bf16.mxu1 %vm363_vm0, %v22385_v25  ;;  %v22387_v42 = vld [vmem:[%s31152_s1 + $0x3f8] sm:$0xff]   ;;  %v22386_v25 = vld [vmem:[%s31152_s1 + $0x68] sm:$0xff]   ;;  %v22388_v12 = vld [vmem:[%s31152_s1 + $0x70] sm:$0xff]  }
 0x2c5   : > { %4274 = vst [vmem:[#allocation2] sm:$0xf] %v19821_v44  ;;  %v5094_v43 = vadd.f32 %v5055_v56, %v26474_v36  ;;  %v26703_v63 = vpop.permute.xlu0 %12109  ;;  %v26705_v1 = vpop.f32.mrf.mxu0  ;;  %21405 = vmatprep.subr.bf16.mxu0 %v26687_v2 }
 0x2c6   : > { %v26701_v51 = vadd.f32 %v26504_v48, %v5096_v29  ;;  %31431 = vst [vmem:[#allocation57_spill] sm:$0xff] %v26703_v63  ;;  %v26708_v62 = vpop.permute.xlu1 %12104  ;;  %8147 = vperm.xlu0 %22072, %v26654_v3   ;;  %v21040_v60 = vpop.f32.mrf.mxu1 }
 0x2c7   : > { %31432 = vst [vmem:[#allocation56_spill] sm:$0xff] %v26708_v62  ;;  %v26715_v36 = vadd.f32 %v26514_v8, %v5094_v43  ;;  %8142 = vperm.xlu1 %22073, %v26664_v61   ;;  %v5097_v48 = vadd.f32 %v21040_v60, %v26494_v22  ;;  %v26722_v11 = vpop.f32.mrf.mxu0  ;;  %v22389_v8 = vld [vmem:[%s31152_s1 + $0x440] sm:$0xff]  }
 0x2c8   : > { %v5058_v21 = vpop.f32.mrf.mxu1 }
 0x2c9   : > { %v5095_v53 = vadd.f32 %v5058_v21, %v26500_v31  ;;  %v26732_v32 = vadd.f32 %v26533_v52, %v5097_v48  ;;  %v26734_v22 = vpop.permute.xlu0 %16111  ;;  %v26736_v44 = vpop.f32.mrf.mxu0 }
 0x2ca   : > { %31433 = vst [vmem:[#allocation141_spill] sm:$0xff] %v26734_v22  ;;  %v26738_v29 = vpop.permute.xlu1 %16106  ;;  %12149 = vperm.xlu0 %22072, %v26654_v3   ;;  %v21043_v56 = vpop.f32.mrf.mxu1  ;;  %21282 = vmatmul.mubr.msk.bf16.gmra.mxu1 %vm363_vm0, %v22387_v42 }
 0x2cb   : > { %31434 = vst [vmem:[#allocation142_spill] sm:$0xff] %v26738_v29  ;;  %v26743_v43 = vadd.f32 %v26552_v59, %v5095_v53  ;;  %21338 = vmatmul.mubr.msk.bf16.gmra.mxu0 %vm363_vm0, %v22386_v25  ;;  %12144 = vperm.xlu1 %22073, %v26664_v61   ;;  %v5100_v31 = vadd.f32 %v21043_v56, %v26510_v24  ;;  %v26748_v52 = vpop.f32.mrf.mxu0 }
 0x2cc   : > { %v5071_v60 = vpop.f32.mrf.mxu1  ;;  %21341 = vmatprep.mubr.msk.bf16.mxu0 %vm363_vm0, %v22388_v12  ;;  %21309 = vmatprep.mubr.msk.bf16.mxu1 %vm363_vm0, %v22389_v8  ;;  %v22391_v12 = vld [vmem:[%s31152_s1 + $0x448] sm:$0xff]  }
 0x2cd   : > { %v5098_v48 = vadd.f32 %v5071_v60, %v26522_v17  ;;  %v26754_v42 = vadd.f32 %v26564_v18, %v5100_v31  ;;  %v26756_v59 = vpop.permute.xlu0 %4003  ;;  %v26758_v21 = vpop.f32.mrf.mxu0  ;;  %v26774_v18 = vld [vmem:[%s31153_s2 + $0x58] sm:$0xff] }
 0x2ce   : > { %v26760_v25 = vpop.permute.xlu1 %3998  ;;  %16151 = vperm.xlu0 %22072, %v26654_v3   ;;  %v21044_v24 = vpop.f32.mrf.mxu1  ;;  %v22390_v3 = vld [vmem:[%s31152_s1 + $0x78] sm:$0xff]  }
 0x2cf   : > { %v26767_v8 = vadd.f32 %v26578_v28, %v5098_v48  ;;  %16146 = vperm.xlu1 %22073, %v26664_v61   ;;  %v5101_v17 = vadd.f32 %v21044_v24, %v26548_v57  ;;  %v26779_v53 = vpop.f32.mrf.mxu0  ;;  %v26784_v28 = vld [vmem:[%s31153_s2 + $0x50] sm:$0xff]  ;;  %v22392_v57 = vld [vmem:[%s31152_s1 + $0x80] sm:$0xff]  }
 0x2d0   : > { %v5074_v56 = vpop.f32.mrf.mxu1  ;;  %v22393_v61 = vld [vmem:[%s31152_s1 + $0x450] sm:$0xff]  }
 0x2d1   : > { %v5099_v31 = vadd.f32 %v5074_v56, %v26559_v26  ;;  %v26794_v60 = vadd.f32 %v26594_v38, %v5101_v17  ;;  %v26796_v48 = vpop.permute.xlu0 %8005  ;;  %v26798_v24 = vpop.f32.mrf.mxu0 }
 0x2d2   : > { %31435 = vst [vmem:[#allocation143_spill] sm:$0xff] %v26796_v48  ;;  %v26800_v22 = vpop.permute.xlu1 %8000  ;;  %4043 = vperm.xlu0 %22072, %v26774_v18   ;;  %v21071_v29 = vpop.f32.mrf.mxu1  ;;  %21310 = vmatmul.mubr.msk.bf16.vlgmr.msra.gmra.mxu1 %vm363_vm0, %v22391_v12 }
 0x2d3   : > { %31436 = vst [vmem:[#allocation144_spill] sm:$0xff] %v26800_v22  ;;  %v26806_v63 = vadd.f32 %v26608_v45, %v5099_v31  ;;  %21342 = vmatmul.mubr.msk.bf16.gmra.mxu0 %vm363_vm0, %v22390_v3  ;;  %4038 = vperm.xlu1 %22073, %v26784_v28   ;;  %v5498_v26 = vadd.f32 %v21071_v29, %v26573_v33  ;;  %v26811_v38 = vpop.f32.mrf.mxu0  ;;  %v22395_v29 = vld [vmem:[%s31152_s1 + $0x458] sm:$0xff]  }
 0x2d4   : > { %v5433_v17 = vpop.f32.mrf.mxu1  ;;  %21369 = vmatprep.mubr.msk.bf16.mxu0 %vm363_vm0, %v22392_v57  ;;  %21313 = vmatprep.mubr.msk.bf16.mxu1 %vm363_vm0, %v22393_v61 }
 0x2d5   : > { %v5496_v56 = vadd.f32 %v5433_v17, %v26587_v34  ;;  %v26817_v12 = vadd.f32 %v26623_v6, %v5498_v26  ;;  %v26819_v45 = vpop.permute.xlu0 %12007  ;;  %21346 = vmatpush3.bf16.msra.mxu1 %v26611_v39  ;;  %v26822_v3 = vpop.f32.mrf.mxu0  ;;  %v22394_v39 = vld [vmem:[%s31152_s1 + $0x88] sm:$0xff]   ;;  %v22396_v26 = vld [vmem:[%s31152_s1 + $0x90] sm:$0xff]  }
 0x2d6   : > { %31437 = vst [vmem:[#allocation145_spill] sm:$0xff] %v26819_v45  ;;  %v26824_v31 = vpop.permute.xlu1 %12002  ;;  %8045 = vperm.xlu0 %22072, %v26774_v18   ;;  %v21072_v33 = vpop.f32.mrf.mxu1  ;;  %21347 = vmatprep.subr.bf16.mxu1 %v22405_v19 }
 0x2d7   : > { %31438 = vst [vmem:[#allocation146_spill] sm:$0xff] %v26824_v31  ;;  %v26831_v34 = vadd.f32 %v26639_v10, %v5496_v56  ;;  %8040 = vperm.xlu1 %22073, %v26784_v28   ;;  %v5499_v6 = vadd.f32 %v21072_v33, %v26604_v7  ;;  %v26838_v57 = vpop.f32.mrf.mxu0  ;;  %v22397_v10 = vld [vmem:[%s31152_s1 + $0x460] sm:$0xff]   ;;  %v31441_v31 = vld [vmem:[#allocation52_spill] sm:$0xff] }
 0x2d8   : > { %v5436_v61 = vpop.f32.mrf.mxu1  ;;  %v26861_v48 = vsel %vm930_vm3, %v31442_v15, %v31441_v31 }
 0x2d9   : > { %v5497_v17 = vadd.f32 %v5436_v61, %v26618_v54  ;;  %v26848_v56 = vadd.f32 %v26659_v20, %v5499_v6  ;;  %v26850_v7 = vpop.permute.xlu0 %16009  ;;  %21348 = vmatpush3.bf16.msra.mxu1 %v22405_v19  ;;  %v26852_v33 = vpop.f32.mrf.mxu0  ;;  %v31443_v6 = vld [vmem:[#allocation60_spill] sm:$0xff]  ;;  %v4069_v61 = vmul.f32 %v26756_v59, %v26145_v46 }
 0x2da   : > { %31439 = vst [vmem:[#allocation147_spill] sm:$0xff] %v26850_v7  ;;  %v26854_v45 = vpop.permute.xlu1 %16004  ;;  %12047 = vperm.xlu0 %22072, %v26774_v18   ;;  %v21075_v62 = vpop.f32.mrf.mxu1  ;;  %21314 = vmatmul.mubr.msk.bf16.gmra.mxu1 %vm363_vm0, %v22395_v29  ;;  %v9168_v29 = vsel %vm1137_vm4, %v31443_v6, %v24665_v5 }
 0x2db   : > { %31440 = vst [vmem:[#allocation148_spill] sm:$0xff] %v26854_v45  ;;  %v26864_v54 = vadd.f32 %v26678_v50, %v5497_v17  ;;  %21370 = vmatmul.mubr.msk.bf16.vlgmr.msra.gmra.mxu0 %vm363_vm0, %v22394_v39  ;;  %12042 = vperm.xlu1 %22073, %v26784_v28   ;;  %v5502_v19 = vadd.f32 %v21075_v62, %v26636_v23  ;;  %v26869_v20 = vpop.f32.mrf.mxu0 }
 0x2dc   : > { %v5449_v15 = vpop.f32.mrf.mxu1  ;;  %21373 = vmatprep.mubr.msk.bf16.mxu0 %vm363_vm0, %v22396_v26  ;;  %21317 = vmatprep.mubr.msk.bf16.mxu1 %vm363_vm0, %v22397_v10  ;;  %v4068_v50 = vmul.f32 %v26760_v25, %v26122_v27  ;;  %v22399_v27 = vld [vmem:[%s31152_s1 + $0x468] sm:$0xff]   ;;  %v26900_v25 = vld [vmem:[%s31154_s3 + $0x58] sm:$0xff] }
 0x2dd   : > { %v5500_v31 = vadd.f32 %v5449_v15, %v26647_v35  ;;  %v26882_v23 = vadd.f32 %v26695_v55, %v5502_v19  ;;  %v4116_v62 = vpop.permute.xlu0 %4115  ;;  %21406 = vmatpush3.bf16.msra.mxu0 %v26687_v2  ;;  %v26885_v5 = vpop.f32.mrf.mxu0  ;;  %21385 = vmatprep.subr.bf16.mxu1 %v26861_v48 }
 0x2de   : > { %v4181_v46 = vadd.f32 %v4116_v62, %v4069_v61  ;;  %v4111_v59 = vpop.permute.xlu1 %4110  ;;  %16049 = vperm.xlu0 %22072, %v26774_v18   ;;  %v21076_v39 = vpop.f32.mrf.mxu1  ;;  %21407 = vmatprep.subr.bf16.mxu0 %v9168_v29  ;;  %v22398_v18 = vld [vmem:[%s31152_s1 + $0x98] sm:$0xff]  }
 0x2df   : > { %v4180_v35 = vadd.f32 %v4111_v59, %v4068_v50  ;;  %v26893_v55 = vadd.f32 %v26705_v1, %v5500_v31  ;;  %16044 = vperm.xlu1 %22073, %v26784_v28   ;;  %v5503_v2 = vadd.f32 %v21076_v39, %v26674_v16  ;;  %v26905_v26 = vpop.f32.mrf.mxu0  ;;  %v26910_v1 = vld [vmem:[%s31154_s3 + $0x50] sm:$0xff]  ;;  %v22400_v16 = vld [vmem:[%s31152_s1 + $0xa0] sm:$0xff]  }
 0x2e0   : > { %v4197_v10 = vmax.f32 %v4181_v46, 0.0  ;;  %v5452_v17 = vpop.f32.mrf.mxu1  ;;  %v22401_v28 = vld [vmem:[%s31152_s1 + $0x470] sm:$0xff]  }
 0x2e1   : > { %v4196_v19 = vmax.f32 %v4180_v35, 0.0  ;;  %v5501_v6 = vadd.f32 %v5452_v17, %v26690_v58  ;;  %v26920_v61 = vadd.f32 %v26722_v11, %v5503_v2  ;;  %v26922_v15 = vpop.permute.xlu0 %8117  ;;  %21408 = vmatpush3.bf16.msra.mxu0 %v9168_v29  ;;  %v26924_v50 = vpop.f32.mrf.mxu0  ;;  %v26933_v58 = vsel %vm1551_vm5, %v24723_v9, %v24732_v47 }
 0x2e2   : > { %31444 = vst [vmem:[#allocation52_spill] sm:$0xff] %v26922_v15  ;;  %v19824_v31 = vpack.c.bf16 %v4197_v10, %v4197_v10  ;;  %v26926_v62 = vpop.permute.xlu1 %8112  ;;  %4155 = vperm.xlu0 %22072, %v26900_v25   ;;  %v21079_v46 = vpop.f32.mrf.mxu1  ;;  %21318 = vmatmul.mubr.msk.bf16.gmra.mxu1 %vm363_vm0, %v22399_v27  ;;  %v22402_v10 = vld [vmem:[%s31152_s1 + $0xa8] sm:$0xff]  }
 0x2e3   : > { %31445 = vst [vmem:[#allocation51_spill] sm:$0xff] %v26926_v62  ;;  %v19823_v11 = vpack.c.bf16 %v4196_v19, %v4196_v19  ;;  %v26936_v59 = vadd.f32 %v26736_v44, %v5501_v6  ;;  %21374 = vmatmul.mubr.msk.bf16.gmra.mxu0 %vm363_vm0, %v22398_v18  ;;  %4150 = vperm.xlu1 %22073, %v26910_v1   ;;  %v26941_v39 = vpop.f32.mrf.mxu0  ;;  %v22403_v18 = vld [vmem:[%s31152_s1 + $0x478] sm:$0xff]   ;;  %v31555_v62 = vld [vmem:[#allocation73_spill] sm:$0xff] }
 0x2e4   : > { %v5506_v29 = vadd.f32 %v21079_v46, %v26701_v51  ;;  %4277 = vst [vmem:[#allocation2 + $0x30] sm:$0xf] %v19824_v31  ;;  %v5465_v35 = vpop.f32.mrf.mxu1  ;;  %21377 = vmatprep.mubr.msk.bf16.mxu0 %vm363_vm0, %v22400_v16  ;;  %21321 = vmatprep.mubr.msk.bf16.mxu1 %vm363_vm0, %v22401_v28  ;;  %v22406_v28 = vld [vmem:[%s31152_s1 + $0xb0] sm:$0xff]  }
 0x2e5   : > { %4276 = vst [vmem:[#allocation2 + $0x20] sm:$0xf] %v19823_v11  ;;  %v5504_v9 = vadd.f32 %v5465_v35, %v26715_v36  ;;  %v26949_v44 = vpop.permute.xlu0 %12119  ;;  %v26951_v27 = vpop.f32.mrf.mxu0  ;;  %21445 = vmatprep.subr.bf16.mxu0 %v26933_v58 }
 0x2e6   : > { %v26947_v47 = vadd.f32 %v26748_v52, %v5506_v29  ;;  %31446 = vst [vmem:[#allocation60_spill] sm:$0xff] %v26949_v44  ;;  %v26954_v51 = vpop.permute.xlu1 %12114  ;;  %8157 = vperm.xlu0 %22072, %v26900_v25   ;;  %v21080_v2 = vpop.f32.mrf.mxu1 }
 0x2e7   : > { %31447 = vst [vmem:[#allocation149_spill] sm:$0xff] %v26954_v51  ;;  %v26961_v36 = vadd.f32 %v26758_v21, %v5504_v9  ;;  %8152 = vperm.xlu1 %22073, %v26910_v1   ;;  %v5507_v52 = vadd.f32 %v21080_v2, %v26732_v32  ;;  %v26968_v17 = vpop.f32.mrf.mxu0  ;;  %v22407_v21 = vld [vmem:[%s31152_s1] sm:$0xff]  }
 0x2e8   : > { %v5468_v16 = vpop.f32.mrf.mxu1 }
 0x2e9   : > { %v5505_v19 = vadd.f32 %v5468_v16, %v26743_v43  ;;  %v26978_v6 = vadd.f32 %v26779_v53, %v5507_v52  ;;  %v26980_v32 = vpop.permute.xlu0 %16121  ;;  %v26982_v31 = vpop.f32.mrf.mxu0 }
 0x2ea   : > { %31448 = vst [vmem:[#allocation150_spill] sm:$0xff] %v26980_v32  ;;  %v26984_v46 = vpop.permute.xlu1 %16116  ;;  %12159 = vperm.xlu0 %22072, %v26900_v25   ;;  %v21083_v11 = vpop.f32.mrf.mxu1  ;;  %21322 = vmatmul.mubr.msk.bf16.gmra.mxu1 %vm363_vm0, %v22403_v18 }
 0x2eb   : > { %31449 = vst [vmem:[#allocation151_spill] sm:$0xff] %v26984_v46  ;;  %v26989_v29 = vadd.f32 %v26798_v24, %v5505_v19  ;;  %21378 = vmatmul.mubr.msk.bf16.gmra.mxu0 %vm363_vm0, %v22402_v10  ;;  %12154 = vperm.xlu1 %22073, %v26910_v1   ;;  %v5510_v43 = vadd.f32 %v21083_v11, %v26754_v42  ;;  %v26994_v53 = vpop.f32.mrf.mxu0  ;;  %v22409_v10 = vld [vmem:[%s31152_s1 + $0x8] sm:$0xff]  }
 0x2ec   : > { %v5481_v35 = vpop.f32.mrf.mxu1  ;;  %21381 = vmatprep.mubr.msk.bf16.mxu0 %vm363_vm0, %v22406_v28  ;;  %21349 = vmatprep.mubr.msk.bf16.mxu1 %vm363_vm0, %v22407_v21 }
 0x2ed   : > { %v5508_v9 = vadd.f32 %v5481_v35, %v26767_v8  ;;  %v27000_v2 = vadd.f32 %v26811_v38, %v5510_v43  ;;  %v27002_v24 = vpop.permute.xlu0 %4013  ;;  %v27004_v18 = vpop.f32.mrf.mxu0  ;;  %v27020_v38 = vld [vmem:[%s31153_s2 + $0x68] sm:$0xff] }
 0x2ee   : > { %v27006_v52 = vpop.permute.xlu1 %4008  ;;  %16161 = vperm.xlu0 %22072, %v26900_v25   ;;  %v21084_v42 = vpop.f32.mrf.mxu1  ;;  %v22408_v25 = vld [vmem:[%s31152_s1 + $0xb8] sm:$0xff]  }
 0x2ef   : > { %v27013_v16 = vadd.f32 %v26822_v3, %v5508_v9  ;;  %16156 = vperm.xlu1 %22073, %v26910_v1   ;;  %v5511_v8 = vadd.f32 %v21084_v42, %v26794_v60  ;;  %v27025_v28 = vpop.f32.mrf.mxu0  ;;  %v27030_v3 = vld [vmem:[%s31153_s2 + $0x60] sm:$0xff]  ;;  %v22411_v1 = vld [vmem:[%s31152_s1 + $0x10] sm:$0xff]  }
 0x2f0   : > { %v5484_v21 = vpop.f32.mrf.mxu1  ;;  %v22410_v60 = vld [vmem:[%s31152_s1 + $0x100] sm:$0xff]  }
 0x2f1   : > { %v5509_v19 = vadd.f32 %v5484_v21, %v26806_v63  ;;  %v27040_v11 = vadd.f32 %v26838_v57, %v5511_v8  ;;  %v27042_v43 = vpop.permute.xlu0 %8015  ;;  %v27044_v35 = vpop.f32.mrf.mxu0  ;;  %v31452_v8 = vld [vmem:[#allocation55_spill] sm:$0xff]  ;;  %v31453_v21 = vld [vmem:[#allocation54_spill] sm:$0xff] }
 0x2f2   : > { %31450 = vst [vmem:[#allocation152_spill] sm:$0xff] %v27042_v43  ;;  %v27046_v9 = vpop.permute.xlu1 %8010  ;;  %4053 = vperm.xlu0 %22072, %v27020_v38   ;;  %v21111_v42 = vpop.f32.mrf.mxu1  ;;  %21350 = vmatmul.mubr.msk.bf16.vlgmr.msra.gmra.mxu1 %vm363_vm0, %v22409_v10  ;;  %v8963_v7 = vsel %vm930_vm3, %v31453_v21, %v31452_v8 }
 0x2f3   : > { %31451 = vst [vmem:[#allocation153_spill] sm:$0xff] %v27046_v9  ;;  %v27051_v32 = vadd.f32 %v26852_v33, %v5509_v19  ;;  %21382 = vmatmul.mubr.msk.bf16.gmra.mxu0 %vm363_vm0, %v22408_v25  ;;  %4048 = vperm.xlu1 %22073, %v27030_v3   ;;  %v5908_v63 = vadd.f32 %v21111_v42, %v26817_v12  ;;  %v27056_v57 = vpop.f32.mrf.mxu0 }
 0x2f4   : > { %v5843_v46 = vpop.f32.mrf.mxu1  ;;  %21409 = vmatprep.mubr.msk.bf16.mxu0 %vm363_vm0, %v22410_v60  ;;  %21353 = vmatprep.mubr.msk.bf16.mxu1 %vm363_vm0, %v22411_v1  ;;  %v22413_v60 = vld [vmem:[%s31152_s1 + $0x18] sm:$0xff]  }
 0x2f5   : > { %v5906_v33 = vadd.f32 %v5843_v46, %v26831_v34  ;;  %v27065_v10 = vadd.f32 %v26869_v20, %v5908_v63  ;;  %v27067_v25 = vpop.permute.xlu0 %12017  ;;  %21386 = vmatpush3.bf16.msra.mxu1 %v26861_v48  ;;  %v27070_v12 = vpop.f32.mrf.mxu0  ;;  %v22412_v48 = vld [vmem:[%s31152_s1 + $0x108] sm:$0xff]   ;;  %v22414_v63 = vld [vmem:[%s31152_s1 + $0x110] sm:$0xff]  }
 0x2f6   : > { %31454 = vst [vmem:[#allocation55_spill] sm:$0xff] %v27067_v25  ;;  %v27072_v19 = vpop.permute.xlu1 %12012  ;;  %8055 = vperm.xlu0 %22072, %v27020_v38   ;;  %v21112_v42 = vpop.f32.mrf.mxu1  ;;  %21387 = vmatprep.subr.bf16.mxu1 %v8963_v7  ;;  %v31458_v25 = vld [vmem:[#allocation59_spill] sm:$0xff] }
 0x2f7   : > { %31455 = vst [vmem:[#allocation54_spill] sm:$0xff] %v27072_v19  ;;  %v27079_v34 = vadd.f32 %v26885_v5, %v5906_v33  ;;  %8050 = vperm.xlu1 %22073, %v27030_v3   ;;  %v5909_v20 = vadd.f32 %v21112_v42, %v26848_v56  ;;  %v27086_v46 = vpop.f32.mrf.mxu0  ;;  %v22415_v5 = vld [vmem:[%s31152_s1 + $0x20] sm:$0xff]   ;;  %v31459_v19 = vld [vmem:[#allocation58_spill] sm:$0xff] }
 0x2f8   : > { %v5846_v1 = vpop.f32.mrf.mxu1  ;;  %v27109_v44 = vsel %vm1344_vm6, %v31459_v19, %v31458_v25 }
 0x2f9   : > { %v5907_v8 = vadd.f32 %v5846_v1, %v26864_v54  ;;  %v27096_v21 = vadd.f32 %v26905_v26, %v5909_v20  ;;  %v27098_v56 = vpop.permute.xlu0 %16019  ;;  %21388 = vmatpush3.bf16.msra.mxu1 %v8963_v7  ;;  %v27100_v33 = vpop.f32.mrf.mxu0  ;;  %v4071_v20 = vmul.f32 %v27002_v24, %v26221_v14 }
 0x2fa   : > { %31456 = vst [vmem:[#allocation154_spill] sm:$0xff] %v27098_v56  ;;  %v27102_v42 = vpop.permute.xlu1 %16014  ;;  %12057 = vperm.xlu0 %22072, %v27020_v38   ;;  %v21115_v45 = vpop.f32.mrf.mxu1  ;;  %21354 = vmatmul.mubr.msk.bf16.gmra.mxu1 %vm363_vm0, %v22413_v60  ;;  %v9578_v60 = vsel %vm1551_vm5, %v24786_v4, %v24795_v41 }
 0x2fb   : > { %31457 = vst [vmem:[#allocation155_spill] sm:$0xff] %v27102_v42  ;;  %v27112_v54 = vadd.f32 %v26924_v50, %v5907_v8  ;;  %21410 = vmatmul.mubr.msk.bf16.vlgmr.msra.gmra.mxu0 %vm363_vm0, %v22412_v48  ;;  %12052 = vperm.xlu1 %22073, %v27030_v3   ;;  %v5912_v7 = vadd.f32 %v21115_v45, %v26882_v23  ;;  %v27117_v26 = vpop.f32.mrf.mxu0 }
 0x2fc   : > { %v5859_v25 = vpop.f32.mrf.mxu1  ;;  %21413 = vmatprep.mubr.msk.bf16.mxu0 %vm363_vm0, %v22414_v63  ;;  %21357 = vmatprep.mubr.msk.bf16.mxu1 %vm363_vm0, %v22415_v5  ;;  %v4070_v50 = vmul.f32 %v27006_v52, %v26187_v40  ;;  %v22417_v40 = vld [vmem:[%s31152_s1 + $0x28] sm:$0xff]  }
 0x2fd   : > { %v5910_v19 = vadd.f32 %v5859_v25, %v26893_v55  ;;  %v27130_v45 = vadd.f32 %v26941_v39, %v5912_v7  ;;  %v4126_v23 = vpop.permute.xlu0 %4125  ;;  %21446 = vmatpush3.bf16.msra.mxu0 %v26933_v58  ;;  %v27133_v4 = vpop.f32.mrf.mxu0  ;;  %21425 = vmatprep.subr.bf16.mxu1 %v27109_v44  ;;  %v27148_v52 = vld [vmem:[%s31154_s3 + $0x68] sm:$0xff] }
 0x2fe   : > { %v4183_v41 = vadd.f32 %v4126_v23, %v4071_v20  ;;  %v4121_v14 = vpop.permute.xlu1 %4120  ;;  %16059 = vperm.xlu0 %22072, %v27020_v38   ;;  %v21116_v24 = vpop.f32.mrf.mxu1  ;;  %21447 = vmatprep.subr.bf16.mxu0 %v9578_v60  ;;  %v22416_v38 = vld [vmem:[%s31152_s1 + $0x118] sm:$0xff]  }
 0x2ff   : > { %v4182_v55 = vadd.f32 %v4121_v14, %v4070_v50  ;;  %v27141_v39 = vadd.f32 %v26951_v27, %v5910_v19  ;;  %16054 = vperm.xlu1 %22073, %v27030_v3   ;;  %v5913_v58 = vadd.f32 %v21116_v24, %v26920_v61  ;;  %v27153_v48 = vpop.f32.mrf.mxu0  ;;  %v27158_v27 = vld [vmem:[%s31154_s3 + $0x60] sm:$0xff]  ;;  %v22419_v3 = vld [vmem:[%s31152_s1 + $0x30] sm:$0xff]  }
 0x300   : > { %v4199_v1 = vmax.f32 %v4183_v41, 0.0  ;;  %v5862_v63 = vpop.f32.mrf.mxu1  ;;  %v22418_v61 = vld [vmem:[%s31152_s1 + $0x120] sm:$0xff]   ;;  %v31462_v41 = vld [vmem:[#allocation68_spill] sm:$0xff] }
 0x301   : > { %v4198_v5 = vmax.f32 %v4182_v55, 0.0  ;;  %v5911_v8 = vadd.f32 %v5862_v63, %v26936_v59  ;;  %v27168_v7 = vadd.f32 %v26968_v17, %v5913_v58  ;;  %v27170_v20 = vpop.permute.xlu0 %8127  ;;  %21448 = vmatpush3.bf16.msra.mxu0 %v9578_v60  ;;  %v27172_v25 = vpop.f32.mrf.mxu0  ;;  %v31463_v14 = vld [vmem:[#allocation67_spill] sm:$0xff] }
 0x302   : > { %31460 = vst [vmem:[#allocation59_spill] sm:$0xff] %v27170_v20  ;;  %v19826_v50 = vpack.c.bf16 %v4199_v1, %v4199_v1  ;;  %v27174_v19 = vpop.permute.xlu1 %8122  ;;  %4165 = vperm.xlu0 %22072, %v27148_v52   ;;  %v21119_v23 = vpop.f32.mrf.mxu1  ;;  %21358 = vmatmul.mubr.msk.bf16.gmra.mxu1 %vm363_vm0, %v22417_v40  ;;  %v27181_v59 = vsel %vm1965_vm7, %v31463_v14, %v31462_v41 }
 0x303   : > { %31461 = vst [vmem:[#allocation58_spill] sm:$0xff] %v27174_v19  ;;  %v19825_v17 = vpack.c.bf16 %v4198_v5, %v4198_v5  ;;  %v27184_v24 = vadd.f32 %v26982_v31, %v5911_v8  ;;  %21414 = vmatmul.mubr.msk.bf16.gmra.mxu0 %vm363_vm0, %v22416_v38  ;;  %4160 = vperm.xlu1 %22073, %v27158_v27   ;;  %v27189_v55 = vpop.f32.mrf.mxu0 }
 0x304   : > { %v5916_v60 = vadd.f32 %v21119_v23, %v26947_v47  ;;  %4279 = vst [vmem:[#allocation2 + $0x50] sm:$0xf] %v19826_v50  ;;  %v5875_v58 = vpop.f32.mrf.mxu1  ;;  %21417 = vmatprep.mubr.msk.bf16.mxu0 %vm363_vm0, %v22418_v61  ;;  %21361 = vmatprep.mubr.msk.bf16.mxu1 %vm363_vm0, %v22419_v3  ;;  %v22421_v61 = vld [vmem:[%s31152_s1 + $0x38] sm:$0xff]   ;;  %v22420_v3 = vld [vmem:[%s31152_s1 + $0x128] sm:$0xff]   ;;  %v22422_v50 = vld [vmem:[%s31152_s1 + $0x130] sm:$0xff]  }
 0x305   : > { %4278 = vst [vmem:[#allocation2 + $0x40] sm:$0xf] %v19825_v17  ;;  %v5914_v40 = vadd.f32 %v5875_v58, %v26961_v36  ;;  %v27197_v1 = vpop.permute.xlu0 %12129  ;;  %v27199_v38 = vpop.f32.mrf.mxu0  ;;  %21485 = vmatprep.subr.bf16.mxu0 %v27181_v59 }
 0x306   : > { %v27195_v31 = vadd.f32 %v26994_v53, %v5916_v60  ;;  %31464 = vst [vmem:[#allocation68_spill] sm:$0xff] %v27197_v1  ;;  %v27202_v47 = vpop.permute.xlu1 %12124  ;;  %8167 = vperm.xlu0 %22072, %v27148_v52   ;;  %v21120_v63 = vpop.f32.mrf.mxu1 }
 0x307   : > { %31465 = vst [vmem:[#allocation67_spill] sm:$0xff] %v27202_v47  ;;  %v27209_v36 = vadd.f32 %v27004_v18, %v5914_v40  ;;  %8162 = vperm.xlu1 %22073, %v27158_v27   ;;  %v5917_v53 = vadd.f32 %v21120_v63, %v26978_v6  ;;  %v27216_v5 = vpop.f32.mrf.mxu0  ;;  %v22423_v18 = vld [vmem:[%s31152_s1 + $0xc0] sm:$0xff]  }
 0x308   : > { %v5878_v8 = vpop.f32.mrf.mxu1  ;;  %v31477_v47 = vld [vmem:[#allocation63_spill] sm:$0xff] }
 0x309   : > { %v5915_v23 = vadd.f32 %v5878_v8, %v26989_v29  ;;  %v27226_v41 = vadd.f32 %v27025_v28, %v5917_v53  ;;  %v27228_v6 = vpop.permute.xlu0 %16131  ;;  %v27230_v14 = vpop.f32.mrf.mxu0  ;;  %v22425_v8 = vld [vmem:[%s31152_s1 + $0xc8] sm:$0xff]  }
 0x30a   : > { %31466 = vst [vmem:[#allocation156_spill] sm:$0xff] %v27228_v6  ;;  %v27232_v17 = vpop.permute.xlu1 %16126  ;;  %12169 = vperm.xlu0 %22072, %v27148_v52   ;;  %v21123_v60 = vpop.f32.mrf.mxu1  ;;  %21362 = vmatmul.mubr.msk.bf16.gmra.mxu1 %vm363_vm0, %v22421_v61 }
 0x30b   : > { %31467 = vst [vmem:[#allocation157_spill] sm:$0xff] %v27232_v17  ;;  %v27237_v58 = vadd.f32 %v27044_v35, %v5915_v23  ;;  %21418 = vmatmul.mubr.msk.bf16.gmra.mxu0 %vm363_vm0, %v22420_v3  ;;  %12164 = vperm.xlu1 %22073, %v27158_v27   ;;  %v5920_v29 = vadd.f32 %v21123_v60, %v27000_v2  ;;  %v27242_v28 = vpop.f32.mrf.mxu0 }
 0x30c   : > { %v5891_v40 = vpop.f32.mrf.mxu1  ;;  %21421 = vmatprep.mubr.msk.bf16.mxu0 %vm363_vm0, %v22422_v50  ;;  %21389 = vmatprep.mubr.msk.bf16.mxu1 %vm363_vm0, %v22423_v18 }
 0x30d   : > { %v5918_v63 = vadd.f32 %v5891_v40, %v27013_v16  ;;  %v27248_v61 = vadd.f32 %v27056_v57, %v5920_v29  ;;  %v27250_v35 = vpop.permute.xlu0 %4023  ;;  %v27252_v53 = vpop.f32.mrf.mxu0  ;;  %v27268_v57 = vld [vmem:[%s31153_s2 + $0x78] sm:$0xff] }
 0x30e   : > { %v27254_v3 = vpop.permute.xlu1 %4018  ;;  %16171 = vperm.xlu0 %22072, %v27148_v52   ;;  %v21124_v2 = vpop.f32.mrf.mxu1  ;;  %v22424_v52 = vld [vmem:[%s31152_s1 + $0x138] sm:$0xff]  }
 0x30f   : > { %v27261_v50 = vadd.f32 %v27070_v12, %v5918_v63  ;;  %16166 = vperm.xlu1 %22073, %v27158_v27   ;;  %v5921_v16 = vadd.f32 %v21124_v2, %v27040_v11  ;;  %v27273_v18 = vpop.f32.mrf.mxu0  ;;  %v27278_v12 = vld [vmem:[%s31153_s2 + $0x70] sm:$0xff]  ;;  %v22426_v11 = vld [vmem:[%s31152_s1 + $0x180] sm:$0xff]  }
 0x310   : > { %v5894_v23 = vpop.f32.mrf.mxu1  ;;  %v22427_v27 = vld [vmem:[%s31152_s1 + $0xd0] sm:$0xff]  }
 0x311   : > { %v5919_v60 = vadd.f32 %v5894_v23, %v27051_v32  ;;  %v27288_v29 = vadd.f32 %v27086_v46, %v5921_v16  ;;  %v27290_v40 = vpop.permute.xlu0 %8025  ;;  %v27292_v63 = vpop.f32.mrf.mxu0  ;;  %v31470_v16 = vld [vmem:[#allocation62_spill] sm:$0xff]  ;;  %v31471_v23 = vld [vmem:[#allocation61_spill] sm:$0xff] }
 0x312   : > { %31468 = vst [vmem:[#allocation158_spill] sm:$0xff] %v27290_v40  ;;  %v27294_v2 = vpop.permute.xlu1 %8020  ;;  %4063 = vperm.xlu0 %22072, %v27268_v57   ;;  %v21151_v6 = vpop.f32.mrf.mxu1  ;;  %21390 = vmatmul.mubr.msk.bf16.vlgmr.msra.gmra.mxu1 %vm363_vm0, %v22425_v8  ;;  %v9373_v17 = vsel %vm1344_vm6, %v31471_v23, %v31470_v16  ;;  %v22466_v40 = vld [vmem:[%s31152_s1 + $0x2a0] sm:$0xff]  }
 0x313   : > { %31469 = vst [vmem:[#allocation159_spill] sm:$0xff] %v27294_v2  ;;  %v27299_v56 = vadd.f32 %v27100_v33, %v5919_v60  ;;  %21422 = vmatmul.mubr.msk.bf16.gmra.mxu0 %vm363_vm0, %v22424_v52  ;;  %4058 = vperm.xlu1 %22073, %v27278_v12   ;;  %v6318_v32 = vadd.f32 %v21151_v6, %v27065_v10  ;;  %v27304_v46 = vpop.f32.mrf.mxu0 }
 0x314   : > { %v6253_v42 = vpop.f32.mrf.mxu1  ;;  %21449 = vmatprep.mubr.msk.bf16.mxu0 %vm363_vm0, %v22426_v11  ;;  %21393 = vmatprep.mubr.msk.bf16.mxu1 %vm363_vm0, %v22427_v27  ;;  %v22429_v11 = vld [vmem:[%s31152_s1 + $0xd8] sm:$0xff]  }
 0x315   : > { %v6316_v33 = vadd.f32 %v6253_v42, %v27079_v34  ;;  %v27313_v8 = vadd.f32 %v27117_v26, %v6318_v32  ;;  %v27315_v52 = vpop.permute.xlu0 %12027  ;;  %21426 = vmatpush3.bf16.msra.mxu1 %v27109_v44  ;;  %v27318_v10 = vpop.f32.mrf.mxu0  ;;  %v22428_v44 = vld [vmem:[%s31152_s1 + $0x188] sm:$0xff]   ;;  %v22430_v32 = vld [vmem:[%s31152_s1 + $0x190] sm:$0xff]  }
 0x316   : > { %31472 = vst [vmem:[#allocation62_spill] sm:$0xff] %v27315_v52  ;;  %v27320_v6 = vpop.permute.xlu1 %12022  ;;  %8065 = vperm.xlu0 %22072, %v27268_v57   ;;  %v21152_v60 = vpop.f32.mrf.mxu1  ;;  %21427 = vmatprep.subr.bf16.mxu1 %v9373_v17  ;;  %v31476_v52 = vld [vmem:[#allocation64_spill] sm:$0xff] }
 0x317   : > { %31473 = vst [vmem:[#allocation61_spill] sm:$0xff] %v27320_v6  ;;  %v27327_v34 = vadd.f32 %v27133_v4, %v6316_v33  ;;  %8060 = vperm.xlu1 %22073, %v27278_v12   ;;  %v6319_v42 = vadd.f32 %v21152_v60, %v27096_v21  ;;  %v27334_v26 = vpop.f32.mrf.mxu0  ;;  %v22431_v4 = vld [vmem:[%s31152_s1 + $0xe0] sm:$0xff]   ;;  %v27357_v6 = vsel %vm1758_vm8, %v31477_v47, %v31476_v52 }
 0x318   : > { %v6256_v27 = vpop.f32.mrf.mxu1 }
 0x319   : > { %v6317_v16 = vadd.f32 %v6256_v27, %v27112_v54  ;;  %v27344_v23 = vadd.f32 %v27153_v48, %v6319_v42  ;;  %v27346_v21 = vpop.permute.xlu0 %16029  ;;  %21428 = vmatpush3.bf16.msra.mxu1 %v9373_v17  ;;  %v27348_v33 = vpop.f32.mrf.mxu0  ;;  %v31478_v42 = vld [vmem:[#allocation3_spill] sm:$0xff]  ;;  %v31479_v27 = vld [vmem:[#allocation4_spill] sm:$0xff] }
 0x31a   : > { %31474 = vst [vmem:[#allocation160_spill] sm:$0xff] %v27346_v21  ;;  %v27350_v60 = vpop.permute.xlu1 %16024  ;;  %12067 = vperm.xlu0 %22072, %v27268_v57   ;;  %v21155_v1 = vpop.f32.mrf.mxu1  ;;  %21394 = vmatmul.mubr.msk.bf16.gmra.mxu1 %vm363_vm0, %v22429_v11  ;;  %v9988_v11 = vsel %vm1965_vm7, %v31479_v27, %v31478_v42  ;;  %v4073_v21 = vmul.f32 %v27250_v35, %v26199_v37 }
 0x31b   : > { %31475 = vst [vmem:[#allocation161_spill] sm:$0xff] %v27350_v60  ;;  %v27360_v54 = vadd.f32 %v27172_v25, %v6317_v16  ;;  %21450 = vmatmul.mubr.msk.bf16.vlgmr.msra.gmra.mxu0 %vm363_vm0, %v22428_v44  ;;  %12062 = vperm.xlu1 %22073, %v27278_v12   ;;  %v6322_v48 = vadd.f32 %v21155_v1, %v27130_v45  ;;  %v27365_v17 = vpop.f32.mrf.mxu0 }
 0x31c   : > { %v6269_v47 = vpop.f32.mrf.mxu1  ;;  %21453 = vmatprep.mubr.msk.bf16.mxu0 %vm363_vm0, %v22430_v32  ;;  %21397 = vmatprep.mubr.msk.bf16.mxu1 %vm363_vm0, %v22431_v4  ;;  %v4072_v25 = vmul.f32 %v27254_v3, %v26175_v0  ;;  %v22433_v0 = vld [vmem:[%s31152_s1 + $0xe8] sm:$0xff]   ;;  %v4097_v3 = vld [vmem:[%s31154_s3 + $0x78] sm:$0xff] }
 0x31d   : > { %v6320_v52 = vadd.f32 %v6269_v47, %v27141_v39  ;;  %v27378_v45 = vadd.f32 %v27189_v55, %v6322_v48  ;;  %v4136_v1 = vpop.permute.xlu0 %4135  ;;  %21486 = vmatpush3.bf16.msra.mxu0 %v27181_v59  ;;  %v27381_v44 = vpop.f32.mrf.mxu0  ;;  %21465 = vmatprep.subr.bf16.mxu1 %v27357_v6 }
 0x31e   : > { %v4185_v37 = vadd.f32 %v4136_v1, %v4073_v21  ;;  %v4131_v35 = vpop.permute.xlu1 %4130  ;;  %16069 = vperm.xlu0 %22072, %v27268_v57   ;;  %v21156_v32 = vpop.f32.mrf.mxu1  ;;  %21487 = vmatprep.subr.bf16.mxu0 %v9988_v11  ;;  %v22432_v57 = vld [vmem:[%s31152_s1 + $0x198] sm:$0xff]  }
 0x31f   : > { %v4184_v39 = vadd.f32 %v4131_v35, %v4072_v25  ;;  %v27389_v55 = vadd.f32 %v27199_v38, %v6320_v52  ;;  %16064 = vperm.xlu1 %22073, %v27278_v12   ;;  %v6323_v59 = vadd.f32 %v21156_v32, %v27168_v7  ;;  %v27399_v4 = vpop.f32.mrf.mxu0  ;;  %v4096_v38 = vld [vmem:[%s31154_s3 + $0x70] sm:$0xff]  ;;  %v22434_v7 = vld [vmem:[%s31152_s1 + $0x1a0] sm:$0xff]   ;;  %v31483_v32 = vld [vmem:[#allocation6_spill] sm:$0xff] }
 0x320   : > { %v4201_v16 = vmax.f32 %v4185_v37, 0.0  ;;  %v6272_v21 = vpop.f32.mrf.mxu1  ;;  %v22435_v12 = vld [vmem:[%s31152_s1 + $0xf0] sm:$0xff]  }
 0x321   : > { %v4200_v48 = vmax.f32 %v4184_v39, 0.0  ;;  %v6321_v42 = vadd.f32 %v6272_v21, %v27184_v24  ;;  %v27412_v27 = vadd.f32 %v27216_v5, %v6323_v59  ;;  %v27414_v47 = vpop.permute.xlu0 %8137  ;;  %21488 = vmatpush3.bf16.msra.mxu0 %v9988_v11  ;;  %v27416_v25 = vpop.f32.mrf.mxu0  ;;  %v31482_v35 = vld [vmem:[#allocation5_spill] sm:$0xff] }
 0x322   : > { %31480 = vst [vmem:[#allocation64_spill] sm:$0xff] %v27414_v47  ;;  %v19828_v52 = vpack.c.bf16 %v4201_v16, %v4201_v16  ;;  %v27418_v1 = vpop.permute.xlu1 %8132  ;;  %4175 = vperm.xlu0 %22072, %v4097_v3   ;;  %v21159_v37 = vpop.f32.mrf.mxu1  ;;  %21398 = vmatmul.mubr.msk.bf16.gmra.mxu1 %vm363_vm0, %v22433_v0  ;;  %v27424_v39 = vsel %vm2379_vm9, %v31483_v32, %v31482_v35 }
 0x323   : > { %31481 = vst [vmem:[#allocation63_spill] sm:$0xff] %v27418_v1  ;;  %v19827_v24 = vpack.c.bf16 %v4200_v48, %v4200_v48  ;;  %v27427_v5 = vadd.f32 %v27230_v14, %v6321_v42  ;;  %21454 = vmatmul.mubr.msk.bf16.gmra.mxu0 %vm363_vm0, %v22432_v57  ;;  %4170 = vperm.xlu1 %22073, %v4096_v38   ;;  %v27431_v59 = vpop.f32.mrf.mxu0  ;;  %v22439_v42 = vld [vmem:[%s31152_s1 + $0x140] sm:$0xff]  }
 0x324   : > { %v6326_v11 = vadd.f32 %v21159_v37, %v27195_v31  ;;  %4281 = vst [vmem:[#allocation2 + $0x70] sm:$0xf] %v19828_v52  ;;  %v6285_v16 = vpop.f32.mrf.mxu1  ;;  %21457 = vmatprep.mubr.msk.bf16.mxu0 %vm363_vm0, %v22434_v7  ;;  %21401 = vmatprep.mubr.msk.bf16.mxu1 %vm363_vm0, %v22435_v12  ;;  %v22436_v7 = vld [vmem:[%s31152_s1 + $0xf8] sm:$0xff]  }
 0x325   : > { %4280 = vst [vmem:[#allocation2 + $0x60] sm:$0xf] %v19827_v24  ;;  %v6324_v0 = vadd.f32 %v6285_v16, %v27209_v36  ;;  %v27439_v14 = vpop.permute.xlu0 %12139  ;;  %v27441_v57 = vpop.f32.mrf.mxu0  ;;  %21525 = vmatprep.subr.bf16.mxu0 %v27424_v39 }
 0x326   : > { %v27437_v21 = vadd.f32 %v27242_v28, %v6326_v11  ;;  %31484 = vst [vmem:[#allocation3_spill] sm:$0xff] %v27439_v14  ;;  %v27444_v31 = vpop.permute.xlu1 %12134  ;;  %v21160_v48 = vpop.f32.mrf.mxu1  ;;  %8177 = vperm.xlu0 %22072, %v4097_v3   ;;  %v22437_v28 = vld [vmem:[%s31152_s1 + $0x1a8] sm:$0xff]   ;;  %v22438_v3 = vld [vmem:[%s31152_s1 + $0x1b0] sm:$0xff]  }
 0x327   : > { %31485 = vst [vmem:[#allocation4_spill] sm:$0xff] %v27444_v31  ;;  %v6327_v12 = vadd.f32 %v21160_v48, %v27226_v41  ;;  %v27451_v36 = vadd.f32 %v27252_v53, %v6324_v0  ;;  %8172 = vperm.xlu1 %22073, %v4096_v38   ;;  %v27459_v52 = vpop.f32.mrf.mxu0  ;;  %v31499_v31 = vld [vmem:[#allocation16_spill] sm:$0xff] }
 0x328   : > { %v6288_v37 = vpop.f32.mrf.mxu1 }
 0x329   : > { %v6325_v41 = vadd.f32 %v6288_v37, %v27237_v58  ;;  %v27466_v53 = vadd.f32 %v27273_v18, %v6327_v12  ;;  %v27468_v35 = vpop.permute.xlu0 %16141  ;;  %v27470_v32 = vpop.f32.mrf.mxu0 }
 0x32a   : > { %31486 = vst [vmem:[#allocation5_spill] sm:$0xff] %v27468_v35  ;;  %v27472_v24 = vpop.permute.xlu1 %16136  ;;  %v21163_v11 = vpop.f32.mrf.mxu1  ;;  %21402 = vmatmul.mubr.msk.bf16.gmra.mxu1 %vm363_vm0, %v22436_v7  ;;  %v31490_v35 = vld [vmem:[#allocation66_spill] sm:$0xff] }
 0x32b   : > { %31487 = vst [vmem:[#allocation6_spill] sm:$0xff] %v27472_v24  ;;  %v6330_v38 = vadd.f32 %v21163_v11, %v27248_v61  ;;  %v27477_v16 = vadd.f32 %v27292_v63, %v6325_v41  ;;  %21458 = vmatmul.mubr.msk.bf16.gmra.mxu0 %vm363_vm0, %v22437_v28  ;;  %21429 = vmatprep.mubr.msk.bf16.mxu1 %vm363_vm0, %v22439_v42  ;;  %v27481_v58 = vpop.f32.mrf.mxu0  ;;  %v22440_v28 = vld [vmem:[%s31152_s1 + $0x148] sm:$0xff]   ;;  %v22442_v11 = vld [vmem:[%s31152_s1 + $0x200] sm:$0xff]   ;;  %v31491_v24 = vld [vmem:[#allocation65_spill] sm:$0xff] }
 0x32c   : > { %v6301_v18 = vpop.f32.mrf.mxu1  ;;  %21461 = vmatprep.mubr.msk.bf16.mxu0 %vm363_vm0, %v22438_v3  ;;  %v9783_v60 = vsel %vm1758_vm8, %v31491_v24, %v31490_v35 }
 0x32d   : > { %v6328_v0 = vadd.f32 %v6301_v18, %v27261_v50  ;;  %v27486_v48 = vadd.f32 %v27304_v46, %v6330_v38  ;;  %v4034_v7 = vpop.permute.xlu0 %4033  ;;  %v27488_v12 = vpop.f32.mrf.mxu0  ;;  %v22441_v50 = vld [vmem:[%s31152_s1 + $0x1b8] sm:$0xff]   ;;  %v22443_v46 = vld [vmem:[%s31152_s1 + $0x150] sm:$0xff]  }
 0x32e   : > { %v4029_v61 = vpop.permute.xlu1 %4028  ;;  %v21164_v63 = vpop.f32.mrf.mxu1 }
 0x32f   : > { %v6331_v42 = vadd.f32 %v21164_v63, %v27288_v29  ;;  %v27495_v37 = vadd.f32 %v27318_v10, %v6328_v0  ;;  %v27503_v3 = vpop.f32.mrf.mxu0 }
 0x330   : > { %v6304_v41 = vpop.f32.mrf.mxu1 }
 0x331   : > { %v6329_v29 = vadd.f32 %v6304_v41, %v27299_v56  ;;  %v27510_v10 = vadd.f32 %v27334_v26, %v6331_v42  ;;  %v27512_v38 = vpop.permute.xlu0 %8035  ;;  %v27514_v18 = vpop.f32.mrf.mxu0  ;;  %v31494_v41 = vld [vmem:[#allocation70_spill] sm:$0xff] }
 0x332   : > { %31488 = vst [vmem:[#allocation162_spill] sm:$0xff] %v27512_v38  ;;  %v27516_v0 = vpop.permute.xlu1 %8030  ;;  %v21191_v63 = vpop.f32.mrf.mxu1  ;;  %21430 = vmatmul.mubr.msk.bf16.vlgmr.msra.gmra.mxu1 %vm363_vm0, %v22440_v28 }
 0x333   : > { %31489 = vst [vmem:[#allocation163_spill] sm:$0xff] %v27516_v0  ;;  %v27523_v14 = vadd.f32 %v27348_v33, %v6329_v29  ;;  %v6728_v56 = vadd.f32 %v21191_v63, %v27313_v8  ;;  %21462 = vmatmul.mubr.msk.bf16.gmra.mxu0 %vm363_vm0, %v22441_v50  ;;  %21433 = vmatprep.mubr.msk.bf16.mxu1 %vm363_vm0, %v22443_v46  ;;  %v27528_v26 = vpop.f32.mrf.mxu0  ;;  %v22444_v46 = vld [vmem:[%s31152_s1 + $0x158] sm:$0xff]   ;;  %v22445_v29 = vld [vmem:[%s31152_s1 + $0x208] sm:$0xff]   ;;  %v22447_v63 = vld [vmem:[%s31152_s1 + $0x160] sm:$0xff]  }
 0x334   : > { %v6663_v42 = vpop.f32.mrf.mxu1  ;;  %21489 = vmatprep.mubr.msk.bf16.mxu0 %vm363_vm0, %v22442_v11  ;;  %21466 = vmatpush3.bf16.msra.mxu1 %v27357_v6  ;;  %v31495_v11 = vld [vmem:[#allocation69_spill] sm:$0xff]  ;;  %v31528_v0 = vld [vmem:[#allocation8_spill] sm:$0xff] }
 0x335   : > { %v6726_v28 = vadd.f32 %v6663_v42, %v27327_v34  ;;  %v27534_v35 = vadd.f32 %v27365_v17, %v6728_v56  ;;  %v27536_v33 = vpop.permute.xlu0 %12037  ;;  %21467 = vmatprep.subr.bf16.mxu1 %v9783_v60  ;;  %v27538_v8 = vpop.f32.mrf.mxu0  ;;  %v27548_v6 = vsel %vm2172_vm10, %v31495_v11, %v31494_v41  ;;  %v22446_v41 = vld [vmem:[%s31152_s1 + $0x210] sm:$0xff]  }
 0x336   : > { %31492 = vst [vmem:[#allocation66_spill] sm:$0xff] %v27536_v33  ;;  %v27540_v24 = vpop.permute.xlu1 %12032  ;;  %v21192_v50 = vpop.f32.mrf.mxu1 }
 0x337   : > { %31493 = vst [vmem:[#allocation65_spill] sm:$0xff] %v27540_v24  ;;  %v6729_v34 = vadd.f32 %v21192_v50, %v27344_v23  ;;  %v27552_v17 = vadd.f32 %v27381_v44, %v6726_v28  ;;  %v27560_v56 = vpop.f32.mrf.mxu0  ;;  %v31498_v24 = vld [vmem:[#allocation15_spill] sm:$0xff] }
 0x338   : > { %v6666_v42 = vpop.f32.mrf.mxu1  ;;  %21468 = vmatpush3.bf16.msra.mxu1 %v9783_v60  ;;  %v10398_v60 = vsel %vm2379_vm9, %v31499_v31, %v31498_v24 }
 0x339   : > { %v6727_v23 = vadd.f32 %v6666_v42, %v27360_v54  ;;  %v27567_v44 = vadd.f32 %v27399_v4, %v6729_v34  ;;  %v27569_v28 = vpop.permute.xlu0 %16039  ;;  %v27571_v50 = vpop.f32.mrf.mxu0  ;;  %21505 = vmatprep.subr.bf16.mxu1 %v27548_v6  ;;  %v4075_v42 = vmul.f32 %v4034_v7, %v26271_v49  ;;  %v22448_v49 = vld [vmem:[%s31152_s1 + $0x168] sm:$0xff]  }
 0x33a   : > { %31496 = vst [vmem:[#allocation70_spill] sm:$0xff] %v27569_v28  ;;  %v27574_v11 = vpop.permute.xlu1 %16034  ;;  %v21195_v33 = vpop.f32.mrf.mxu1  ;;  %21434 = vmatmul.mubr.msk.bf16.gmra.mxu1 %vm363_vm0, %v22444_v46  ;;  %v31500_v46 = vld [vmem:[#allocation120_spill] sm:$0xff] }
 0x33b   : > { %31497 = vst [vmem:[#allocation69_spill] sm:$0xff] %v27574_v11  ;;  %v6732_v54 = vadd.f32 %v21195_v33, %v27378_v45  ;;  %v27582_v4 = vadd.f32 %v27416_v25, %v6727_v23  ;;  %21490 = vmatmul.mubr.msk.bf16.vlgmr.msra.gmra.mxu0 %vm363_vm0, %v22445_v29  ;;  %21437 = vmatprep.mubr.msk.bf16.mxu1 %vm363_vm0, %v22447_v63  ;;  %v27586_v34 = vpop.f32.mrf.mxu0  ;;  %v31501_v7 = vld [vmem:[#allocation76_spill] sm:$0xff] }
 0x33c   : > { %v6679_v28 = vpop.f32.mrf.mxu1  ;;  %21493 = vmatprep.mubr.msk.bf16.mxu0 %vm363_vm0, %v22446_v41  ;;  %21526 = vmatpush3.bf16.msra.mxu0 %v27424_v39  ;;  %v4074_v31 = vmul.f32 %v4029_v61, %v31500_v46  ;;  %v31502_v39 = vld [vmem:[#allocation75_spill] sm:$0xff] }
 0x33d   : > { %v6730_v45 = vadd.f32 %v6679_v28, %v27389_v55  ;;  %v27594_v25 = vadd.f32 %v27431_v59, %v6732_v54  ;;  %v4146_v33 = vpop.permute.xlu0 %4145  ;;  %v27596_v24 = vpop.f32.mrf.mxu0  ;;  %21527 = vmatprep.subr.bf16.mxu0 %v10398_v60  ;;  %v27604_v61 = vsel %vm31503_vm11, %v31502_v39, %v31501_v7  ;;  %v22449_v28 = vld [vmem:[%s31152_s1 + $0x218] sm:$0xff]   ;;  %v22451_v54 = vld [vmem:[%s31152_s1 + $0x170] sm:$0xff]  }
 0x33e   : > { %v4187_v29 = vadd.f32 %v4146_v33, %v4075_v42  ;;  %v4141_v63 = vpop.permute.xlu1 %4140  ;;  %v21196_v23 = vpop.f32.mrf.mxu1 }
 0x33f   : > { %v4186_v55 = vadd.f32 %v4141_v63, %v4074_v31  ;;  %v6733_v59 = vadd.f32 %v21196_v23, %v27412_v27  ;;  %v27608_v41 = vadd.f32 %v27441_v57, %v6730_v45  ;;  %v27616_v42 = vpop.f32.mrf.mxu0  ;;  %v22450_v31 = vld [vmem:[%s31152_s1 + $0x220] sm:$0xff]  }
 0x340   : > { %v4203_v46 = vmax.f32 %v4187_v29, 0.0  ;;  %v6682_v33 = vpop.f32.mrf.mxu1  ;;  %21528 = vmatpush3.bf16.msra.mxu0 %v10398_v60 }
 0x341   : > { %v4202_v27 = vmax.f32 %v4186_v55, 0.0  ;;  %v6731_v57 = vadd.f32 %v6682_v33, %v27427_v5  ;;  %v27623_v45 = vadd.f32 %v27459_v52, %v6733_v59  ;;  %v27625_v63 = vpop.permute.xlu0 %8147  ;;  %v27627_v23 = vpop.f32.mrf.mxu0  ;;  %21565 = vmatprep.subr.bf16.mxu0 %v27604_v61 }
 0x342   : > { %31504 = vst [vmem:[#allocation15_spill] sm:$0xff] %v27625_v63  ;;  %v19830_v7 = vpack.c.bf16 %v4203_v46, %v4203_v46  ;;  %v27630_v29 = vpop.permute.xlu1 %8142  ;;  %v21199_v39 = vpop.f32.mrf.mxu1  ;;  %21438 = vmatmul.mubr.msk.bf16.gmra.mxu1 %vm363_vm0, %v22448_v49 }
 0x343   : > { %31505 = vst [vmem:[#allocation16_spill] sm:$0xff] %v27630_v29  ;;  %v19829_v11 = vpack.c.bf16 %v4202_v27, %v4202_v27  ;;  %v6736_v60 = vadd.f32 %v21199_v39, %v27437_v21  ;;  %v27635_v5 = vadd.f32 %v27470_v32, %v6731_v57  ;;  %21494 = vmatmul.mubr.msk.bf16.gmra.mxu0 %vm363_vm0, %v22449_v28  ;;  %v27639_v52 = vpop.f32.mrf.mxu0  ;;  %v22454_v57 = vld [vmem:[%s31152_s1 + $0x230] sm:$0xff]   ;;  %v31527_v29 = vld [vmem:[#allocation7_spill] sm:$0xff] }
 0x344   : > { %21441 = vmatprep.mubr.msk.bf16.mxu1 %vm363_vm0, %v22451_v54  ;;  %4283 = vst [vmem:[#allocation2 + $0x90] sm:$0xf] %v19830_v7  ;;  %v6695_v55 = vpop.f32.mrf.mxu1  ;;  %21497 = vmatprep.mubr.msk.bf16.mxu0 %vm363_vm0, %v22450_v31  ;;  %v22452_v54 = vld [vmem:[%s31152_s1 + $0x178] sm:$0xff]  }
 0x345   : > { %4282 = vst [vmem:[#allocation2 + $0x80] sm:$0xf] %v19829_v11  ;;  %v6734_v59 = vadd.f32 %v6695_v55, %v27451_v36  ;;  %v27644_v49 = vadd.f32 %v27481_v58, %v6736_v60  ;;  %v27646_v21 = vpop.permute.xlu0 %12149  ;;  %v27648_v32 = vpop.f32.mrf.mxu0  ;;  %v22453_v36 = vld [vmem:[%s31152_s1 + $0x228] sm:$0xff]   ;;  %v22455_v58 = vld [vmem:[%s31152_s1 + $0x1c0] sm:$0xff]  }
 0x346   : > { %31506 = vst [vmem:[#allocation120_spill] sm:$0xff] %v27646_v21  ;;  %v27650_v46 = vpop.permute.xlu1 %12144  ;;  %v21200_v28 = vpop.f32.mrf.mxu1  ;;  %v31514_v21 = vld [vmem:[#allocation72_spill] sm:$0xff] }
 0x347   : > { %31507 = vst [vmem:[#allocation76_spill] sm:$0xff] %v27650_v46  ;;  %v6737_v33 = vadd.f32 %v21200_v28, %v27466_v53  ;;  %v27657_v11 = vadd.f32 %v27488_v12, %v6734_v59  ;;  %v27665_v31 = vpop.f32.mrf.mxu0  ;;  %v31515_v46 = vld [vmem:[#allocation71_spill] sm:$0xff] }
 0x348   : > { %v6698_v27 = vpop.f32.mrf.mxu1  ;;  %v10193_v51 = vsel %vm2172_vm10, %v31515_v46, %v31514_v21  ;;  %v22460_v46 = vld [vmem:[%s31152_s1 + $0x1d8] sm:$0xff]  }
 0x349   : > { %v6735_v53 = vadd.f32 %v6698_v27, %v27477_v16  ;;  %v27672_v12 = vadd.f32 %v27503_v3, %v6737_v33  ;;  %v27674_v7 = vpop.permute.xlu0 %16151  ;;  %v27676_v39 = vpop.f32.mrf.mxu0 }
 0x34a   : > { %31508 = vst [vmem:[#allocation75_spill] sm:$0xff] %v27674_v7  ;;  %v27678_v60 = vpop.permute.xlu1 %16146  ;;  %v21203_v55 = vpop.f32.mrf.mxu1  ;;  %21442 = vmatmul.mubr.msk.bf16.gmra.mxu1 %vm363_vm0, %v22452_v54 }
 0x34b   : > { %31509 = vst [vmem:[#allocation164_spill] sm:$0xff] %v27678_v60  ;;  %v6740_v59 = vadd.f32 %v21203_v55, %v27486_v48  ;;  %v27683_v28 = vadd.f32 %v27514_v18, %v6735_v53  ;;  %21498 = vmatmul.mubr.msk.bf16.gmra.mxu0 %vm363_vm0, %v22453_v36  ;;  %21469 = vmatprep.mubr.msk.bf16.mxu1 %vm363_vm0, %v22455_v58  ;;  %v27687_v16 = vpop.f32.mrf.mxu0  ;;  %v22456_v36 = vld [vmem:[%s31152_s1 + $0x1c8] sm:$0xff]  }
 0x34c   : > { %v6711_v3 = vpop.f32.mrf.mxu1  ;;  %21501 = vmatprep.mubr.msk.bf16.mxu0 %vm363_vm0, %v22454_v57 }
 0x34d   : > { %v6738_v33 = vadd.f32 %v6711_v3, %v27495_v37  ;;  %v27692_v27 = vadd.f32 %v27528_v26, %v6740_v59  ;;  %v4044_v54 = vpop.permute.xlu0 %4043  ;;  %v27694_v7 = vpop.f32.mrf.mxu0  ;;  %v22457_v37 = vld [vmem:[%s31152_s1 + $0x238] sm:$0xff]   ;;  %v22459_v26 = vld [vmem:[%s31152_s1 + $0x1d0] sm:$0xff]   ;;  %v22458_v59 = vld [vmem:[%s31152_s1 + $0x280] sm:$0xff]  }
 0x34e   : > { %v4039_v48 = vpop.permute.xlu1 %4038  ;;  %v21204_v18 = vpop.f32.mrf.mxu1 }
 0x34f   : > { %v6741_v58 = vadd.f32 %v21204_v18, %v27510_v10  ;;  %v27701_v53 = vadd.f32 %v27538_v8, %v6738_v33  ;;  %v27709_v57 = vpop.f32.mrf.mxu0 }
 0x350   : > { %v6714_v55 = vpop.f32.mrf.mxu1 }
 0x351   : > { %v6739_v10 = vadd.f32 %v6714_v55, %v27523_v14  ;;  %v27716_v8 = vadd.f32 %v27560_v56, %v6741_v58  ;;  %v27718_v3 = vpop.permute.xlu0 %8045  ;;  %v27720_v33 = vpop.f32.mrf.mxu0 }
 0x352   : > { %31511 = vst [vmem:[#allocation166_spill] sm:$0xff] %v27718_v3  ;;  %31512 = vst [vmem:[#allocation167_spill] sm:$0xff] %v27720_v33  ;;  %v27722_v18 = vpop.permute.xlu1 %8040  ;;  %v27724_v60 = vpop.f32.mrf.mxu1  ;;  %21470 = vmatmul.mubr.msk.bf16.vlgmr.msra.gmra.mxu1 %vm363_vm0, %v22456_v36 }
 0x353   : > { %31510 = vst [vmem:[#allocation165_spill] sm:$0xff] %v27716_v8  ;;  %31513 = vst [vmem:[#allocation168_spill] sm:$0xff] %v27722_v18  ;;  %v27731_v63 = vadd.f32 %v27571_v50, %v6739_v10  ;;  %21502 = vmatmul.mubr.msk.bf16.gmra.mxu0 %vm363_vm0, %v22457_v37  ;;  %21473 = vmatprep.mubr.msk.bf16.mxu1 %vm363_vm0, %v22459_v26  ;;  %v27735_v14 = vpop.f32.mrf.mxu0  ;;  %v31521_v37 = vld [vmem:[#allocation11_spill] sm:$0xff]  ;;  %v31522_v26 = vld [vmem:[#allocation12_spill] sm:$0xff] }
 0x354   : > { %31517 = vst [vmem:[#allocation71_spill] sm:$0xff] %v27735_v14  ;;  %v27737_v56 = vpop.f32.mrf.mxu1  ;;  %21529 = vmatprep.mubr.msk.bf16.mxu0 %vm363_vm0, %v22458_v59  ;;  %21506 = vmatpush3.bf16.msra.mxu1 %v27548_v6  ;;  %v27755_v55 = vsel %vm2586_vm12, %v31522_v26, %v31521_v37  ;;  %v22461_v6 = vld [vmem:[%s31152_s1 + $0x288] sm:$0xff]   ;;  %v22463_v59 = vld [vmem:[%s31152_s1 + $0x1e0] sm:$0xff]  }
 0x355   : > { %31516 = vst [vmem:[#allocation72_spill] sm:$0xff] %v27731_v63  ;;  %v27741_v36 = vpop.permute.xlu0 %12047  ;;  %21507 = vmatprep.subr.bf16.mxu1 %v10193_v51  ;;  %v27743_v58 = vpop.f32.mrf.mxu0  ;;  %v31568_v8 = vld [vmem:[#allocation24_spill] sm:$0xff] }
 0x356   : > { %31518 = vst [vmem:[#allocation169_spill] sm:$0xff] %v27741_v36  ;;  %31519 = vst [vmem:[#allocation170_spill] sm:$0xff] %v27743_v58  ;;  %v27745_v21 = vpop.permute.xlu1 %12042  ;;  %v27747_v50 = vpop.f32.mrf.mxu1 }
 0x357   : > { %31520 = vst [vmem:[#allocation171_spill] sm:$0xff] %v27745_v21  ;;  %v27763_v10 = vpop.f32.mrf.mxu0  ;;  %v22462_v21 = vld [vmem:[%s31152_s1 + $0x290] sm:$0xff]  }
 0x358   : > { %31523 = vst [vmem:[#allocation11_spill] sm:$0xff] %v27763_v10  ;;  %v27765_v36 = vpop.f32.mrf.mxu1  ;;  %21508 = vmatpush3.bf16.msra.mxu1 %v10193_v51  ;;  %v10808_v10 = vsel %vm31503_vm11, %v31528_v0, %v31527_v29  ;;  %vm31533_vm11 = vcmask 187392  }
 0x359   : > { %v27770_v38 = vpop.permute.xlu0 %16049  ;;  %v27772_v37 = vpop.f32.mrf.mxu0  ;;  %21545 = vmatprep.subr.bf16.mxu1 %v27755_v55 }
 0x35a   : > { %31524 = vst [vmem:[#allocation12_spill] sm:$0xff] %v27770_v38  ;;  %31525 = vst [vmem:[#allocation172_spill] sm:$0xff] %v27772_v37  ;;  %v27775_v26 = vpop.permute.xlu1 %16044  ;;  %v27777_v3 = vpop.f32.mrf.mxu1  ;;  %21474 = vmatmul.mubr.msk.bf16.gmra.mxu1 %vm363_vm0, %v22460_v46  ;;  %v31529_v38 = vld [vmem:[#allocation122_spill] sm:$0xff] }
 0x35b   : > { %31526 = vst [vmem:[#allocation173_spill] sm:$0xff] %v27775_v26  ;;  %21530 = vmatmul.mubr.msk.bf16.vlgmr.msra.gmra.mxu0 %vm363_vm0, %v22461_v6  ;;  %21477 = vmatprep.mubr.msk.bf16.mxu1 %vm363_vm0, %v22463_v59  ;;  %v27785_v51 = vpop.f32.mrf.mxu0  ;;  %v4077_v37 = vmul.f32 %v4044_v54, %v31529_v38  ;;  %v31530_v26 = vld [vmem:[#allocation49_spill] sm:$0xff]  ;;  %v22464_v38 = vld [vmem:[%s31152_s1 + $0x1e8] sm:$0xff]   ;;  %v31532_v59 = vld [vmem:[#allocation10_spill] sm:$0xff] }
 0x35c   : > { %v27788_v18 = vpop.f32.mrf.mxu1  ;;  %21533 = vmatprep.mubr.msk.bf16.mxu0 %vm363_vm0, %v22462_v21  ;;  %21566 = vmatpush3.bf16.msra.mxu0 %v27604_v61  ;;  %v4076_v46 = vmul.f32 %v4039_v48, %v31530_v26  ;;  %v31531_v54 = vld [vmem:[#allocation9_spill] sm:$0xff]  ;;  %v22465_v48 = vld [vmem:[%s31152_s1 + $0x298] sm:$0xff]  }
 0x35d   : > { %v4156_v20 = vpop.permute.xlu0 %4155  ;;  %v27793_v47 = vpop.f32.mrf.mxu0  ;;  %21567 = vmatprep.subr.bf16.mxu0 %v10808_v10  ;;  %v27803_v21 = vsel %vm31533_vm11, %v31532_v59, %v31531_v54 }
 0x35e   : > { %v4189_v0 = vadd.f32 %v4156_v20, %v4077_v37  ;;  %v4151_v29 = vpop.permute.xlu1 %4150  ;;  %v27795_v6 = vpop.f32.mrf.mxu1  ;;  %v22467_v20 = vld [vmem:[%s31152_s1 + $0x1f0] sm:$0xff]  }
 0x35f   : > { %v4188_v61 = vadd.f32 %v4151_v29, %v4076_v46  ;;  %v27811_v37 = vpop.f32.mrf.mxu0 }
 0x360   : > { %31534 = vst [vmem:[#allocation7_spill] sm:$0xff] %v27811_v37  ;;  %v4205_v26 = vmax.f32 %v4189_v0, 0.0  ;;  %v27813_v43 = vpop.f32.mrf.mxu1  ;;  %21568 = vmatpush3.bf16.msra.mxu0 %v10808_v10 }
 0x361   : > { %v4204_v54 = vmax.f32 %v4188_v61, 0.0  ;;  %v27818_v46 = vpop.permute.xlu0 %8157  ;;  %v27820_v29 = vpop.f32.mrf.mxu0  ;;  %21605 = vmatprep.subr.bf16.mxu0 %v27803_v21 }
 0x362   : > { %31535 = vst [vmem:[#allocation8_spill] sm:$0xff] %v27818_v46  ;;  %31536 = vst [vmem:[#allocation122_spill] sm:$0xff] %v27820_v29  ;;  %v19832_v59 = vpack.c.bf16 %v4205_v26, %v4205_v26  ;;  %v27823_v19 = vpop.permute.xlu1 %8152  ;;  %v27825_v1 = vpop.f32.mrf.mxu1  ;;  %21478 = vmatmul.mubr.msk.bf16.gmra.mxu1 %vm363_vm0, %v22464_v38 }
 0x363   : > { %31537 = vst [vmem:[#allocation49_spill] sm:$0xff] %v27823_v19  ;;  %v19831_v0 = vpack.c.bf16 %v4204_v54, %v4204_v54  ;;  %21534 = vmatmul.mubr.msk.bf16.gmra.mxu0 %vm363_vm0, %v22465_v48  ;;  %21481 = vmatprep.mubr.msk.bf16.mxu1 %vm363_vm0, %v22467_v20  ;;  %v27830_v10 = vpop.f32.mrf.mxu0  ;;  %v22468_v48 = vld [vmem:[%s31152_s1 + $0x1f8] sm:$0xff]   ;;  %v22469_v20 = vld [vmem:[%s31152_s1 + $0x2a8] sm:$0xff]  }
 0x364   : > { %31538 = vst [vmem:[#allocation9_spill] sm:$0xff] %v27830_v10  ;;  %4285 = vst [vmem:[#allocation2 + $0xb0] sm:$0xf] %v19832_v59  ;;  %v27832_v61 = vpop.f32.mrf.mxu1  ;;  %21537 = vmatprep.mubr.msk.bf16.mxu0 %vm363_vm0, %v22466_v40  ;;  %v22471_v40 = vld [vmem:[%s31152_s1 + $0x240] sm:$0xff]  }
 0x365   : > { %4284 = vst [vmem:[#allocation2 + $0xa0] sm:$0xf] %v19831_v0  ;;  %v27835_v26 = vpop.permute.xlu0 %12159  ;;  %v27837_v46 = vpop.f32.mrf.mxu0  ;;  %v22470_v0 = vld [vmem:[%s31152_s1 + $0x2b0] sm:$0xff]  }
 0x366   : > { %31539 = vst [vmem:[#allocation10_spill] sm:$0xff] %v27835_v26  ;;  %31540 = vst [vmem:[#allocation174_spill] sm:$0xff] %v27837_v46  ;;  %v27839_v19 = vpop.permute.xlu1 %12154  ;;  %v27841_v38 = vpop.f32.mrf.mxu1 }
 0x367   : > { %31541 = vst [vmem:[#allocation175_spill] sm:$0xff] %v27839_v19  ;;  %v27852_v54 = vpop.f32.mrf.mxu0 }
 0x368   : > { %31542 = vst [vmem:[#allocation176_spill] sm:$0xff] %v27852_v54  ;;  %v27854_v59 = vpop.f32.mrf.mxu1 }
 0x369   : > { %v27859_v26 = vpop.permute.xlu0 %16161  ;;  %v27861_v19 = vpop.f32.mrf.mxu0 }
 0x36a   : > { %31543 = vst [vmem:[#allocation177_spill] sm:$0xff] %v27859_v26  ;;  %31544 = vst [vmem:[#allocation178_spill] sm:$0xff] %v27861_v19  ;;  %v27863_v9 = vpop.permute.xlu1 %16156  ;;  %v27865_v2 = vpop.f32.mrf.mxu1  ;;  %21482 = vmatmul.mubr.msk.bf16.gmra.mxu1 %vm363_vm0, %v22468_v48  ;;  %v22472_v48 = vld [vmem:[%s31152_s1 + $0x248] sm:$0xff]  }
 0x36b   : > { %31545 = vst [vmem:[#allocation179_spill] sm:$0xff] %v27863_v9  ;;  %21538 = vmatmul.mubr.msk.bf16.gmra.mxu0 %vm363_vm0, %v22469_v20  ;;  %21509 = vmatprep.mubr.msk.bf16.mxu1 %vm363_vm0, %v22471_v40  ;;  %v27870_v15 = vpop.f32.mrf.mxu0  ;;  %v22473_v20 = vld [vmem:[%s31152_s1 + $0x2b8] sm:$0xff]   ;;  %v22475_v40 = vld [vmem:[%s31152_s1 + $0x250] sm:$0xff]  }
 0x36c   : > { %31546 = vst [vmem:[#allocation180_spill] sm:$0xff] %v27870_v15  ;;  %v27872_v54 = vpop.f32.mrf.mxu1  ;;  %21541 = vmatprep.mubr.msk.bf16.mxu0 %vm363_vm0, %v22470_v0 }
 0x36d   : > { %v4054_v30 = vpop.permute.xlu0 %4053  ;;  %v27875_v26 = vpop.f32.mrf.mxu0 }
 0x36e   : > { %31547 = vst [vmem:[#allocation181_spill] sm:$0xff] %v27875_v26  ;;  %v4049_v19 = vpop.permute.xlu1 %4048  ;;  %v27877_v46 = vpop.f32.mrf.mxu1  ;;  %v22474_v26 = vld [vmem:[%s31152_s1 + $0x300] sm:$0xff]  }
 0x36f   : > { %31548 = vst [vmem:[#allocation182_spill] sm:$0xff] %v27877_v46  ;;  %v27888_v9 = vpop.f32.mrf.mxu0 }
 0x370   : > { %31549 = vst [vmem:[#allocation183_spill] sm:$0xff] %v27888_v9  ;;  %v27890_v0 = vpop.f32.mrf.mxu1  ;;  %v10603_v9 = vsel %vm2586_vm12, %v31555_v62, %v31554_v13  ;;  %v22476_v62 = vld [vmem:[%s31152_s1 + $0x258] sm:$0xff]  }
 0x371   : > { %31550 = vst [vmem:[#allocation184_spill] sm:$0xff] %v27890_v0  ;;  %v27895_v15 = vpop.permute.xlu0 %8055  ;;  %v27897_v10 = vpop.f32.mrf.mxu0 }
 0x372   : > { %31551 = vst [vmem:[#allocation185_spill] sm:$0xff] %v27895_v15  ;;  %31552 = vst [vmem:[#allocation186_spill] sm:$0xff] %v27897_v10  ;;  %v27899_v63 = vpop.permute.xlu1 %8050  ;;  %v27901_v58 = vpop.f32.mrf.mxu1  ;;  %21510 = vmatmul.mubr.msk.bf16.vlgmr.msra.gmra.mxu1 %vm363_vm0, %v22472_v48 }
 0x373   : > { %31553 = vst [vmem:[#allocation187_spill] sm:$0xff] %v27899_v63  ;;  %21542 = vmatmul.mubr.msk.bf16.gmra.mxu0 %vm363_vm0, %v22473_v20  ;;  %21513 = vmatprep.mubr.msk.bf16.mxu1 %vm363_vm0, %v22475_v40  ;;  %v27909_v0 = vpop.f32.mrf.mxu0  ;;  %v31560_v20 = vld [vmem:[#allocation78_spill] sm:$0xff]  ;;  %v31561_v40 = vld [vmem:[#allocation77_spill] sm:$0xff] }
 0x374   : > { %31556 = vst [vmem:[#allocation74_spill] sm:$0xff] %v27909_v0  ;;  %v27911_v29 = vpop.f32.mrf.mxu1  ;;  %21569 = vmatprep.mubr.msk.bf16.mxu0 %vm363_vm0, %v22474_v26  ;;  %21546 = vmatpush3.bf16.msra.mxu1 %v27755_v55  ;;  %v27929_v0 = vsel %vm3000_vm14, %v31561_v40, %v31560_v20  ;;  %v22477_v55 = vld [vmem:[%s31152_s1 + $0x308] sm:$0xff]   ;;  %v22479_v26 = vld [vmem:[%s31152_s1 + $0x260] sm:$0xff]  }
 0x375   : > { %v27915_v15 = vpop.permute.xlu0 %12057  ;;  %21547 = vmatprep.subr.bf16.mxu1 %v10603_v9  ;;  %v27917_v48 = vpop.f32.mrf.mxu0  ;;  %31562 = vst [vmem:[#allocation78_spill] sm:$0xff] %v27929_v0 }
 0x376   : > { %31557 = vst [vmem:[#allocation73_spill] sm:$0xff] %v27915_v15  ;;  %31558 = vst [vmem:[#allocation188_spill] sm:$0xff] %v27917_v48  ;;  %v27919_v63 = vpop.permute.xlu1 %12052  ;;  %v27921_v13 = vpop.f32.mrf.mxu1  ;;  %v22478_v48 = vld [vmem:[%s31152_s1 + $0x310] sm:$0xff]  }
 0x377   : > { %31559 = vst [vmem:[#allocation189_spill] sm:$0xff] %v27919_v63  ;;  %v27937_v15 = vpop.f32.mrf.mxu0 }
 0x378   : > { %31563 = vst [vmem:[#allocation77_spill] sm:$0xff] %v27937_v15  ;;  %v27939_v63 = vpop.f32.mrf.mxu1  ;;  %21548 = vmatpush3.bf16.msra.mxu1 %v10603_v9  ;;  %v31567_v15 = vld [vmem:[#allocation23_spill] sm:$0xff] }
 0x379   : > { %v27944_v10 = vpop.permute.xlu0 %16059  ;;  %v27946_v20 = vpop.f32.mrf.mxu0  ;;  %21585 = vmatprep.subr.bf16.mxu1 %v27929_v0  ;;  %v11218_v14 = vsel %vm31533_vm11, %v31568_v8, %v31567_v15  ;;  %vm31576_vm11 = vcmask 146432  }
 0x37a   : > { %31564 = vst [vmem:[#allocation190_spill] sm:$0xff] %v27944_v10  ;;  %31565 = vst [vmem:[#allocation191_spill] sm:$0xff] %v27946_v20  ;;  %v27949_v40 = vpop.permute.xlu1 %16054  ;;  %v27951_v46 = vpop.f32.mrf.mxu1  ;;  %21514 = vmatmul.mubr.msk.bf16.gmra.mxu1 %vm363_vm0, %v22476_v62  ;;  %v31570_v10 = vld [vmem:[#allocation131_spill] sm:$0xff] }
 0x37b   : > { %31566 = vst [vmem:[#allocation192_spill] sm:$0xff] %v27949_v40  ;;  %21570 = vmatmul.mubr.msk.bf16.vlgmr.msra.gmra.mxu0 %vm363_vm0, %v22477_v55  ;;  %21517 = vmatprep.mubr.msk.bf16.mxu1 %vm363_vm0, %v22479_v26  ;;  %v27959_v9 = vpop.f32.mrf.mxu0  ;;  %v4079_v20 = vmul.f32 %v4054_v30, %v31570_v10  ;;  %v31571_v40 = vld [vmem:[#allocation127_spill] sm:$0xff]  ;;  %v22480_v30 = vld [vmem:[%s31152_s1 + $0x268] sm:$0xff]  }
 0x37c   : > { %31569 = vst [vmem:[#allocation23_spill] sm:$0xff] %v27959_v9  ;;  %v27962_v22 = vpop.f32.mrf.mxu1  ;;  %21573 = vmatprep.mubr.msk.bf16.mxu0 %vm363_vm0, %v22478_v48  ;;  %21606 = vmatpush3.bf16.msra.mxu0 %v27803_v21  ;;  %v4078_v62 = vmul.f32 %v4049_v19, %v31571_v40  ;;  %v31574_v10 = vld [vmem:[#allocation84_spill] sm:$0xff]  ;;  %v31575_v26 = vld [vmem:[#allocation83_spill] sm:$0xff]  ;;  %v22481_v19 = vld [vmem:[%s31152_s1 + $0x318] sm:$0xff]  }
 0x37d   : > { %v4166_v37 = vpop.permute.xlu0 %4165  ;;  %v27967_v33 = vpop.f32.mrf.mxu0  ;;  %21607 = vmatprep.subr.bf16.mxu0 %v11218_v14  ;;  %v27977_v48 = vsel %vm31576_vm11, %v31575_v26, %v31574_v10  ;;  %v22482_v9 = vld [vmem:[%s31152_s1 + $0x320] sm:$0xff]  }
 0x37e   : > { %31572 = vst [vmem:[#allocation24_spill] sm:$0xff] %v27967_v33  ;;  %v4191_v15 = vadd.f32 %v4166_v37, %v4079_v20  ;;  %v4161_v8 = vpop.permute.xlu1 %4160  ;;  %v27969_v55 = vpop.f32.mrf.mxu1  ;;  %v22483_v37 = vld [vmem:[%s31152_s1 + $0x270] sm:$0xff]  }
 0x37f   : > { %31573 = vst [vmem:[#allocation131_spill] sm:$0xff] %v27969_v55  ;;  %v4190_v21 = vadd.f32 %v4161_v8, %v4078_v62  ;;  %v27985_v20 = vpop.f32.mrf.mxu0 }
 0x380   : > { %31577 = vst [vmem:[#allocation127_spill] sm:$0xff] %v27985_v20  ;;  %v4207_v40 = vmax.f32 %v4191_v15, 0.0  ;;  %v27987_v33 = vpop.f32.mrf.mxu1  ;;  %21608 = vmatpush3.bf16.msra.mxu0 %v11218_v14 }
 0x381   : > { %v4206_v10 = vmax.f32 %v4190_v21, 0.0  ;;  %v27992_v62 = vpop.permute.xlu0 %8167  ;;  %v27994_v8 = vpop.f32.mrf.mxu0  ;;  %21645 = vmatprep.subr.bf16.mxu0 %v27977_v48 }
 0x382   : > { %31578 = vst [vmem:[#allocation84_spill] sm:$0xff] %v27992_v62  ;;  %31579 = vst [vmem:[#allocation83_spill] sm:$0xff] %v27994_v8  ;;  %v19834_v26 = vpack.c.bf16 %v4207_v40, %v4207_v40  ;;  %v27997_v55 = vpop.permute.xlu1 %8162  ;;  %v27999_v0 = vpop.f32.mrf.mxu1  ;;  %21518 = vmatmul.mubr.msk.bf16.gmra.mxu1 %vm363_vm0, %v22480_v30  ;;  %v7139_v62 = vadd.f32 %v27747_v50, %v27567_v44  ;;  %v7141_v50 = vadd.f32 %v27813_v43, %v27635_v5 }
 0x383   : > { %v19833_v15 = vpack.c.bf16 %v4206_v10, %v4206_v10  ;;  %21574 = vmatmul.mubr.msk.bf16.gmra.mxu0 %vm363_vm0, %v22481_v19  ;;  %21521 = vmatprep.mubr.msk.bf16.mxu1 %vm363_vm0, %v22483_v37  ;;  %v28004_v14 = vpop.f32.mrf.mxu0  ;;  %v22484_v19 = vld [vmem:[%s31152_s1 + $0x278] sm:$0xff]   ;;  %v7138_v37 = vadd.f32 %v27724_v60, %v27534_v35  ;;  %v22487_v10 = vld [vmem:[%s31152_s1 + $0x2c0] sm:$0xff]   ;;  %v7147_v43 = vadd.f32 %v27841_v38, %v27672_v12  ;;  %v22491_v12 = vld [vmem:[%s31152_s1 + $0x2d0] sm:$0xff]  }
 0x384   : > { %31580 = vst [vmem:[#allocation193_spill] sm:$0xff] %v28004_v14  ;;  %4287 = vst [vmem:[#allocation2 + $0xd0] sm:$0xf] %v19834_v26  ;;  %v28006_v21 = vpop.f32.mrf.mxu1  ;;  %21577 = vmatprep.mubr.msk.bf16.mxu0 %vm363_vm0, %v22482_v9  ;;  %v22485_v9 = vld [vmem:[%s31152_s1 + $0x328] sm:$0xff]   ;;  %v31591_v38 = vld [vmem:[#allocation19_spill] sm:$0xff] }
 0x385   : > { %4286 = vst [vmem:[#allocation2 + $0xc0] sm:$0xf] %v19833_v15  ;;  %v28009_v40 = vpop.permute.xlu0 %12169  ;;  %v28011_v8 = vpop.f32.mrf.mxu0 }
 0x386   : > { %31581 = vst [vmem:[#allocation194_spill] sm:$0xff] %v28009_v40  ;;  %31582 = vst [vmem:[#allocation195_spill] sm:$0xff] %v28011_v8  ;;  %v28013_v20 = vpop.permute.xlu1 %12164  ;;  %v28015_v30 = vpop.f32.mrf.mxu1  ;;  %v22486_v40 = vld [vmem:[%s31152_s1 + $0x330] sm:$0xff]  }
 0x387   : > { %31583 = vst [vmem:[#allocation196_spill] sm:$0xff] %v28013_v20  ;;  %v28028_v26 = vpop.f32.mrf.mxu0  ;;  %v7136_v20 = vadd.f32 %v27737_v56, %v27552_v17  ;;  %v7137_v56 = vadd.f32 %v27765_v36, %v27582_v4 }
 0x388   : > { %31584 = vst [vmem:[#allocation197_spill] sm:$0xff] %v28028_v26  ;;  %v28030_v15 = vpop.f32.mrf.mxu1  ;;  %v7343_v26 = vadd.f32 %v27586_v34, %v7138_v37  ;;  %v7143_v34 = vadd.f32 %v27795_v6, %v27623_v45  ;;  %v7146_v45 = vadd.f32 %v27825_v1, %v27644_v49  ;;  %v22488_v6 = vld [vmem:[%s31152_s1 + $0x2c8] sm:$0xff]   ;;  %v7344_v1 = vadd.f32 %v27616_v42, %v7139_v62 }
 0x389   : > { %v28037_v35 = vpop.permute.xlu0 %16171  ;;  %v28039_v60 = vpop.f32.mrf.mxu0  ;;  %v7341_v44 = vadd.f32 %v27596_v24, %v7136_v20  ;;  %v7144_v24 = vadd.f32 %v27832_v61, %v27657_v11  ;;  %v31589_v20 = vld [vmem:[#allocation13_spill] sm:$0xff]  ;;  %v22489_v11 = vld [vmem:[%s31152_s1 + $0x338] sm:$0xff]  }
 0x38a   : > { %31585 = vst [vmem:[#allocation198_spill] sm:$0xff] %v28037_v35  ;;  %v28041_v8 = vpop.permute.xlu1 %16166  ;;  %v28043_v14 = vpop.f32.mrf.mxu1  ;;  %21522 = vmatmul.mubr.msk.bf16.gmra.mxu1 %vm363_vm0, %v22484_v19  ;;  %v7142_v35 = vadd.f32 %v27777_v3, %v27594_v25  ;;  %v7140_v19 = vadd.f32 %v27788_v18, %v27608_v41  ;;  %v7548_v4 = vadd.f32 %v27901_v58, %v7343_v26  ;;  %v31587_v3 = vld [vmem:[#allocation80_spill] sm:$0xff]  ;;  %v31588_v41 = vld [vmem:[#allocation79_spill] sm:$0xff] }
 0x38b   : > { %31586 = vst [vmem:[#allocation199_spill] sm:$0xff] %v28041_v8  ;;  %21578 = vmatmul.mubr.msk.bf16.gmra.mxu0 %vm363_vm0, %v22485_v9  ;;  %21549 = vmatprep.mubr.msk.bf16.mxu1 %vm363_vm0, %v22487_v10  ;;  %v28051_v17 = vpop.f32.mrf.mxu0  ;;  %v28075_v18 = vsel %vm3000_vm14, %v31588_v41, %v31587_v3  ;;  %v7546_v49 = vadd.f32 %v27911_v29, %v7341_v44  ;;  %v31592_v10 = vld [vmem:[#allocation20_spill] sm:$0xff]  ;;  %v31593_v3 = vld [vmem:[#allocation17_spill] sm:$0xff]  ;;  %v31594_v41 = vld [vmem:[#allocation18_spill] sm:$0xff] }
 0x38c   : > { %v28061_v37 = vpop.f32.mrf.mxu1  ;;  %21581 = vmatprep.mubr.msk.bf16.mxu0 %vm363_vm0, %v22486_v40  ;;  %v31590_v40 = vld [vmem:[#allocation14_spill] sm:$0xff]  ;;  %v28108_v26 = vsel %vm3414_vm13, %v31592_v10, %v31591_v38  ;;  %v28113_v42 = vsel %vm358_vm1, %v31594_v41, %v31593_v3  ;;  %v7342_v29 = vadd.f32 %v27627_v23, %v7137_v56  ;;  %v7347_v62 = vadd.f32 %v27639_v52, %v7142_v35  ;;  %v22490_v38 = vld [vmem:[%s31152_s1 + $0x380] sm:$0xff]  }
 0x38d   : > { %v28068_v36 = vpop.permute.xlu0 %4063  ;;  %v28070_v25 = vpop.f32.mrf.mxu0  ;;  %v28093_v9 = vsel %vm31576_vm11, %v31590_v40, %v31589_v20  ;;  %v7345_v44 = vadd.f32 %v27648_v32, %v7140_v19  ;;  %v7348_v20 = vadd.f32 %v27665_v31, %v7143_v34  ;;  %v7346_v10 = vadd.f32 %v27676_v39, %v7141_v50  ;;  %v31597_v50 = vld [vmem:[#allocation7_spill] sm:$0xff] }
 0x38e   : > { %v28083_v5 = vpop.permute.xlu1 %4058  ;;  %v28085_v58 = vpop.f32.mrf.mxu1  ;;  %v7145_v3 = vadd.f32 %v27854_v59, %v27683_v28  ;;  %v7753_v41 = vadd.f32 %v27785_v51, %v7548_v4  ;;  %v7549_v23 = vadd.f32 %v27921_v13, %v7344_v1  ;;  %v7351_v31 = vadd.f32 %v27687_v16, %v7146_v45  ;;  %v31598_v45 = vld [vmem:[#allocation144_spill] sm:$0xff]  ;;  %v31602_v1 = vld [vmem:[#allocation182_spill] sm:$0xff] }
 0x38f   : > { %v28103_v61 = vpop.f32.mrf.mxu0  ;;  %v7349_v35 = vadd.f32 %v27694_v7, %v7144_v24  ;;  %v28136_v56 = vadd.f32 %v27709_v57, %v7147_v43  ;;  %v7150_v39 = vadd.f32 %v27865_v2, %v27692_v27  ;;  %v7751_v51 = vadd.f32 %v27793_v47, %v7546_v49  ;;  %v31595_v47 = vld [vmem:[#allocation78_spill] sm:$0xff] }
 0x390   : > { %v28119_v40 = vpop.f32.mrf.mxu1  ;;  %v7547_v59 = vadd.f32 %v27939_v63, %v7342_v29  ;;  %v7148_v16 = vadd.f32 %v27872_v54, %v27701_v53  ;;  %v7552_v2 = vadd.f32 %v27951_v46, %v7347_v62  ;;  %v7550_v27 = vadd.f32 %v27962_v22, %v7345_v44  ;;  %v31596_v63 = vld [vmem:[#allocation167_spill] sm:$0xff]  ;;  %v31601_v54 = vld [vmem:[#allocation165_spill] sm:$0xff] }
 0x391   : > { %v28129_v52 = vpop.permute.xlu0 %8065  ;;  %v28131_v32 = vpop.f32.mrf.mxu0  ;;  %v28156_v34 = vadd.f32 %v31596_v63, %v7145_v3  ;;  %v7754_v4 = vadd.f32 %v31597_v50, %v7549_v23  ;;  %v31600_v22 = vld [vmem:[#allocation71_spill] sm:$0xff]  ;;  %v28170_v49 = vadd.f32 %v31602_v1, %v31601_v54  ;;  %v7551_v29 = vadd.f32 %v27987_v33, %v7346_v10  ;;  %v31605_v3 = vld [vmem:[#allocation122_spill] sm:$0xff]  ;;  %v31609_v63 = vld [vmem:[#allocation72_spill] sm:$0xff] }
 0x392   : > { %v28140_v19 = vpop.permute.xlu1 %8060  ;;  %v21311_v28 = vpop.f32.mrf.mxu1  ;;  %21550 = vmatmul.mubr.msk.bf16.vlgmr.msra.gmra.mxu1 %vm363_vm0, %v22488_v6  ;;  %v28166_v46 = vadd.f32 %v31600_v22, %v7150_v39  ;;  %v31606_v23 = vld [vmem:[#allocation51_spill] sm:$0xff]  ;;  %v22495_v54 = vld [vmem:[%s31152_s1 + $0x390] sm:$0xff]  }
 0x393   : > { %v7958_v13 = vadd.f32 %v21311_v28, %v7753_v41  ;;  %21582 = vmatmul.mubr.msk.bf16.gmra.mxu0 %vm363_vm0, %v22489_v11  ;;  %21553 = vmatprep.mubr.msk.bf16.mxu1 %vm363_vm0, %v22491_v12  ;;  %v28147_v7 = vpop.f32.mrf.mxu0  ;;  %v31603_v11 = vld [vmem:[#allocation131_spill] sm:$0xff]  ;;  %v7752_v41 = vadd.f32 %v31605_v3, %v7547_v59  ;;  %v31607_v28 = vld [vmem:[#allocation137_spill] sm:$0xff]  ;;  %v31610_v59 = vld [vmem:[#allocation184_spill] sm:$0xff] }
 0x394   : > { %v7893_v57 = vpop.f32.mrf.mxu1  ;;  %21609 = vmatprep.mubr.msk.bf16.mxu0 %vm363_vm0, %v22490_v38  ;;  %21586 = vmatpush3.bf16.msra.mxu1 %v31595_v47  ;;  %v7553_v12 = vadd.f32 %v31603_v11, %v7348_v20  ;;  %v22492_v38 = vld [vmem:[%s31152_s1 + $0x2d8] sm:$0xff]   ;;  %v22493_v20 = vld [vmem:[%s31152_s1 + $0x388] sm:$0xff]   ;;  %v22494_v33 = vld [vmem:[%s31152_s1 + $0x2e0] sm:$0xff]   ;;  %v28195_v50 = vadd.f32 %v31610_v59, %v31609_v63  ;;  %v7556_v63 = vadd.f32 %v27999_v0, %v7351_v31 }
 0x395   : > { %v8070_v24 = vmul.f32 %v31598_v45, %v7958_v13  ;;  %v7956_v43 = vadd.f32 %v7893_v57, %v7751_v51  ;;  %v28160_v6 = vpop.permute.xlu0 %12067  ;;  %21587 = vmatprep.subr.bf16.mxu1 %v28075_v18  ;;  %v28163_v53 = vpop.f32.mrf.mxu0  ;;  %v31608_v57 = vld [vmem:[#allocation170_spill] sm:$0xff]  ;;  %v31611_v45 = vld [vmem:[#allocation9_spill] sm:$0xff]  ;;  %v31613_v11 = vld [vmem:[#allocation140_spill] sm:$0xff] }
 0x396   : > { %31599 = vst [vmem:[#allocation80_spill] sm:$0xff] %v28160_v6  ;;  %v28174_v62 = vpop.permute.xlu1 %12062  ;;  %v21312_v44 = vpop.f32.mrf.mxu1  ;;  %v28191_v47 = vadd.f32 %v31608_v57, %v7148_v16  ;;  %v31614_v16 = vld [vmem:[#allocation143_spill] sm:$0xff]  ;;  %v31617_v59 = vld [vmem:[#allocation178_spill] sm:$0xff]  ;;  %v31621_v31 = vld [vmem:[#allocation129_spill] sm:$0xff] }
 0x397   : > { %31604 = vst [vmem:[#allocation79_spill] sm:$0xff] %v28174_v62  ;;  %v8182_v39 = vadd.f32 %v31606_v23, %v8070_v24  ;;  %v8068_v51 = vmul.f32 %v31607_v28, %v7956_v43  ;;  %v7959_v13 = vadd.f32 %v21312_v44, %v7754_v4  ;;  %v28188_v10 = vpop.f32.mrf.mxu0  ;;  %v7757_v24 = vadd.f32 %v31611_v45, %v7552_v2  ;;  %v31612_v4 = vld [vmem:[#allocation174_spill] sm:$0xff]  ;;  %v31616_v2 = vld [vmem:[#allocation176_spill] sm:$0xff] }
 0x398   : > { %v7755_v43 = vadd.f32 %v31612_v4, %v7550_v27  ;;  %v7896_v22 = vpop.f32.mrf.mxu1  ;;  %21588 = vmatpush3.bf16.msra.mxu1 %v28075_v18  ;;  %v7758_v27 = vadd.f32 %v31616_v2, %v7553_v12  ;;  %v7756_v45 = vadd.f32 %v31617_v59, %v7551_v29  ;;  %v7554_v18 = vadd.f32 %v28006_v21, %v7349_v35  ;;  %v31619_v4 = vld [vmem:[#allocation52_spill] sm:$0xff]  ;;  %v31622_v35 = vld [vmem:[#allocation125_spill] sm:$0xff] }
 0x399   : > { %v8198_v1 = vmax.f32 %v8182_v39, 0.0  ;;  %v8180_v44 = vadd.f32 %v31613_v11, %v8068_v51  ;;  %v8071_v3 = vmul.f32 %v31614_v16, %v7959_v13  ;;  %v7957_v23 = vadd.f32 %v7896_v22, %v7752_v41  ;;  %v28205_v28 = vpop.permute.xlu0 %16069  ;;  %v28207_v57 = vpop.f32.mrf.mxu0  ;;  %21625 = vmatprep.subr.bf16.mxu1 %v28108_v26  ;;  %v31620_v11 = vld [vmem:[#allocation136_spill] sm:$0xff] }
 0x39a   : > { %31615 = vst [vmem:[#allocation13_spill] sm:$0xff] %v28205_v28  ;;  %v28214_v39 = vpop.permute.xlu1 %16064  ;;  %v21315_v51 = vpop.f32.mrf.mxu1  ;;  %21554 = vmatmul.mubr.msk.bf16.gmra.mxu1 %vm363_vm0, %v22492_v38  ;;  %v4081_v21 = vmul.f32 %v28068_v36, %v31621_v31  ;;  %v4080_v12 = vmul.f32 %v28083_v5, %v31622_v35  ;;  %v31624_v36 = vld [vmem:[#allocation180_spill] sm:$0xff]  ;;  %v7557_v5 = vadd.f32 %v28015_v30, %v28136_v56  ;;  %v22498_v30 = vld [vmem:[%s31152_s1 + $0x2f0] sm:$0xff]   ;;  %v31628_v35 = vld [vmem:[#allocation63_spill] sm:$0xff] }
 0x39b   : > { %31618 = vst [vmem:[#allocation14_spill] sm:$0xff] %v28214_v39  ;;  %v19839_v41 = vpack.c.bf16 %v8198_v1, %v8198_v1  ;;  %v8196_v13 = vmax.f32 %v8180_v44, 0.0  ;;  %v8183_v22 = vadd.f32 %v31619_v4, %v8071_v3  ;;  %v8069_v16 = vmul.f32 %v31620_v11, %v7957_v23  ;;  %21610 = vmatmul.mubr.msk.bf16.vlgmr.msra.gmra.mxu0 %vm363_vm0, %v22493_v20  ;;  %v28221_v0 = vpop.f32.mrf.mxu0  ;;  %v31623_v20 = vld [vmem:[#allocation53_spill] sm:$0xff]  ;;  %v22618_v62 = vld [vmem:[%s31152_s1 + $0x248] sm:$0xff]  }
 0x39c   : > { %21557 = vmatprep.mubr.msk.bf16.mxu1 %vm363_vm0, %v22494_v33  ;;  %v7962_v29 = vadd.f32 %v21315_v51, %v7757_v24  ;;  %v7909_v38 = vpop.f32.mrf.mxu1  ;;  %21613 = vmatprep.mubr.msk.bf16.mxu0 %vm363_vm0, %v22495_v54  ;;  %v7761_v59 = vadd.f32 %v31624_v36, %v7556_v63  ;;  %v31625_v24 = vld [vmem:[#allocation159_spill] sm:$0xff]  ;;  %v22497_v63 = vld [vmem:[%s31152_s1 + $0x398] sm:$0xff]   ;;  %v31627_v31 = vld [vmem:[#allocation181_spill] sm:$0xff] }
 0x39d   : > { %21646 = vmatpush3.bf16.msra.mxu0 %v27977_v48  ;;  %8278 = vst [vmem:[#allocation2 + $0x24] sm:$0xf] %v19839_v41  ;;  %v19837_v1 = vpack.c.bf16 %v8196_v13, %v8196_v13  ;;  %v8199_v44 = vmax.f32 %v8183_v22, 0.0  ;;  %v8181_v3 = vadd.f32 %v31623_v20, %v8069_v16  ;;  %v7960_v33 = vadd.f32 %v7909_v38, %v7755_v43  ;;  %v4176_v23 = vpop.permute.xlu0 %4175  ;;  %v28230_v2 = vpop.f32.mrf.mxu0  ;;  %v22496_v13 = vld [vmem:[%s31152_s1 + $0x2e8] sm:$0xff]   ;;  %v31626_v22 = vld [vmem:[#allocation153_spill] sm:$0xff] }
 0x39e   : > { %21647 = vmatprep.subr.bf16.mxu0 %v28093_v9  ;;  %v8074_v54 = vmul.f32 %v31625_v24, %v7962_v29  ;;  %v4193_v51 = vadd.f32 %v4176_v23, %v4081_v21  ;;  %v4171_v48 = vpop.permute.xlu1 %4170  ;;  %v21316_v41 = vpop.f32.mrf.mxu1  ;;  %v7759_v21 = vadd.f32 %v31627_v31, %v7554_v18 }
 0x39f   : > { %8276 = vst [vmem:[#allocation2 + $0x4] sm:$0xf] %v19837_v1  ;;  %v19840_v43 = vpack.c.bf16 %v8199_v44, %v8199_v44  ;;  %v8197_v4 = vmax.f32 %v8181_v3, 0.0  ;;  %v8072_v11 = vmul.f32 %v31626_v22, %v7960_v33  ;;  %v4192_v16 = vadd.f32 %v4171_v48, %v4080_v12  ;;  %v28247_v56 = vpop.f32.mrf.mxu0  ;;  %v22499_v12 = vld [vmem:[%s31152_s1 + $0x3a0] sm:$0xff]   ;;  %v31629_v3 = vld [vmem:[#allocation58_spill] sm:$0xff] }
 0x3a0   : > { %v8186_v29 = vadd.f32 %v31628_v35, %v8074_v54  ;;  %v4209_v38 = vmax.f32 %v4193_v51, 0.0  ;;  %v7963_v1 = vadd.f32 %v21316_v41, %v7758_v27  ;;  %v7912_v44 = vpop.f32.mrf.mxu1  ;;  %v7555_v27 = vadd.f32 %v28030_v15, %v28156_v34  ;;  %v31630_v51 = vld [vmem:[#allocation158_spill] sm:$0xff]  ;;  %v31632_v15 = vld [vmem:[#allocation183_spill] sm:$0xff] }
 0x3a1   : > { %21648 = vmatpush3.bf16.msra.mxu0 %v28093_v9  ;;  %8279 = vst [vmem:[#allocation2 + $0x34] sm:$0xf] %v19840_v43  ;;  %v19838_v20 = vpack.c.bf16 %v8197_v4, %v8197_v4  ;;  %v8184_v33 = vadd.f32 %v31629_v3, %v8072_v11  ;;  %v4208_v23 = vmax.f32 %v4192_v16, 0.0  ;;  %v7961_v36 = vadd.f32 %v7912_v44, %v7756_v45  ;;  %v28256_v24 = vpop.f32.mrf.mxu0  ;;  %v31631_v4 = vld [vmem:[#allocation152_spill] sm:$0xff] }
 0x3a2   : > { %21685 = vmatprep.subr.bf16.mxu0 %v28113_v42  ;;  %v8202_v18 = vmax.f32 %v8186_v29, 0.0  ;;  %v19836_v54 = vpack.c.bf16 %v4209_v38, %v4209_v38  ;;  %v8075_v48 = vmul.f32 %v31630_v51, %v7963_v1  ;;  %v21319_v41 = vpop.f32.mrf.mxu1  ;;  %21558 = vmatmul.mubr.msk.bf16.gmra.mxu1 %vm363_vm0, %v22496_v13  ;;  %v7762_v34 = vadd.f32 %v31632_v15, %v7557_v5  ;;  %v31633_v13 = vld [vmem:[#allocation64_spill] sm:$0xff]  ;;  %v31636_v5 = vld [vmem:[#allocation11_spill] sm:$0xff] }
 0x3a3   : > { %8277 = vst [vmem:[#allocation2 + $0x14] sm:$0xf] %v19838_v20  ;;  %v8200_v9 = vmax.f32 %v8184_v33, 0.0  ;;  %v19835_v43 = vpack.c.bf16 %v4208_v23, %v4208_v23  ;;  %v8073_v22 = vmul.f32 %v31631_v4, %v7961_v36  ;;  %v7966_v45 = vadd.f32 %v21319_v41, %v7761_v59  ;;  %21614 = vmatmul.mubr.msk.bf16.gmra.mxu0 %vm363_vm0, %v22497_v63  ;;  %v28266_v11 = vpop.f32.mrf.mxu0  ;;  %v31634_v59 = vld [vmem:[#allocation59_spill] sm:$0xff]  ;;  %v31635_v1 = vld [vmem:[#allocation168_spill] sm:$0xff]  ;;  %v22500_v36 = vld [vmem:[%s31152_s1 + $0x2f8] sm:$0xff]  }
 0x3a4   : > { %21561 = vmatprep.mubr.msk.bf16.mxu1 %vm363_vm0, %v22498_v30  ;;  %v7560_v16 = vadd.f32 %v28043_v14, %v28166_v46  ;;  %v19843_v31 = vpack.c.bf16 %v8202_v18, %v8202_v18  ;;  %4289 = vst [vmem:[#allocation2 + $0xf0] sm:$0xf] %v19836_v54  ;;  %v8187_v35 = vadd.f32 %v31633_v13, %v8075_v48  ;;  %v7925_v29 = vpop.f32.mrf.mxu1  ;;  %v31637_v14 = vld [vmem:[#allocation172_spill] sm:$0xff]  ;;  %v31638_v18 = vld [vmem:[#allocation49_spill] sm:$0xff]  ;;  %v31639_v51 = vld [vmem:[#allocation163_spill] sm:$0xff] }
 0x3a5   : > { %21617 = vmatprep.mubr.msk.bf16.mxu0 %vm363_vm0, %v22499_v12  ;;  %v19841_v38 = vpack.c.bf16 %v8200_v9, %v8200_v9  ;;  %4288 = vst [vmem:[#allocation2 + $0xe0] sm:$0xf] %v19835_v43  ;;  %v8185_v63 = vadd.f32 %v31634_v59, %v8073_v22  ;;  %v8078_v30 = vmul.f32 %v31635_v1, %v7966_v45  ;;  %v28275_v20 = vpop.f32.mrf.mxu0  ;;  %v31640_v41 = vld [vmem:[#allocation186_spill] sm:$0xff]  ;;  %v31644_v1 = vld [vmem:[#allocation188_spill] sm:$0xff] }
 0x3a6   : > { %v7964_v44 = vadd.f32 %v7925_v29, %v7759_v21  ;;  %v7356_v3 = vadd.f32 %v31636_v5, %v28170_v49  ;;  %v7354_v46 = vadd.f32 %v31637_v14, %v28195_v50  ;;  %v7558_v33 = vadd.f32 %v28061_v37, %v28191_v47  ;;  %8282 = vst [vmem:[#allocation2 + $0x64] sm:$0xf] %v19843_v31  ;;  %v21320_v23 = vpop.f32.mrf.mxu1  ;;  %v22501_v50 = vld [vmem:[%s31152_s1 + $0x3a8] sm:$0xff]   ;;  %v22502_v37 = vld [vmem:[%s31152_s1 + $0x340] sm:$0xff]   ;;  %v31641_v43 = vld [vmem:[#allocation74_spill] sm:$0xff] }
 0x3a7   : > { %v8203_v12 = vmax.f32 %v8187_v35, 0.0  ;;  %8280 = vst [vmem:[#allocation2 + $0x44] sm:$0xf] %v19841_v38  ;;  %v8201_v21 = vmax.f32 %v8185_v63, 0.0  ;;  %v8190_v54 = vadd.f32 %v31638_v18, %v8078_v30  ;;  %v7967_v49 = vadd.f32 %v21320_v23, %v7762_v34  ;;  %v28294_v47 = vpop.f32.mrf.mxu0  ;;  %v22503_v34 = vld [vmem:[%s31152_s1 + $0x3b0] sm:$0xff]   ;;  %v31642_v35 = vld [vmem:[#allocation16_spill] sm:$0xff] }
 0x3a8   : > { %v8076_v48 = vmul.f32 %v31639_v51, %v7964_v44  ;;  %v7760_v9 = vadd.f32 %v31640_v41, %v7555_v27  ;;  %v7765_v4 = vadd.f32 %v31641_v43, %v7560_v16  ;;  %v7561_v22 = vadd.f32 %v28085_v58, %v7356_v3  ;;  %v7928_v15 = vpop.f32.mrf.mxu1  ;;  %v31643_v38 = vld [vmem:[#allocation166_spill] sm:$0xff]  ;;  %v31645_v3 = vld [vmem:[#allocation8_spill] sm:$0xff] }
 0x3a9   : > { %v19844_v45 = vpack.c.bf16 %v8203_v12, %v8203_v12  ;;  %v19842_v31 = vpack.c.bf16 %v8201_v21, %v8201_v21  ;;  %v8206_v13 = vmax.f32 %v8190_v54, 0.0  ;;  %v8079_v59 = vmul.f32 %v31643_v38, %v7967_v49  ;;  %v28304_v63 = vpop.f32.mrf.mxu0  ;;  %v8173_v54 = vpop.permute.xlu1 %8172 }
 0x3aa   : > { %v8188_v29 = vadd.f32 %v31642_v35, %v8076_v48  ;;  %v7763_v27 = vadd.f32 %v31644_v1, %v7558_v33  ;;  %v7559_v16 = vadd.f32 %v28119_v40, %v7354_v46  ;;  %v7965_v58 = vadd.f32 %v7928_v15, %v7760_v9  ;;  %v21323_v30 = vpop.f32.mrf.mxu1  ;;  %21562 = vmatmul.mubr.msk.bf16.gmra.mxu1 %vm363_vm0, %v22500_v36  ;;  %v31646_v33 = vld [vmem:[#allocation77_spill] sm:$0xff]  ;;  %v31647_v40 = vld [vmem:[#allocation162_spill] sm:$0xff]  ;;  %v31649_v9 = vld [vmem:[#allocation15_spill] sm:$0xff]  ;;  %v8178_v1 = vpop.permute.xlu0 %8177 }
 0x3ab   : > { %8283 = vst [vmem:[#allocation2 + $0x74] sm:$0xf] %v19844_v45  ;;  %8281 = vst [vmem:[#allocation2 + $0x54] sm:$0xf] %v19842_v31  ;;  %v19847_v44 = vpack.c.bf16 %v8206_v13, %v8206_v13  ;;  %v8191_v14 = vadd.f32 %v31645_v3, %v8079_v59  ;;  %v7970_v12 = vadd.f32 %v21323_v30, %v7765_v4  ;;  %21618 = vmatmul.mubr.msk.bf16.gmra.mxu0 %vm363_vm0, %v22501_v50  ;;  %v28312_v23 = vpop.f32.mrf.mxu0  ;;  %v31648_v50 = vld [vmem:[#allocation191_spill] sm:$0xff]  ;;  %v22506_v35 = vld [vmem:[%s31152_s1 + $0x350] sm:$0xff]  }
 0x3ac   : > { %v8204_v5 = vmax.f32 %v8188_v29, 0.0  ;;  %21589 = vmatprep.mubr.msk.bf16.mxu1 %vm363_vm0, %v22502_v37  ;;  %v7766_v21 = vadd.f32 %v31646_v33, %v7561_v22  ;;  %v8077_v46 = vmul.f32 %v31647_v40, %v7965_v58  ;;  %v7941_v18 = vpop.f32.mrf.mxu1  ;;  %21621 = vmatprep.mubr.msk.bf16.mxu0 %vm363_vm0, %v22503_v34  ;;  %v7764_v37 = vadd.f32 %v31648_v50, %v7559_v16  ;;  %v22504_v22 = vld [vmem:[%s31152_s1 + $0x348] sm:$0xff]   ;;  %v31650_v15 = vld [vmem:[#allocation187_spill] sm:$0xff]  ;;  %v31652_v33 = vld [vmem:[#allocation81_spill] sm:$0xff] }
 0x3ad   : > { %8286 = vst [vmem:[#allocation2 + $0xa4] sm:$0xf] %v19847_v44  ;;  %v8207_v51 = vmax.f32 %v8191_v14, 0.0  ;;  %v7968_v48 = vadd.f32 %v7941_v18, %v7763_v27  ;;  %v8082_v49 = vmul.f32 %v28140_v19, %v7970_v12  ;;  %v28318_v41 = vpop.f32.mrf.mxu0  ;;  %v22505_v19 = vld [vmem:[%s31152_s1 + $0x3b8] sm:$0xff]   ;;  %v22507_v27 = vld [vmem:[%s31152_s1 + $0x400] sm:$0xff]   ;;  %v31653_v18 = vld [vmem:[#allocation185_spill] sm:$0xff] }
 0x3ae   : > { %v19845_v36 = vpack.c.bf16 %v8204_v5, %v8204_v5  ;;  %v8189_v43 = vadd.f32 %v31649_v9, %v8077_v46  ;;  %v21324_v4 = vpop.f32.mrf.mxu1  ;;  %v31651_v12 = vld [vmem:[#allocation82_spill] sm:$0xff]  ;;  %v31655_v50 = vld [vmem:[#allocation84_spill] sm:$0xff] }
 0x3af   : > { %v19848_v45 = vpack.c.bf16 %v8207_v51, %v8207_v51  ;;  %v8080_v34 = vmul.f32 %v31650_v15, %v7968_v48  ;;  %v8194_v31 = vadd.f32 %v8173_v54, %v8082_v49  ;;  %v7971_v13 = vadd.f32 %v21324_v4, %v7766_v21  ;;  %v28332_v29 = vpop.f32.mrf.mxu0 }
 0x3b0   : > { %8284 = vst [vmem:[#allocation2 + $0x84] sm:$0xf] %v19845_v36  ;;  %v8205_v38 = vmax.f32 %v8189_v43, 0.0  ;;  %v7944_v59 = vpop.f32.mrf.mxu1  ;;  %v11423_v21 = vsel %vm3414_vm13, %v31652_v33, %v31651_v12  ;;  %v31656_v43 = vld [vmem:[#allocation24_spill] sm:$0xff] }
 0x3b1   : > { %8287 = vst [vmem:[#allocation2 + $0xb4] sm:$0xf] %v19848_v45  ;;  %v8192_v16 = vadd.f32 %v27997_v55, %v8080_v34  ;;  %v8210_v58 = vmax.f32 %v8194_v31, 0.0  ;;  %v7969_v30 = vadd.f32 %v7944_v59, %v7764_v37  ;;  %v8083_v44 = vmul.f32 %v28129_v52, %v7971_v13  ;;  %v28339_v5 = vpop.f32.mrf.mxu0  ;;  %v31654_v52 = vld [vmem:[#allocation23_spill] sm:$0xff]  ;;  %v22508_v34 = vld [vmem:[%s31152_s1 + $0x358] sm:$0xff]  }
 0x3b2   : > { %v19846_v3 = vpack.c.bf16 %v8205_v38, %v8205_v38  ;;  %v21351_v14 = vpop.f32.mrf.mxu1  ;;  %21590 = vmatmul.mubr.msk.bf16.vlgmr.msra.gmra.mxu1 %vm363_vm0, %v22504_v22  ;;  %v31657_v31 = vld [vmem:[#allocation86_spill] sm:$0xff]  ;;  %v31659_v38 = vld [vmem:[#allocation127_spill] sm:$0xff] }
 0x3b3   : > { %v8208_v40 = vmax.f32 %v8192_v16, 0.0  ;;  %v19851_v46 = vpack.c.bf16 %v8210_v58, %v8210_v58  ;;  %v8081_v54 = vmul.f32 %v31653_v18, %v7969_v30  ;;  %v8195_v36 = vadd.f32 %v8178_v1, %v8083_v44  ;;  %21622 = vmatmul.mubr.msk.bf16.gmra.mxu0 %vm363_vm0, %v22505_v19  ;;  %21593 = vmatprep.mubr.msk.bf16.mxu1 %vm363_vm0, %v22506_v35  ;;  %v28348_v55 = vpop.f32.mrf.mxu0  ;;  %v22511_v30 = vld [vmem:[%s31152_s1 + $0x410] sm:$0xff]  }
 0x3b4   : > { %8285 = vst [vmem:[#allocation2 + $0x94] sm:$0xf] %v19846_v3  ;;  %v8640_v51 = vadd.f32 %v21351_v14, %v31654_v52  ;;  %v8631_v48 = vpop.f32.mrf.mxu1  ;;  %21649 = vmatprep.mubr.msk.bf16.mxu0 %vm363_vm0, %v22507_v27  ;;  %21626 = vmatpush3.bf16.msra.mxu1 %v28108_v26  ;;  %v31658_v26 = vld [vmem:[#allocation85_spill] sm:$0xff]  ;;  %v22510_v27 = vld [vmem:[%s31152_s1 + $0x360] sm:$0xff]  }
 0x3b5   : > { %v19849_v49 = vpack.c.bf16 %v8208_v40, %v8208_v40  ;;  %8290 = vst [vmem:[#allocation2 + $0xe4] sm:$0xf] %v19851_v46  ;;  %v8193_v37 = vadd.f32 %v31655_v50, %v8081_v54  ;;  %v8211_v9 = vmax.f32 %v8195_v36, 0.0  ;;  %v8632_v4 = vadd.f32 %v8631_v48, %v31656_v43  ;;  %21627 = vmatprep.subr.bf16.mxu1 %v11423_v21  ;;  %v28355_v22 = vpop.f32.mrf.mxu0  ;;  %v31661_v40 = vld [vmem:[#allocation27_spill] sm:$0xff]  ;;  %v31662_v46 = vld [vmem:[#allocation28_spill] sm:$0xff] }
 0x3b6   : > { %v28358_v45 = vadd.f32 %v28221_v0, %v8640_v51  ;;  %v21352_v15 = vpop.f32.mrf.mxu1  ;;  %v28366_v13 = vsel %vm3828_vm15, %v31658_v26, %v31657_v31  ;;  %v22509_v0 = vld [vmem:[%s31152_s1 + $0x408] sm:$0xff]   ;;  %v12398_v18 = vsel %vm358_vm1, %v31662_v46, %v31661_v40  ;;  %v31664_v51 = vld [vmem:[#allocation195_spill] sm:$0xff]  ;;  %v22514_v31 = vld [vmem:[%s31152_s1 + $0x370] sm:$0xff]   ;;  %vm31704_vm1 = vcmask 228352  }
 0x3b7   : > { %8288 = vst [vmem:[#allocation2 + $0xc4] sm:$0xf] %v19849_v49  ;;  %v8209_v19 = vmax.f32 %v8193_v37, 0.0  ;;  %v19852_v35 = vpack.c.bf16 %v8211_v9, %v8211_v9  ;;  %v8643_v59 = vadd.f32 %v21352_v15, %v31659_v38  ;;  %v28370_v1 = vadd.f32 %v28230_v2, %v8632_v4  ;;  %v28378_v16 = vpop.f32.mrf.mxu0  ;;  %v31660_v2 = vld [vmem:[#allocation83_spill] sm:$0xff]  ;;  %v22512_v37 = vld [vmem:[%s31152_s1 + $0x368] sm:$0xff]   ;;  %v31667_v15 = vld [vmem:[#allocation197_spill] sm:$0xff] }
 0x3b8   : > { %v8634_v58 = vpop.f32.mrf.mxu1  ;;  %21628 = vmatpush3.bf16.msra.mxu1 %v11423_v21  ;;  %v31663_v21 = vld [vmem:[#allocation193_spill] sm:$0xff]  ;;  %v31665_v9 = vld [vmem:[#allocation31_spill] sm:$0xff]  ;;  %v31666_v43 = vld [vmem:[#allocation32_spill] sm:$0xff] }
 0x3b9   : > { %v19850_v44 = vpack.c.bf16 %v8209_v19, %v8209_v19  ;;  %8291 = vst [vmem:[#allocation2 + $0xf4] sm:$0xf] %v19852_v35  ;;  %v8635_v3 = vadd.f32 %v8634_v58, %v31660_v2  ;;  %v28385_v14 = vadd.f32 %v28247_v56, %v8643_v59  ;;  %v28387_v12 = vpop.f32.mrf.mxu0  ;;  %21665 = vmatprep.subr.bf16.mxu1 %v28366_v13  ;;  %v22515_v35 = vld [vmem:[%s31152_s1 + $0x420] sm:$0xff]   ;;  %v22517_v40 = vld [vmem:[%s31152_s1 + $0x428] sm:$0xff]  }
 0x3ba   : > { %v21355_v33 = vpop.f32.mrf.mxu1  ;;  %21594 = vmatmul.mubr.msk.bf16.gmra.mxu1 %vm363_vm0, %v22508_v34  ;;  %v28416_v4 = vsel %vm723_vm2, %v31666_v43, %v31665_v9 }
 0x3bb   : > { %8289 = vst [vmem:[#allocation2 + $0xd4] sm:$0xf] %v19850_v44  ;;  %v8656_v54 = vadd.f32 %v21355_v33, %v31663_v21  ;;  %v28396_v36 = vadd.f32 %v28256_v24, %v8635_v3  ;;  %21650 = vmatmul.mubr.msk.bf16.vlgmr.msra.gmra.mxu0 %vm363_vm0, %v22509_v0  ;;  %21597 = vmatprep.mubr.msk.bf16.mxu1 %vm363_vm0, %v22510_v27  ;;  %v28400_v56 = vpop.f32.mrf.mxu0 }
 0x3bc   : > { %v8647_v52 = vpop.f32.mrf.mxu1  ;;  %21653 = vmatprep.mubr.msk.bf16.mxu0 %vm363_vm0, %v22511_v30  ;;  %21686 = vmatpush3.bf16.msra.mxu0 %v28113_v42 }
 0x3bd   : > { %v8648_v48 = vadd.f32 %v8647_v52, %v31664_v51  ;;  %v28406_v49 = vadd.f32 %v28266_v11, %v8656_v54  ;;  %v28408_v50 = vpop.f32.mrf.mxu0  ;;  %21687 = vmatprep.subr.bf16.mxu0 %v12398_v18  ;;  %v22513_v11 = vld [vmem:[%s31152_s1 + $0x418] sm:$0xff]  }
 0x3be   : > { %v21356_v24 = vpop.f32.mrf.mxu1 }
 0x3bf   : > { %v8659_v42 = vadd.f32 %v21356_v24, %v31667_v15  ;;  %v28420_v34 = vadd.f32 %v28275_v20, %v8648_v48  ;;  %v28428_v26 = vpop.f32.mrf.mxu0  ;;  %v22521_v15 = vld [vmem:[%s31152_s1 + $0x438] sm:$0xff]  }
 0x3c0   : > { %v8650_v19 = vpop.f32.mrf.mxu1  ;;  %21688 = vmatpush3.bf16.msra.mxu0 %v12398_v18  ;;  %v22519_v18 = vld [vmem:[%s31152_s1 + $0x430] sm:$0xff]  }
 0x3c1   : > { %v8651_v38 = vadd.f32 %v8650_v19, %v28039_v60  ;;  %v28435_v20 = vadd.f32 %v28294_v47, %v8659_v42  ;;  %v28437_v59 = vpop.f32.mrf.mxu0  ;;  %21725 = vmatprep.subr.bf16.mxu0 %v28416_v4 }
 0x3c2   : > { %v21359_v0 = vpop.f32.mrf.mxu1  ;;  %21598 = vmatmul.mubr.msk.bf16.gmra.mxu1 %vm363_vm0, %v22512_v37 }
 0x3c3   : > { %v8672_v27 = vadd.f32 %v21359_v0, %v28051_v17  ;;  %v28443_v58 = vadd.f32 %v28304_v63, %v8651_v38  ;;  %21654 = vmatmul.mubr.msk.bf16.gmra.mxu0 %vm363_vm0, %v22513_v11  ;;  %21601 = vmatprep.mubr.msk.bf16.mxu1 %vm363_vm0, %v22514_v31  ;;  %v28447_v60 = vpop.f32.mrf.mxu0  ;;  %v22516_v63 = vld [vmem:[%s31152_s1 + $0x378] sm:$0xff]   ;;  %v22523_v11 = vld [vmem:[%s31152_s1 + $0x40] sm:$0xff]  }
 0x3c4   : > { %v8663_v47 = vpop.f32.mrf.mxu1  ;;  %21657 = vmatprep.mubr.msk.bf16.mxu0 %vm363_vm0, %v22515_v35  ;;  %v31668_v35 = vld [vmem:[#allocation88_spill] sm:$0xff]  ;;  %v31669_v38 = vld [vmem:[#allocation87_spill] sm:$0xff] }
 0x3c5   : > { %v8664_v30 = vadd.f32 %v8663_v47, %v28070_v25  ;;  %v28452_v44 = vadd.f32 %v28312_v23, %v8672_v27  ;;  %v28454_v2 = vpop.f32.mrf.mxu0  ;;  %v22518_v25 = vld [vmem:[%s31152_s1 + $0x3c0] sm:$0xff]   ;;  %v11833_v0 = vsel %vm3828_vm15, %v31669_v38, %v31668_v35  ;;  %v22530_v38 = vld [vmem:[%s31152_s1 + $0x3f0] sm:$0xff]  }
 0x3c6   : > { %v21360_v17 = vpop.f32.mrf.mxu1 }
 0x3c7   : > { %v8675_v3 = vadd.f32 %v21360_v17, %v28103_v61  ;;  %v28461_v33 = vadd.f32 %v28318_v41, %v8664_v30  ;;  %v28469_v23 = vpop.f32.mrf.mxu0 }
 0x3c8   : > { %v8666_v46 = vpop.f32.mrf.mxu1 }
 0x3c9   : > { %v8667_v61 = vadd.f32 %v8666_v46, %v28131_v32  ;;  %v28476_v41 = vadd.f32 %v28332_v29, %v8675_v3  ;;  %v28478_v21 = vpop.f32.mrf.mxu0 }
 0x3ca   : > { %v21363_v54 = vpop.f32.mrf.mxu1  ;;  %21602 = vmatmul.mubr.msk.bf16.gmra.mxu1 %vm363_vm0, %v22516_v63  ;;  %v28544_v63 = vld [vmem:[%s22921_s26 + $0x34] ss:$20 sps:$4 sm:$0xff]  }
 0x3cb   : > { %v8688_v52 = vadd.f32 %v21363_v54, %v28147_v7  ;;  %v28483_v51 = vadd.f32 %v28339_v5, %v8667_v61  ;;  %21658 = vmatmul.mubr.msk.bf16.gmra.mxu0 %vm363_vm0, %v22517_v40  ;;  %21629 = vmatprep.mubr.msk.bf16.mxu1 %vm363_vm0, %v22518_v25  ;;  %v28487_v48 = vpop.f32.mrf.mxu0  ;;  %v22520_v5 = vld [vmem:[%s31152_s1 + $0x3c8] sm:$0xff]   ;;  %v22524_v40 = vld [vmem:[%s31152_s1 + $0x3d8] sm:$0xff]  }
 0x3cc   : > { %v8679_v32 = vpop.f32.mrf.mxu1  ;;  %21661 = vmatprep.mubr.msk.bf16.mxu0 %vm363_vm0, %v22519_v18  ;;  %v12101_v18 = vld [vmem:[%s31154_s3 + $0x78] sm:$0xff] }
 0x3cd   : > { %v8680_v29 = vadd.f32 %v8679_v32, %v28163_v53  ;;  %v28492_v24 = vadd.f32 %v28348_v55, %v8688_v52  ;;  %v28494_v37 = vpop.f32.mrf.mxu0  ;;  %v22522_v53 = vld [vmem:[%s31152_s1 + $0x3d0] sm:$0xff]   ;;  %12179 = vperm.xlu0 %22072, %v12101_v18  }
 0x3ce   : > { %v21364_v7 = vpop.f32.mrf.mxu1 }
 0x3cf   : > { %v8691_v9 = vadd.f32 %v21364_v7, %v28188_v10  ;;  %v28501_v43 = vadd.f32 %v28355_v22, %v8680_v29  ;;  %v28509_v55 = vpop.f32.mrf.mxu0  ;;  %v31670_v29 = vld [vmem:[#allocation92_spill] sm:$0xff]  ;;  %v31671_v7 = vld [vmem:[#allocation91_spill] sm:$0xff] }
 0x3d0   : > { %v8682_v42 = vpop.f32.mrf.mxu1 }
 0x3d1   : > { %v8683_v10 = vadd.f32 %v8682_v42, %v28207_v57  ;;  %v28516_v22 = vadd.f32 %v28378_v16, %v8691_v9  ;;  %v28518_v31 = vpop.f32.mrf.mxu0  ;;  %v12100_v16 = vld [vmem:[%s31154_s3 + $0x70] sm:$0xff]  ;;  %16181 = vperm.xlu0 %22072, %v12101_v18  }
 0x3d2   : > { %v21391_v19 = vpop.f32.mrf.mxu1  ;;  %21630 = vmatmul.mubr.msk.bf16.vlgmr.msra.gmra.mxu1 %vm363_vm0, %v22520_v5  ;;  %12174 = vperm.xlu1 %22073, %v12100_v16   ;;  %v12760_v5 = vsel %vm723_vm2, %v31671_v7, %v31670_v29  ;;  %vm31717_vm2 = vmmov %vm31704_vm1 }
 0x3d3   : > { %v28525_v27 = vadd.f32 %v28387_v12, %v8683_v10  ;;  %v9090_v47 = vadd.f32 %v21391_v19, %v28358_v45  ;;  %21662 = vmatmul.mubr.msk.bf16.gmra.mxu0 %vm363_vm0, %v22521_v15  ;;  %21633 = vmatprep.mubr.msk.bf16.mxu1 %vm363_vm0, %v22522_v53  ;;  %v28530_v57 = vpop.f32.mrf.mxu0  ;;  %v31672_v10 = vld [vmem:[#allocation21_spill] sm:$0xff]  ;;  %v31673_v19 = vld [vmem:[#allocation22_spill] sm:$0xff] }
 0x3d4   : > { %v9025_v30 = vpop.f32.mrf.mxu1  ;;  %21689 = vmatprep.mubr.msk.bf16.mxu0 %vm363_vm0, %v22523_v11  ;;  %21666 = vmatpush3.bf16.msra.mxu1 %v28366_v13  ;;  %v22528_v11 = vld [vmem:[%s31152_s1 + $0x3e8] sm:$0xff]   ;;  %v28600_v35 = vsel %vm1137_vm4, %v31673_v19, %v31672_v10  ;;  %v22537_v19 = vld [vmem:[%s31152_s1 + $0x78] sm:$0xff]  }
 0x3d5   : > { %v9088_v12 = vadd.f32 %v9025_v30, %v28370_v1  ;;  %v28539_v17 = vadd.f32 %v28400_v56, %v9090_v47  ;;  %21667 = vmatprep.subr.bf16.mxu1 %v11833_v0  ;;  %v28541_v45 = vpop.f32.mrf.mxu0  ;;  %v22525_v1 = vld [vmem:[%s31152_s1 + $0x48] sm:$0xff]   ;;  %v22526_v56 = vld [vmem:[%s31152_s1 + $0x3e0] sm:$0xff]  }
 0x3d6   : > { %v21392_v3 = vpop.f32.mrf.mxu1  ;;  %16176 = vperm.xlu1 %22073, %v12100_v16   ;;  %v22531_v16 = vld [vmem:[%s31152_s1 + $0x60] sm:$0xff]  }
 0x3d7   : > { %v9091_v25 = vadd.f32 %v21392_v3, %v28385_v14  ;;  %v28551_v13 = vadd.f32 %v28408_v50, %v9088_v12  ;;  %v28559_v46 = vpop.f32.mrf.mxu0  ;;  %v22527_v14 = vld [vmem:[%s31152_s1 + $0x50] sm:$0xff]  }
 0x3d8   : > { %v9028_v61 = vpop.f32.mrf.mxu1  ;;  %21668 = vmatpush3.bf16.msra.mxu1 %v11833_v0 }
 0x3d9   : > { %v9089_v50 = vadd.f32 %v9028_v61, %v28396_v36  ;;  %v28569_v54 = vadd.f32 %v28428_v26, %v9091_v25  ;;  %v28571_v52 = vpop.f32.mrf.mxu0  ;;  %21705 = vmatprep.subr.bf16.mxu1 %v28544_v63 }
 0x3da   : > { %v21395_v32 = vpop.f32.mrf.mxu1  ;;  %21634 = vmatmul.mubr.msk.bf16.gmra.mxu1 %vm363_vm0, %v22524_v40 }
 0x3db   : > { %v9094_v9 = vadd.f32 %v21395_v32, %v28406_v49  ;;  %v28580_v15 = vadd.f32 %v28437_v59, %v9089_v50  ;;  %21690 = vmatmul.mubr.msk.bf16.vlgmr.msra.gmra.mxu0 %vm363_vm0, %v22525_v1  ;;  %21637 = vmatprep.mubr.msk.bf16.mxu1 %vm363_vm0, %v22526_v56  ;;  %v28584_v36 = vpop.f32.mrf.mxu0  ;;  %v22535_v32 = vld [vmem:[%s31152_s1 + $0x70] sm:$0xff]  }
 0x3dc   : > { %v9041_v26 = vpop.f32.mrf.mxu1  ;;  %21693 = vmatprep.mubr.msk.bf16.mxu0 %vm363_vm0, %v22527_v14  ;;  %21726 = vmatpush3.bf16.msra.mxu0 %v28416_v4  ;;  %v22533_v14 = vld [vmem:[%s31152_s1 + $0x68] sm:$0xff]  }
 0x3dd   : > { %v9092_v53 = vadd.f32 %v9041_v26, %v28420_v34  ;;  %v28590_v42 = vadd.f32 %v28447_v60, %v9094_v9  ;;  %v28592_v49 = vpop.f32.mrf.mxu0  ;;  %21727 = vmatprep.subr.bf16.mxu0 %v12760_v5  ;;  %v22529_v60 = vld [vmem:[%s31152_s1 + $0x58] sm:$0xff]  }
 0x3de   : > { %v21396_v59 = vpop.f32.mrf.mxu1 }
 0x3df   : > { %v9095_v4 = vadd.f32 %v21396_v59, %v28435_v20  ;;  %v28604_v34 = vadd.f32 %v28454_v2, %v9092_v53  ;;  %v28612_v0 = vpop.f32.mrf.mxu0 }
 0x3e0   : > { %v9044_v47 = vpop.f32.mrf.mxu1  ;;  %21728 = vmatpush3.bf16.msra.mxu0 %v12760_v5 }
 0x3e1   : > { %v9093_v20 = vadd.f32 %v9044_v47, %v28443_v58  ;;  %v28619_v2 = vadd.f32 %v28469_v23, %v9095_v4  ;;  %v28621_v30 = vpop.f32.mrf.mxu0  ;;  %21765 = vmatprep.subr.bf16.mxu0 %v28600_v35  ;;  %v22551_v47 = vld [vmem:[%s22921_s26 + $0xc] ss:$20 sps:$4 sm:$0xff]  }
 0x3e2   : > { %v21399_v12 = vpop.f32.mrf.mxu1  ;;  %21638 = vmatmul.mubr.msk.bf16.gmra.mxu1 %vm363_vm0, %v22528_v11 }
 0x3e3   : > { %v9098_v3 = vadd.f32 %v21399_v12, %v28452_v44  ;;  %v28627_v40 = vadd.f32 %v28478_v21, %v9093_v20  ;;  %21694 = vmatmul.mubr.msk.bf16.gmra.mxu0 %vm363_vm0, %v22529_v60  ;;  %21641 = vmatprep.mubr.msk.bf16.mxu1 %vm363_vm0, %v22530_v38  ;;  %v28631_v58 = vpop.f32.mrf.mxu0  ;;  %v22532_v21 = vld [vmem:[%s31152_s1 + $0x3f8] sm:$0xff]   ;;  %v22539_v60 = vld [vmem:[%s31152_s1 + $0x80] sm:$0xff]  }
 0x3e4   : > { %v9057_v23 = vpop.f32.mrf.mxu1  ;;  %21697 = vmatprep.mubr.msk.bf16.mxu0 %vm363_vm0, %v22531_v16 }
 0x3e5   : > { %v9096_v25 = vadd.f32 %v9057_v23, %v28461_v33  ;;  %v28636_v1 = vadd.f32 %v28487_v48, %v9098_v3  ;;  %v28638_v56 = vpop.f32.mrf.mxu0  ;;  %v22534_v33 = vld [vmem:[%s31152_s1 + $0x440] sm:$0xff]  }
 0x3e6   : > { %v21400_v44 = vpop.f32.mrf.mxu1 }
 0x3e7   : > { %v9099_v18 = vadd.f32 %v21400_v44, %v28476_v41  ;;  %v28645_v61 = vadd.f32 %v28494_v37, %v9096_v25  ;;  %v28653_v48 = vpop.f32.mrf.mxu0  ;;  %v22540_v25 = vld [vmem:[%s31152_s1 + $0x458] sm:$0xff]  }
 0x3e8   : > { %v9060_v50 = vpop.f32.mrf.mxu1  ;;  %v31674_v44 = vld [vmem:[#allocation90_spill] sm:$0xff] }
 0x3e9   : > { %v9097_v41 = vadd.f32 %v9060_v50, %v28483_v51  ;;  %v28660_v37 = vadd.f32 %v28509_v55, %v9099_v18  ;;  %v28662_v29 = vpop.f32.mrf.mxu0 }
 0x3ea   : > { %v21403_v7 = vpop.f32.mrf.mxu1  ;;  %21642 = vmatmul.mubr.msk.bf16.gmra.mxu1 %vm363_vm0, %v22532_v21  ;;  %v31675_v21 = vld [vmem:[#allocation89_spill] sm:$0xff] }
 0x3eb   : > { %v9102_v5 = vadd.f32 %v21403_v7, %v28492_v24  ;;  %v28667_v9 = vadd.f32 %v28518_v31, %v9097_v41  ;;  %21698 = vmatmul.mubr.msk.bf16.gmra.mxu0 %vm363_vm0, %v22533_v14  ;;  %21669 = vmatprep.mubr.msk.bf16.mxu1 %vm363_vm0, %v22534_v33  ;;  %v28671_v26 = vpop.f32.mrf.mxu0  ;;  %v22536_v31 = vld [vmem:[%s31152_s1 + $0x448] sm:$0xff]   ;;  %v28728_v18 = vsel %vm930_vm3, %v31675_v21, %v31674_v44  ;;  %v22542_v14 = vld [vmem:[%s31152_s1 + $0x460] sm:$0xff]  }
 0x3ec   : > { %v9073_v51 = vpop.f32.mrf.mxu1  ;;  %21701 = vmatprep.mubr.msk.bf16.mxu0 %vm363_vm0, %v22535_v32  ;;  %v22543_v32 = vld [vmem:[%s31152_s1 + $0x90] sm:$0xff]  }
 0x3ed   : > { %v9100_v55 = vadd.f32 %v9073_v51, %v28501_v43  ;;  %v28676_v53 = vadd.f32 %v28530_v57, %v9102_v5  ;;  %v28678_v59 = vpop.f32.mrf.mxu0  ;;  %v22538_v43 = vld [vmem:[%s31152_s1 + $0x450] sm:$0xff]   ;;  %v31677_v51 = vld [vmem:[#allocation26_spill] sm:$0xff] }
 0x3ee   : > { %v21404_v24 = vpop.f32.mrf.mxu1  ;;  %v31676_v5 = vld [vmem:[#allocation25_spill] sm:$0xff] }
 0x3ef   : > { %v9103_v11 = vadd.f32 %v21404_v24, %v28516_v22  ;;  %v28685_v10 = vadd.f32 %v28541_v45, %v9100_v55  ;;  %v28693_v57 = vpop.f32.mrf.mxu0  ;;  %v13170_v55 = vsel %vm1137_vm4, %v31677_v51, %v31676_v5 }
 0x3f0   : > { %v9076_v4 = vpop.f32.mrf.mxu1 }
 0x3f1   : > { %v9101_v22 = vadd.f32 %v9076_v4, %v28525_v27  ;;  %v28700_v45 = vadd.f32 %v28559_v46, %v9103_v11  ;;  %v28702_v38 = vpop.f32.mrf.mxu0  ;;  %v31678_v4 = vld [vmem:[#allocation98_spill] sm:$0xff] }
 0x3f2   : > { %v21431_v16 = vpop.f32.mrf.mxu1  ;;  %21670 = vmatmul.mubr.msk.bf16.vlgmr.msra.gmra.mxu1 %vm363_vm0, %v22536_v31 }
 0x3f3   : > { %v28707_v20 = vadd.f32 %v28571_v52, %v9101_v22  ;;  %v9500_v12 = vadd.f32 %v21431_v16, %v28539_v17  ;;  %21702 = vmatmul.mubr.msk.bf16.gmra.mxu0 %vm363_vm0, %v22537_v19  ;;  %21673 = vmatprep.mubr.msk.bf16.mxu1 %vm363_vm0, %v22538_v43  ;;  %v28712_v3 = vpop.f32.mrf.mxu0  ;;  %v22544_v43 = vld [vmem:[%s31152_s1 + $0x468] sm:$0xff]  }
 0x3f4   : > { %v9435_v27 = vpop.f32.mrf.mxu1  ;;  %21729 = vmatprep.mubr.msk.bf16.mxu0 %vm363_vm0, %v22539_v60  ;;  %21706 = vmatpush3.bf16.msra.mxu1 %v28544_v63  ;;  %v31679_v60 = vld [vmem:[#allocation97_spill] sm:$0xff] }
 0x3f5   : > { %v9498_v46 = vadd.f32 %v9435_v27, %v28551_v13  ;;  %v28718_v23 = vadd.f32 %v28584_v36, %v9500_v12  ;;  %v28720_v52 = vpop.f32.mrf.mxu0  ;;  %21707 = vmatprep.subr.bf16.mxu1 %v22551_v47  ;;  %v22541_v36 = vld [vmem:[%s31152_s1 + $0x88] sm:$0xff]   ;;  %v28778_v22 = vsel %vm1551_vm5, %v31679_v60, %v31678_v4  ;;  %v22547_v27 = vld [vmem:[%s31152_s1 + $0xa0] sm:$0xff]   ;;  %v22555_v60 = vld [vmem:[%s31152_s1 + $0xb8] sm:$0xff]  }
 0x3f6   : > { %v21432_v17 = vpop.f32.mrf.mxu1 }
 0x3f7   : > { %v9501_v63 = vadd.f32 %v21432_v17, %v28569_v54  ;;  %v28732_v13 = vadd.f32 %v28592_v49, %v9498_v46  ;;  %v28740_v33 = vpop.f32.mrf.mxu0 }
 0x3f8   : > { %v9438_v50 = vpop.f32.mrf.mxu1  ;;  %21708 = vmatpush3.bf16.msra.mxu1 %v22551_v47  ;;  %v22546_v47 = vld [vmem:[%s31152_s1 + $0x470] sm:$0xff]  }
 0x3f9   : > { %v9499_v54 = vadd.f32 %v9438_v50, %v28580_v15  ;;  %v28747_v49 = vadd.f32 %v28612_v0, %v9501_v63  ;;  %v28749_v41 = vpop.f32.mrf.mxu0  ;;  %21745 = vmatprep.subr.bf16.mxu1 %v28728_v18 }
 0x3fa   : > { %v21435_v7 = vpop.f32.mrf.mxu1  ;;  %21674 = vmatmul.mubr.msk.bf16.gmra.mxu1 %vm363_vm0, %v22540_v25 }
 0x3fb   : > { %v9504_v24 = vadd.f32 %v21435_v7, %v28590_v42  ;;  %v28758_v31 = vadd.f32 %v28621_v30, %v9499_v54  ;;  %21730 = vmatmul.mubr.msk.bf16.vlgmr.msra.gmra.mxu0 %vm363_vm0, %v22541_v36  ;;  %21677 = vmatprep.mubr.msk.bf16.mxu1 %vm363_vm0, %v22542_v14  ;;  %v28762_v15 = vpop.f32.mrf.mxu0  ;;  %v22553_v7 = vld [vmem:[%s31152_s1 + $0xb0] sm:$0xff]  }
 0x3fc   : > { %v9451_v0 = vpop.f32.mrf.mxu1  ;;  %21733 = vmatprep.mubr.msk.bf16.mxu0 %vm363_vm0, %v22543_v32  ;;  %21766 = vmatpush3.bf16.msra.mxu0 %v28600_v35  ;;  %v22550_v32 = vld [vmem:[%s31152_s1 + $0xa8] sm:$0xff]  }
 0x3fd   : > { %v9502_v11 = vadd.f32 %v9451_v0, %v28604_v34  ;;  %v28768_v19 = vadd.f32 %v28631_v58, %v9504_v24  ;;  %v28770_v42 = vpop.f32.mrf.mxu0  ;;  %21767 = vmatprep.subr.bf16.mxu0 %v13170_v55  ;;  %v22545_v58 = vld [vmem:[%s31152_s1 + $0x98] sm:$0xff]  }
 0x3fe   : > { %v21436_v30 = vpop.f32.mrf.mxu1 }
 0x3ff   : > { %v9505_v35 = vadd.f32 %v21436_v30, %v28619_v2  ;;  %v28782_v34 = vadd.f32 %v28638_v56, %v9502_v11  ;;  %v28790_v16 = vpop.f32.mrf.mxu0 }
 0x400   : > { %v9454_v12 = vpop.f32.mrf.mxu1  ;;  %21768 = vmatpush3.bf16.msra.mxu0 %v13170_v55 }
 0x401   : > { %v9503_v2 = vadd.f32 %v9454_v12, %v28627_v40  ;;  %v28797_v56 = vadd.f32 %v28653_v48, %v9505_v35  ;;  %v28799_v46 = vpop.f32.mrf.mxu0  ;;  %21805 = vmatprep.subr.bf16.mxu0 %v28778_v22 }
 0x402   : > { %v21439_v17 = vpop.f32.mrf.mxu1  ;;  %21678 = vmatmul.mubr.msk.bf16.gmra.mxu1 %vm363_vm0, %v22544_v43 }
 0x403   : > { %v9508_v25 = vadd.f32 %v21439_v17, %v28636_v1  ;;  %v28805_v44 = vadd.f32 %v28662_v29, %v9503_v2  ;;  %21734 = vmatmul.mubr.msk.bf16.gmra.mxu0 %vm363_vm0, %v22545_v58  ;;  %21681 = vmatprep.mubr.msk.bf16.mxu1 %vm363_vm0, %v22546_v47  ;;  %v28809_v40 = vpop.f32.mrf.mxu0  ;;  %v22548_v29 = vld [vmem:[%s31152_s1 + $0x478] sm:$0xff]   ;;  %v22557_v58 = vld [vmem:[%s31152_s1 + $0x100] sm:$0xff]   ;;  %v31681_v2 = vld [vmem:[#allocation93_spill] sm:$0xff] }
 0x404   : > { %v9467_v48 = vpop.f32.mrf.mxu1  ;;  %21737 = vmatprep.mubr.msk.bf16.mxu0 %vm363_vm0, %v22547_v27  ;;  %v31680_v27 = vld [vmem:[#allocation94_spill] sm:$0xff] }
 0x405   : > { %v9506_v21 = vadd.f32 %v9467_v48, %v28645_v61  ;;  %v28814_v63 = vadd.f32 %v28671_v26, %v9508_v25  ;;  %v28816_v36 = vpop.f32.mrf.mxu0  ;;  %v22552_v61 = vld [vmem:[%s31152_s1] sm:$0xff]   ;;  %v12965_v17 = vsel %vm930_vm3, %v31681_v2, %v31680_v27  ;;  %v22564_v2 = vld [vmem:[%s31152_s1 + $0x30] sm:$0xff]   ;;  %vm31720_vm3 = vcmask 187392  }
 0x406   : > { %v21440_v1 = vpop.f32.mrf.mxu1  ;;  %vm31740_vm4 = vmmov %vm31720_vm3 }
 0x407   : > { %v9509_v14 = vadd.f32 %v21440_v1, %v28660_v37  ;;  %v28823_v50 = vadd.f32 %v28678_v59, %v9506_v21  ;;  %v28831_v26 = vpop.f32.mrf.mxu0 }
 0x408   : > { %v9470_v54 = vpop.f32.mrf.mxu1 }
 0x409   : > { %v9507_v37 = vadd.f32 %v9470_v54, %v28667_v9  ;;  %v28838_v59 = vadd.f32 %v28693_v57, %v9509_v14  ;;  %v28840_v5 = vpop.f32.mrf.mxu0  ;;  %v31682_v14 = vld [vmem:[#allocation96_spill] sm:$0xff]  ;;  %v22560_v54 = vld [vmem:[%s31152_s1 + $0x20] sm:$0xff]  }
 0x40a   : > { %v21443_v51 = vpop.f32.mrf.mxu1  ;;  %21682 = vmatmul.mubr.msk.bf16.gmra.mxu1 %vm363_vm0, %v22548_v29  ;;  %v22558_v29 = vld [vmem:[%s31152_s1 + $0x18] sm:$0xff]  }
 0x40b   : > { %v9512_v55 = vadd.f32 %v21443_v51, %v28676_v53  ;;  %v28845_v24 = vadd.f32 %v28702_v38, %v9507_v37  ;;  %21738 = vmatmul.mubr.msk.bf16.gmra.mxu0 %vm363_vm0, %v22550_v32  ;;  %21709 = vmatprep.mubr.msk.bf16.mxu1 %vm363_vm0, %v22552_v61  ;;  %v28849_v0 = vpop.f32.mrf.mxu0  ;;  %v22554_v38 = vld [vmem:[%s31152_s1 + $0x8] sm:$0xff]   ;;  %v31683_v32 = vld [vmem:[#allocation95_spill] sm:$0xff]  ;;  %v22561_v51 = vld [vmem:[%s31152_s1 + $0x110] sm:$0xff]  }
 0x40c   : > { %v9483_v9 = vpop.f32.mrf.mxu1  ;;  %21741 = vmatprep.mubr.msk.bf16.mxu0 %vm363_vm0, %v22553_v7  ;;  %v28908_v61 = vsel %vm1344_vm6, %v31683_v32, %v31682_v14 }
 0x40d   : > { %v9510_v57 = vadd.f32 %v9483_v9, %v28685_v10  ;;  %v28854_v11 = vadd.f32 %v28712_v3, %v9512_v55  ;;  %v28856_v30 = vpop.f32.mrf.mxu0  ;;  %v22556_v10 = vld [vmem:[%s31152_s1 + $0x10] sm:$0xff]  }
 0x40e   : > { %v21444_v53 = vpop.f32.mrf.mxu1 }
 0x40f   : > { %v9513_v43 = vadd.f32 %v21444_v53, %v28700_v45  ;;  %v28863_v4 = vadd.f32 %v28720_v52, %v9510_v57  ;;  %v28871_v3 = vpop.f32.mrf.mxu0  ;;  %v31684_v57 = vld [vmem:[#allocation102_spill] sm:$0xff]  ;;  %v31685_v53 = vld [vmem:[#allocation101_spill] sm:$0xff] }
 0x410   : > { %v9486_v35 = vpop.f32.mrf.mxu1 }
 0x411   : > { %v9511_v45 = vadd.f32 %v9486_v35, %v28707_v20  ;;  %v28878_v52 = vadd.f32 %v28740_v33, %v9513_v43  ;;  %v28880_v47 = vpop.f32.mrf.mxu0 }
 0x412   : > { %v21471_v12 = vpop.f32.mrf.mxu1  ;;  %21710 = vmatmul.mubr.msk.bf16.vlgmr.msra.gmra.mxu1 %vm363_vm0, %v22554_v38  ;;  %v13580_v38 = vsel %vm1551_vm5, %v31685_v53, %v31684_v57  ;;  %vm31745_vm5 = vmmov %vm31576_vm11 }
 0x413   : > { %v28887_v25 = vadd.f32 %v28749_v41, %v9511_v45  ;;  %v9910_v48 = vadd.f32 %v21471_v12, %v28718_v23  ;;  %21742 = vmatmul.mubr.msk.bf16.gmra.mxu0 %vm363_vm0, %v22555_v60  ;;  %21713 = vmatprep.mubr.msk.bf16.mxu1 %vm363_vm0, %v22556_v10  ;;  %v28892_v20 = vpop.f32.mrf.mxu0  ;;  %v31686_v45 = vld [vmem:[#allocation29_spill] sm:$0xff]  ;;  %v31687_v12 = vld [vmem:[#allocation30_spill] sm:$0xff] }
 0x414   : > { %v9845_v33 = vpop.f32.mrf.mxu1  ;;  %21769 = vmatprep.mubr.msk.bf16.mxu0 %vm363_vm0, %v22557_v58  ;;  %21746 = vmatpush3.bf16.msra.mxu1 %v28728_v18  ;;  %v22562_v58 = vld [vmem:[%s31152_s1 + $0x28] sm:$0xff]   ;;  %v28958_v27 = vsel %vm1965_vm7, %v31687_v12, %v31686_v45  ;;  %v22571_v12 = vld [vmem:[%s31152_s1 + $0x138] sm:$0xff]  }
 0x415   : > { %v9908_v21 = vadd.f32 %v9845_v33, %v28732_v13  ;;  %v28898_v1 = vadd.f32 %v28762_v15, %v9910_v48  ;;  %21747 = vmatprep.subr.bf16.mxu1 %v12965_v17  ;;  %v28900_v41 = vpop.f32.mrf.mxu0  ;;  %v22559_v15 = vld [vmem:[%s31152_s1 + $0x108] sm:$0xff]   ;;  %v22565_v33 = vld [vmem:[%s31152_s1 + $0x120] sm:$0xff]  }
 0x416   : > { %v21472_v23 = vpop.f32.mrf.mxu1 }
 0x417   : > { %v9911_v18 = vadd.f32 %v21472_v23, %v28747_v49  ;;  %v28912_v13 = vadd.f32 %v28770_v42, %v9908_v21  ;;  %v28920_v7 = vpop.f32.mrf.mxu0 }
 0x418   : > { %v9848_v37 = vpop.f32.mrf.mxu1  ;;  %21748 = vmatpush3.bf16.msra.mxu1 %v12965_v17 }
 0x419   : > { %v9909_v49 = vadd.f32 %v9848_v37, %v28758_v31  ;;  %v28927_v42 = vadd.f32 %v28790_v16, %v9911_v18  ;;  %v28929_v55 = vpop.f32.mrf.mxu0  ;;  %21785 = vmatprep.subr.bf16.mxu1 %v28908_v61 }
 0x41a   : > { %v21475_v9 = vpop.f32.mrf.mxu1  ;;  %21714 = vmatmul.mubr.msk.bf16.gmra.mxu1 %vm363_vm0, %v22558_v29 }
 0x41b   : > { %v9914_v43 = vadd.f32 %v21475_v9, %v28768_v19  ;;  %v28938_v60 = vadd.f32 %v28799_v46, %v9909_v49  ;;  %21770 = vmatmul.mubr.msk.bf16.vlgmr.msra.gmra.mxu0 %vm363_vm0, %v22559_v15  ;;  %21717 = vmatprep.mubr.msk.bf16.mxu1 %vm363_vm0, %v22560_v54  ;;  %v28942_v31 = vpop.f32.mrf.mxu0  ;;  %v22569_v9 = vld [vmem:[%s31152_s1 + $0x130] sm:$0xff]  }
 0x41c   : > { %v9861_v16 = vpop.f32.mrf.mxu1  ;;  %21773 = vmatprep.mubr.msk.bf16.mxu0 %vm363_vm0, %v22561_v51  ;;  %21806 = vmatpush3.bf16.msra.mxu0 %v28778_v22  ;;  %v22567_v51 = vld [vmem:[%s31152_s1 + $0x128] sm:$0xff]  }
 0x41d   : > { %v9912_v10 = vadd.f32 %v9861_v16, %v28782_v34  ;;  %v28948_v35 = vadd.f32 %v28809_v40, %v9914_v43  ;;  %v28950_v19 = vpop.f32.mrf.mxu0  ;;  %21807 = vmatprep.subr.bf16.mxu0 %v13580_v38  ;;  %v22563_v40 = vld [vmem:[%s31152_s1 + $0x118] sm:$0xff]  }
 0x41e   : > { %v21476_v46 = vpop.f32.mrf.mxu1 }
 0x41f   : > { %v9915_v22 = vadd.f32 %v21476_v46, %v28797_v56  ;;  %v28962_v34 = vadd.f32 %v28816_v36, %v9912_v10  ;;  %v28970_v17 = vpop.f32.mrf.mxu0 }
 0x420   : > { %v9864_v48 = vpop.f32.mrf.mxu1  ;;  %21808 = vmatpush3.bf16.msra.mxu0 %v13580_v38 }
 0x421   : > { %v9913_v56 = vadd.f32 %v9864_v48, %v28805_v44  ;;  %v28977_v36 = vadd.f32 %v28831_v26, %v9915_v22  ;;  %v28979_v21 = vpop.f32.mrf.mxu0  ;;  %21845 = vmatprep.subr.bf16.mxu0 %v28958_v27 }
 0x422   : > { %v21479_v23 = vpop.f32.mrf.mxu1  ;;  %21718 = vmatmul.mubr.msk.bf16.gmra.mxu1 %vm363_vm0, %v22562_v58 }
 0x423   : > { %v9918_v29 = vadd.f32 %v21479_v23, %v28814_v63  ;;  %v28985_v14 = vadd.f32 %v28840_v5, %v9913_v56  ;;  %21774 = vmatmul.mubr.msk.bf16.gmra.mxu0 %vm363_vm0, %v22563_v40  ;;  %21721 = vmatprep.mubr.msk.bf16.mxu1 %vm363_vm0, %v22564_v2  ;;  %v28989_v44 = vpop.f32.mrf.mxu0  ;;  %v22566_v5 = vld [vmem:[%s31152_s1 + $0x38] sm:$0xff]   ;;  %v22573_v40 = vld [vmem:[%s31152_s1 + $0x180] sm:$0xff]   ;;  %v31689_v56 = vld [vmem:[#allocation36_spill] sm:$0xff] }
 0x424   : > { %v9877_v26 = vpop.f32.mrf.mxu1  ;;  %21777 = vmatprep.mubr.msk.bf16.mxu0 %vm363_vm0, %v22565_v33  ;;  %v31688_v33 = vld [vmem:[#allocation35_spill] sm:$0xff] }
 0x425   : > { %v9916_v32 = vadd.f32 %v9877_v26, %v28823_v50  ;;  %v28994_v18 = vadd.f32 %v28849_v0, %v9918_v29  ;;  %v28996_v15 = vpop.f32.mrf.mxu0  ;;  %v22568_v50 = vld [vmem:[%s31152_s1 + $0xc0] sm:$0xff]   ;;  %v13375_v23 = vsel %vm1344_vm6, %v31689_v56, %v31688_v33  ;;  %v22580_v56 = vld [vmem:[%s31152_s1 + $0xf0] sm:$0xff]   ;;  %vm31763_vm6 = vmmov %vm31745_vm5 }
 0x426   : > { %v21480_v63 = vpop.f32.mrf.mxu1 }
 0x427   : > { %v9919_v54 = vadd.f32 %v21480_v63, %v28838_v59  ;;  %v29003_v37 = vadd.f32 %v28856_v30, %v9916_v32  ;;  %v29011_v0 = vpop.f32.mrf.mxu0 }
 0x428   : > { %v9880_v49 = vpop.f32.mrf.mxu1 }
 0x429   : > { %v9917_v59 = vadd.f32 %v9880_v49, %v28845_v24  ;;  %v29018_v30 = vadd.f32 %v28871_v3, %v9919_v54  ;;  %v29020_v57 = vpop.f32.mrf.mxu0  ;;  %v31690_v54 = vld [vmem:[#allocation100_spill] sm:$0xff]  ;;  %v22576_v49 = vld [vmem:[%s31152_s1 + $0xe0] sm:$0xff]  }
 0x42a   : > { %v21483_v53 = vpop.f32.mrf.mxu1  ;;  %21722 = vmatmul.mubr.msk.bf16.gmra.mxu1 %vm363_vm0, %v22566_v5  ;;  %v22574_v5 = vld [vmem:[%s31152_s1 + $0xd8] sm:$0xff]  }
 0x42b   : > { %v9922_v38 = vadd.f32 %v21483_v53, %v28854_v11  ;;  %v29025_v43 = vadd.f32 %v28880_v47, %v9917_v59  ;;  %21778 = vmatmul.mubr.msk.bf16.gmra.mxu0 %vm363_vm0, %v22567_v51  ;;  %21749 = vmatprep.mubr.msk.bf16.mxu1 %vm363_vm0, %v22568_v50  ;;  %v29029_v16 = vpop.f32.mrf.mxu0  ;;  %v22570_v47 = vld [vmem:[%s31152_s1 + $0xc8] sm:$0xff]   ;;  %v31691_v51 = vld [vmem:[#allocation99_spill] sm:$0xff]  ;;  %v22577_v53 = vld [vmem:[%s31152_s1 + $0x190] sm:$0xff]  }
 0x42c   : > { %v9893_v24 = vpop.f32.mrf.mxu1  ;;  %21781 = vmatprep.mubr.msk.bf16.mxu0 %vm363_vm0, %v22569_v9  ;;  %v29088_v50 = vsel %vm1758_vm8, %v31691_v51, %v31690_v54 }
 0x42d   : > { %v9920_v3 = vadd.f32 %v9893_v24, %v28863_v4  ;;  %v29034_v10 = vadd.f32 %v28892_v20, %v9922_v38  ;;  %v29036_v46 = vpop.f32.mrf.mxu0  ;;  %v22572_v4 = vld [vmem:[%s31152_s1 + $0xd0] sm:$0xff]  }
 0x42e   : > { %v21484_v11 = vpop.f32.mrf.mxu1 }
 0x42f   : > { %v9923_v58 = vadd.f32 %v21484_v11, %v28878_v52  ;;  %v29043_v45 = vadd.f32 %v28900_v41, %v9920_v3  ;;  %v29051_v20 = vpop.f32.mrf.mxu0  ;;  %v31692_v3 = vld [vmem:[#allocation33_spill] sm:$0xff]  ;;  %v31693_v11 = vld [vmem:[#allocation34_spill] sm:$0xff] }
 0x430   : > { %v9896_v22 = vpop.f32.mrf.mxu1 }
 0x431   : > { %v9921_v52 = vadd.f32 %v9896_v22, %v28887_v25  ;;  %v29058_v41 = vadd.f32 %v28920_v7, %v9923_v58  ;;  %v29060_v2 = vpop.f32.mrf.mxu0 }
 0x432   : > { %v21511_v48 = vpop.f32.mrf.mxu1  ;;  %21750 = vmatmul.mubr.msk.bf16.vlgmr.msra.gmra.mxu1 %vm363_vm0, %v22570_v47  ;;  %v13990_v47 = vsel %vm1965_vm7, %v31693_v11, %v31692_v3 }
 0x433   : > { %v29067_v29 = vadd.f32 %v28929_v55, %v9921_v52  ;;  %v10320_v26 = vadd.f32 %v21511_v48, %v28898_v1  ;;  %21782 = vmatmul.mubr.msk.bf16.gmra.mxu0 %vm363_vm0, %v22571_v12  ;;  %21753 = vmatprep.mubr.msk.bf16.mxu1 %vm363_vm0, %v22572_v4  ;;  %v29072_v25 = vpop.f32.mrf.mxu0  ;;  %v31694_v52 = vld [vmem:[#allocation110_spill] sm:$0xff]  ;;  %v31695_v48 = vld [vmem:[#allocation109_spill] sm:$0xff] }
 0x434   : > { %v10255_v7 = vpop.f32.mrf.mxu1  ;;  %21809 = vmatprep.mubr.msk.bf16.mxu0 %vm363_vm0, %v22573_v40  ;;  %21786 = vmatpush3.bf16.msra.mxu1 %v28908_v61  ;;  %v22578_v40 = vld [vmem:[%s31152_s1 + $0xe8] sm:$0xff]   ;;  %v29138_v33 = vsel %vm2379_vm9, %v31695_v48, %v31694_v52  ;;  %v22587_v48 = vld [vmem:[%s31152_s1 + $0x1b8] sm:$0xff]  }
 0x435   : > { %v10318_v32 = vadd.f32 %v10255_v7, %v28912_v13  ;;  %v29078_v63 = vadd.f32 %v28942_v31, %v10320_v26  ;;  %21787 = vmatprep.subr.bf16.mxu1 %v13375_v23  ;;  %v29080_v55 = vpop.f32.mrf.mxu0  ;;  %v22575_v31 = vld [vmem:[%s31152_s1 + $0x188] sm:$0xff]   ;;  %v22581_v7 = vld [vmem:[%s31152_s1 + $0x1a0] sm:$0xff]  }
 0x436   : > { %v21512_v1 = vpop.f32.mrf.mxu1 }
 0x437   : > { %v10321_v61 = vadd.f32 %v21512_v1, %v28927_v42  ;;  %v29092_v13 = vadd.f32 %v28950_v19, %v10318_v32  ;;  %v29100_v9 = vpop.f32.mrf.mxu0 }
 0x438   : > { %v10258_v59 = vpop.f32.mrf.mxu1  ;;  %21788 = vmatpush3.bf16.msra.mxu1 %v13375_v23 }
 0x439   : > { %v10319_v42 = vadd.f32 %v10258_v59, %v28938_v60  ;;  %v29107_v19 = vadd.f32 %v28970_v17, %v10321_v61  ;;  %v29109_v38 = vpop.f32.mrf.mxu0  ;;  %21825 = vmatprep.subr.bf16.mxu1 %v29088_v50 }
 0x43a   : > { %v21515_v24 = vpop.f32.mrf.mxu1  ;;  %21754 = vmatmul.mubr.msk.bf16.gmra.mxu1 %vm363_vm0, %v22574_v5 }
 0x43b   : > { %v10324_v58 = vadd.f32 %v21515_v24, %v28948_v35  ;;  %v29118_v12 = vadd.f32 %v28979_v21, %v10319_v42  ;;  %21810 = vmatmul.mubr.msk.bf16.vlgmr.msra.gmra.mxu0 %vm363_vm0, %v22575_v31  ;;  %21757 = vmatprep.mubr.msk.bf16.mxu1 %vm363_vm0, %v22576_v49  ;;  %v29122_v60 = vpop.f32.mrf.mxu0  ;;  %v22585_v24 = vld [vmem:[%s31152_s1 + $0x1b0] sm:$0xff]  }
 0x43c   : > { %v10271_v17 = vpop.f32.mrf.mxu1  ;;  %21813 = vmatprep.mubr.msk.bf16.mxu0 %vm363_vm0, %v22577_v53  ;;  %21846 = vmatpush3.bf16.msra.mxu0 %v28958_v27  ;;  %v22583_v53 = vld [vmem:[%s31152_s1 + $0x1a8] sm:$0xff]  }
 0x43d   : > { %v10322_v4 = vadd.f32 %v10271_v17, %v28962_v34  ;;  %v29128_v22 = vadd.f32 %v28989_v44, %v10324_v58  ;;  %v29130_v35 = vpop.f32.mrf.mxu0  ;;  %21847 = vmatprep.subr.bf16.mxu0 %v13990_v47  ;;  %v22579_v44 = vld [vmem:[%s31152_s1 + $0x198] sm:$0xff]  }
 0x43e   : > { %v21516_v21 = vpop.f32.mrf.mxu1 }
 0x43f   : > { %v10325_v27 = vadd.f32 %v21516_v21, %v28977_v36  ;;  %v29142_v34 = vadd.f32 %v28996_v15, %v10322_v4  ;;  %v29150_v23 = vpop.f32.mrf.mxu0 }
 0x440   : > { %v10274_v26 = vpop.f32.mrf.mxu1  ;;  %21848 = vmatpush3.bf16.msra.mxu0 %v13990_v47 }
 0x441   : > { %v10323_v36 = vadd.f32 %v10274_v26, %v28985_v14  ;;  %v29157_v15 = vadd.f32 %v29011_v0, %v10325_v27  ;;  %v29159_v32 = vpop.f32.mrf.mxu0  ;;  %21885 = vmatprep.subr.bf16.mxu0 %v29138_v33 }
 0x442   : > { %v21519_v1 = vpop.f32.mrf.mxu1  ;;  %21758 = vmatmul.mubr.msk.bf16.gmra.mxu1 %vm363_vm0, %v22578_v40 }
 0x443   : > { %v10328_v5 = vadd.f32 %v21519_v1, %v28994_v18  ;;  %v29165_v54 = vadd.f32 %v29020_v57, %v10323_v36  ;;  %21814 = vmatmul.mubr.msk.bf16.gmra.mxu0 %vm363_vm0, %v22579_v44  ;;  %21761 = vmatprep.mubr.msk.bf16.mxu1 %vm363_vm0, %v22580_v56  ;;  %v29169_v14 = vpop.f32.mrf.mxu0  ;;  %v22582_v57 = vld [vmem:[%s31152_s1 + $0xf8] sm:$0xff]   ;;  %v22589_v44 = vld [vmem:[%s31152_s1 + $0x200] sm:$0xff]  }
 0x444   : > { %v10287_v0 = vpop.f32.mrf.mxu1  ;;  %21817 = vmatprep.mubr.msk.bf16.mxu0 %vm363_vm0, %v22581_v7  ;;  %v31696_v7 = vld [vmem:[#allocation104_spill] sm:$0xff]  ;;  %v31697_v36 = vld [vmem:[#allocation103_spill] sm:$0xff] }
 0x445   : > { %v10326_v51 = vadd.f32 %v10287_v0, %v29003_v37  ;;  %v29174_v61 = vadd.f32 %v29029_v16, %v10328_v5  ;;  %v29176_v31 = vpop.f32.mrf.mxu0  ;;  %v22584_v37 = vld [vmem:[%s31152_s1 + $0x140] sm:$0xff]   ;;  %v13785_v1 = vsel %vm1758_vm8, %v31697_v36, %v31696_v7  ;;  %v22596_v36 = vld [vmem:[%s31152_s1 + $0x170] sm:$0xff]  }
 0x446   : > { %v21520_v18 = vpop.f32.mrf.mxu1 }
 0x447   : > { %v10329_v49 = vadd.f32 %v21520_v18, %v29018_v30  ;;  %v29183_v59 = vadd.f32 %v29036_v46, %v10326_v51  ;;  %v29191_v16 = vpop.f32.mrf.mxu0 }
 0x448   : > { %v10290_v42 = vpop.f32.mrf.mxu1 }
 0x449   : > { %v10327_v30 = vadd.f32 %v10290_v42, %v29025_v43  ;;  %v29198_v46 = vadd.f32 %v29051_v20, %v10329_v49  ;;  %v29200_v3 = vpop.f32.mrf.mxu0  ;;  %v31698_v49 = vld [vmem:[#allocation106_spill] sm:$0xff]  ;;  %v22592_v42 = vld [vmem:[%s31152_s1 + $0x160] sm:$0xff]  }
 0x44a   : > { %v21523_v11 = vpop.f32.mrf.mxu1  ;;  %21762 = vmatmul.mubr.msk.bf16.gmra.mxu1 %vm363_vm0, %v22582_v57  ;;  %v22590_v57 = vld [vmem:[%s31152_s1 + $0x158] sm:$0xff]  }
 0x44b   : > { %v10332_v47 = vadd.f32 %v21523_v11, %v29034_v10  ;;  %v29205_v58 = vadd.f32 %v29060_v2, %v10327_v30  ;;  %21818 = vmatmul.mubr.msk.bf16.gmra.mxu0 %vm363_vm0, %v22583_v53  ;;  %21789 = vmatprep.mubr.msk.bf16.mxu1 %vm363_vm0, %v22584_v37  ;;  %v29209_v17 = vpop.f32.mrf.mxu0  ;;  %v22586_v2 = vld [vmem:[%s31152_s1 + $0x148] sm:$0xff]   ;;  %v31699_v53 = vld [vmem:[#allocation105_spill] sm:$0xff] }
 0x44c   : > { %v10303_v43 = vpop.f32.mrf.mxu1  ;;  %21821 = vmatprep.mubr.msk.bf16.mxu0 %vm363_vm0, %v22585_v24  ;;  %v29268_v37 = vsel %vm2172_vm10, %v31699_v53, %v31698_v49  ;;  %v22593_v11 = vld [vmem:[%s31152_s1 + $0x210] sm:$0xff]  }
 0x44d   : > { %v10330_v20 = vadd.f32 %v10303_v43, %v29043_v45  ;;  %v29214_v4 = vadd.f32 %v29072_v25, %v10332_v47  ;;  %v29216_v21 = vpop.f32.mrf.mxu0  ;;  %v22588_v45 = vld [vmem:[%s31152_s1 + $0x150] sm:$0xff]  }
 0x44e   : > { %v21524_v10 = vpop.f32.mrf.mxu1 }
 0x44f   : > { %v10333_v40 = vadd.f32 %v21524_v10, %v29058_v41  ;;  %v29223_v52 = vadd.f32 %v29080_v55, %v10330_v20  ;;  %v29231_v25 = vpop.f32.mrf.mxu0  ;;  %v31700_v20 = vld [vmem:[#allocation114_spill] sm:$0xff]  ;;  %v31701_v10 = vld [vmem:[#allocation113_spill] sm:$0xff] }
 0x450   : > { %v10306_v27 = vpop.f32.mrf.mxu1 }
 0x451   : > { %v10331_v41 = vadd.f32 %v10306_v27, %v29067_v29  ;;  %v29238_v55 = vadd.f32 %v29100_v9, %v10333_v40  ;;  %v29240_v56 = vpop.f32.mrf.mxu0 }
 0x452   : > { %v21551_v26 = vpop.f32.mrf.mxu1  ;;  %21790 = vmatmul.mubr.msk.bf16.vlgmr.msra.gmra.mxu1 %vm363_vm0, %v22586_v2  ;;  %v14400_v2 = vsel %vm2379_vm9, %v31701_v10, %v31700_v20 }
 0x453   : > { %v29247_v5 = vadd.f32 %v29109_v38, %v10331_v41  ;;  %v10730_v0 = vadd.f32 %v21551_v26, %v29078_v63  ;;  %21822 = vmatmul.mubr.msk.bf16.gmra.mxu0 %vm363_vm0, %v22587_v48  ;;  %21793 = vmatprep.mubr.msk.bf16.mxu1 %vm363_vm0, %v22588_v45  ;;  %v29252_v29 = vpop.f32.mrf.mxu0  ;;  %v31702_v41 = vld [vmem:[#allocation37_spill] sm:$0xff]  ;;  %v31703_v26 = vld [vmem:[#allocation38_spill] sm:$0xff] }
 0x454   : > { %v10665_v9 = vpop.f32.mrf.mxu1  ;;  %21849 = vmatprep.mubr.msk.bf16.mxu0 %vm363_vm0, %v22589_v44  ;;  %21826 = vmatpush3.bf16.msra.mxu1 %v29088_v50  ;;  %v22594_v44 = vld [vmem:[%s31152_s1 + $0x168] sm:$0xff]   ;;  %v29318_v7 = vsel %vm31704_vm1, %v31703_v26, %v31702_v41  ;;  %v22603_v26 = vld [vmem:[%s31152_s1 + $0x238] sm:$0xff]  }
 0x455   : > { %v10728_v51 = vadd.f32 %v10665_v9, %v29092_v13  ;;  %v29258_v18 = vadd.f32 %v29122_v60, %v10730_v0  ;;  %21827 = vmatprep.subr.bf16.mxu1 %v13785_v1  ;;  %v29260_v38 = vpop.f32.mrf.mxu0  ;;  %v22591_v60 = vld [vmem:[%s31152_s1 + $0x208] sm:$0xff]   ;;  %v22597_v9 = vld [vmem:[%s31152_s1 + $0x220] sm:$0xff]  }
 0x456   : > { %v21552_v63 = vpop.f32.mrf.mxu1 }
 0x457   : > { %v10731_v50 = vadd.f32 %v21552_v63, %v29107_v19  ;;  %v29272_v13 = vadd.f32 %v29130_v35, %v10728_v51  ;;  %v29280_v24 = vpop.f32.mrf.mxu0 }
 0x458   : > { %v10668_v30 = vpop.f32.mrf.mxu1  ;;  %21828 = vmatpush3.bf16.msra.mxu1 %v13785_v1 }
 0x459   : > { %v10729_v19 = vadd.f32 %v10668_v30, %v29118_v12  ;;  %v29287_v35 = vadd.f32 %v29150_v23, %v10731_v50  ;;  %v29289_v47 = vpop.f32.mrf.mxu0  ;;  %21865 = vmatprep.subr.bf16.mxu1 %v29268_v37 }
 0x45a   : > { %v21555_v43 = vpop.f32.mrf.mxu1  ;;  %21794 = vmatmul.mubr.msk.bf16.gmra.mxu1 %vm363_vm0, %v22590_v57 }
 0x45b   : > { %v10734_v40 = vadd.f32 %v21555_v43, %v29128_v22  ;;  %v29298_v48 = vadd.f32 %v29159_v32, %v10729_v19  ;;  %21850 = vmatmul.mubr.msk.bf16.vlgmr.msra.gmra.mxu0 %vm363_vm0, %v22591_v60  ;;  %21797 = vmatprep.mubr.msk.bf16.mxu1 %vm363_vm0, %v22592_v42  ;;  %v29302_v12 = vpop.f32.mrf.mxu0  ;;  %v22601_v43 = vld [vmem:[%s31152_s1 + $0x230] sm:$0xff]  }
 0x45c   : > { %v10681_v23 = vpop.f32.mrf.mxu1  ;;  %21853 = vmatprep.mubr.msk.bf16.mxu0 %vm363_vm0, %v22593_v11  ;;  %21886 = vmatpush3.bf16.msra.mxu0 %v29138_v33  ;;  %v22599_v11 = vld [vmem:[%s31152_s1 + $0x228] sm:$0xff]  }
 0x45d   : > { %v10732_v45 = vadd.f32 %v10681_v23, %v29142_v34  ;;  %v29308_v27 = vadd.f32 %v29169_v14, %v10734_v40  ;;  %v29310_v22 = vpop.f32.mrf.mxu0  ;;  %21887 = vmatprep.subr.bf16.mxu0 %v14400_v2  ;;  %v22595_v14 = vld [vmem:[%s31152_s1 + $0x218] sm:$0xff]  }
 0x45e   : > { %v21556_v32 = vpop.f32.mrf.mxu1 }
 0x45f   : > { %v10735_v33 = vadd.f32 %v21556_v32, %v29157_v15  ;;  %v29322_v34 = vadd.f32 %v29176_v31, %v10732_v45  ;;  %v29330_v1 = vpop.f32.mrf.mxu0 }
 0x460   : > { %v10684_v0 = vpop.f32.mrf.mxu1  ;;  %21888 = vmatpush3.bf16.msra.mxu0 %v14400_v2 }
 0x461   : > { %v10733_v15 = vadd.f32 %v10684_v0, %v29165_v54  ;;  %v29337_v31 = vadd.f32 %v29191_v16, %v10735_v33  ;;  %v29339_v51 = vpop.f32.mrf.mxu0  ;;  %21925 = vmatprep.subr.bf16.mxu0 %v29318_v7 }
 0x462   : > { %v21559_v63 = vpop.f32.mrf.mxu1  ;;  %21798 = vmatmul.mubr.msk.bf16.gmra.mxu1 %vm363_vm0, %v22594_v44 }
 0x463   : > { %v10738_v57 = vadd.f32 %v21559_v63, %v29174_v61  ;;  %v29345_v49 = vadd.f32 %v29200_v3, %v10733_v15  ;;  %21854 = vmatmul.mubr.msk.bf16.gmra.mxu0 %vm363_vm0, %v22595_v14  ;;  %21801 = vmatprep.mubr.msk.bf16.mxu1 %vm363_vm0, %v22596_v36  ;;  %v29349_v54 = vpop.f32.mrf.mxu0  ;;  %v22598_v3 = vld [vmem:[%s31152_s1 + $0x178] sm:$0xff]   ;;  %v22605_v14 = vld [vmem:[%s31152_s1 + $0x280] sm:$0xff]  }
 0x464   : > { %v10697_v16 = vpop.f32.mrf.mxu1  ;;  %21857 = vmatprep.mubr.msk.bf16.mxu0 %vm363_vm0, %v22597_v9  ;;  %v31706_v9 = vld [vmem:[#allocation108_spill] sm:$0xff]  ;;  %v31707_v15 = vld [vmem:[#allocation107_spill] sm:$0xff] }
 0x465   : > { %v10736_v53 = vadd.f32 %v10697_v16, %v29183_v59  ;;  %v29354_v50 = vadd.f32 %v29209_v17, %v10738_v57  ;;  %v29356_v60 = vpop.f32.mrf.mxu0  ;;  %v22600_v59 = vld [vmem:[%s31152_s1 + $0x1c0] sm:$0xff]   ;;  %v14195_v63 = vsel %vm2172_vm10, %v31707_v15, %v31706_v9  ;;  %v22611_v9 = vld [vmem:[%s31152_s1 + $0x298] sm:$0xff]  }
 0x466   : > { %v21560_v61 = vpop.f32.mrf.mxu1 }
 0x467   : > { %v10739_v42 = vadd.f32 %v21560_v61, %v29198_v46  ;;  %v29363_v30 = vadd.f32 %v29216_v21, %v10736_v53  ;;  %v29371_v17 = vpop.f32.mrf.mxu0  ;;  %v31711_v61 = vld [vmem:[#allocation112_spill] sm:$0xff] }
 0x468   : > { %v10700_v19 = vpop.f32.mrf.mxu1 }
 0x469   : > { %v10737_v46 = vadd.f32 %v10700_v19, %v29205_v58  ;;  %v29378_v21 = vadd.f32 %v29231_v25, %v10739_v42  ;;  %v29380_v20 = vpop.f32.mrf.mxu0 }
 0x46a   : > { %v21563_v10 = vpop.f32.mrf.mxu1  ;;  %21802 = vmatmul.mubr.msk.bf16.gmra.mxu1 %vm363_vm0, %v22598_v3  ;;  %v31712_v3 = vld [vmem:[#allocation111_spill] sm:$0xff] }
 0x46b   : > { %v10742_v2 = vadd.f32 %v21563_v10, %v29214_v4  ;;  %v29385_v40 = vadd.f32 %v29240_v56, %v10737_v46  ;;  %21858 = vmatmul.mubr.msk.bf16.gmra.mxu0 %vm363_vm0, %v22599_v11  ;;  %21829 = vmatprep.mubr.msk.bf16.mxu1 %vm363_vm0, %v22600_v59  ;;  %v29389_v23 = vpop.f32.mrf.mxu0  ;;  %v22602_v56 = vld [vmem:[%s31152_s1 + $0x1c8] sm:$0xff]   ;;  %v29449_v42 = vsel %vm2586_vm12, %v31712_v3, %v31711_v61 }
 0x46c   : > { %v10713_v58 = vpop.f32.mrf.mxu1  ;;  %21861 = vmatprep.mubr.msk.bf16.mxu0 %vm363_vm0, %v22601_v43  ;;  %v22607_v11 = vld [vmem:[%s31152_s1 + $0x288] sm:$0xff]   ;;  %v22609_v43 = vld [vmem:[%s31152_s1 + $0x290] sm:$0xff]  }
 0x46d   : > { %v10740_v25 = vadd.f32 %v10713_v58, %v29223_v52  ;;  %v29394_v45 = vadd.f32 %v29252_v29, %v10742_v2  ;;  %v29396_v32 = vpop.f32.mrf.mxu0  ;;  %v22604_v52 = vld [vmem:[%s31152_s1 + $0x1d0] sm:$0xff]   ;;  %v31715_v2 = vld [vmem:[#allocation39_spill] sm:$0xff]  ;;  %v31716_v58 = vld [vmem:[#allocation40_spill] sm:$0xff] }
 0x46e   : > { %v21564_v4 = vpop.f32.mrf.mxu1 }
 0x46f   : > { %v10743_v44 = vadd.f32 %v21564_v4, %v29238_v55  ;;  %v29403_v41 = vadd.f32 %v29260_v38, %v10740_v25  ;;  %v29411_v29 = vpop.f32.mrf.mxu0  ;;  %v14810_v25 = vsel %vm31717_vm2, %v31716_v58, %v31715_v2  ;;  %v22614_v58 = vld [vmem:[%s31152_s1 + $0x1f8] sm:$0xff]  }
 0x470   : > { %v10716_v33 = vpop.f32.mrf.mxu1 }
 0x471   : > { %v10741_v55 = vadd.f32 %v10716_v33, %v29247_v5  ;;  %v29418_v38 = vadd.f32 %v29280_v24, %v10743_v44  ;;  %v29420_v36 = vpop.f32.mrf.mxu0  ;;  %v31718_v33 = vld [vmem:[#allocation121_spill] sm:$0xff] }
 0x472   : > { %v29422_v0 = vpop.f32.mrf.mxu1  ;;  %21830 = vmatmul.mubr.msk.bf16.vlgmr.msra.gmra.mxu1 %vm363_vm0, %v22602_v56 }
 0x473   : > { %31705 = vst [vmem:[#allocation19_spill] sm:$0xff] %v29418_v38  ;;  %v29429_v57 = vadd.f32 %v29289_v47, %v10741_v55  ;;  %21862 = vmatmul.mubr.msk.bf16.gmra.mxu0 %vm363_vm0, %v22603_v26  ;;  %21833 = vmatprep.mubr.msk.bf16.mxu1 %vm363_vm0, %v22604_v52  ;;  %v29433_v5 = vpop.f32.mrf.mxu0  ;;  %v22606_v47 = vld [vmem:[%s31152_s1 + $0x1d8] sm:$0xff]   ;;  %v22610_v52 = vld [vmem:[%s31152_s1 + $0x1e8] sm:$0xff]  }
 0x474   : > { %31709 = vst [vmem:[#allocation17_spill] sm:$0xff] %v29433_v5  ;;  %v29435_v24 = vpop.f32.mrf.mxu1  ;;  %21889 = vmatprep.mubr.msk.bf16.mxu0 %vm363_vm0, %v22605_v14  ;;  %21866 = vmatpush3.bf16.msra.mxu1 %v29268_v37  ;;  %v22608_v37 = vld [vmem:[%s31152_s1 + $0x1e0] sm:$0xff]   ;;  %v31739_v38 = vld [vmem:[#allocation126_spill] sm:$0xff] }
 0x475   : > { %31708 = vst [vmem:[#allocation20_spill] sm:$0xff] %v29429_v57  ;;  %21867 = vmatprep.subr.bf16.mxu1 %v14195_v63  ;;  %v29439_v16 = vpop.f32.mrf.mxu0  ;;  %v31719_v14 = vld [vmem:[#allocation119_spill] sm:$0xff]  ;;  %v31730_v57 = vld [vmem:[#allocation116_spill] sm:$0xff] }
 0x476   : > { %31710 = vst [vmem:[#allocation18_spill] sm:$0xff] %v29439_v16  ;;  %v29441_v53 = vpop.f32.mrf.mxu1  ;;  %v29491_v55 = vsel %vm31720_vm3, %v31719_v14, %v31718_v33  ;;  %v31731_v16 = vld [vmem:[#allocation115_spill] sm:$0xff] }
 0x477   : > { %v29457_v59 = vpop.f32.mrf.mxu0 }
 0x478   : > { %31713 = vst [vmem:[#allocation78_spill] sm:$0xff] %v29457_v59  ;;  %v29459_v19 = vpop.f32.mrf.mxu1  ;;  %21868 = vmatpush3.bf16.msra.mxu1 %v14195_v63 }
 0x479   : > { %v29464_v46 = vpop.f32.mrf.mxu0  ;;  %21905 = vmatprep.subr.bf16.mxu1 %v29449_v42 }
 0x47a   : > { %31714 = vst [vmem:[#allocation167_spill] sm:$0xff] %v29464_v46  ;;  %v29467_v10 = vpop.f32.mrf.mxu1  ;;  %21834 = vmatmul.mubr.msk.bf16.gmra.mxu1 %vm363_vm0, %v22606_v47  ;;  %v22613_v47 = vld [vmem:[%s31152_s1 + $0x2a0] sm:$0xff]  }
 0x47b   : > { %21890 = vmatmul.mubr.msk.bf16.vlgmr.msra.gmra.mxu0 %vm363_vm0, %v22607_v11  ;;  %21837 = vmatprep.mubr.msk.bf16.mxu1 %vm363_vm0, %v22608_v37  ;;  %v29475_v4 = vpop.f32.mrf.mxu0 }
 0x47c   : > { %v29477_v56 = vpop.f32.mrf.mxu1  ;;  %21893 = vmatprep.mubr.msk.bf16.mxu0 %vm363_vm0, %v22609_v43  ;;  %21926 = vmatpush3.bf16.msra.mxu0 %v29318_v7  ;;  %v22612_v7 = vld [vmem:[%s31152_s1 + $0x1f0] sm:$0xff]  }
 0x47d   : > { %v29481_v44 = vpop.f32.mrf.mxu0  ;;  %21927 = vmatprep.subr.bf16.mxu0 %v14810_v25 }
 0x47e   : > { %v29483_v26 = vpop.f32.mrf.mxu1 }
 0x47f   : > { %v29499_v15 = vpop.f32.mrf.mxu0 }
 0x480   : > { %v29501_v63 = vpop.f32.mrf.mxu1  ;;  %21928 = vmatpush3.bf16.msra.mxu0 %v14810_v25  ;;  %v22615_v25 = vld [vmem:[%s31152_s1 + $0x2a8] sm:$0xff]  }
 0x481   : > { %v29506_v61 = vpop.f32.mrf.mxu0  ;;  %21965 = vmatprep.subr.bf16.mxu0 %v29491_v55 }
 0x482   : > { %v29509_v3 = vpop.f32.mrf.mxu1  ;;  %21838 = vmatmul.mubr.msk.bf16.gmra.mxu1 %vm363_vm0, %v22610_v52  ;;  %v22616_v52 = vld [vmem:[%s31152_s1 + $0x240] sm:$0xff]  }
 0x483   : > { %21894 = vmatmul.mubr.msk.bf16.gmra.mxu0 %vm363_vm0, %v22611_v9  ;;  %21841 = vmatprep.mubr.msk.bf16.mxu1 %vm363_vm0, %v22612_v7  ;;  %v29514_v11 = vpop.f32.mrf.mxu0  ;;  %v22617_v9 = vld [vmem:[%s31152_s1 + $0x2b0] sm:$0xff]  }
 0x484   : > { %v29516_v37 = vpop.f32.mrf.mxu1  ;;  %21897 = vmatprep.mubr.msk.bf16.mxu0 %vm363_vm0, %v22613_v47 }
 0x485   : > { %v29519_v43 = vpop.f32.mrf.mxu0 }
 0x486   : > { %31721 = vst [vmem:[#allocation7_spill] sm:$0xff] %v29519_v43  ;;  %v29521_v2 = vpop.f32.mrf.mxu1 }
 0x487   : > { %v29532_v33 = vpop.f32.mrf.mxu0 }
 0x488   : > { %31722 = vst [vmem:[#allocation144_spill] sm:$0xff] %v29532_v33  ;;  %v29534_v14 = vpop.f32.mrf.mxu1 }
 0x489   : > { %v29539_v7 = vpop.f32.mrf.mxu0 }
 0x48a   : > { %31723 = vst [vmem:[#allocation71_spill] sm:$0xff] %v29539_v7  ;;  %v29541_v47 = vpop.f32.mrf.mxu1  ;;  %21842 = vmatmul.mubr.msk.bf16.gmra.mxu1 %vm363_vm0, %v22614_v58  ;;  %v22619_v58 = vld [vmem:[%s31152_s1 + $0x2b8] sm:$0xff]   ;;  %v22625_v7 = vld [vmem:[%s31152_s1 + $0x310] sm:$0xff]  }
 0x48b   : > { %21898 = vmatmul.mubr.msk.bf16.gmra.mxu0 %vm363_vm0, %v22615_v25  ;;  %21869 = vmatprep.mubr.msk.bf16.mxu1 %vm363_vm0, %v22616_v52  ;;  %v29546_v28 = vpop.f32.mrf.mxu0  ;;  %v22620_v25 = vld [vmem:[%s31152_s1 + $0x250] sm:$0xff]  }
 0x48c   : > { %31724 = vst [vmem:[#allocation165_spill] sm:$0xff] %v29546_v28  ;;  %v29548_v8 = vpop.f32.mrf.mxu1  ;;  %21901 = vmatprep.mubr.msk.bf16.mxu0 %vm363_vm0, %v22617_v9  ;;  %v22621_v9 = vld [vmem:[%s31152_s1 + $0x300] sm:$0xff]   ;;  %v14605_v28 = vsel %vm2586_vm12, %v31731_v16, %v31730_v57  ;;  %v22622_v57 = vld [vmem:[%s31152_s1 + $0x258] sm:$0xff]  }
 0x48d   : > { %v29551_v39 = vpop.f32.mrf.mxu0  ;;  %v31734_v16 = vld [vmem:[#allocation118_spill] sm:$0xff] }
 0x48e   : > { %31725 = vst [vmem:[#allocation182_spill] sm:$0xff] %v29551_v39  ;;  %v29553_v6 = vpop.f32.mrf.mxu1 }
 0x48f   : > { %31726 = vst [vmem:[#allocation131_spill] sm:$0xff] %v29553_v6  ;;  %v29564_v52 = vpop.f32.mrf.mxu0 }
 0x490   : > { %31727 = vst [vmem:[#allocation122_spill] sm:$0xff] %v29564_v52  ;;  %v29566_v46 = vpop.f32.mrf.mxu1 }
 0x491   : > { %31728 = vst [vmem:[#allocation51_spill] sm:$0xff] %v29566_v46  ;;  %v29571_v59 = vpop.f32.mrf.mxu0 }
 0x492   : > { %31729 = vst [vmem:[#allocation137_spill] sm:$0xff] %v29571_v59  ;;  %v29573_v39 = vpop.f32.mrf.mxu1  ;;  %21870 = vmatmul.mubr.msk.bf16.vlgmr.msra.gmra.mxu1 %vm363_vm0, %v22618_v62 }
 0x493   : > { %21902 = vmatmul.mubr.msk.bf16.gmra.mxu0 %vm363_vm0, %v22619_v58  ;;  %21873 = vmatprep.mubr.msk.bf16.mxu1 %vm363_vm0, %v22620_v25  ;;  %v29581_v52 = vpop.f32.mrf.mxu0  ;;  %v31735_v58 = vld [vmem:[#allocation117_spill] sm:$0xff] }
 0x494   : > { %31732 = vst [vmem:[#allocation170_spill] sm:$0xff] %v29581_v52  ;;  %v29583_v46 = vpop.f32.mrf.mxu1  ;;  %21929 = vmatprep.mubr.msk.bf16.mxu0 %vm363_vm0, %v22621_v9  ;;  %21906 = vmatpush3.bf16.msra.mxu1 %v29449_v42  ;;  %v29597_v25 = vsel %vm3000_vm14, %v31735_v58, %v31734_v16  ;;  %v22623_v9 = vld [vmem:[%s31152_s1 + $0x308] sm:$0xff]   ;;  %v22624_v42 = vld [vmem:[%s31152_s1 + $0x260] sm:$0xff]  }
 0x495   : > { %21907 = vmatprep.subr.bf16.mxu1 %v14605_v28  ;;  %v29587_v59 = vpop.f32.mrf.mxu0  ;;  %v31738_v58 = vld [vmem:[#allocation128_spill] sm:$0xff] }
 0x496   : > { %31733 = vst [vmem:[#allocation72_spill] sm:$0xff] %v29587_v59  ;;  %v29589_v62 = vpop.f32.mrf.mxu1  ;;  %v15220_v5 = vsel %vm31740_vm4, %v31739_v38, %v31738_v58  ;;  %v22626_v38 = vld [vmem:[%s31152_s1 + $0x268] sm:$0xff]   ;;  %v31744_v58 = vld [vmem:[#allocation42_spill] sm:$0xff] }
 0x497   : > { %v29605_v59 = vpop.f32.mrf.mxu0 }
 0x498   : > { %31736 = vst [vmem:[#allocation184_spill] sm:$0xff] %v29605_v59  ;;  %v29607_v52 = vpop.f32.mrf.mxu1  ;;  %21908 = vmatpush3.bf16.msra.mxu1 %v14605_v28 }
 0x499   : > { %v29612_v6 = vpop.f32.mrf.mxu0  ;;  %21945 = vmatprep.subr.bf16.mxu1 %v29597_v25 }
 0x49a   : > { %31737 = vst [vmem:[#allocation9_spill] sm:$0xff] %v29612_v6  ;;  %v29615_v16 = vpop.f32.mrf.mxu1  ;;  %21874 = vmatmul.mubr.msk.bf16.gmra.mxu1 %vm363_vm0, %v22622_v57  ;;  %v22629_v6 = vld [vmem:[%s31152_s1 + $0x320] sm:$0xff]  }
 0x49b   : > { %21930 = vmatmul.mubr.msk.bf16.vlgmr.msra.gmra.mxu0 %vm363_vm0, %v22623_v9  ;;  %21877 = vmatprep.mubr.msk.bf16.mxu1 %vm363_vm0, %v22624_v42  ;;  %v29623_v59 = vpop.f32.mrf.mxu0  ;;  %v31743_v9 = vld [vmem:[#allocation41_spill] sm:$0xff] }
 0x49c   : > { %31741 = vst [vmem:[#allocation174_spill] sm:$0xff] %v29623_v59  ;;  %v29625_v33 = vpop.f32.mrf.mxu1  ;;  %21933 = vmatprep.mubr.msk.bf16.mxu0 %vm363_vm0, %v22625_v7  ;;  %21966 = vmatpush3.bf16.msra.mxu0 %v29491_v55  ;;  %v29639_v42 = vsel %vm31745_vm5, %v31744_v58, %v31743_v9  ;;  %v22627_v7 = vld [vmem:[%s31152_s1 + $0x318] sm:$0xff]   ;;  %v22628_v55 = vld [vmem:[%s31152_s1 + $0x270] sm:$0xff]  }
 0x49d   : > { %v29629_v28 = vpop.f32.mrf.mxu0  ;;  %21967 = vmatprep.subr.bf16.mxu0 %v15220_v5  ;;  %31746 = vst [vmem:[#allocation143_spill] sm:$0xff] %v29639_v42 }
 0x49e   : > { %31742 = vst [vmem:[#allocation140_spill] sm:$0xff] %v29629_v28  ;;  %v29631_v57 = vpop.f32.mrf.mxu1 }
 0x49f   : > { %v29647_v28 = vpop.f32.mrf.mxu0 }
 0x4a0   : > { %31747 = vst [vmem:[#allocation176_spill] sm:$0xff] %v29647_v28  ;;  %v29649_v59 = vpop.f32.mrf.mxu1  ;;  %21968 = vmatpush3.bf16.msra.mxu0 %v15220_v5 }
 0x4a1   : > { %31748 = vst [vmem:[#allocation178_spill] sm:$0xff] %v29649_v59  ;;  %v29654_v43 = vpop.f32.mrf.mxu0  ;;  %22005 = vmatprep.subr.bf16.mxu0 %v29639_v42 }
 0x4a2   : > { %31749 = vst [vmem:[#allocation52_spill] sm:$0xff] %v29654_v43  ;;  %v29657_v9 = vpop.f32.mrf.mxu1  ;;  %21878 = vmatmul.mubr.msk.bf16.gmra.mxu1 %vm363_vm0, %v22626_v38  ;;  %v22630_v43 = vld [vmem:[%s31152_s1 + $0x278] sm:$0xff]   ;;  %v11140_v38 = vadd.f32 %v29422_v0, %v29258_v18 }
 0x4a3   : > { %21934 = vmatmul.mubr.msk.bf16.gmra.mxu0 %vm363_vm0, %v22627_v7  ;;  %21881 = vmatprep.mubr.msk.bf16.mxu1 %vm363_vm0, %v22628_v55  ;;  %v29662_v58 = vpop.f32.mrf.mxu0  ;;  %v22631_v7 = vld [vmem:[%s31152_s1 + $0x328] sm:$0xff]   ;;  %v22632_v55 = vld [vmem:[%s31152_s1 + $0x2c0] sm:$0xff]  }
 0x4a4   : > { %31750 = vst [vmem:[#allocation136_spill] sm:$0xff] %v29662_v58  ;;  %v29664_v28 = vpop.f32.mrf.mxu1  ;;  %21937 = vmatprep.mubr.msk.bf16.mxu0 %vm363_vm0, %v22629_v6  ;;  %v22633_v58 = vld [vmem:[%s31152_s1 + $0x330] sm:$0xff]  }
 0x4a5   : > { %31751 = vst [vmem:[#allocation129_spill] sm:$0xff] %v29664_v28  ;;  %v29667_v59 = vpop.f32.mrf.mxu0  ;;  %v11345_v28 = vadd.f32 %v29302_v12, %v11140_v38 }
 0x4a6   : > { %31752 = vst [vmem:[#allocation125_spill] sm:$0xff] %v29667_v59  ;;  %v29669_v5 = vpop.f32.mrf.mxu1 }
 0x4a7   : > { %31753 = vst [vmem:[#allocation53_spill] sm:$0xff] %v29669_v5  ;;  %v29682_v6 = vpop.f32.mrf.mxu0  ;;  %v11138_v5 = vadd.f32 %v29435_v24, %v29272_v13  ;;  %v11139_v24 = vadd.f32 %v29459_v19, %v29298_v48  ;;  %v11550_v12 = vadd.f32 %v29573_v39, %v11345_v28  ;;  %v22635_v39 = vld [vmem:[%s31152_s1 + $0x338] sm:$0xff]  }
 0x4a8   : > { %31754 = vst [vmem:[#allocation180_spill] sm:$0xff] %v29682_v6  ;;  %v29684_v59 = vpop.f32.mrf.mxu1  ;;  %v11141_v6 = vadd.f32 %v29441_v53, %v29287_v35  ;;  %v11144_v35 = vadd.f32 %v29467_v10, %v29308_v27  ;;  %v11142_v53 = vadd.f32 %v29477_v56, %v29322_v34  ;;  %v22636_v27 = vld [vmem:[%s31152_s1 + $0x2d0] sm:$0xff]   ;;  %v11145_v34 = vadd.f32 %v29483_v26, %v29337_v31  ;;  %v31760_v56 = vld [vmem:[#allocation46_spill] sm:$0xff] }
 0x4a9   : > { %31755 = vst [vmem:[#allocation159_spill] sm:$0xff] %v29684_v59  ;;  %v29691_v18 = vpop.f32.mrf.mxu0  ;;  %v11343_v13 = vadd.f32 %v29310_v22, %v11138_v5  ;;  %v31761_v5 = vld [vmem:[#allocation133_spill] sm:$0xff]  ;;  %v11344_v31 = vadd.f32 %v29339_v51, %v11139_v24  ;;  %v11143_v26 = vadd.f32 %v29501_v63, %v29345_v49 }
 0x4aa   : > { %v29693_v0 = vpop.f32.mrf.mxu1  ;;  %21882 = vmatmul.mubr.msk.bf16.gmra.mxu1 %vm363_vm0, %v22630_v43  ;;  %v11346_v22 = vadd.f32 %v29330_v1, %v11141_v6  ;;  %v22637_v1 = vld [vmem:[%s31152_s1 + $0x380] sm:$0xff]   ;;  %v31764_v6 = vld [vmem:[#allocation124_spill] sm:$0xff] }
 0x4ab   : > { %21938 = vmatmul.mubr.msk.bf16.gmra.mxu0 %vm363_vm0, %v22631_v7  ;;  %21909 = vmatprep.mubr.msk.bf16.mxu1 %vm363_vm0, %v22632_v55  ;;  %v29701_v59 = vpop.f32.mrf.mxu0  ;;  %v11548_v48 = vadd.f32 %v29583_v46, %v11343_v13  ;;  %v31759_v46 = vld [vmem:[#allocation45_spill] sm:$0xff]  ;;  %v31762_v7 = vld [vmem:[#allocation50_spill] sm:$0xff]  ;;  %v31765_v13 = vld [vmem:[#allocation123_spill] sm:$0xff] }
 0x4ac   : > { %31756 = vst [vmem:[#allocation153_spill] sm:$0xff] %v29701_v59  ;;  %v29703_v42 = vpop.f32.mrf.mxu1  ;;  %21941 = vmatprep.mubr.msk.bf16.mxu0 %vm363_vm0, %v22633_v58  ;;  %v22634_v58 = vld [vmem:[%s31152_s1 + $0x2c8] sm:$0xff]   ;;  %v15015_v28 = vsel %vm3000_vm14, %v31760_v56, %v31759_v46  ;;  %v29744_v55 = vsel %vm31763_vm6, %v31762_v7, %v31761_v5  ;;  %v11551_v59 = vadd.f32 %v29589_v62, %v11346_v22 }
 0x4ad   : > { %v29710_v43 = vpop.f32.mrf.mxu0  ;;  %v11349_v56 = vadd.f32 %v29349_v54, %v11144_v35  ;;  %v11347_v5 = vadd.f32 %v29356_v60, %v11142_v53  ;;  %v11148_v7 = vadd.f32 %v29509_v3, %v29354_v50  ;;  %v11753_v49 = vadd.f32 %v29481_v44, %v11548_v48 }
 0x4ae   : > { %31757 = vst [vmem:[#allocation181_spill] sm:$0xff] %v29710_v43  ;;  %v29716_v38 = vpop.f32.mrf.mxu1  ;;  %v11755_v43 = vadd.f32 %v29475_v4, %v11550_v12  ;;  %v11549_v4 = vadd.f32 %v29607_v52, %v11344_v31  ;;  %v11350_v60 = vadd.f32 %v29371_v17, %v11145_v34  ;;  %v11149_v50 = vadd.f32 %v29521_v2, %v29378_v21  ;;  %v31766_v52 = vld [vmem:[#allocation146_spill] sm:$0xff]  ;;  %v31769_v34 = vld [vmem:[#allocation56_spill] sm:$0xff] }
 0x4af   : > { %v29729_v19 = vpop.f32.mrf.mxu0  ;;  %v11348_v44 = vadd.f32 %v29380_v20, %v11143_v26  ;;  %v11353_v21 = vadd.f32 %v29389_v23, %v11148_v7  ;;  %v22638_v20 = vld [vmem:[%s31152_s1 + $0x2d8] sm:$0xff]   ;;  %v22639_v23 = vld [vmem:[%s31152_s1 + $0x388] sm:$0xff]  }
 0x4b0   : > { %31758 = vst [vmem:[#allocation63_spill] sm:$0xff] %v29729_v19  ;;  %v29733_v10 = vpop.f32.mrf.mxu1  ;;  %v29749_v19 = vsel %vm3414_vm13, %v31765_v13, %v31764_v6  ;;  %v11146_v6 = vadd.f32 %v29516_v37, %v29363_v30  ;;  %v11147_v30 = vadd.f32 %v29534_v14, %v29385_v40  ;;  %v11756_v37 = vadd.f32 %v29499_v15, %v11551_v59  ;;  %v31767_v15 = vld [vmem:[#allocation149_spill] sm:$0xff] }
 0x4b1   : > { %v29756_v46 = vpop.f32.mrf.mxu0  ;;  %v11554_v40 = vadd.f32 %v29615_v16, %v11349_v56  ;;  %v11552_v14 = vadd.f32 %v29625_v33, %v11347_v5  ;;  %v11754_v59 = vadd.f32 %v29506_v61, %v11549_v4  ;;  %v11354_v16 = vadd.f32 %v29411_v29, %v11149_v50  ;;  %v31770_v13 = vld [vmem:[#allocation145_spill] sm:$0xff]  ;;  %v31772_v56 = vld [vmem:[#allocation178_spill] sm:$0xff]  ;;  %v31774_v4 = vld [vmem:[#allocation48_spill] sm:$0xff] }
 0x4b2   : > { %v21671_v51 = vpop.f32.mrf.mxu1  ;;  %21910 = vmatmul.mubr.msk.bf16.vlgmr.msra.gmra.mxu1 %vm363_vm0, %v22634_v58  ;;  %v29785_v2 = vadd.f32 %v29396_v32, %v11146_v6  ;;  %v22640_v32 = vld [vmem:[%s31152_s1 + $0x2e0] sm:$0xff]   ;;  %v11152_v61 = vadd.f32 %v29541_v47, %v29394_v45  ;;  %v29807_v58 = vadd.f32 %v29420_v36, %v11147_v30  ;;  %v11555_v22 = vadd.f32 %v29631_v57, %v11350_v60 }
 0x4b3   : > { %v11960_v63 = vadd.f32 %v21671_v51, %v11755_v43  ;;  %21942 = vmatmul.mubr.msk.bf16.gmra.mxu0 %vm363_vm0, %v22635_v39  ;;  %21913 = vmatprep.mubr.msk.bf16.mxu1 %vm363_vm0, %v22636_v27  ;;  %v29769_v54 = vpop.f32.mrf.mxu0  ;;  %v31768_v43 = vld [vmem:[#allocation47_spill] sm:$0xff]  ;;  %v22641_v39 = vld [vmem:[%s31152_s1 + $0x390] sm:$0xff]   ;;  %v11150_v45 = vadd.f32 %v29548_v8, %v29403_v41  ;;  %v11759_v36 = vadd.f32 %v29514_v11, %v11554_v40  ;;  %v31773_v51 = vld [vmem:[#allocation60_spill] sm:$0xff] }
 0x4b4   : > { %v11895_v3 = vpop.f32.mrf.mxu1  ;;  %21969 = vmatprep.mubr.msk.bf16.mxu0 %vm363_vm0, %v22637_v1  ;;  %21946 = vmatpush3.bf16.msra.mxu1 %v29597_v25  ;;  %v31771_v47 = vld [vmem:[#allocation7_spill] sm:$0xff]  ;;  %v11553_v5 = vadd.f32 %v31772_v56, %v11348_v44  ;;  %v31775_v41 = vld [vmem:[#allocation144_spill] sm:$0xff]  ;;  %v11558_v60 = vadd.f32 %v29657_v9, %v11353_v21  ;;  %v22656_v9 = vld [vmem:[%s31155_s4 + $0x74] ss:$8 sps:$4 sm:$0xff]  }
 0x4b5   : > { %v12072_v62 = vmul.f32 %v31766_v52, %v11960_v63  ;;  %v11958_v24 = vadd.f32 %v11895_v3, %v11753_v49  ;;  %21947 = vmatprep.subr.bf16.mxu1 %v15015_v28  ;;  %v29781_v17 = vpop.f32.mrf.mxu0  ;;  %v11757_v57 = vadd.f32 %v31771_v47, %v11552_v14  ;;  %v11760_v11 = vadd.f32 %v31775_v41, %v11555_v22  ;;  %v31776_v3 = vld [vmem:[#allocation143_spill] sm:$0xff]  ;;  %v31777_v52 = vld [vmem:[#allocation57_spill] sm:$0xff]  ;;  %v31787_v56 = vld [vmem:[#allocation4_spill] sm:$0xff] }
 0x4b6   : > { %v21672_v25 = vpop.f32.mrf.mxu1  ;;  %v31778_v21 = vld [vmem:[#allocation17_spill] sm:$0xff] }
 0x4b7   : > { %v12184_v12 = vadd.f32 %v31767_v15, %v12072_v62  ;;  %v12070_v35 = vmul.f32 %v31768_v43, %v11958_v24  ;;  %v11961_v53 = vadd.f32 %v21672_v25, %v11756_v37  ;;  %v29801_v33 = vpop.f32.mrf.mxu0  ;;  %v11357_v14 = vadd.f32 %v31778_v21, %v11152_v61  ;;  %v31779_v25 = vld [vmem:[#allocation19_spill] sm:$0xff]  ;;  %v31782_v43 = vld [vmem:[#allocation61_spill] sm:$0xff]  ;;  %v22643_v61 = vld [vmem:[%s31152_s1 + $0x398] sm:$0xff]  }
 0x4b8   : > { %v11898_v48 = vpop.f32.mrf.mxu1  ;;  %21948 = vmatpush3.bf16.msra.mxu1 %v15015_v28  ;;  %v31781_v15 = vld [vmem:[#allocation71_spill] sm:$0xff]  ;;  %v31786_v47 = vld [vmem:[#allocation53_spill] sm:$0xff] }
 0x4b9   : > { %v12200_v27 = vmax.f32 %v12184_v12, 0.0  ;;  %v12182_v1 = vadd.f32 %v31769_v34, %v12070_v35  ;;  %v12073_v31 = vmul.f32 %v31770_v13, %v11961_v53  ;;  %v11959_v29 = vadd.f32 %v11898_v48, %v11754_v59  ;;  %v29815_v26 = vpop.f32.mrf.mxu0  ;;  %21985 = vmatprep.subr.bf16.mxu1 %v29749_v19  ;;  %v31783_v48 = vld [vmem:[#allocation54_spill] sm:$0xff]  ;;  %v22644_v34 = vld [vmem:[%s31152_s1 + $0x2f0] sm:$0xff]   ;;  %v31795_v21 = vld [vmem:[#allocation55_spill] sm:$0xff] }
 0x4ba   : > { %v21675_v28 = vpop.f32.mrf.mxu1  ;;  %21914 = vmatmul.mubr.msk.bf16.gmra.mxu1 %vm363_vm0, %v22638_v20  ;;  %v31780_v20 = vld [vmem:[#allocation131_spill] sm:$0xff]  ;;  %v11758_v12 = vadd.f32 %v31781_v15, %v11553_v5  ;;  %v31784_v13 = vld [vmem:[#allocation129_spill] sm:$0xff] }
 0x4bb   : > { %v19855_v7 = vpack.c.bf16 %v12200_v27, %v12200_v27  ;;  %v12198_v6 = vmax.f32 %v12182_v1, 0.0  ;;  %v12185_v49 = vadd.f32 %v31773_v51, %v12073_v31  ;;  %v12071_v63 = vmul.f32 %v31774_v4, %v11959_v29  ;;  %21970 = vmatmul.mubr.msk.bf16.vlgmr.msra.gmra.mxu0 %vm363_vm0, %v22639_v23  ;;  %21917 = vmatprep.mubr.msk.bf16.mxu1 %vm363_vm0, %v22640_v32  ;;  %v29828_v8 = vpop.f32.mrf.mxu0  ;;  %v22642_v23 = vld [vmem:[%s31152_s1 + $0x2e8] sm:$0xff]   ;;  %v31785_v29 = vld [vmem:[#allocation165_spill] sm:$0xff]  ;;  %v31788_v51 = vld [vmem:[#allocation67_spill] sm:$0xff] }
 0x4bc   : > { %v11964_v50 = vadd.f32 %v21675_v28, %v11759_v36  ;;  %v11911_v30 = vpop.f32.mrf.mxu1  ;;  %21973 = vmatprep.mubr.msk.bf16.mxu0 %vm363_vm0, %v22641_v39  ;;  %22006 = vmatpush3.bf16.msra.mxu0 %v31776_v3  ;;  %v29844_v59 = vadd.f32 %v31780_v20, %v31779_v25  ;;  %v11556_v31 = vadd.f32 %v31784_v13, %v29785_v2  ;;  %v31789_v4 = vld [vmem:[#allocation62_spill] sm:$0xff]  ;;  %v31793_v3 = vld [vmem:[#allocation159_spill] sm:$0xff] }
 0x4bd   : > { %12280 = vst [vmem:[#allocation2 + $0x28] sm:$0xf] %v19855_v7  ;;  %v19853_v44 = vpack.c.bf16 %v12198_v6, %v12198_v6  ;;  %v12201_v37 = vmax.f32 %v12185_v49, 0.0  ;;  %v12183_v62 = vadd.f32 %v31777_v52, %v12071_v63  ;;  %v11962_v24 = vadd.f32 %v11911_v30, %v11757_v57  ;;  %22007 = vmatprep.subr.bf16.mxu0 %v29744_v55  ;;  %v29836_v40 = vpop.f32.mrf.mxu0  ;;  %v22645_v7 = vld [vmem:[%s31152_s1 + $0x3a0] sm:$0xff]   ;;  %v31796_v20 = vld [vmem:[#allocation182_spill] sm:$0xff] }
 0x4be   : > { %v12076_v35 = vmul.f32 %v31782_v43, %v11964_v50  ;;  %v21676_v53 = vpop.f32.mrf.mxu1  ;;  %v11763_v36 = vadd.f32 %v31785_v29, %v11558_v60  ;;  %v11559_v57 = vadd.f32 %v31786_v47, %v11354_v16  ;;  %v31790_v16 = vld [vmem:[#allocation18_spill] sm:$0xff]  ;;  %v31791_v60 = vld [vmem:[#allocation20_spill] sm:$0xff]  ;;  %v31792_v50 = vld [vmem:[#allocation51_spill] sm:$0xff]  ;;  %v11761_v15 = vadd.f32 %v31796_v20, %v11556_v31 }
 0x4bf   : > { %12278 = vst [vmem:[#allocation2 + $0x8] sm:$0xf] %v19853_v44  ;;  %v19856_v32 = vpack.c.bf16 %v12201_v37, %v12201_v37  ;;  %v12199_v22 = vmax.f32 %v12183_v62, 0.0  ;;  %v12074_v39 = vmul.f32 %v31783_v48, %v11962_v24  ;;  %v11965_v27 = vadd.f32 %v21676_v53, %v11760_v11  ;;  %v29858_v1 = vpop.f32.mrf.mxu0  ;;  %v31794_v62 = vld [vmem:[#allocation3_spill] sm:$0xff] }
 0x4c0   : > { %v12188_v5 = vadd.f32 %v31787_v56, %v12076_v35  ;;  %v11914_v28 = vpop.f32.mrf.mxu1  ;;  %22008 = vmatpush3.bf16.msra.mxu0 %v29744_v55  ;;  %v11355_v11 = vadd.f32 %v31790_v16, %v11150_v45  ;;  %v11151_v30 = vadd.f32 %v31792_v50, %v31791_v60  ;;  %v11557_v44 = vadd.f32 %v31793_v3, %v29807_v58  ;;  %v31797_v58 = vld [vmem:[#allocation122_spill] sm:$0xff]  ;;  %v22648_v60 = vld [vmem:[%s31152_s1 + $0x340] sm:$0xff]   ;;  %v22649_v50 = vld [vmem:[%s31152_s1 + $0x3b0] sm:$0xff]  }
 0x4c1   : > { %12281 = vst [vmem:[#allocation2 + $0x38] sm:$0xf] %v19856_v32  ;;  %v19854_v6 = vpack.c.bf16 %v12199_v22, %v12199_v22  ;;  %v12186_v49 = vadd.f32 %v31788_v51, %v12074_v39  ;;  %v12077_v63 = vmul.f32 %v31789_v4, %v11965_v27  ;;  %v11963_v2 = vadd.f32 %v11914_v28, %v11758_v12  ;;  %v29871_v41 = vpop.f32.mrf.mxu0  ;;  %v31798_v22 = vld [vmem:[#allocation68_spill] sm:$0xff]  ;;  %v31799_v39 = vld [vmem:[#allocation171_spill] sm:$0xff]  ;;  %v31804_v4 = vld [vmem:[#allocation170_spill] sm:$0xff] }
 0x4c2   : > { %16872 = vmatprep.subr.bf16.mxu0 %v22656_v9  ;;  %v12204_v37 = vmax.f32 %v12188_v5, 0.0  ;;  %v21679_v55 = vpop.f32.mrf.mxu1  ;;  %21918 = vmatmul.mubr.msk.bf16.gmra.mxu1 %vm363_vm0, %v22642_v23  ;;  %v11764_v12 = vadd.f32 %v31797_v58, %v11559_v57  ;;  %v11562_v43 = vadd.f32 %v29693_v0, %v11357_v14  ;;  %v11560_v31 = vadd.f32 %v29703_v42, %v11355_v11  ;;  %v22646_v0 = vld [vmem:[%s31152_s1 + $0x2f8] sm:$0xff]   ;;  %v31801_v57 = vld [vmem:[#allocation175_spill] sm:$0xff]  ;;  %v22647_v28 = vld [vmem:[%s31152_s1 + $0x3a8] sm:$0xff]  }
 0x4c3   : > { %12279 = vst [vmem:[#allocation2 + $0x18] sm:$0xf] %v19854_v6  ;;  %v12202_v52 = vmax.f32 %v12186_v49, 0.0  ;;  %v12189_v24 = vadd.f32 %v31794_v62, %v12077_v63  ;;  %v12075_v9 = vmul.f32 %v31795_v21, %v11963_v2  ;;  %v11968_v25 = vadd.f32 %v21679_v55, %v11763_v36  ;;  %21974 = vmatmul.mubr.msk.bf16.gmra.mxu0 %vm363_vm0, %v22643_v61  ;;  %v29883_v45 = vpop.f32.mrf.mxu0  ;;  %v31802_v42 = vld [vmem:[#allocation78_spill] sm:$0xff]  ;;  %v31803_v51 = vld [vmem:[#allocation167_spill] sm:$0xff]  ;;  %v31805_v2 = vld [vmem:[#allocation65_spill] sm:$0xff] }
 0x4c4   : > { %21921 = vmatprep.mubr.msk.bf16.mxu1 %vm363_vm0, %v22644_v34  ;;  %v19859_v35 = vpack.c.bf16 %v12204_v37, %v12204_v37  ;;  %v11927_v53 = vpop.f32.mrf.mxu1  ;;  %21977 = vmatprep.mubr.msk.bf16.mxu0 %vm363_vm0, %v22645_v7  ;;  %v31800_v34 = vld [vmem:[#allocation137_spill] sm:$0xff]  ;;  %v11358_v6 = vadd.f32 %v31802_v42, %v29844_v59  ;;  %v11356_v49 = vadd.f32 %v31803_v51, %v11151_v30  ;;  %v31807_v62 = vld [vmem:[#allocation72_spill] sm:$0xff]  ;;  %v31809_v58 = vld [vmem:[#allocation10_spill] sm:$0xff] }
 0x4c5   : > { %v19857_v23 = vpack.c.bf16 %v12202_v52, %v12202_v52  ;;  %v12205_v32 = vmax.f32 %v12189_v24, 0.0  ;;  %v12187_v48 = vadd.f32 %v31798_v22, %v12075_v9  ;;  %v12080_v27 = vmul.f32 %v31799_v39, %v11968_v25  ;;  %v29891_v61 = vpop.f32.mrf.mxu0  ;;  %v31806_v37 = vld [vmem:[#allocation169_spill] sm:$0xff]  ;;  %v31808_v9 = vld [vmem:[#allocation76_spill] sm:$0xff]  ;;  %v12175_v22 = vpop.permute.xlu1 %12174 }
 0x4c6   : > { %v11762_v13 = vadd.f32 %v31800_v34, %v11557_v44  ;;  %12284 = vst [vmem:[#allocation2 + $0x68] sm:$0xf] %v19859_v35  ;;  %v11966_v29 = vadd.f32 %v11927_v53, %v11761_v15  ;;  %v21680_v36 = vpop.f32.mrf.mxu1  ;;  %v11767_v63 = vadd.f32 %v31804_v4, %v11562_v43  ;;  %v11563_v52 = vadd.f32 %v29716_v38, %v11358_v6  ;;  %v31810_v43 = vld [vmem:[#allocation66_spill] sm:$0xff]  ;;  %v31812_v34 = vld [vmem:[#allocation79_spill] sm:$0xff]  ;;  %v31815_v42 = vld [vmem:[#allocation189_spill] sm:$0xff] }
 0x4c7   : > { %12282 = vst [vmem:[#allocation2 + $0x48] sm:$0xf] %v19857_v23  ;;  %v19860_v14 = vpack.c.bf16 %v12205_v32, %v12205_v32  ;;  %v12203_v47 = vmax.f32 %v12187_v48, 0.0  ;;  %v12192_v56 = vadd.f32 %v31801_v57, %v12080_v27  ;;  %v11969_v5 = vadd.f32 %v21680_v36, %v11764_v12  ;;  %v29902_v7 = vpop.f32.mrf.mxu0  ;;  %v31811_v48 = vld [vmem:[#allocation120_spill] sm:$0xff]  ;;  %v22652_v4 = vld [vmem:[%s31152_s1 + $0x350] sm:$0xff]  }
 0x4c8   : > { %v12078_v16 = vmul.f32 %v31805_v2, %v11966_v29  ;;  %v11930_v11 = vpop.f32.mrf.mxu1  ;;  %v11765_v24 = vadd.f32 %v31807_v62, %v11560_v31  ;;  %v11561_v21 = vadd.f32 %v29733_v10, %v11356_v49  ;;  %v31813_v29 = vld [vmem:[#allocation184_spill] sm:$0xff]  ;;  %v22651_v49 = vld [vmem:[%s31152_s1 + $0x3b8] sm:$0xff]  }
 0x4c9   : > { %12285 = vst [vmem:[#allocation2 + $0x78] sm:$0xf] %v19860_v14  ;;  %v19858_v3 = vpack.c.bf16 %v12203_v47, %v12203_v47  ;;  %v12208_v44 = vmax.f32 %v12192_v56, 0.0  ;;  %v12081_v59 = vmul.f32 %v31806_v37, %v11969_v5  ;;  %v11967_v55 = vadd.f32 %v11930_v11, %v11762_v13  ;;  %v29916_v30 = vpop.f32.mrf.mxu0  ;;  %v22650_v56 = vld [vmem:[%s31152_s1 + $0x348] sm:$0xff]   ;;  %v22653_v11 = vld [vmem:[%s31152_s1 + $0x400] sm:$0xff]  }
 0x4ca   : > { %v12190_v25 = vadd.f32 %v31808_v9, %v12078_v16  ;;  %v21683_v20 = vpop.f32.mrf.mxu1  ;;  %21922 = vmatmul.mubr.msk.bf16.gmra.mxu1 %vm363_vm0, %v22646_v0  ;;  %v11768_v36 = vadd.f32 %v31813_v29, %v11563_v52  ;;  %v31814_v0 = vld [vmem:[#allocation9_spill] sm:$0xff]  ;;  %v31817_v52 = vld [vmem:[#allocation80_spill] sm:$0xff]  ;;  %v31819_v9 = vld [vmem:[#allocation130_spill] sm:$0xff] }
 0x4cb   : > { %12283 = vst [vmem:[#allocation2 + $0x58] sm:$0xf] %v19858_v3  ;;  %v19863_v15 = vpack.c.bf16 %v12208_v44, %v12208_v44  ;;  %v12193_v12 = vadd.f32 %v31809_v58, %v12081_v59  ;;  %v12079_v35 = vmul.f32 %v31810_v43, %v11967_v55  ;;  %v11972_v53 = vadd.f32 %v21683_v20, %v11767_v63  ;;  %v29926_v23 = vpop.f32.mrf.mxu0  ;;  %v12180_v59 = vpop.permute.xlu0 %12179  ;;  %v31820_v58 = vld [vmem:[#allocation73_spill] sm:$0xff]  ;;  %v31821_v43 = vld [vmem:[#allocation174_spill] sm:$0xff] }
 0x4cc   : > { %21978 = vmatmul.mubr.msk.bf16.gmra.mxu0 %vm363_vm0, %v22647_v28  ;;  %v12206_v38 = vmax.f32 %v12190_v25, 0.0  ;;  %v11943_v32 = vpop.f32.mrf.mxu1  ;;  %21949 = vmatprep.mubr.msk.bf16.mxu1 %vm363_vm0, %v22648_v60  ;;  %v11766_v14 = vadd.f32 %v31814_v0, %v11561_v21  ;;  %v31818_v21 = vld [vmem:[#allocation132_spill] sm:$0xff]  ;;  %v22657_v0 = vld [vmem:[%s31152_s1 + $0x358] sm:$0xff]  }
 0x4cd   : > { %21981 = vmatprep.mubr.msk.bf16.mxu0 %vm363_vm0, %v22649_v50  ;;  %12288 = vst [vmem:[#allocation2 + $0xa8] sm:$0xf] %v19863_v15  ;;  %v12209_v10 = vmax.f32 %v12193_v12, 0.0  ;;  %v12191_v39 = vadd.f32 %v31811_v48, %v12079_v35  ;;  %v11970_v27 = vadd.f32 %v11943_v32, %v11765_v24  ;;  %v12084_v13 = vmul.f32 %v31812_v34, %v11972_v53  ;;  %v29932_v31 = vpop.f32.mrf.mxu0  ;;  %v31816_v50 = vld [vmem:[#allocation196_spill] sm:$0xff] }
 0x4ce   : > { %v19861_v47 = vpack.c.bf16 %v12206_v38, %v12206_v38  ;;  %v21684_v57 = vpop.f32.mrf.mxu1  ;;  %v15425_v25 = vsel %vm3414_vm13, %v31819_v9, %v31818_v21  ;;  %v31829_v21 = vld [vmem:[#allocation125_spill] sm:$0xff] }
 0x4cf   : > { %v19864_v5 = vpack.c.bf16 %v12209_v10, %v12209_v10  ;;  %v12207_v28 = vmax.f32 %v12191_v39, 0.0  ;;  %v12082_v6 = vmul.f32 %v31815_v42, %v11970_v27  ;;  %v12196_v51 = vadd.f32 %v12175_v22, %v12084_v13  ;;  %v29946_v63 = vpop.f32.mrf.mxu0  ;;  %v31822_v10 = vld [vmem:[#allocation194_spill] sm:$0xff]  ;;  %v31823_v39 = vld [vmem:[#allocation140_spill] sm:$0xff]  ;;  %v22662_v42 = vld [vmem:[%s31152_s1 + $0x360] sm:$0xff]  }
 0x4d0   : > { %12286 = vst [vmem:[#allocation2 + $0x88] sm:$0xf] %v19861_v47  ;;  %v11973_v2 = vadd.f32 %v21684_v57, %v11768_v36  ;;  %v11946_v16 = vpop.f32.mrf.mxu1 }
 0x4d1   : > { %12289 = vst [vmem:[#allocation2 + $0xb8] sm:$0xf] %v19864_v5  ;;  %v19862_v60 = vpack.c.bf16 %v12207_v28, %v12207_v28  ;;  %v12194_v3 = vadd.f32 %v31816_v50, %v12082_v6  ;;  %v12212_v44 = vmax.f32 %v12196_v51, 0.0  ;;  %v11971_v37 = vadd.f32 %v11946_v16, %v11766_v14  ;;  %v29952_v55 = vpop.f32.mrf.mxu0  ;;  %v31824_v14 = vld [vmem:[#allocation43_spill] sm:$0xff]  ;;  %v22658_v28 = vld [vmem:[%s31152_s1 + $0x408] sm:$0xff]  }
 0x4d2   : > { %v12085_v62 = vmul.f32 %v31817_v52, %v11973_v2  ;;  %v21711_v24 = vpop.f32.mrf.mxu1  ;;  %21950 = vmatmul.mubr.msk.bf16.vlgmr.msra.gmra.mxu1 %vm363_vm0, %v22650_v56  ;;  %v31826_v56 = vld [vmem:[#allocation176_spill] sm:$0xff] }
 0x4d3   : > { %12287 = vst [vmem:[#allocation2 + $0x98] sm:$0xf] %v19862_v60  ;;  %v12210_v20 = vmax.f32 %v12194_v3, 0.0  ;;  %v19867_v15 = vpack.c.bf16 %v12212_v44, %v12212_v44  ;;  %v12083_v12 = vmul.f32 %v31820_v58, %v11971_v37  ;;  %v12642_v35 = vadd.f32 %v21711_v24, %v31821_v43  ;;  %21953 = vmatprep.mubr.msk.bf16.mxu1 %vm363_vm0, %v22652_v4  ;;  %v29963_v53 = vpop.f32.mrf.mxu0  ;;  %v22654_v4 = vld [vmem:[%s31155_s4 + $0x70] ss:$8 sps:$4 sm:$0xff]   ;;  %v31827_v16 = vld [vmem:[#allocation52_spill] sm:$0xff] }
 0x4d4   : > { %21982 = vmatmul.mubr.msk.bf16.gmra.mxu0 %vm363_vm0, %v22651_v49  ;;  %v12197_v38 = vadd.f32 %v12180_v59, %v12085_v62  ;;  %v12633_v32 = vpop.f32.mrf.mxu1  ;;  %21986 = vmatpush3.bf16.msra.mxu1 %v29749_v19  ;;  %v31825_v19 = vld [vmem:[#allocation44_spill] sm:$0xff] }
 0x4d5   : > { %22009 = vmatprep.mubr.msk.bf16.mxu0 %vm363_vm0, %v22653_v11  ;;  %v19865_v22 = vpack.c.bf16 %v12210_v20, %v12210_v20  ;;  %12292 = vst [vmem:[#allocation2 + $0xe8] sm:$0xf] %v19867_v15  ;;  %v12195_v48 = vadd.f32 %v31822_v10, %v12083_v12  ;;  %v12634_v27 = vadd.f32 %v12633_v32, %v31823_v39  ;;  %v29972_v13 = vpop.f32.mrf.mxu0  ;;  %v22661_v50 = vld [vmem:[%s31155_s4 + $0x64] ss:$8 sps:$4 sm:$0xff]   ;;  %v22659_v24 = vld [vmem:[%s31155_s4 + $0x60] ss:$8 sps:$4 sm:$0xff]  }
 0x4d6   : > { %v29970_v34 = vadd.f32 %v29828_v8, %v12642_v35  ;;  %21987 = vmatprep.subr.bf16.mxu1 %v15425_v25  ;;  %v12213_v29 = vmax.f32 %v12197_v38, 0.0  ;;  %v21712_v36 = vpop.f32.mrf.mxu1  ;;  %v29980_v47 = vsel %vm3828_vm15, %v31825_v19, %v31824_v14  ;;  %v31828_v37 = vld [vmem:[#allocation136_spill] sm:$0xff]  ;;  %v22672_v38 = vld [vmem:[%s31152_s1 + $0x370] sm:$0xff]  }
 0x4d7   : > { %12290 = vst [vmem:[#allocation2 + $0xc8] sm:$0xf] %v19865_v22  ;;  %v12211_v57 = vmax.f32 %v12195_v48, 0.0  ;;  %v12645_v5 = vadd.f32 %v21712_v36, %v31826_v56  ;;  %v29984_v8 = vadd.f32 %v29836_v40, %v12634_v27  ;;  %v29992_v6 = vpop.f32.mrf.mxu0  ;;  %v22663_v40 = vld [vmem:[%s31152_s1 + $0x410] sm:$0xff]   ;;  %v22667_v58 = vld [vmem:[%s31152_s1 + $0x368] sm:$0xff]  }
 0x4d8   : > { %v19868_v51 = vpack.c.bf16 %v12213_v29, %v12213_v29  ;;  %v12636_v49 = vpop.f32.mrf.mxu1  ;;  %21988 = vmatpush3.bf16.msra.mxu1 %v15425_v25  ;;  %v31830_v12 = vld [vmem:[#allocation180_spill] sm:$0xff]  ;;  %v22664_v10 = vld [vmem:[%s31155_s4 + $0x50] ss:$8 sps:$4 sm:$0xff]  }
 0x4d9   : > { %v19866_v2 = vpack.c.bf16 %v12211_v57, %v12211_v57  ;;  %v12637_v11 = vadd.f32 %v12636_v49, %v31827_v16  ;;  %v30002_v60 = vadd.f32 %v29858_v1, %v12645_v5  ;;  %v30007_v3 = vpop.f32.mrf.mxu0  ;;  %22025 = vmatprep.subr.bf16.mxu1 %v29980_v47  ;;  %v22671_v27 = vld [vmem:[%s31155_s4 + $0x44] ss:$8 sps:$4 sm:$0xff]   ;;  %v22669_v57 = vld [vmem:[%s31155_s4 + $0x40] ss:$8 sps:$4 sm:$0xff]   ;;  %v31832_v56 = vld [vmem:[#allocation181_spill] sm:$0xff] }
 0x4da   : > { %12293 = vst [vmem:[#allocation2 + $0xf8] sm:$0xf] %v19868_v51  ;;  %v21715_v44 = vpop.f32.mrf.mxu1  ;;  %21954 = vmatmul.mubr.msk.bf16.gmra.mxu1 %vm363_vm0, %v22657_v0  ;;  %v31831_v0 = vld [vmem:[#allocation153_spill] sm:$0xff]  ;;  %v22677_v49 = vld [vmem:[%s31152_s1 + $0x378] sm:$0xff]   ;;  %v22682_v16 = vld [vmem:[%s31152_s1 + $0x3c0] sm:$0xff]  }
 0x4db   : > { %12291 = vst [vmem:[#allocation2 + $0xd8] sm:$0xf] %v19866_v2  ;;  %v12658_v59 = vadd.f32 %v21715_v44, %v31828_v37  ;;  %v30013_v52 = vadd.f32 %v29871_v41, %v12637_v11  ;;  %21957 = vmatprep.mubr.msk.bf16.mxu1 %vm363_vm0, %v22662_v42  ;;  %v30017_v1 = vpop.f32.mrf.mxu0  ;;  %v22666_v41 = vld [vmem:[%s31155_s4 + $0x54] ss:$8 sps:$4 sm:$0xff]   ;;  %v22674_v44 = vld [vmem:[%s31155_s4 + $0x30] ss:$8 sps:$4 sm:$0xff]  }
 0x4dc   : > { %22010 = vmatmul.mubr.msk.bf16.vlgmr.msra.gmra.mxu0 %vm363_vm0, %v22658_v28  ;;  %v12649_v62 = vpop.f32.mrf.mxu1 }
 0x4dd   : > { %16873 = vmatpush1.bf16.msra.mxu0 %v22654_v4  ;;  %22013 = vmatprep.mubr.msk.bf16.mxu0 %vm363_vm0, %v22663_v40  ;;  %v12650_v9 = vadd.f32 %v12649_v62, %v31829_v21  ;;  %v30025_v25 = vadd.f32 %v29883_v45, %v12658_v59  ;;  %v30030_v20 = vpop.f32.mrf.mxu0  ;;  %v22668_v45 = vld [vmem:[%s31152_s1 + $0x418] sm:$0xff]   ;;  %v31833_v4 = vld [vmem:[#allocation63_spill] sm:$0xff] }
 0x4de   : > { %16874 = vmatprep.subr.bf16.mxu0 %v22661_v50  ;;  %v21716_v15 = vpop.f32.mrf.mxu1  ;;  %v22681_v62 = vld [vmem:[%s31155_s4 + $0x24] ss:$8 sps:$4 sm:$0xff]  }
 0x4df   : > { %v12661_v43 = vadd.f32 %v21716_v15, %v31830_v12  ;;  %v30037_v35 = vadd.f32 %v29891_v61, %v12650_v9  ;;  %v30045_v32 = vpop.f32.mrf.mxu0  ;;  %v22673_v61 = vld [vmem:[%s31152_s1 + $0x420] sm:$0xff]  }
 0x4e0   : > { %v12652_v22 = vpop.f32.mrf.mxu1  ;;  %v22679_v15 = vld [vmem:[%s31155_s4 + $0x20] ss:$8 sps:$4 sm:$0xff]  }
 0x4e1   : > { %16875 = vmatpush1.bf16.msra.mxu0 %v22659_v24  ;;  %v12653_v48 = vadd.f32 %v12652_v22, %v29691_v18  ;;  %v30055_v39 = vadd.f32 %v29902_v7, %v12661_v43  ;;  %v30060_v29 = vpop.f32.mrf.mxu0 }
 0x4e2   : > { %16876 = vmatprep.subr.bf16.mxu0 %v22666_v41  ;;  %v21719_v36 = vpop.f32.mrf.mxu1  ;;  %21958 = vmatmul.mubr.msk.bf16.gmra.mxu1 %vm363_vm0, %v22667_v58 }
 0x4e3   : > { %v12674_v14 = vadd.f32 %v21719_v36, %v31831_v0  ;;  %v30065_v19 = vadd.f32 %v29916_v30, %v12653_v48  ;;  %21961 = vmatprep.mubr.msk.bf16.mxu1 %vm363_vm0, %v22672_v38  ;;  %v30069_v18 = vpop.f32.mrf.mxu0  ;;  %v22676_v30 = vld [vmem:[%s31155_s4 + $0x34] ss:$8 sps:$4 sm:$0xff]   ;;  %v22684_v48 = vld [vmem:[%s31155_s4 + $0x10] ss:$8 sps:$4 sm:$0xff]  }
 0x4e4   : > { %22014 = vmatmul.mubr.msk.bf16.gmra.mxu0 %vm363_vm0, %v22668_v45  ;;  %v12665_v7 = vpop.f32.mrf.mxu1  ;;  %v22687_v45 = vld [vmem:[%s31152_s1 + $0x3c8] sm:$0xff]  }
 0x4e5   : > { %16877 = vmatpush1.bf16.msra.mxu0 %v22664_v10  ;;  %22017 = vmatprep.mubr.msk.bf16.mxu0 %vm363_vm0, %v22673_v61  ;;  %v12666_v5 = vadd.f32 %v12665_v7, %v31832_v56  ;;  %v30077_v28 = vadd.f32 %v29926_v23, %v12674_v14  ;;  %v30082_v42 = vpop.f32.mrf.mxu0  ;;  %v22678_v23 = vld [vmem:[%s31152_s1 + $0x428] sm:$0xff]   ;;  %v22691_v14 = vld [vmem:[#allocation2 + $0x4] ss:$16 sps:$4 sm:$0xff]   ;;  %v31835_v56 = vld [vmem:[#allocation134_spill] sm:$0xff] }
 0x4e6   : > { %16878 = vmatprep.subr.bf16.mxu0 %v22671_v27  ;;  %v21720_v51 = vpop.f32.mrf.mxu1  ;;  %v22694_v27 = vld [vmem:[%s31155_s4 + $0x4] ss:$8 sps:$4 sm:$0xff]  }
 0x4e7   : > { %v12677_v40 = vadd.f32 %v21720_v51, %v31833_v4  ;;  %v30089_v2 = vadd.f32 %v29932_v31, %v12666_v5  ;;  %v30097_v11 = vpop.f32.mrf.mxu0  ;;  %v22683_v31 = vld [vmem:[%s31152_s1 + $0x430] sm:$0xff]  }
 0x4e8   : > { %v12668_v50 = vpop.f32.mrf.mxu1 }
 0x4e9   : > { %16879 = vmatpush1.bf16.msra.mxu0 %v22669_v57  ;;  %v12669_v37 = vadd.f32 %v12668_v50, %v29756_v46  ;;  %v30107_v59 = vadd.f32 %v29946_v63, %v12677_v40  ;;  %v30112_v24 = vpop.f32.mrf.mxu0 }
 0x4ea   : > { %16880 = vmatprep.subr.bf16.mxu0 %v22676_v30  ;;  %v21723_v21 = vpop.f32.mrf.mxu1  ;;  %21962 = vmatmul.mubr.msk.bf16.gmra.mxu1 %vm363_vm0, %v22677_v49  ;;  %v22698_v49 = vld [vmem:[%s31155_s4 + $0xf4] ss:$8 sps:$4 sm:$0xff]  }
 0x4eb   : > { %v12690_v9 = vadd.f32 %v21723_v21, %v29769_v54  ;;  %v30117_v41 = vadd.f32 %v29952_v55, %v12669_v37  ;;  %21989 = vmatprep.mubr.msk.bf16.mxu1 %vm363_vm0, %v22682_v16  ;;  %v30121_v46 = vpop.f32.mrf.mxu0  ;;  %v22686_v55 = vld [vmem:[%s31155_s4 + $0x14] ss:$8 sps:$4 sm:$0xff]   ;;  %v22703_v16 = vld [vmem:[%s31152_s1 + $0x3e0] sm:$0xff]  }
 0x4ec   : > { %22018 = vmatmul.mubr.msk.bf16.gmra.mxu0 %vm363_vm0, %v22678_v23  ;;  %v12681_v63 = vpop.f32.mrf.mxu1  ;;  %v22699_v23 = vld [vmem:[%s31152_s1 + $0x3d8] sm:$0xff]  }
 0x4ed   : > { %16881 = vmatpush1.bf16.msra.mxu0 %v22674_v44  ;;  %22021 = vmatprep.mubr.msk.bf16.mxu0 %vm363_vm0, %v22683_v31  ;;  %v12682_v58 = vadd.f32 %v12681_v63, %v29781_v17  ;;  %v30129_v54 = vadd.f32 %v29963_v53, %v12690_v9  ;;  %v30134_v12 = vpop.f32.mrf.mxu0  ;;  %v22688_v17 = vld [vmem:[%s31152_s1 + $0x438] sm:$0xff]   ;;  %v22695_v53 = vld [vmem:[%s31152_s1 + $0x3d0] sm:$0xff]   ;;  %v22700_v63 = vld [vmem:[%s31155_s4 + $0xe0] ss:$8 sps:$4 sm:$0xff]  }
 0x4ee   : > { %16882 = vmatprep.subr.bf16.mxu0 %v22681_v62  ;;  %v21724_v43 = vpop.f32.mrf.mxu1  ;;  %v22696_v44 = vld [vmem:[%s31155_s4 + $0xf0] ss:$8 sps:$4 sm:$0xff]  }
 0x4ef   : > { %v12693_v38 = vadd.f32 %v21724_v43, %v29801_v33  ;;  %v30141_v22 = vadd.f32 %v29972_v13, %v12682_v58  ;;  %v30149_v10 = vpop.f32.mrf.mxu0  ;;  %v22707_v43 = vld [vmem:[%s31152_s1 + $0x3e8] sm:$0xff]  }
 0x4f0   : > { %v12684_v61 = vpop.f32.mrf.mxu1 }
 0x4f1   : > { %16883 = vmatpush1.bf16.msra.mxu0 %v22679_v15  ;;  %v12685_v33 = vadd.f32 %v12684_v61, %v29815_v26  ;;  %v30156_v13 = vadd.f32 %v29992_v6, %v12693_v38  ;;  %v30161_v36 = vpop.f32.mrf.mxu0  ;;  %v31834_v6 = vld [vmem:[#allocation135_spill] sm:$0xff] }
 0x4f2   : > { %16884 = vmatprep.subr.bf16.mxu0 %v22686_v55  ;;  %v21751_v0 = vpop.f32.mrf.mxu1  ;;  %21990 = vmatmul.mubr.msk.bf16.vlgmr.msra.gmra.mxu1 %vm363_vm0, %v22687_v45  ;;  %v15835_v5 = vsel %vm3828_vm15, %v31835_v56, %v31834_v6 }
 0x4f3   : > { %v30165_v7 = vadd.f32 %v30007_v3, %v12685_v33  ;;  %v13092_v57 = vadd.f32 %v21751_v0, %v29970_v34  ;;  %21993 = vmatprep.mubr.msk.bf16.mxu1 %vm363_vm0, %v22695_v53  ;;  %v30170_v26 = vpop.f32.mrf.mxu0  ;;  %v22692_v3 = vld [vmem:[%s31155_s4] ss:$8 sps:$4 sm:$0xff]   ;;  %22026 = vmatpush3.bf16.msra.mxu1 %v29980_v47  ;;  %v22704_v53 = vld [vmem:[%s31155_s4 + $0xd0] ss:$8 sps:$4 sm:$0xff]  }
 0x4f4   : > { %22022 = vmatmul.mubr.msk.bf16.gmra.mxu0 %vm363_vm0, %v22688_v17  ;;  %v13027_v30 = vpop.f32.mrf.mxu1  ;;  %22027 = vmatprep.subr.bf16.mxu1 %v15835_v5 }
 0x4f5   : > { %16885 = vmatpush1.bf16.msra.mxu0 %v22684_v48  ;;  %16904 = vmatprep.mubr.bf16.mxu0 %v22691_v14  ;;  %v13090_v51 = vadd.f32 %v13027_v30, %v29984_v8  ;;  %v30180_v34 = vadd.f32 %v30017_v1, %v13092_v57  ;;  %v30186_v4 = vpop.f32.mrf.mxu0  ;;  %v22708_v14 = vld [vmem:[%s31155_s4 + $0xc0] ss:$8 sps:$4 sm:$0xff]  }
 0x4f6   : > { %16886 = vmatprep.subr.bf16.mxu0 %v22694_v27  ;;  %v21752_v40 = vpop.f32.mrf.mxu1 }
 0x4f7   : > { %v13093_v8 = vadd.f32 %v21752_v40, %v30002_v60  ;;  %v30193_v1 = vadd.f32 %v30030_v20, %v13090_v51  ;;  %v30198_v50 = vpop.f32.mrf.mxu0  ;;  %v22702_v60 = vld [vmem:[%s31155_s4 + $0xe4] ss:$8 sps:$4 sm:$0xff]   ;;  %22028 = vmatpush3.bf16.msra.mxu1 %v15835_v5  ;;  %v22715_v5 = vld [vmem:[%s31152_s1 + $0x3f8] sm:$0xff]  }
 0x4f8   : > { %v13030_v47 = vpop.f32.mrf.mxu1 }
 0x4f9   : > { %16887 = vmatpush1.bf16.msra.mxu0 %v22692_v3  ;;  %v13091_v31 = vadd.f32 %v13030_v47, %v30013_v52  ;;  %v30205_v37 = vadd.f32 %v30045_v32, %v13093_v8  ;;  %v30210_v20 = vpop.f32.mrf.mxu0 }
 0x4fa   : > { %16888 = vmatprep.subr.bf16.mxu0 %v22698_v49  ;;  %v21755_v62 = vpop.f32.mrf.mxu1  ;;  %21994 = vmatmul.mubr.msk.bf16.gmra.mxu1 %vm363_vm0, %v22699_v23  ;;  %v22712_v49 = vld [vmem:[%s31155_s4 + $0xb0] ss:$8 sps:$4 sm:$0xff]  }
 0x4fb   : > { %v13096_v21 = vadd.f32 %v21755_v62, %v30025_v25  ;;  %v30215_v9 = vadd.f32 %v30060_v29, %v13091_v31  ;;  %21997 = vmatprep.mubr.msk.bf16.mxu1 %vm363_vm0, %v22703_v16  ;;  %v30218_v52 = vpop.f32.mrf.mxu0  ;;  %v22706_v25 = vld [vmem:[%s31155_s4 + $0xd4] ss:$8 sps:$4 sm:$0xff]  }
 0x4fc   : > { %v13043_v32 = vpop.f32.mrf.mxu1 }
 0x4fd   : > { %16889 = vmatpush2.bf16.msra.mxu0 %v22696_v44  ;;  %v13094_v15 = vadd.f32 %v13043_v32, %v30037_v35  ;;  %v30225_v58 = vadd.f32 %v30069_v18, %v13096_v21  ;;  %v30230_v29 = vpop.f32.mrf.mxu0  ;;  %v22711_v35 = vld [vmem:[%s31152_s1 + $0x3f0] sm:$0xff]   ;;  %v22716_v44 = vld [vmem:[%s31155_s4 + $0xa0] ss:$8 sps:$4 sm:$0xff]  }
 0x4fe   : > { %16890 = vmatprep.subr.bf16.mxu0 %v22702_v60  ;;  %v21756_v55 = vpop.f32.mrf.mxu1  ;;  %v22723_v21 = vld [vmem:[%s31152_s1 + $0x448] sm:$0xff]  }
 0x4ff   : > { %v13097_v45 = vadd.f32 %v21756_v55, %v30055_v39  ;;  %v30237_v38 = vadd.f32 %v30082_v42, %v13094_v15  ;;  %v30242_v18 = vpop.f32.mrf.mxu0  ;;  %v22710_v39 = vld [vmem:[%s31155_s4 + $0xc4] ss:$8 sps:$4 sm:$0xff]  }
 0x500   : > { %v13046_v17 = vpop.f32.mrf.mxu1 }
 0x501   : > { %16891 = vmatpush2.bf16.msra.mxu0 %v22700_v63  ;;  %v13095_v61 = vadd.f32 %v13046_v17, %v30065_v19  ;;  %v30249_v48 = vadd.f32 %v30097_v11, %v13097_v45  ;;  %v30254_v42 = vpop.f32.mrf.mxu0 }
 0x502   : > { %16892 = vmatprep.subr.bf16.mxu0 %v22706_v25  ;;  %v21759_v33 = vpop.f32.mrf.mxu1  ;;  %21998 = vmatmul.mubr.msk.bf16.gmra.mxu1 %vm363_vm0, %v22707_v43  ;;  %v22720_v25 = vld [vmem:[%s31155_s4 + $0x90] ss:$8 sps:$4 sm:$0xff]  }
 0x503   : > { %v13100_v27 = vadd.f32 %v21759_v33, %v30077_v28  ;;  %v30259_v0 = vadd.f32 %v30112_v24, %v13095_v61  ;;  %22001 = vmatprep.mubr.msk.bf16.mxu1 %vm363_vm0, %v22711_v35  ;;  %v30262_v19 = vpop.f32.mrf.mxu0  ;;  %v22714_v28 = vld [vmem:[%s31155_s4 + $0xb4] ss:$8 sps:$4 sm:$0xff]  }
 0x504   : > { %v13059_v11 = vpop.f32.mrf.mxu1 }
 0x505   : > { %16893 = vmatpush2.bf16.msra.mxu0 %v22704_v53  ;;  %v13098_v57 = vadd.f32 %v13059_v11, %v30089_v2  ;;  %v30269_v6 = vadd.f32 %v30121_v46, %v13100_v27  ;;  %v30274_v24 = vpop.f32.mrf.mxu0  ;;  %v22719_v2 = vld [vmem:[%s31152_s1 + $0x440] sm:$0xff]  }
 0x506   : > { %16894 = vmatprep.subr.bf16.mxu0 %v22710_v39  ;;  %v21760_v56 = vpop.f32.mrf.mxu1  ;;  %v22724_v53 = vld [vmem:[%s31155_s4 + $0x80] ss:$8 sps:$4 sm:$0xff]  }
 0x507   : > { %v13101_v30 = vadd.f32 %v21760_v56, %v30107_v59  ;;  %v30281_v3 = vadd.f32 %v30134_v12, %v13098_v57  ;;  %v30286_v46 = vpop.f32.mrf.mxu0  ;;  %v22718_v59 = vld [vmem:[%s31155_s4 + $0xa4] ss:$8 sps:$4 sm:$0xff]   ;;  %v22689_v57 = vld [vmem:[#allocation2] ss:$16 sps:$4 sm:$0xff]  }
 0x508   : > { %v13062_v51 = vpop.f32.mrf.mxu1 }
 0x509   : > { %16895 = vmatpush2.bf16.msra.mxu0 %v22708_v14  ;;  %v13099_v40 = vadd.f32 %v13062_v51, %v30117_v41  ;;  %v30293_v23 = vadd.f32 %v30149_v10, %v13101_v30  ;;  %v30298_v12 = vpop.f32.mrf.mxu0 }
 0x50a   : > { %16896 = vmatprep.subr.bf16.mxu0 %v22714_v28  ;;  %v21763_v8 = vpop.f32.mrf.mxu1  ;;  %22002 = vmatmul.mubr.msk.bf16.gmra.mxu1 %vm363_vm0, %v22715_v5 }
 0x50b   : > { %v13104_v16 = vadd.f32 %v21763_v8, %v30129_v54  ;;  %v30303_v47 = vadd.f32 %v30161_v36, %v13099_v40  ;;  %22029 = vmatprep.mubr.msk.bf16.mxu1 %vm363_vm0, %v22719_v2  ;;  %v30306_v41 = vpop.f32.mrf.mxu0  ;;  %v22722_v54 = vld [vmem:[%s31155_s4 + $0x94] ss:$8 sps:$4 sm:$0xff]  }
 0x50c   : > { %v13075_v10 = vpop.f32.mrf.mxu1 }
 0x50d   : > { %16897 = vmatpush2.bf16.msra.mxu0 %v22712_v49  ;;  %v13102_v31 = vadd.f32 %v13075_v10, %v30141_v22  ;;  %v30313_v60 = vadd.f32 %v30170_v26, %v13104_v16  ;;  %v30318_v36 = vpop.f32.mrf.mxu0  ;;  %v22727_v22 = vld [vmem:[%s31152_s1 + $0x450] sm:$0xff]  }
 0x50e   : > { %16898 = vmatprep.subr.bf16.mxu0 %v22718_v59  ;;  %v21764_v62 = vpop.f32.mrf.mxu1  ;;  %v22737_v16 = vld [vmem:[%s31152_s1 + $0x470] sm:$0xff]  }
 0x50f   : > { %v13105_v32 = vadd.f32 %v21764_v62, %v30156_v13  ;;  %v30325_v63 = vadd.f32 %v30186_v4, %v13102_v31  ;;  %v30330_v26 = vpop.f32.mrf.mxu0  ;;  %v22726_v13 = vld [vmem:[%s31155_s4 + $0x84] ss:$8 sps:$4 sm:$0xff]   ;;  %v22729_v10 = vld [vmem:[#allocation2 + $0x20] ss:$16 sps:$4 sm:$0xff]  }
 0x510   : > { %v13078_v15 = vpop.f32.mrf.mxu1 }
 0x511   : > { %16899 = vmatpush2.bf16.msra.mxu0 %v22716_v44  ;;  %v13103_v55 = vadd.f32 %v13078_v15, %v30165_v7  ;;  %v30337_v43 = vadd.f32 %v30198_v50, %v13105_v32  ;;  %v30342_v4 = vpop.f32.mrf.mxu0 }
 0x512   : > { %16900 = vmatprep.subr.bf16.mxu0 %v22722_v54  ;;  %v21791_v45 = vpop.f32.mrf.mxu1  ;;  %22030 = vmatmul.mubr.msk.bf16.vlgmr.msra.gmra.mxu1 %vm363_vm0, %v22723_v21 }
 0x513   : > { %v30346_v35 = vadd.f32 %v30210_v20, %v13103_v55  ;;  %v13502_v17 = vadd.f32 %v21791_v45, %v30180_v34  ;;  %22033 = vmatprep.mubr.msk.bf16.mxu1 %vm363_vm0, %v22727_v22  ;;  %v30350_v7 = vpop.f32.mrf.mxu0  ;;  %v22728_v34 = vld [vmem:[%s31152_s1 + $0x458] sm:$0xff]  }
 0x514   : > { %v13437_v50 = vpop.f32.mrf.mxu1 }
 0x515   : > { %16901 = vmatpush2.bf16.msra.mxu0 %v22720_v25  ;;  %v13500_v61 = vadd.f32 %v13437_v50, %v30193_v1  ;;  %v30357_v39 = vadd.f32 %v30218_v52, %v13502_v17  ;;  %v30359_v20 = vpop.f32.mrf.mxu0  ;;  %v22732_v1 = vld [vmem:[%s31152_s1 + $0x460] sm:$0xff]  }
 0x516   : > { %16902 = vmatprep.subr.bf16.mxu0 %v22726_v13  ;;  %v21792_v33 = vpop.f32.mrf.mxu1  ;;  %v22734_v17 = vld [vmem:[#allocation2 + $0x40] ss:$16 sps:$4 sm:$0xff]  }
 0x517   : > { %v13503_v27 = vadd.f32 %v21792_v33, %v30205_v37  ;;  %v30366_v11 = vadd.f32 %v30230_v29, %v13500_v61  ;;  %v30371_v14 = vpop.f32.mrf.mxu0  ;;  %v22731_v29 = vld [vmem:[#allocation2 + $0x24] ss:$16 sps:$4 sm:$0xff]  }
 0x518   : > { %v13440_v52 = vpop.f32.mrf.mxu1  ;;  %v22741_v61 = vld [vmem:[#allocation2 + $0x64] ss:$16 sps:$4 sm:$0xff]  }
 0x519   : > { %16903 = vmatpush2.bf16.msra.mxu0 %v22724_v53  ;;  %v30374_v28 = vadd.f32 %v30242_v18, %v13503_v27  ;;  %v13501_v56 = vadd.f32 %v13440_v52, %v30215_v9  ;;  %v30377_v5 = vpop.f32.mrf.mxu0  ;;  %v22756_v52 = vld [vmem:[%s31155_s4 + $0x174] ss:$8 sps:$4 sm:$0xff]  }
 0x51a   : > { %v21795_v37 = vpop.f32.mrf.mxu1  ;;  %22034 = vmatmul.mubr.msk.bf16.gmra.mxu1 %vm363_vm0, %v22728_v34  ;;  %16985 = vmatprep.subr.bf16.mxu1 %v22756_v52 }
 0x51b   : > { %v13506_v30 = vadd.f32 %v21795_v37, %v30225_v58  ;;  %v30382_v2 = vadd.f32 %v30254_v42, %v13501_v56  ;;  %22037 = vmatprep.mubr.msk.bf16.mxu1 %vm363_vm0, %v22732_v1  ;;  %v30385_v51 = vpop.f32.mrf.mxu0  ;;  %v22733_v58 = vld [vmem:[%s31152_s1 + $0x468] sm:$0xff]   ;;  %v22739_v56 = vld [vmem:[#allocation2 + $0x60] ss:$16 sps:$4 sm:$0xff]  }
 0x51c   : > { %16905 = vmatmul.mubr.bf16.vlgmr.msra.gmra.mxu0 %v22689_v57  ;;  %v13453_v18 = vpop.f32.mrf.mxu1 }
 0x51d   : > { %16914 = vmatprep.mubr.bf16.mxu0 %v22731_v29  ;;  %v13504_v9 = vadd.f32 %v13453_v18, %v30237_v38  ;;  %v30389_v49 = vadd.f32 %v30262_v19, %v13506_v30  ;;  %v30391_v40 = vpop.f32.mrf.mxu0  ;;  %v22759_v18 = vld [vmem:[%s31155_s4 + $0x164] ss:$8 sps:$4 sm:$0xff]  }
 0x51e   : > { %v21796_v59 = vpop.f32.mrf.mxu1 }
 0x51f   : > { %v13507_v42 = vadd.f32 %v21796_v59, %v30249_v48  ;;  %v30398_v8 = vadd.f32 %v30274_v24, %v13504_v9  ;;  %v30403_v38 = vpop.f32.mrf.mxu0  ;;  %v22736_v48 = vld [vmem:[#allocation2 + $0x44] ss:$16 sps:$4 sm:$0xff]  }
 0x520   : > { %v13456_v19 = vpop.f32.mrf.mxu1 }
 0x521   : > { %v13505_v44 = vadd.f32 %v13456_v19, %v30259_v0  ;;  %v30407_v31 = vadd.f32 %v30286_v46, %v13507_v42  ;;  %v30409_v54 = vpop.f32.mrf.mxu0 }
 0x522   : > { %v21799_v62 = vpop.f32.mrf.mxu1  ;;  %22038 = vmatmul.mubr.msk.bf16.gmra.mxu1 %vm363_vm0, %v22733_v58 }
 0x523   : > { %v13510_v24 = vadd.f32 %v21799_v62, %v30269_v6  ;;  %v30414_v21 = vadd.f32 %v30298_v12, %v13505_v44  ;;  %22041 = vmatprep.mubr.msk.bf16.mxu1 %vm363_vm0, %v22737_v16  ;;  %v30417_v32 = vpop.f32.mrf.mxu0  ;;  %v22738_v6 = vld [vmem:[%s31152_s1 + $0x478] sm:$0xff]  }
 0x524   : > { %16915 = vmatmul.mubr.bf16.gmra.mxu0 %v22729_v10  ;;  %v13469_v0 = vpop.f32.mrf.mxu1 }
 0x525   : > { %16924 = vmatprep.mubr.bf16.mxu0 %v22736_v48  ;;  %v13508_v46 = vadd.f32 %v13469_v0, %v30281_v3  ;;  %v30421_v22 = vadd.f32 %v30306_v41, %v13510_v24  ;;  %v30423_v15 = vpop.f32.mrf.mxu0  ;;  %v22742_v48 = vld [vmem:[#allocation2 + $0x80] ss:$16 sps:$4 sm:$0xff]  }
 0x526   : > { %v21800_v25 = vpop.f32.mrf.mxu1 }
 0x527   : > { %v13511_v12 = vadd.f32 %v21800_v25, %v30293_v23  ;;  %v30430_v55 = vadd.f32 %v30318_v36, %v13508_v46  ;;  %v30432_v13 = vpop.f32.mrf.mxu0  ;;  %v22747_v46 = vld [vmem:[#allocation2 + $0xa4] ss:$16 sps:$4 sm:$0xff]  }
 0x528   : > { %v13472_v45 = vpop.f32.mrf.mxu1 }
 0x529   : > { %v13509_v3 = vadd.f32 %v13472_v45, %v30303_v47  ;;  %v30436_v41 = vadd.f32 %v30330_v26, %v13511_v12  ;;  %v30438_v50 = vpop.f32.mrf.mxu0  ;;  %v22763_v12 = vld [vmem:[%s31155_s4 + $0x140] ss:$8 sps:$4 sm:$0xff]  }
 0x52a   : > { %v21803_v53 = vpop.f32.mrf.mxu1  ;;  %22042 = vmatmul.mubr.msk.bf16.gmra.mxu1 %vm363_vm0, %v22738_v6 }
 0x52b   : > { %v13514_v23 = vadd.f32 %v21803_v53, %v30313_v60  ;;  %v30443_v36 = vadd.f32 %v30342_v4, %v13509_v3  ;;  %v30445_v33 = vpop.f32.mrf.mxu0 }
 0x52c   : > { %16925 = vmatmul.mubr.bf16.gmra.mxu0 %v22734_v17  ;;  %v13485_v34 = vpop.f32.mrf.mxu1 }
 0x52d   : > { %16934 = vmatprep.mubr.bf16.mxu0 %v22741_v61  ;;  %v13512_v47 = vadd.f32 %v13485_v34, %v30325_v63  ;;  %v30449_v26 = vadd.f32 %v30350_v7, %v13514_v23  ;;  %v30451_v27 = vpop.f32.mrf.mxu0  ;;  %v22754_v63 = vld [vmem:[%s31155_s4 + $0x170] ss:$8 sps:$4 sm:$0xff]  }
 0x52e   : > { %v21804_v1 = vpop.f32.mrf.mxu1  ;;  %16986 = vmatpush1.bf16.msra.mxu1 %v22754_v63 }
 0x52f   : > { %v13515_v60 = vadd.f32 %v21804_v1, %v30337_v43  ;;  %v30458_v4 = vadd.f32 %v30359_v20, %v13512_v47  ;;  %v30460_v57 = vpop.f32.mrf.mxu0  ;;  %v22744_v20 = vld [vmem:[#allocation2 + $0x84] ss:$16 sps:$4 sm:$0xff]   ;;  %16987 = vmatprep.subr.bf16.mxu1 %v22759_v18  ;;  %v22745_v47 = vld [vmem:[#allocation2 + $0xa0] ss:$16 sps:$4 sm:$0xff]  }
 0x530   : > { %v13488_v7 = vpop.f32.mrf.mxu1 }
 0x531   : > { %v13513_v37 = vadd.f32 %v13488_v7, %v30346_v35  ;;  %v30467_v29 = vadd.f32 %v30371_v14, %v13515_v60  ;;  %v30469_v30 = vpop.f32.mrf.mxu0  ;;  %v22757_v35 = vld [vmem:[%s31155_s4 + $0x160] ss:$8 sps:$4 sm:$0xff]   ;;  %v22750_v60 = vld [vmem:[#allocation2 + $0xc4] ss:$16 sps:$4 sm:$0xff]  }
 0x532   : > { %v21831_v43 = vpop.f32.mrf.mxu1  ;;  %16988 = vmatpush1.bf16.msra.mxu1 %v22757_v35 }
 0x533   : > { %v30475_v9 = vadd.f32 %v30377_v5, %v13513_v37  ;;  %v13912_v59 = vadd.f32 %v21831_v43, %v30357_v39  ;;  %v30478_v58 = vpop.f32.mrf.mxu0  ;;  %v22762_v39 = vld [vmem:[%s31155_s4 + $0x154] ss:$8 sps:$4 sm:$0xff]  }
 0x534   : > { %16935 = vmatmul.mubr.bf16.gmra.mxu0 %v22739_v56  ;;  %v13847_v14 = vpop.f32.mrf.mxu1  ;;  %16989 = vmatprep.subr.bf16.mxu1 %v22762_v39  ;;  %v22769_v56 = vld [vmem:[%s31155_s4 + $0x120] ss:$8 sps:$4 sm:$0xff]  }
 0x535   : > { %16944 = vmatprep.mubr.bf16.mxu0 %v22744_v20  ;;  %v13910_v42 = vadd.f32 %v13847_v14, %v30366_v11  ;;  %v30485_v16 = vadd.f32 %v30385_v51, %v13912_v59  ;;  %v30487_v19 = vpop.f32.mrf.mxu0  ;;  %v22760_v11 = vld [vmem:[%s31155_s4 + $0x150] ss:$8 sps:$4 sm:$0xff]  }
 0x536   : > { %v21832_v5 = vpop.f32.mrf.mxu1  ;;  %16990 = vmatpush1.bf16.msra.mxu1 %v22760_v11 }
 0x537   : > { %v13913_v10 = vadd.f32 %v21832_v5, %v30374_v28  ;;  %v30494_v44 = vadd.f32 %v30391_v40, %v13910_v42  ;;  %v30496_v62 = vpop.f32.mrf.mxu0  ;;  %v22765_v40 = vld [vmem:[%s31155_s4 + $0x144] ss:$8 sps:$4 sm:$0xff]   ;;  %v22748_v42 = vld [vmem:[#allocation2 + $0xc0] ss:$16 sps:$4 sm:$0xff]  }
 0x538   : > { %v30501_v51 = vpop.f32.mrf.mxu1  ;;  %16991 = vmatprep.subr.bf16.mxu1 %v22765_v40 }
 0x539   : > { %v30504_v24 = vadd.f32 %v30403_v38, %v13913_v10  ;;  %v30506_v0 = vpop.f32.mrf.mxu0  ;;  %v22753_v10 = vld [vmem:[#allocation2 + $0xe4] ss:$16 sps:$4 sm:$0xff]  }
 0x53a   : > { %v21835_v28 = vpop.f32.mrf.mxu1  ;;  %16992 = vmatpush1.bf16.msra.mxu1 %v22763_v12 }
 0x53b   : > { %v13916_v25 = vadd.f32 %v21835_v28, %v30389_v49  ;;  %v30512_v6 = vpop.f32.mrf.mxu0  ;;  %v22768_v49 = vld [vmem:[%s31155_s4 + $0x134] ss:$8 sps:$4 sm:$0xff]   ;;  %v22775_v28 = vld [vmem:[%s31155_s4 + $0x100] ss:$8 sps:$4 sm:$0xff]  }
 0x53c   : > { %16945 = vmatmul.mubr.bf16.gmra.mxu0 %v22742_v48  ;;  %v13863_v38 = vpop.f32.mrf.mxu1  ;;  %16993 = vmatprep.subr.bf16.mxu1 %v22768_v49  ;;  %v22751_v49 = vld [vmem:[#allocation2 + $0xe0] ss:$16 sps:$4 sm:$0xff]  }
 0x53d   : > { %16954 = vmatprep.mubr.bf16.mxu0 %v22747_v46  ;;  %v13914_v45 = vadd.f32 %v13863_v38, %v30398_v8  ;;  %v30519_v17 = vadd.f32 %v30417_v32, %v13916_v25  ;;  %v30521_v3 = vpop.f32.mrf.mxu0  ;;  %v22766_v8 = vld [vmem:[%s31155_s4 + $0x130] ss:$8 sps:$4 sm:$0xff]  }
 0x53e   : > { %v21836_v53 = vpop.f32.mrf.mxu1  ;;  %16994 = vmatpush1.bf16.msra.mxu1 %v22766_v8 }
 0x53f   : > { %v13917_v61 = vadd.f32 %v21836_v53, %v30407_v31  ;;  %v30528_v23 = vadd.f32 %v30423_v15, %v13914_v45  ;;  %v30530_v34 = vpop.f32.mrf.mxu0  ;;  %v22771_v15 = vld [vmem:[%s31155_s4 + $0x124] ss:$8 sps:$4 sm:$0xff]  }
 0x540   : > { %v30535_v32 = vpop.f32.mrf.mxu1  ;;  %16995 = vmatprep.subr.bf16.mxu1 %v22771_v15 }
 0x541   : > { %v30538_v1 = vadd.f32 %v30432_v13, %v13917_v61  ;;  %v30540_v52 = vpop.f32.mrf.mxu0 }
 0x542   : > { %v21839_v31 = vpop.f32.mrf.mxu1  ;;  %16996 = vmatpush1.bf16.msra.mxu1 %v22769_v56 }
 0x543   : > { %v13920_v63 = vadd.f32 %v21839_v31, %v30421_v22  ;;  %v30546_v7 = vpop.f32.mrf.mxu0  ;;  %v22774_v22 = vld [vmem:[%s31155_s4 + $0x114] ss:$8 sps:$4 sm:$0xff]  }
 0x544   : > { %16955 = vmatmul.mubr.bf16.gmra.mxu0 %v22745_v47  ;;  %v13879_v13 = vpop.f32.mrf.mxu1  ;;  %16997 = vmatprep.subr.bf16.mxu1 %v22774_v22  ;;  %v13911_v47 = vadd.f32 %v30501_v51, %v30382_v2 }
 0x545   : > { %16964 = vmatprep.mubr.bf16.mxu0 %v22750_v60  ;;  %v13918_v37 = vadd.f32 %v13879_v13, %v30430_v55  ;;  %v30553_v43 = vadd.f32 %v30445_v33, %v13920_v63  ;;  %v30555_v20 = vpop.f32.mrf.mxu0  ;;  %v22772_v55 = vld [vmem:[%s31155_s4 + $0x110] ss:$8 sps:$4 sm:$0xff]   ;;  %v31836_v63 = vmov 0  }
 0x546   : > { %v21840_v18 = vpop.f32.mrf.mxu1  ;;  %16998 = vmatpush1.bf16.msra.mxu1 %v22772_v55  ;;  %v14116_v51 = vadd.f32 %v30409_v54, %v13911_v47 }
 0x547   : > { %v13921_v59 = vadd.f32 %v21840_v18, %v30436_v41  ;;  %v30562_v35 = vadd.f32 %v30451_v27, %v13918_v37  ;;  %v30564_v14 = vpop.f32.mrf.mxu0  ;;  %v22777_v27 = vld [vmem:[%s31155_s4 + $0x104] ss:$8 sps:$4 sm:$0xff]  }
 0x548   : > { %v30569_v33 = vpop.f32.mrf.mxu1  ;;  %16999 = vmatprep.subr.bf16.mxu1 %v22777_v27 }
 0x549   : > { %v30572_v5 = vadd.f32 %v30460_v57, %v13921_v59  ;;  %v30574_v39 = vpop.f32.mrf.mxu0 }
 0x54a   : > { %v21843_v41 = vpop.f32.mrf.mxu1  ;;  %17000 = vmatpush1.bf16.msra.mxu1 %v22775_v28 }
 0x54b   : > { %v13924_v11 = vadd.f32 %v21843_v41, %v30449_v26  ;;  %v30580_v48 = vpop.f32.mrf.mxu0  ;;  %v22780_v26 = vld [vmem:[%s31155_s4 + $0x1f4] ss:$8 sps:$4 sm:$0xff]  }
 0x54c   : > { %16965 = vmatmul.mubr.bf16.gmra.mxu0 %v22748_v42  ;;  %v13895_v57 = vpop.f32.mrf.mxu1  ;;  %17001 = vmatprep.subr.bf16.mxu1 %v22780_v26 }
 0x54d   : > { %16974 = vmatprep.mubr.bf16.mxu0 %v22753_v10  ;;  %v13922_v46 = vadd.f32 %v13895_v57, %v30458_v4  ;;  %v30587_v40 = vadd.f32 %v30478_v58, %v13924_v11  ;;  %v30589_v25 = vpop.f32.mrf.mxu0  ;;  %v22778_v4 = vld [vmem:[%s31155_s4 + $0x1f0] ss:$8 sps:$4 sm:$0xff]  }
 0x54e   : > { %v21844_v12 = vpop.f32.mrf.mxu1  ;;  %17002 = vmatpush2.bf16.msra.mxu1 %v22778_v4 }
 0x54f   : > { %v13925_v38 = vadd.f32 %v21844_v12, %v30467_v29  ;;  %v30596_v45 = vadd.f32 %v30487_v19, %v13922_v46  ;;  %v30598_v53 = vpop.f32.mrf.mxu0  ;;  %v22783_v19 = vld [vmem:[%s31155_s4 + $0x1e4] ss:$8 sps:$4 sm:$0xff]  }
 0x550   : > { %v30603_v58 = vpop.f32.mrf.mxu1  ;;  %17003 = vmatprep.subr.bf16.mxu1 %v22783_v19 }
 0x551   : > { %v30606_v61 = vadd.f32 %v30496_v62, %v13925_v38  ;;  %v30608_v8 = vpop.f32.mrf.mxu0  ;;  %v22781_v62 = vld [vmem:[%s31155_s4 + $0x1e0] ss:$8 sps:$4 sm:$0xff]  }
 0x552   : > { %v21871_v29 = vpop.f32.mrf.mxu1  ;;  %17004 = vmatpush2.bf16.msra.mxu1 %v22781_v62 }
 0x553   : > { %v14322_v31 = vadd.f32 %v21871_v29, %v30485_v16  ;;  %v30616_v60 = vpop.f32.mrf.mxu0  ;;  %v22786_v16 = vld [vmem:[%s31155_s4 + $0x1d4] ss:$8 sps:$4 sm:$0xff]  }
 0x554   : > { %16975 = vmatmul.mubr.bf16.gmra.mxu0 %v22751_v49  ;;  %v14257_v15 = vpop.f32.mrf.mxu1  ;;  %17005 = vmatprep.subr.bf16.mxu1 %v22786_v16 }
 0x555   : > { %17210 = vmatprep.mubr.bf16.mxu0 %v31836_v63  ;;  %v14320_v56 = vadd.f32 %v14257_v15, %v30494_v44  ;;  %v30624_v13 = vadd.f32 %v30512_v6, %v14322_v31  ;;  %v30626_v37 = vpop.f32.mrf.mxu0  ;;  %v22784_v44 = vld [vmem:[%s31155_s4 + $0x1d0] ss:$8 sps:$4 sm:$0xff]  }
 0x556   : > { %v21872_v2 = vpop.f32.mrf.mxu1  ;;  %17006 = vmatpush2.bf16.msra.mxu1 %v22784_v44 }
 0x557   : > { %v14323_v18 = vadd.f32 %v21872_v2, %v30504_v24  ;;  %v30634_v22 = vadd.f32 %v30521_v3, %v14320_v56  ;;  %v30636_v59 = vpop.f32.mrf.mxu0  ;;  %v22789_v24 = vld [vmem:[%s31155_s4 + $0x1c4] ss:$8 sps:$4 sm:$0xff]   ;;  %v13915_v3 = vadd.f32 %v30535_v32, %v30414_v21  ;;  %v22792_v21 = vld [vmem:[%s31155_s4 + $0x1b4] ss:$8 sps:$4 sm:$0xff]  }
 0x558   : > { %v14260_v6 = vpop.f32.mrf.mxu1  ;;  %17007 = vmatprep.subr.bf16.mxu1 %v22789_v24 }
 0x559   : > { %v30641_v55 = vadd.f32 %v14260_v6, %v14116_v51  ;;  %v30644_v42 = vadd.f32 %v30530_v34, %v14323_v18  ;;  %v30646_v41 = vpop.f32.mrf.mxu0  ;;  %v22787_v34 = vld [vmem:[%s31155_s4 + $0x1c0] ss:$8 sps:$4 sm:$0xff]  }
 0x55a   : > { %v21875_v54 = vpop.f32.mrf.mxu1  ;;  %17008 = vmatpush2.bf16.msra.mxu1 %v22787_v34 }
 0x55b   : > { %v14326_v10 = vadd.f32 %v21875_v54, %v30519_v17  ;;  %v30654_v27 = vpop.f32.mrf.mxu0  ;;  %v14120_v17 = vadd.f32 %v30438_v50, %v13915_v3  ;;  %17009 = vmatprep.subr.bf16.mxu1 %v22792_v21  ;;  %v22799_v3 = vld [vmem:[%s31155_s4 + $0x180] ss:$8 sps:$4 sm:$0xff]  }
 0x55c   : > { %v14273_v11 = vpop.f32.mrf.mxu1 }
 0x55d   : > { %v14324_v28 = vadd.f32 %v14273_v11, %v30528_v23  ;;  %v30661_v57 = vadd.f32 %v30546_v7, %v14326_v10  ;;  %v30663_v46 = vpop.f32.mrf.mxu0  ;;  %v22790_v23 = vld [vmem:[%s31155_s4 + $0x1b0] ss:$8 sps:$4 sm:$0xff]  }
 0x55e   : > { %v21876_v12 = vpop.f32.mrf.mxu1  ;;  %17010 = vmatpush2.bf16.msra.mxu1 %v22790_v23 }
 0x55f   : > { %v14327_v32 = vadd.f32 %v21876_v12, %v30538_v1  ;;  %v30671_v26 = vadd.f32 %v30555_v20, %v14324_v28  ;;  %v30673_v38 = vpop.f32.mrf.mxu0  ;;  %v22795_v1 = vld [vmem:[%s31155_s4 + $0x1a4] ss:$8 sps:$4 sm:$0xff]   ;;  %v13919_v20 = vadd.f32 %v30569_v33, %v30443_v36  ;;  %v22798_v36 = vld [vmem:[%s31155_s4 + $0x194] ss:$8 sps:$4 sm:$0xff]  }
 0x560   : > { %v14276_v7 = vpop.f32.mrf.mxu1  ;;  %17011 = vmatprep.subr.bf16.mxu1 %v22795_v1  ;;  %v14526_v1 = vadd.f32 %v30540_v52, %v30641_v55 }
 0x561   : > { %v30678_v4 = vadd.f32 %v14276_v7, %v14120_v17  ;;  %v30681_v49 = vadd.f32 %v30564_v14, %v14327_v32  ;;  %v30683_v29 = vpop.f32.mrf.mxu0  ;;  %v22793_v14 = vld [vmem:[%s31155_s4 + $0x1a0] ss:$8 sps:$4 sm:$0xff]  }
 0x562   : > { %v21879_v50 = vpop.f32.mrf.mxu1  ;;  %17012 = vmatpush2.bf16.msra.mxu1 %v22793_v14 }
 0x563   : > { %v14330_v19 = vadd.f32 %v21879_v50, %v30553_v43  ;;  %v30691_v47 = vpop.f32.mrf.mxu0  ;;  %v14124_v43 = vadd.f32 %v30469_v30, %v13919_v20  ;;  %17013 = vmatprep.subr.bf16.mxu1 %v22798_v36  ;;  %v22801_v30 = vld [vmem:[%s31155_s4 + $0x184] ss:$8 sps:$4 sm:$0xff]  }
 0x564   : > { %v14289_v31 = vpop.f32.mrf.mxu1 }
 0x565   : > { %v14328_v62 = vadd.f32 %v14289_v31, %v30562_v35  ;;  %v30698_v15 = vadd.f32 %v30580_v48, %v14330_v19  ;;  %v30700_v56 = vpop.f32.mrf.mxu0  ;;  %v22796_v35 = vld [vmem:[%s31155_s4 + $0x190] ss:$8 sps:$4 sm:$0xff]  }
 0x566   : > { %v21880_v2 = vpop.f32.mrf.mxu1  ;;  %17014 = vmatpush2.bf16.msra.mxu1 %v22796_v35 }
 0x567   : > { %v14331_v33 = vadd.f32 %v21880_v2, %v30572_v5  ;;  %v14533_v16 = vadd.f32 %v30589_v25, %v14328_v62  ;;  %v30708_v51 = vpop.f32.mrf.mxu0  ;;  %v13923_v5 = vadd.f32 %v30603_v58, %v30475_v9  ;;  %17015 = vmatprep.subr.bf16.mxu1 %v22801_v30 }
 0x568   : > { %v14292_v48 = vpop.f32.mrf.mxu1 }
 0x569   : > { %v14329_v18 = vadd.f32 %v14292_v48, %v14124_v43  ;;  %v14536_v44 = vadd.f32 %v30598_v53, %v14331_v33  ;;  %v30714_v6 = vpop.f32.mrf.mxu0  ;;  %v14128_v9 = vadd.f32 %v30506_v0, %v13923_v5 }
 0x56a   : > { %v21883_v54 = vpop.f32.mrf.mxu1  ;;  %17016 = vmatpush2.bf16.msra.mxu1 %v22799_v3 }
 0x56b   : > { %v14334_v25 = vadd.f32 %v21883_v54, %v30587_v40  ;;  %v30722_v24 = vpop.f32.mrf.mxu0 }
 0x56c   : > { %v14305_v53 = vpop.f32.mrf.mxu1 }
 0x56d   : > { %v14332_v10 = vadd.f32 %v14305_v53, %v30596_v45  ;;  %v14539_v34 = vadd.f32 %v30616_v60, %v14334_v25  ;;  %v30729_v11 = vpop.f32.mrf.mxu0 }
 0x56e   : > { %v21884_v28 = vpop.f32.mrf.mxu1 }
 0x56f   : > { %v14335_v40 = vadd.f32 %v21884_v28, %v30606_v61  ;;  %v14537_v58 = vadd.f32 %v30626_v37, %v14332_v10  ;;  %v30734_v12 = vpop.f32.mrf.mxu0 }
 0x570   : > { %v14308_v21 = vpop.f32.mrf.mxu1 }
 0x571   : > { %v14333_v17 = vadd.f32 %v14308_v21, %v14128_v9  ;;  %v14540_v32 = vadd.f32 %v30636_v59, %v14335_v40  ;;  %v30737_v23 = vpop.f32.mrf.mxu0 }
 0x572   : > { %v21911_v45 = vpop.f32.mrf.mxu1 }
 0x573   : > { %v30740_v60 = vadd.f32 %v21911_v45, %v30624_v13  ;;  %v30742_v7 = vpop.f32.mrf.mxu0 }
 0x574   : > { %v14667_v50 = vpop.f32.mrf.mxu1 }
 0x575   : > { %v30745_v0 = vadd.f32 %v14667_v50, %v30634_v22  ;;  %v30747_v61 = vpop.f32.mrf.mxu0  ;;  %v14538_v50 = vadd.f32 %v30646_v41, %v14333_v17 }
 0x576   : > { %v21912_v37 = vpop.f32.mrf.mxu1 }
 0x577   : > { %v30752_v59 = vadd.f32 %v21912_v37, %v30644_v42  ;;  %v30754_v20 = vpop.f32.mrf.mxu0  ;;  %v14530_v42 = vadd.f32 %v30574_v39, %v30678_v4 }
 0x578   : > { %v14670_v19 = vpop.f32.mrf.mxu1 }
 0x579   : > { %v30756_v13 = vadd.f32 %v14670_v19, %v14526_v1  ;;  %v30758_v14 = vpop.f32.mrf.mxu0 }
 0x57a   : > { %v21915_v31 = vpop.f32.mrf.mxu1 }
 0x57b   : > { %v30761_v22 = vadd.f32 %v21915_v31, %v30661_v57  ;;  %v30763_v62 = vpop.f32.mrf.mxu0 }
 0x57c   : > { %v14683_v2 = vpop.f32.mrf.mxu1 }
 0x57d   : > { %v30766_v36 = vadd.f32 %v14683_v2, %v30671_v26  ;;  %v30768_v52 = vpop.f32.mrf.mxu0 }
 0x57e   : > { %v21916_v55 = vpop.f32.mrf.mxu1 }
 0x57f   : > { %v30773_v43 = vadd.f32 %v21916_v55, %v30681_v49  ;;  %v30775_v33 = vpop.f32.mrf.mxu0  ;;  %v14534_v49 = vadd.f32 %v30608_v8, %v14329_v18 }
 0x580   : > { %v14686_v35 = vpop.f32.mrf.mxu1 }
 0x581   : > { %v30777_v57 = vadd.f32 %v14686_v35, %v14530_v42  ;;  %v30779_v48 = vpop.f32.mrf.mxu0 }
 0x582   : > { %v21919_v54 = vpop.f32.mrf.mxu1 }
 0x583   : > { %v30782_v26 = vadd.f32 %v21919_v54, %v30698_v15  ;;  %v30784_v30 = vpop.f32.mrf.mxu0 }
 0x584   : > { %v14699_v5 = vpop.f32.mrf.mxu1 }
 0x585   : > { %v30786_v25 = vadd.f32 %v14699_v5, %v14533_v16  ;;  %v30788_v39 = vpop.f32.mrf.mxu0 }
 0x586   : > { %v21920_v4 = vpop.f32.mrf.mxu1 }
 0x587   : > { %v30791_v3 = vadd.f32 %v21920_v4, %v14536_v44  ;;  %v30793_v53 = vpop.f32.mrf.mxu0 }
 0x588   : > { %v14702_v10 = vpop.f32.mrf.mxu1 }
 0x589   : > { %v30795_v28 = vadd.f32 %v14702_v10, %v14534_v49  ;;  %v30799_v40 = vpop.f32.mrf.mxu0 }
 0x58a   : > { %v21923_v9 = vpop.f32.mrf.mxu1  ;;  %31837 = vst [vmem:[#allocation58_spill] sm:$0xff] %v30799_v40 }
 0x58b   : > { %v30797_v15 = vadd.f32 %v21923_v9, %v14539_v34 }
 0x58c   : > { %v14715_v21 = vpop.f32.mrf.mxu1  ;;  %v30806_v8 = vpop.f32.mrf.mxu0 }
 0x58d   : > { %v30801_v16 = vadd.f32 %v14715_v21, %v14537_v58  ;;  %31838 = vst [vmem:[#allocation158_spill] sm:$0xff] %v30806_v8 }
 0x58e   : > { %v21924_v45 = vpop.f32.mrf.mxu1  ;;  %v30810_v19 = vpop.f32.mrf.mxu0 }
 0x58f   : > { %v30804_v37 = vadd.f32 %v21924_v45, %v14540_v32  ;;  %31839 = vst [vmem:[#allocation152_spill] sm:$0xff] %v30810_v19 }
 0x590   : > { %v14718_v18 = vpop.f32.mrf.mxu1  ;;  %v30812_v2 = vpop.f32.mrf.mxu0 }
 0x591   : > { %v30808_v44 = vadd.f32 %v14718_v18, %v14538_v50  ;;  %31840 = vst [vmem:[#allocation183_spill] sm:$0xff] %v30812_v2 }
 0x592   : > { %v21951_v1 = vpop.f32.mrf.mxu1  ;;  %v30814_v42 = vpop.f32.mrf.mxu0 }
 0x593   : > { %31841 = vst [vmem:[#allocation64_spill] sm:$0xff] %v30814_v42 }
 0x594   : > { %v15077_v34 = vpop.f32.mrf.mxu1  ;;  %v30816_v17 = vpop.f32.mrf.mxu0 }
 0x595   : > { %31842 = vst [vmem:[#allocation59_spill] sm:$0xff] %v30816_v17 }
 0x596   : > { %v21952_v31 = vpop.f32.mrf.mxu1  ;;  %v30822_v5 = vpop.f32.mrf.mxu0 }
 0x597   : > { %31843 = vst [vmem:[#allocation168_spill] sm:$0xff] %v30822_v5 }
 0x598   : > { %v15080_v55 = vpop.f32.mrf.mxu1  ;;  %v30828_v10 = vpop.f32.mrf.mxu0 }
 0x599   : > { %31846 = vst [vmem:[#allocation49_spill] sm:$0xff] %v30828_v10 }
 0x59a   : > { %v21955_v58 = vpop.f32.mrf.mxu1  ;;  %v30834_v45 = vpop.f32.mrf.mxu0 }
 0x59b   : > { %31849 = vst [vmem:[#allocation74_spill] sm:$0xff] %v30834_v45 }
 0x59c   : > { %v15093_v35 = vpop.f32.mrf.mxu1  ;;  %v22011_v63 = vpop.f32.mrf.mxu0 }
 0x59e   : > { %v21956_v41 = vpop.f32.mrf.mxu1  ;;  %v15692_v42 = vpop.f32.mrf.mxu0 }
 0x5a0   : > { %v30818_v32 = vpop.f32.mrf.mxu1  ;;  %v30842_v8 = vpop.f32.mrf.mxu0 }
 0x5a1   : > { %31853 = vst [vmem:[#allocation8_spill] sm:$0xff] %v30842_v8  ;;  %v14937_v8 = vadd.f32 %v30654_v27, %v30740_v60 }
 0x5a2   : > { %v30820_v54 = vpop.f32.mrf.mxu1 }
 0x5a4   : > { %v30824_v4 = vpop.f32.mrf.mxu1 }
 0x5a5   : > { %31844 = vst [vmem:[#allocation11_spill] sm:$0xff] %v30824_v4 }
 0x5a6   : > { %v30826_v49 = vpop.f32.mrf.mxu1 }
 0x5a7   : > { %31845 = vst [vmem:[#allocation172_spill] sm:$0xff] %v30826_v49 }
 0x5a8   : > { %v30830_v9 = vpop.f32.mrf.mxu1 }
 0x5a9   : > { %31847 = vst [vmem:[#allocation163_spill] sm:$0xff] %v30830_v9  ;;  %v30846_v9 = vpop.f32.mrf.mxu0 }
 0x5aa   : > { %v30832_v21 = vpop.f32.mrf.mxu1  ;;  %31855 = vst [vmem:[#allocation162_spill] sm:$0xff] %v30846_v9  ;;  %v14935_v9 = vadd.f32 %v30663_v46, %v30745_v0  ;;  %v14941_v46 = vadd.f32 %v30691_v47, %v30761_v22  ;;  %v14943_v47 = vadd.f32 %v30729_v11, %v30786_v25  ;;  %v14947_v25 = vadd.f32 %v30747_v61, %v30801_v16 }
 0x5ab   : > { %31848 = vst [vmem:[#allocation186_spill] sm:$0xff] %v30832_v21 }
 0x5ac   : > { %v30836_v50 = vpop.f32.mrf.mxu1  ;;  %v31864_v16 = vld [vmem:[#allocation11_spill] sm:$0xff] }
 0x5ad   : > { %31850 = vst [vmem:[#allocation16_spill] sm:$0xff] %v30836_v50  ;;  %v30852_v50 = vpop.f32.mrf.mxu0 }
 0x5ae   : > { %v30838_v18 = vpop.f32.mrf.mxu1  ;;  %31858 = vst [vmem:[#allocation187_spill] sm:$0xff] %v30852_v50 }
 0x5af   : > { %31851 = vst [vmem:[#allocation166_spill] sm:$0xff] %v30838_v18  ;;  %v30858_v49 = vpop.f32.mrf.mxu0 }
 0x5b0   : > { %v30840_v17 = vpop.f32.mrf.mxu1  ;;  %31861 = vst [vmem:[#allocation185_spill] sm:$0xff] %v30858_v49 }
 0x5b1   : > { %31852 = vst [vmem:[#allocation188_spill] sm:$0xff] %v30840_v17 }
 0x5b2   : > { %v21991_v5 = vpop.f32.mrf.mxu1 }
 0x5b4   : > { %v15487_v2 = vpop.f32.mrf.mxu1 }
 0x5b6   : > { %v21992_v19 = vpop.f32.mrf.mxu1 }
 0x5b8   : > { %v15490_v10 = vpop.f32.mrf.mxu1 }
 0x5ba   : > { %v30844_v40 = vpop.f32.mrf.mxu1 }
 0x5bb   : > { %31854 = vst [vmem:[#allocation77_spill] sm:$0xff] %v30844_v40 }
 0x5bc   : > { %v30848_v21 = vpop.f32.mrf.mxu1 }
 0x5bd   : > { %31856 = vst [vmem:[#allocation191_spill] sm:$0xff] %v30848_v21  ;;  %v15142_v21 = vadd.f32 %v21951_v1, %v14937_v8  ;;  %v14939_v8 = vadd.f32 %v30700_v56, %v30766_v36  ;;  %v14946_v56 = vadd.f32 %v30734_v12, %v30791_v3  ;;  %v14950_v3 = vadd.f32 %v30754_v20, %v30804_v37  ;;  %v31865_v37 = vld [vmem:[#allocation172_spill] sm:$0xff] }
 0x5be   : > { %v30850_v45 = vpop.f32.mrf.mxu1  ;;  %v15148_v20 = vadd.f32 %v31864_v16, %v14943_v47  ;;  %v31877_v47 = vld [vmem:[#allocation183_spill] sm:$0xff] }
 0x5bf   : > { %31857 = vst [vmem:[#allocation15_spill] sm:$0xff] %v30850_v45  ;;  %v30868_v45 = vpop.f32.mrf.mxu0  ;;  %v15347_v27 = vadd.f32 %v30763_v62, %v15142_v21  ;;  %v14945_v62 = vadd.f32 %v30722_v24, %v30782_v26  ;;  %v15144_v24 = vadd.f32 %v15093_v35, %v14939_v8  ;;  %v31874_v8 = vld [vmem:[#allocation151_spill] sm:$0xff] }
 0x5c0   : > { %v30854_v18 = vpop.f32.mrf.mxu1 }
 0x5c1   : > { %31859 = vst [vmem:[#allocation82_spill] sm:$0xff] %v30854_v18  ;;  %v15140_v18 = vadd.f32 %v15077_v34, %v14935_v9  ;;  %v15552_v1 = vadd.f32 %v21991_v5, %v15347_v27  ;;  %v31873_v27 = vld [vmem:[#allocation162_spill] sm:$0xff] }
 0x5c2   : > { %v30856_v17 = vpop.f32.mrf.mxu1  ;;  %v31871_v9 = vld [vmem:[#allocation77_spill] sm:$0xff] }
 0x5c3   : > { %31860 = vst [vmem:[#allocation81_spill] sm:$0xff] %v30856_v17  ;;  %v14938_v17 = vadd.f32 %v30673_v38, %v30752_v59  ;;  %v15345_v38 = vadd.f32 %v30768_v52, %v15140_v18  ;;  %v15146_v52 = vadd.f32 %v21955_v58, %v14941_v46  ;;  %v15757_v26 = vadd.f32 %v22011_v63, %v15552_v1 }
 0x5c4   : > { %v30860_v4 = vpop.f32.mrf.mxu1  ;;  %v15151_v58 = vadd.f32 %v31865_v37, %v14946_v56  ;;  %v31872_v21 = vld [vmem:[#allocation191_spill] sm:$0xff] }
 0x5c5   : > { %31862 = vst [vmem:[#allocation23_spill] sm:$0xff] %v30860_v4  ;;  %v14936_v4 = vadd.f32 %v30683_v29, %v30756_v13  ;;  %v15143_v60 = vadd.f32 %v21952_v31, %v14938_v17  ;;  %v14942_v29 = vadd.f32 %v30708_v51, %v30773_v43  ;;  %v14940_v13 = vadd.f32 %v30714_v6, %v30777_v57 }
 0x5c6   : > { %v30864_v40 = vpop.f32.mrf.mxu1  ;;  %v15550_v34 = vadd.f32 %v15487_v2, %v15345_v38  ;;  %v14944_v51 = vadd.f32 %v30737_v23, %v30795_v28  ;;  %v14949_v6 = vadd.f32 %v30742_v7, %v30797_v15  ;;  %v30917_v23 = vadd.f32 %v30758_v14, %v30808_v44  ;;  %v31866_v44 = vld [vmem:[#allocation58_spill] sm:$0xff] }
 0x5c7   : > { %31863 = vst [vmem:[#allocation84_spill] sm:$0xff] %v30864_v40  ;;  %v30879_v40 = vpop.f32.mrf.mxu0  ;;  %v15141_v59 = vadd.f32 %v15080_v55, %v14936_v4  ;;  %v15348_v36 = vadd.f32 %v30775_v33, %v15143_v60  ;;  %v15147_v43 = vadd.f32 %v21956_v41, %v14942_v29  ;;  %v15145_v12 = vadd.f32 %v30818_v32, %v14940_v13  ;;  %v31867_v41 = vld [vmem:[#allocation8_spill] sm:$0xff]  ;;  %v31870_v4 = vld [vmem:[#allocation163_spill] sm:$0xff] }
 0x5c8   : > { %v30870_v50 = vpop.f32.mrf.mxu1  ;;  %v15150_v7 = vadd.f32 %v30820_v54, %v14945_v62  ;;  %v15351_v15 = vadd.f32 %v30784_v30, %v15146_v52  ;;  %v31868_v32 = vld [vmem:[#allocation148_spill] sm:$0xff]  ;;  %v31869_v54 = vld [vmem:[#allocation158_spill] sm:$0xff]  ;;  %v15356_v56 = vadd.f32 %v31877_v47, %v15151_v58  ;;  %v31894_v47 = vld [vmem:[#allocation155_spill] sm:$0xff] }
 0x5c9   : > { %v30901_v31 = vpop.f32.mrf.mxu0  ;;  %v15346_v57 = vadd.f32 %v30779_v48, %v15141_v59  ;;  %v15553_v33 = vadd.f32 %v21992_v19, %v15348_v36  ;;  %v15755_v48 = vadd.f32 %v15692_v42, %v15550_v34  ;;  %v15349_v19 = vadd.f32 %v30788_v39, %v15144_v24  ;;  %v31875_v59 = vld [vmem:[#allocation139_spill] sm:$0xff]  ;;  %v31876_v13 = vld [vmem:[#allocation152_spill] sm:$0xff]  ;;  %v31878_v36 = vld [vmem:[#allocation186_spill] sm:$0xff] }
 0x5ca   : > { %v30874_v49 = vpop.f32.mrf.mxu1  ;;  %v15352_v61 = vadd.f32 %v30793_v53, %v15147_v43  ;;  %v15350_v35 = vadd.f32 %v31866_v44, %v15145_v12  ;;  %v15355_v5 = vadd.f32 %v31869_v54, %v15150_v7  ;;  %v15556_v39 = vadd.f32 %v31871_v9, %v15351_v15  ;;  %v31879_v34 = vld [vmem:[#allocation15_spill] sm:$0xff]  ;;  %v31885_v16 = vld [vmem:[#allocation82_spill] sm:$0xff]  ;;  %v31889_v54 = vld [vmem:[#allocation81_spill] sm:$0xff] }
 0x5cb   : > { %v15551_v2 = vadd.f32 %v15490_v10, %v15346_v57  ;;  %v30921_v55 = vpop.f32.mrf.mxu0  ;;  %v15758_v17 = vadd.f32 %v31867_v41, %v15553_v33  ;;  %v15149_v10 = vadd.f32 %v31870_v4, %v14944_v51  ;;  %v15554_v53 = vadd.f32 %v31872_v21, %v15349_v19  ;;  %v31880_v57 = vld [vmem:[#allocation142_spill] sm:$0xff] }
 0x5cc   : > { %v30883_v0 = vpop.f32.mrf.mxu1  ;;  %v15353_v62 = vadd.f32 %v31876_v13, %v15148_v20  ;;  %v15154_v52 = vadd.f32 %v31878_v36, %v14949_v6  ;;  %v15557_v51 = vadd.f32 %v31879_v34, %v15352_v61  ;;  %v15555_v20 = vadd.f32 %v31885_v16, %v15350_v35  ;;  %v31886_v61 = vld [vmem:[#allocation150_spill] sm:$0xff]  ;;  %v31890_v35 = vld [vmem:[#allocation141_spill] sm:$0xff]  ;;  %v31901_v16 = vld [vmem:[#allocation188_spill] sm:$0xff] }
 0x5cd   : > { %v15756_v60 = vadd.f32 %v31873_v27, %v15551_v2  ;;  %v30935_v46 = vpop.f32.mrf.mxu0  ;;  %v31887_v41 = vld [vmem:[#allocation138_spill] sm:$0xff]  ;;  %v15560_v4 = vadd.f32 %v31889_v54, %v15355_v5  ;;  %v31891_v27 = vld [vmem:[#allocation59_spill] sm:$0xff] }
 0x5ce   : > { %v30896_v22 = vpop.f32.mrf.mxu1 }
 0x5cf   : > { %v15727_v58 = vpop.f32.mrf.mxu0 }
 0x5d0   : > { %v30907_v11 = vpop.f32.mrf.mxu1 }
 0x5d2   : > { %v22031_v28 = vpop.f32.mrf.mxu1 }
 0x5d3   : > { %v15962_v63 = vadd.f32 %v22031_v28, %v15757_v26  ;;  %v31881_v26 = vld [vmem:[#allocation147_spill] sm:$0xff]  ;;  %v31882_v28 = vld [vmem:[#allocation64_spill] sm:$0xff] }
 0x5d4   : > { %v15897_v14 = vpop.f32.mrf.mxu1  ;;  %v15354_v15 = vadd.f32 %v31882_v28, %v15149_v10  ;;  %v31899_v28 = vld [vmem:[#allocation160_spill] sm:$0xff] }
 0x5d5   : > { %v16074_v30 = vmul.f32 %v31868_v32, %v15962_v63  ;;  %v15960_v42 = vadd.f32 %v15897_v14, %v15755_v48  ;;  %v31883_v48 = vld [vmem:[#allocation187_spill] sm:$0xff]  ;;  %v31884_v63 = vld [vmem:[#allocation185_spill] sm:$0xff]  ;;  %v31888_v32 = vld [vmem:[#allocation16_spill] sm:$0xff] }
 0x5d6   : > { %v22032_v18 = vpop.f32.mrf.mxu1  ;;  %v15761_v2 = vadd.f32 %v31883_v48, %v15556_v39  ;;  %v15759_v19 = vadd.f32 %v31884_v63, %v15554_v53  ;;  %v31900_v63 = vld [vmem:[#allocation168_spill] sm:$0xff] }
 0x5d7   : > { %v16186_v38 = vadd.f32 %v31874_v8, %v16074_v30  ;;  %v16072_v1 = vmul.f32 %v31875_v59, %v15960_v42  ;;  %v15963_v29 = vadd.f32 %v22032_v18, %v15758_v17  ;;  %v15152_v30 = vadd.f32 %v31888_v32, %v14947_v25  ;;  %v31892_v8 = vld [vmem:[#allocation166_spill] sm:$0xff] }
 0x5d8   : > { %v15900_v24 = vpop.f32.mrf.mxu1  ;;  %v15762_v42 = vadd.f32 %v30868_v45, %v15557_v51  ;;  %v15760_v59 = vadd.f32 %v30879_v40, %v15555_v20  ;;  %v22023_v45 = vpop.f32.mrf.mxu0  ;;  %v31895_v51 = vld [vmem:[#allocation23_spill] sm:$0xff]  ;;  %v15153_v20 = vadd.f32 %v31901_v16, %v30917_v23 }
 0x5d9   : > { %v16202_v43 = vmax.f32 %v16186_v38, 0.0  ;;  %v16184_v12 = vadd.f32 %v31880_v57, %v16072_v1  ;;  %v16075_v33 = vmul.f32 %v31881_v26, %v15963_v29  ;;  %v15961_v7 = vadd.f32 %v15900_v24, %v15756_v60  ;;  %v31893_v1 = vld [vmem:[#allocation161_spill] sm:$0xff]  ;;  %v31896_v57 = vld [vmem:[#allocation84_spill] sm:$0xff] }
 0x5da   : > { %v22035_v37 = vpop.f32.mrf.mxu1  ;;  %v15359_v60 = vadd.f32 %v31891_v27, %v15154_v52  ;;  %v15155_v38 = vadd.f32 %v31892_v8, %v14950_v3  ;;  %v15558_v24 = vadd.f32 %v31895_v51, %v15353_v62  ;;  %v15561_v52 = vadd.f32 %v31896_v57, %v15356_v56  ;;  %v15740_v56 = vpop.f32.mrf.mxu0  ;;  %v31906_v8 = vld [vmem:[#allocation179_spill] sm:$0xff] }
 0x5db   : > { %v19871_v6 = vpack.c.bf16 %v16202_v43, %v16202_v43  ;;  %v16200_v14 = vmax.f32 %v16184_v12, 0.0  ;;  %v16187_v44 = vadd.f32 %v31886_v61, %v16075_v33  ;;  %v16073_v17 = vmul.f32 %v31887_v41, %v15961_v7  ;;  %v31897_v12 = vld [vmem:[#allocation6_spill] sm:$0xff]  ;;  %v31898_v33 = vld [vmem:[#allocation157_spill] sm:$0xff] }
 0x5dc   : > { %v15966_v10 = vadd.f32 %v22035_v37, %v15761_v2  ;;  %v15913_v9 = vpop.f32.mrf.mxu1  ;;  %v15765_v43 = vadd.f32 %v30901_v31, %v15560_v4  ;;  %v15559_v62 = vadd.f32 %v30870_v50, %v15354_v15  ;;  %v15763_v32 = vadd.f32 %v30921_v55, %v15558_v24  ;;  %v31904_v15 = vld [vmem:[#allocation156_spill] sm:$0xff]  ;;  %v22024_v27 = vpop.f32.mrf.mxu0 }
 0x5dd   : > { %16282 = vst [vmem:[#allocation2 + $0x2c] sm:$0xf] %v19871_v6  ;;  %v19869_v39 = vpack.c.bf16 %v16200_v14, %v16200_v14  ;;  %v16203_v21 = vmax.f32 %v16187_v44, 0.0  ;;  %v16185_v53 = vadd.f32 %v31890_v35, %v16073_v17  ;;  %v15964_v18 = vadd.f32 %v15913_v9, %v15759_v19  ;;  %v31902_v14 = vld [vmem:[#allocation5_spill] sm:$0xff]  ;;  %v31903_v44 = vld [vmem:[#allocation154_spill] sm:$0xff] }
 0x5de   : > { %v16078_v25 = vmul.f32 %v31893_v1, %v15966_v10  ;;  %v22036_v29 = vpop.f32.mrf.mxu1  ;;  %v15357_v19 = vadd.f32 %v31900_v63, %v15152_v30  ;;  %v15564_v30 = vadd.f32 %v30874_v49, %v15359_v60  ;;  %v31905_v9 = vld [vmem:[#allocation173_spill] sm:$0xff] }
 0x5df   : > { %16280 = vst [vmem:[#allocation2 + $0xc] sm:$0xf] %v19869_v39  ;;  %v19872_v5 = vpack.c.bf16 %v16203_v21, %v16203_v21  ;;  %v16201_v13 = vmax.f32 %v16185_v53, 0.0  ;;  %v16076_v36 = vmul.f32 %v31894_v47, %v15964_v18  ;;  %v15967_v34 = vadd.f32 %v22036_v29, %v15762_v42 }
 0x5e0   : > { %v16190_v3 = vadd.f32 %v31897_v12, %v16078_v25  ;;  %v15916_v26 = vpop.f32.mrf.mxu1  ;;  %v15766_v42 = vadd.f32 %v30935_v46, %v15561_v52  ;;  %v15764_v21 = vadd.f32 %v15727_v58, %v15559_v62  ;;  %v15562_v35 = vadd.f32 %v30883_v0, %v15357_v19  ;;  %v31908_v25 = vld [vmem:[#allocation74_spill] sm:$0xff]  ;;  %v31911_v12 = vld [vmem:[#allocation164_spill] sm:$0xff] }
 0x5e1   : > { %16283 = vst [vmem:[#allocation2 + $0x3c] sm:$0xf] %v19872_v5  ;;  %v19870_v40 = vpack.c.bf16 %v16201_v13, %v16201_v13  ;;  %v16188_v7 = vadd.f32 %v31898_v33, %v16076_v36  ;;  %v16079_v48 = vmul.f32 %v31899_v28, %v15967_v34  ;;  %v15965_v2 = vadd.f32 %v15916_v26, %v15760_v59  ;;  %v31907_v59 = vld [vmem:[#allocation49_spill] sm:$0xff]  ;;  %v31910_v34 = vld [vmem:[#allocation12_spill] sm:$0xff] }
 0x5e2   : > { %v16206_v31 = vmax.f32 %v16190_v3, 0.0  ;;  %v22039_v37 = vpop.f32.mrf.mxu1  ;;  %v15360_v1 = vadd.f32 %v31907_v59, %v15155_v38  ;;  %v15358_v29 = vadd.f32 %v31908_v25, %v15153_v20  ;;  %v15769_v5 = vadd.f32 %v22023_v45, %v15564_v30  ;;  %v31909_v13 = vld [vmem:[#allocation69_spill] sm:$0xff]  ;;  %v22802_v26 = vld [vmem:[#allocation2 + $0x8] ss:$16 sps:$4 sm:$0xff]   ;;  %v15743_v45 = vpop.f32.mrf.mxu0 }
 0x5e3   : > { %16281 = vst [vmem:[#allocation2 + $0x1c] sm:$0xf] %v19870_v40  ;;  %v16204_v6 = vmax.f32 %v16188_v7, 0.0  ;;  %v16191_v61 = vadd.f32 %v31902_v14, %v16079_v48  ;;  %v16077_v41 = vmul.f32 %v31903_v44, %v15965_v2  ;;  %v15970_v17 = vadd.f32 %v22039_v37, %v15765_v43  ;;  %v31912_v7 = vld [vmem:[#allocation177_spill] sm:$0xff]  ;;  %v31913_v48 = vld [vmem:[#allocation70_spill] sm:$0xff]  ;;  %v31916_v30 = vld [vmem:[#allocation192_spill] sm:$0xff] }
 0x5e4   : > { %v19875_v54 = vpack.c.bf16 %v16206_v31, %v16206_v31  ;;  %v15929_v23 = vpop.f32.mrf.mxu1  ;;  %v15565_v43 = vadd.f32 %v30896_v22, %v15360_v1  ;;  %v15767_v57 = vadd.f32 %v15740_v56, %v15562_v35  ;;  %v15563_v52 = vadd.f32 %v30907_v11, %v15358_v29  ;;  %v31914_v11 = vld [vmem:[#allocation75_spill] sm:$0xff]  ;;  %v31915_v31 = vld [vmem:[#allocation14_spill] sm:$0xff] }
 0x5e5   : > { %v19873_v4 = vpack.c.bf16 %v16204_v6, %v16204_v6  ;;  %v16207_v50 = vmax.f32 %v16191_v61, 0.0  ;;  %v16189_v10 = vadd.f32 %v31904_v15, %v16077_v41  ;;  %v16082_v39 = vmul.f32 %v31905_v9, %v15970_v17  ;;  %v16177_v6 = vpop.permute.xlu1 %16176  ;;  %v31920_v1 = vld [vmem:[#allocation198_spill] sm:$0xff] }
 0x5e6   : > { %16286 = vst [vmem:[#allocation2 + $0x6c] sm:$0xf] %v19875_v54  ;;  %v15968_v53 = vadd.f32 %v15929_v23, %v15763_v32  ;;  %v22040_v18 = vpop.f32.mrf.mxu1  ;;  %v15770_v14 = vadd.f32 %v22024_v27, %v15565_v43  ;;  %v15768_v61 = vadd.f32 %v15743_v45, %v15563_v52  ;;  %v22817_v43 = vld [vmem:[#allocation2 + $0xa8] ss:$16 sps:$4 sm:$0xff]  }
 0x5e7   : > { %16284 = vst [vmem:[#allocation2 + $0x4c] sm:$0xf] %v19873_v4  ;;  %v19876_v55 = vpack.c.bf16 %v16207_v50, %v16207_v50  ;;  %v16205_v46 = vmax.f32 %v16189_v10, 0.0  ;;  %v16194_v49 = vadd.f32 %v31906_v8, %v16082_v39  ;;  %v15971_v60 = vadd.f32 %v22040_v18, %v15766_v42  ;;  %v31917_v10 = vld [vmem:[#allocation199_spill] sm:$0xff]  ;;  %v22820_v52 = vld [vmem:[#allocation2 + $0xc8] ss:$16 sps:$4 sm:$0xff]  }
 0x5e8   : > { %v16080_v47 = vmul.f32 %v31909_v13, %v15968_v53  ;;  %v15932_v58 = vpop.f32.mrf.mxu1  ;;  %v22807_v22 = vld [vmem:[#allocation2 + $0x2c] ss:$16 sps:$4 sm:$0xff]   ;;  %v16182_v53 = vpop.permute.xlu0 %16181 }
 0x5e9   : > { %16287 = vst [vmem:[#allocation2 + $0x7c] sm:$0xf] %v19876_v55  ;;  %v19874_v0 = vpack.c.bf16 %v16205_v46, %v16205_v46  ;;  %v16210_v36 = vmax.f32 %v16194_v49, 0.0  ;;  %v16083_v51 = vmul.f32 %v31910_v34, %v15971_v60  ;;  %v15969_v24 = vadd.f32 %v15932_v58, %v15764_v21  ;;  %v31918_v21 = vld [vmem:[#allocation13_spill] sm:$0xff]  ;;  %v22805_v55 = vld [vmem:[#allocation2 + $0x28] ss:$16 sps:$4 sm:$0xff]  }
 0x5ea   : > { %v16192_v3 = vadd.f32 %v31911_v12, %v16080_v47  ;;  %v22043_v38 = vpop.f32.mrf.mxu1  ;;  %v22804_v40 = vld [vmem:[#allocation2 + $0xc] ss:$16 sps:$4 sm:$0xff]   ;;  %v22808_v58 = vld [vmem:[#allocation2 + $0x48] ss:$16 sps:$4 sm:$0xff]  }
 0x5eb   : > { %16285 = vst [vmem:[#allocation2 + $0x5c] sm:$0xf] %v19874_v0  ;;  %v19879_v33 = vpack.c.bf16 %v16210_v36, %v16210_v36  ;;  %v16195_v28 = vadd.f32 %v31912_v7, %v16083_v51  ;;  %v16081_v2 = vmul.f32 %v31913_v48, %v15969_v24  ;;  %v15974_v63 = vadd.f32 %v22043_v38, %v15769_v5  ;;  %v31919_v46 = vld [vmem:[#allocation190_spill] sm:$0xff]  ;;  %v16906_v38 = vpop.f32.mrf.mxu0 }
 0x5ec   : > { %v16208_v19 = vmax.f32 %v16192_v3, 0.0  ;;  %v15945_v16 = vpop.f32.mrf.mxu1  ;;  %17017 = vmatprep.mubr.bf16.mxu1 %v22804_v40  ;;  %v22811_v36 = vld [vmem:[#allocation2 + $0x68] ss:$16 sps:$4 sm:$0xff]  }
 0x5ed   : > { %16290 = vst [vmem:[#allocation2 + $0xac] sm:$0xf] %v19879_v33  ;;  %v16211_v20 = vmax.f32 %v16195_v28, 0.0  ;;  %v16193_v62 = vadd.f32 %v31914_v11, %v16081_v2  ;;  %v16086_v37 = vmul.f32 %v31915_v31, %v15974_v63  ;;  %v15972_v56 = vadd.f32 %v15945_v16, %v15767_v57  ;;  %17018 = vmatmul.mubr.bf16.vlgmr.msra.gmra.mxu1 %v22802_v26  ;;  %v22814_v51 = vld [vmem:[#allocation2 + $0x88] ss:$16 sps:$4 sm:$0xff]   ;;  %v16908_v26 = vpop.f32.mrf.mxu0 }
 0x5ee   : > { %v19877_v44 = vpack.c.bf16 %v16208_v19, %v16208_v19  ;;  %v22044_v41 = vpop.f32.mrf.mxu1  ;;  %17027 = vmatprep.mubr.bf16.mxu1 %v22807_v22  ;;  %v22823_v3 = vld [vmem:[#allocation2 + $0xe8] ss:$16 sps:$4 sm:$0xff]  }
 0x5ef   : > { %v19880_v17 = vpack.c.bf16 %v16211_v20, %v16211_v20  ;;  %v16209_v32 = vmax.f32 %v16193_v62, 0.0  ;;  %v16198_v42 = vadd.f32 %v16177_v6, %v16086_v37  ;;  %v16084_v54 = vmul.f32 %v31916_v30, %v15972_v56  ;;  %v16910_v40 = vpop.f32.mrf.mxu0 }
 0x5f0   : > { %16288 = vst [vmem:[#allocation2 + $0x8c] sm:$0xf] %v19877_v44  ;;  %v15975_v23 = vadd.f32 %v22044_v41, %v15770_v14  ;;  %v15948_v4 = vpop.f32.mrf.mxu1  ;;  %v22813_v0 = vld [vmem:[#allocation2 + $0x6c] ss:$16 sps:$4 sm:$0xff]  }
 0x5f1   : > { %16291 = vst [vmem:[#allocation2 + $0xbc] sm:$0xf] %v19880_v17  ;;  %v19878_v50 = vpack.c.bf16 %v16209_v32, %v16209_v32  ;;  %v16214_v15 = vmax.f32 %v16198_v42, 0.0  ;;  %v16196_v9 = vadd.f32 %v31917_v10, %v16084_v54  ;;  %v15973_v39 = vadd.f32 %v15948_v4, %v15768_v61  ;;  %v16912_v45 = vpop.f32.mrf.mxu0 }
 0x5f2   : > { %v16087_v35 = vmul.f32 %v31918_v21, %v15975_v23  ;;  %v22810_v60 = vld [vmem:[#allocation2 + $0x4c] ss:$16 sps:$4 sm:$0xff]  }
 0x5f3   : > { %16289 = vst [vmem:[#allocation2 + $0x9c] sm:$0xf] %v19878_v50  ;;  %v19883_v18 = vpack.c.bf16 %v16214_v15, %v16214_v15  ;;  %v16212_v27 = vmax.f32 %v16196_v9, 0.0  ;;  %v16085_v8 = vmul.f32 %v31919_v46, %v15973_v39  ;;  %v16916_v33 = vpop.f32.mrf.mxu0 }
 0x5f4   : > { %v16199_v49 = vadd.f32 %v16182_v53, %v16087_v35 }
 0x5f5   : > { %16294 = vst [vmem:[#allocation2 + $0xec] sm:$0xf] %v19883_v18  ;;  %v19881_v59 = vpack.c.bf16 %v16212_v27, %v16212_v27  ;;  %v16197_v25 = vadd.f32 %v31920_v1, %v16085_v8  ;;  %17028 = vmatmul.mubr.bf16.gmra.mxu1 %v22805_v55  ;;  %v16918_v7 = vpop.f32.mrf.mxu0 }
 0x5f6   : > { %v16215_v29 = vmax.f32 %v16199_v49, 0.0  ;;  %17037 = vmatprep.mubr.bf16.mxu1 %v22810_v60 }
 0x5f7   : > { %16292 = vst [vmem:[#allocation2 + $0xcc] sm:$0xf] %v19881_v59  ;;  %v16213_v5 = vmax.f32 %v16197_v25, 0.0  ;;  %v16920_v28 = vpop.f32.mrf.mxu0 }
 0x5f8   : > { %v19884_v13 = vpack.c.bf16 %v16215_v29, %v16215_v29  ;;  %v22819_v24 = vld [vmem:[#allocation2 + $0xac] ss:$16 sps:$4 sm:$0xff]  }
 0x5f9   : > { %v19882_v47 = vpack.c.bf16 %v16213_v5, %v16213_v5  ;;  %v16922_v48 = vpop.f32.mrf.mxu0 }
 0x5fa   : > { %16295 = vst [vmem:[#allocation2 + $0xfc] sm:$0xf] %v19884_v13  ;;  %v22816_v34 = vld [vmem:[#allocation2 + $0x8c] ss:$16 sps:$4 sm:$0xff]  }
 0x5fb   : > { %16293 = vst [vmem:[#allocation2 + $0xdc] sm:$0xf] %v19882_v47  ;;  %v30995_v2 = vpop.f32.mrf.mxu0 }
 0x5fd   : > { %17038 = vmatmul.mubr.bf16.gmra.mxu1 %v22808_v58  ;;  %v30997_v63 = vpop.f32.mrf.mxu0 }
 0x5fe   : > { %17047 = vmatprep.mubr.bf16.mxu1 %v22813_v0 }
 0x5ff   : > { %v30999_v19 = vpop.f32.mrf.mxu0 }
 0x601   : > { %v22825_v12 = vld [vmem:[#allocation2 + $0xec] ss:$16 sps:$4 sm:$0xff]   ;;  %v31001_v16 = vpop.f32.mrf.mxu0 }
 0x602   : > { %v22822_v57 = vld [vmem:[#allocation2 + $0xcc] ss:$16 sps:$4 sm:$0xff]  }
 0x603   : > { %v31003_v22 = vpop.f32.mrf.mxu0 }
 0x605   : > { %17048 = vmatmul.mubr.bf16.gmra.mxu1 %v22811_v36  ;;  %v31005_v20 = vpop.f32.mrf.mxu0 }
 0x606   : > { %17057 = vmatprep.mubr.bf16.mxu1 %v22816_v34 }
 0x607   : > { %v31007_v11 = vpop.f32.mrf.mxu0 }
 0x609   : > { %v31009_v62 = vpop.f32.mrf.mxu0 }
 0x60b   : > { %v31011_v37 = vpop.f32.mrf.mxu0 }
 0x60d   : > { %17058 = vmatmul.mubr.bf16.gmra.mxu1 %v22814_v51  ;;  %v31017_v44 = vpop.f32.mrf.mxu0 }
 0x60e   : > { %17067 = vmatprep.mubr.bf16.mxu1 %v22819_v24 }
 0x60f   : > { %v31027_v23 = vpop.f32.mrf.mxu0 }
 0x611   : > { %v16952_v9 = vpop.f32.mrf.mxu0 }
 0x613   : > { %v16956_v55 = vpop.f32.mrf.mxu0 }
 0x615   : > { %17068 = vmatmul.mubr.bf16.gmra.mxu1 %v22817_v43  ;;  %v16958_v49 = vpop.f32.mrf.mxu0 }
 0x616   : > { %17077 = vmatprep.mubr.bf16.mxu1 %v22822_v57 }
 0x617   : > { %v16960_v1 = vpop.f32.mrf.mxu0 }
 0x619   : > { %v16962_v5 = vpop.f32.mrf.mxu0 }
 0x61b   : > { %v16966_v58 = vpop.f32.mrf.mxu0 }
 0x61d   : > { %17078 = vmatmul.mubr.bf16.gmra.mxu1 %v22820_v52  ;;  %v16968_v34 = vpop.f32.mrf.mxu0 }
 0x61e   : > { %17087 = vmatprep.mubr.bf16.mxu1 %v22825_v12 }
 0x61f   : > { %v16970_v43 = vpop.f32.mrf.mxu0 }
 0x621   : > { %v16972_v12 = vpop.f32.mrf.mxu0 }
 0x625   : > { %17088 = vmatmul.mubr.bf16.gmra.mxu1 %v22823_v3 }
 0x6ad   : > { %v17019_v31 = vpop.f32.mrf.mxu1 }
 0x6ae   : > { %v31013_v14 = vadd.f32 %v17019_v31, %v16906_v38 }
 0x6af   : > { %v17021_v56 = vpop.f32.mrf.mxu1 }
 0x6b0   : > { %31921 = vst [vmem:[#allocation24_spill] sm:$0xff] %v31013_v14  ;;  %v31019_v17 = vadd.f32 %v17021_v56, %v16908_v26  ;;  %v16976_v26 = vpop.f32.mrf.mxu0 }
 0x6b1   : > { %v17023_v6 = vpop.f32.mrf.mxu1 }
 0x6b2   : > { %v31015_v61 = vadd.f32 %v17023_v6, %v16910_v40  ;;  %31923 = vst [vmem:[#allocation85_spill] sm:$0xff] %v31019_v17 }
 0x6b3   : > { %v17025_v41 = vpop.f32.mrf.mxu1 }
 0x6b4   : > { %31922 = vst [vmem:[#allocation86_spill] sm:$0xff] %v31015_v61  ;;  %v31023_v42 = vadd.f32 %v17025_v41, %v16912_v45 }
 0x6b5   : > { %v17029_v30 = vpop.f32.mrf.mxu1 }
 0x6b6   : > { %31924 = vst [vmem:[#allocation127_spill] sm:$0xff] %v31023_v42  ;;  %v31029_v15 = vadd.f32 %v17029_v30, %v16916_v33  ;;  %v16978_v33 = vpop.f32.mrf.mxu0 }
 0x6b7   : > { %v17031_v4 = vpop.f32.mrf.mxu1 }
 0x6b8   : > { %31925 = vst [vmem:[#allocation83_spill] sm:$0xff] %v31029_v15  ;;  %v31033_v21 = vadd.f32 %v17031_v4, %v16918_v7 }
 0x6b9   : > { %v17033_v50 = vpop.f32.mrf.mxu1 }
 0x6ba   : > { %v31031_v10 = vadd.f32 %v17033_v50, %v16920_v28  ;;  %31927 = vst [vmem:[#allocation28_spill] sm:$0xff] %v31033_v21 }
 0x6bb   : > { %v17035_v39 = vpop.f32.mrf.mxu1 }
 0x6bc   : > { %31926 = vst [vmem:[#allocation27_spill] sm:$0xff] %v31031_v10  ;;  %v31037_v53 = vadd.f32 %v17035_v39, %v16922_v48  ;;  %v16980_v48 = vpop.f32.mrf.mxu0 }
 0x6bd   : > { %v31039_v18 = vpop.f32.mrf.mxu1 }
 0x6be   : > { %31928 = vst [vmem:[#allocation193_spill] sm:$0xff] %v31037_v53  ;;  %v16982_v6 = vpop.f32.mrf.mxu0 }
 0x6bf   : > { %v31043_v46 = vpop.f32.mrf.mxu1 }
 0x6c1   : > { %v31045_v8 = vpop.f32.mrf.mxu1 }
 0x6c3   : > { %v31047_v60 = vpop.f32.mrf.mxu1 }
 0x6c5   : > { %v31049_v59 = vpop.f32.mrf.mxu1 }
 0x6c7   : > { %v17051_v25 = vpop.f32.mrf.mxu1 }
 0x6c9   : > { %v17053_v29 = vpop.f32.mrf.mxu1 }
 0x6cb   : > { %v17055_v13 = vpop.f32.mrf.mxu1 }
 0x6cd   : > { %v17059_v47 = vpop.f32.mrf.mxu1 }
 0x6cf   : > { %v17061_v0 = vpop.f32.mrf.mxu1 }
 0x6d1   : > { %v17063_v36 = vpop.f32.mrf.mxu1 }
 0x6d3   : > { %v17065_v51 = vpop.f32.mrf.mxu1 }
 0x6d4   : > { %v17066_v53 = vadd.f32 %v17065_v51, %v16952_v9  ;;  %v31930_v9 = vld [vmem:[#allocation28_spill] sm:$0xff] }
 0x6d5   : > { %v17069_v24 = vpop.f32.mrf.mxu1 }
 0x6d7   : > { %v17071_v57 = vpop.f32.mrf.mxu1 }
 0x6d8   : > { %v17072_v15 = vadd.f32 %v17071_v57, %v16958_v49  ;;  %v31941_v49 = vmov 0  }
 0x6d9   : > { %v17073_v52 = vpop.f32.mrf.mxu1 }
 0x6da   : > { %v17074_v10 = vadd.f32 %v17073_v52, %v16960_v1  ;;  %v22829_v1 = vld [vmem:[%s31156_s5 + $0x18] sm:$0xff]  }
 0x6db   : > { %v17075_v3 = vpop.f32.mrf.mxu1 }
 0x6dc   : > { %v17076_v61 = vadd.f32 %v17075_v3, %v16962_v5  ;;  %v22832_v5 = vld [vmem:[%s31156_s5 + $0x30] sm:$0xff]  }
 0x6dd   : > { %v17079_v38 = vpop.f32.mrf.mxu1 }
 0x6de   : > { %v17080_v42 = vadd.f32 %v17079_v38, %v16966_v58 }
 0x6df   : > { %v17081_v40 = vpop.f32.mrf.mxu1 }
 0x6e0   : > { %v17082_v54 = vadd.f32 %v17081_v40, %v16968_v34  ;;  %v17064_v34 = vadd.f32 %v17063_v36, %v31027_v23  ;;  %v17050_v23 = vadd.f32 %v31049_v59, %v31003_v22  ;;  %v22828_v59 = vld [vmem:[%s31156_s5 + $0x10] sm:$0xff]  }
 0x6e1   : > { %v17083_v45 = vpop.f32.mrf.mxu1 }
 0x6e2   : > { %v17084_v27 = vadd.f32 %v17083_v45, %v16970_v43 }
 0x6e3   : > { %v17085_v7 = vpop.f32.mrf.mxu1 }
 0x6e4   : > { %v17086_v4 = vadd.f32 %v17085_v7, %v16972_v12  ;;  %v17126_v21 = vpack.c.bf16 %v17084_v27, %v17080_v42  ;;  %v17062_v12 = vadd.f32 %v17061_v0, %v31017_v44  ;;  %v17046_v42 = vadd.f32 %v31047_v60, %v31001_v16  ;;  %v31935_v27 = vld [vmem:[#allocation127_spill] sm:$0xff]  ;;  %v22827_v60 = vld [vmem:[%s31156_s5 + $0x8] sm:$0xff]  }
 0x6e5   : > { %v17089_v28 = vpop.f32.mrf.mxu1 }
 0x6e6   : > { %v17090_v32 = vadd.f32 %v17089_v28, %v16976_v26  ;;  %v17127_v17 = vpack.c.bf16 %v17086_v4, %v17082_v54  ;;  %v17123_v54 = vpack.c.bf16 %v17066_v53, %v17062_v12  ;;  %v31933_v53 = vld [vmem:[#allocation83_spill] sm:$0xff] }
 0x6e7   : > { %v17091_v31 = vpop.f32.mrf.mxu1 }
 0x6e8   : > { %v17092_v50 = vadd.f32 %v17091_v31, %v16978_v33 }
 0x6e9   : > { %v17093_v56 = vpop.f32.mrf.mxu1 }
 0x6ea   : > { %v17094_v41 = vadd.f32 %v17093_v56, %v16980_v48  ;;  %v17125_v48 = vpack.c.bf16 %v17076_v61, %v17072_v15  ;;  %v17070_v56 = vadd.f32 %v17069_v24, %v16956_v55  ;;  %v31936_v55 = vld [vmem:[#allocation85_spill] sm:$0xff] }
 0x6eb   : > { %v17095_v30 = vpop.f32.mrf.mxu1 }
 0x6ec   : > { %v17096_v39 = vadd.f32 %v17095_v30, %v16982_v6  ;;  %v17128_v14 = vpack.c.bf16 %v17094_v41, %v17090_v32  ;;  %v17124_v43 = vpack.c.bf16 %v17074_v10, %v17070_v56  ;;  %v17056_v32 = vadd.f32 %v17055_v13, %v31009_v62  ;;  %v31929_v10 = vld [vmem:[#allocation193_spill] sm:$0xff]  ;;  %v22833_v13 = vld [vmem:[%s31156_s5 + $0x38] sm:$0xff]  }
 0x6ed   : > { %v17042_v62 = vadd.f32 %v31043_v46, %v30997_v63  ;;  %v31931_v22 = vpack.c.bf16 %v31929_v10, %v31930_v9  ;;  %v31939_v46 = vld [vmem:[#allocation24_spill] sm:$0xff] }
 0x6ee   : > { %v17129_v35 = vpack.c.bf16 %v17096_v39, %v17092_v50 }
 0x6ef   : > { %v17119_v15 = vpack.c.bf16 %v17046_v42, %v17042_v62 }
 0x6f0   : > { %17178 = vmatprep.subr.bf16.mxu0 %v17129_v35  ;;  %v17060_v35 = vadd.f32 %v17059_v47, %v31011_v37  ;;  %v17044_v37 = vadd.f32 %v31045_v8, %v30999_v19  ;;  %v31937_v19 = vpack.c.bf16 %v31935_v27, %v31936_v55 }
 0x6f1   : > { %17179 = vmatpush1.bf16.msra.mxu0 %v17128_v14  ;;  %v17052_v14 = vadd.f32 %v17051_v25, %v31005_v20  ;;  %v22830_v25 = vld [vmem:[%s31156_s5 + $0x20] sm:$0xff]  }
 0x6f2   : > { %17180 = vmatprep.subr.bf16.mxu0 %v17127_v17  ;;  %v17054_v17 = vadd.f32 %v17053_v29, %v31007_v11  ;;  %v17122_v61 = vpack.c.bf16 %v17064_v34, %v17060_v35  ;;  %v17040_v11 = vadd.f32 %v31039_v18, %v30995_v2  ;;  %v22826_v2 = vld [vmem:[%s31156_s5] sm:$0xff]   ;;  %v31938_v18 = vld [vmem:[#allocation86_spill] sm:$0xff]  ;;  %v22831_v29 = vld [vmem:[%s31156_s5 + $0x28] sm:$0xff]  }
 0x6f3   : > { %v17121_v44 = vpack.c.bf16 %v17056_v32, %v17052_v14  ;;  %v31940_v8 = vpack.c.bf16 %v31938_v18, %v31939_v46 }
 0x6f4   : > { %v17120_v20 = vpack.c.bf16 %v17054_v17, %v17050_v23  ;;  %v17118_v16 = vpack.c.bf16 %v17044_v37, %v17040_v11 }
 0x6f5   : > { %17181 = vmatpush1.bf16.msra.mxu0 %v17126_v21  ;;  %v31932_v21 = vld [vmem:[#allocation27_spill] sm:$0xff] }
 0x6f6   : > { %17182 = vmatprep.subr.bf16.mxu0 %v17125_v48  ;;  %v31934_v63 = vpack.c.bf16 %v31932_v21, %v31933_v53 }
 0x6f9   : > { %17183 = vmatpush1.bf16.msra.mxu0 %v17124_v43 }
 0x6fa   : > { %17184 = vmatprep.subr.bf16.mxu0 %v17123_v54 }
 0x6fd   : > { %17185 = vmatpush1.bf16.msra.mxu0 %v17122_v61 }
 0x6fe   : > { %17186 = vmatprep.subr.bf16.mxu0 %v17121_v44 }
 0x701   : > { %17187 = vmatpush1.bf16.msra.mxu0 %v17120_v20 }
 0x702   : > { %17188 = vmatprep.subr.bf16.mxu0 %v17119_v15 }
 0x705   : > { %17189 = vmatpush1.bf16.msra.mxu0 %v17118_v16 }
 0x706   : > { %17190 = vmatprep.subr.bf16.mxu0 %v31931_v22 }
 0x709   : > { %17191 = vmatpush1.bf16.msra.mxu0 %v31934_v63 }
 0x70a   : > { %17192 = vmatprep.subr.bf16.mxu0 %v31937_v19 }
 0x70d   : > { %17193 = vmatpush1.bf16.msra.mxu0 %v31940_v8 }
 0x710   : > { %17211 = vmatmul.mubr.bf16.vlgmr.msra.gmra.mxu0 %v22826_v2 }
 0x711   : > { %17220 = vmatprep.mubr.bf16.mxu0 %v31941_v49 }
 0x718   : > { %17221 = vmatmul.mubr.bf16.gmra.mxu0 %v22827_v60 }
 0x719   : > { %17230 = vmatprep.mubr.bf16.mxu0 %v31941_v49 }
 0x720   : > { %17231 = vmatmul.mubr.bf16.gmra.mxu0 %v22828_v59 }
 0x721   : > { %17240 = vmatprep.mubr.bf16.mxu0 %v31941_v49 }
 0x728   : > { %17241 = vmatmul.mubr.bf16.gmra.mxu0 %v22829_v1 }
 0x729   : > { %17250 = vmatprep.mubr.bf16.mxu0 %v31941_v49 }
 0x730   : > { %17251 = vmatmul.mubr.bf16.gmra.mxu0 %v22830_v25 }
 0x731   : > { %17260 = vmatprep.mubr.bf16.mxu0 %v31941_v49 }
 0x738   : > { %17261 = vmatmul.mubr.bf16.gmra.mxu0 %v22831_v29 }
 0x739   : > { %17270 = vmatprep.mubr.bf16.mxu0 %v31941_v49 }
 0x740   : > { %17271 = vmatmul.mubr.bf16.gmra.mxu0 %v22832_v5 }
 0x741   : > { %17280 = vmatprep.mubr.bf16.mxu0 %v31941_v49 }
 0x748   : > { %17281 = vmatmul.mubr.bf16.gmra.mxu0 %v22833_v13 }
 0x7d0   : > { %v17212_v47 = vpop.f32.mrf.mxu0 }
 0x7d1   : > { %17291 = vst [vmem:[%s31114_s16] sm:$0xff] %v17212_v47 }
 0x7d2   : > { %v17214_v58 = vpop.f32.mrf.mxu0 }
 0x7d3   : > { %17292 = vst [vmem:[%s31114_s16 + $0x8] sm:$0xff] %v17214_v58 }
 0x7d4   : > { %v17216_v0 = vpop.f32.mrf.mxu0 }
 0x7d5   : > { %17293 = vst [vmem:[%s31114_s16 + $0x10] sm:$0xff] %v17216_v0 }
 0x7d6   : > { %v17218_v36 = vpop.f32.mrf.mxu0 }
 0x7d7   : > { %17294 = vst [vmem:[%s31114_s16 + $0x18] sm:$0xff] %v17218_v36 }
 0x7d8   : > { %v17222_v51 = vpop.f32.mrf.mxu0 }
 0x7d9   : > { %17295 = vst [vmem:[%s31114_s16 + $0x20] sm:$0xff] %v17222_v51 }
 0x7da   : > { %v17224_v24 = vpop.f32.mrf.mxu0 }
 0x7db   : > { %17296 = vst [vmem:[%s31114_s16 + $0x28] sm:$0xff] %v17224_v24 }
 0x7dc   : > { %v17226_v57 = vpop.f32.mrf.mxu0 }
 0x7dd   : > { %17297 = vst [vmem:[%s31114_s16 + $0x30] sm:$0xff] %v17226_v57 }
 0x7de   : > { %v17228_v52 = vpop.f32.mrf.mxu0 }
 0x7df   : > { %17298 = vst [vmem:[%s31114_s16 + $0x38] sm:$0xff] %v17228_v52 }
 0x7e0   : > { %v17232_v3 = vpop.f32.mrf.mxu0 }
 0x7e1   : > { %17299 = vst [vmem:[%s31114_s16 + $0x40] sm:$0xff] %v17232_v3 }
 0x7e2   : > { %v17234_v38 = vpop.f32.mrf.mxu0 }
 0x7e3   : > { %17300 = vst [vmem:[%s31114_s16 + $0x48] sm:$0xff] %v17234_v38 }
 0x7e4   : > { %v17236_v26 = vpop.f32.mrf.mxu0 }
 0x7e5   : > { %17301 = vst [vmem:[%s31114_s16 + $0x50] sm:$0xff] %v17236_v26 }
 0x7e6   : > { %v17238_v40 = vpop.f32.mrf.mxu0 }
 0x7e7   : > { %17302 = vst [vmem:[%s31114_s16 + $0x58] sm:$0xff] %v17238_v40 }
 0x7e8   : > { %v17242_v45 = vpop.f32.mrf.mxu0 }
 0x7e9   : > { %17303 = vst [vmem:[%s31114_s16 + $0x60] sm:$0xff] %v17242_v45 }
 0x7ea   : > { %v17244_v33 = vpop.f32.mrf.mxu0 }
 0x7eb   : > { %17304 = vst [vmem:[%s31114_s16 + $0x68] sm:$0xff] %v17244_v33 }
 0x7ec   : > { %v17246_v7 = vpop.f32.mrf.mxu0 }
 0x7ed   : > { %17305 = vst [vmem:[%s31114_s16 + $0x70] sm:$0xff] %v17246_v7 }
 0x7ee   : > { %v17248_v28 = vpop.f32.mrf.mxu0 }
 0x7ef   : > { %17306 = vst [vmem:[%s31114_s16 + $0x78] sm:$0xff] %v17248_v28 }
 0x7f0   : > { %v17252_v31 = vpop.f32.mrf.mxu0 }
 0x7f1   : > { %17307 = vst [vmem:[%s31114_s16 + $0x80] sm:$0xff] %v17252_v31 }
 0x7f2   : > { %v17254_v6 = vpop.f32.mrf.mxu0 }
 0x7f3   : > { %17308 = vst [vmem:[%s31114_s16 + $0x88] sm:$0xff] %v17254_v6 }
 0x7f4   : > { %v17256_v41 = vpop.f32.mrf.mxu0 }
 0x7f5   : > { %17309 = vst [vmem:[%s31114_s16 + $0x90] sm:$0xff] %v17256_v41 }
 0x7f6   : > { %v17258_v30 = vpop.f32.mrf.mxu0 }
 0x7f7   : > { %17310 = vst [vmem:[%s31114_s16 + $0x98] sm:$0xff] %v17258_v30 }
 0x7f8   : > { %v17262_v4 = vpop.f32.mrf.mxu0 }
 0x7f9   : > { %17311 = vst [vmem:[%s31114_s16 + $0xa0] sm:$0xff] %v17262_v4 }
 0x7fa   : > { %v17264_v50 = vpop.f32.mrf.mxu0 }
 0x7fb   : > { %17312 = vst [vmem:[%s31114_s16 + $0xa8] sm:$0xff] %v17264_v50 }
 0x7fc   : > { %v17266_v39 = vpop.f32.mrf.mxu0 }
 0x7fd   : > { %17313 = vst [vmem:[%s31114_s16 + $0xb0] sm:$0xff] %v17266_v39 }
 0x7fe   : > { %v17268_v48 = vpop.f32.mrf.mxu0 }
 0x7ff   : > { %17314 = vst [vmem:[%s31114_s16 + $0xb8] sm:$0xff] %v17268_v48 }
 0x800   : > { %v17272_v56 = vpop.f32.mrf.mxu0 }
 0x801   : > { %17315 = vst [vmem:[%s31114_s16 + $0xc0] sm:$0xff] %v17272_v56 }
 0x802   : > { %v17274_v12 = vpop.f32.mrf.mxu0 }
 0x803   : > { %17316 = vst [vmem:[%s31114_s16 + $0xc8] sm:$0xff] %v17274_v12 }
 0x804   : > { %v17276_v34 = vpop.f32.mrf.mxu0 }
 0x805   : > { %17317 = vst [vmem:[%s31114_s16 + $0xd0] sm:$0xff] %v17276_v34 }
 0x806   : > { %v17278_v43 = vpop.f32.mrf.mxu0 }
 0x807   : > { %17318 = vst [vmem:[%s31114_s16 + $0xd8] sm:$0xff] %v17278_v43 }
 0x808   : > { %v17282_v32 = vpop.f32.mrf.mxu0 }
 0x809   : > { %17319 = vst [vmem:[%s31114_s16 + $0xe0] sm:$0xff] %v17282_v32 }
 0x80a   : > { %v17284_v54 = vpop.f32.mrf.mxu0 }
 0x80b   : > { %17320 = vst [vmem:[%s31114_s16 + $0xe8] sm:$0xff] %v17284_v54 }
 0x80c   : > { %v17286_v35 = vpop.f32.mrf.mxu0 }
 0x80d   : > { %17321 = vst [vmem:[%s31114_s16 + $0xf0] sm:$0xff] %v17286_v35 }
 0x80e   : > { %v17288_v14 = vpop.f32.mrf.mxu0 }
 0x80f   : > { %17322 = vst [vmem:[%s31114_s16 + $0xf8] sm:$0xff] %v17288_v14 }
 0x810 PF: > { %s16_s21 = sadd.s32 1, %s22852_s21  }
 0x811   : > { %p13_p4 = scmp.ge.s32.totalorder %s16_s21, 10  }
 0x813   :  { %15 = sbr.rel (!%p13_p4) target bundleno = 1 (0x1), region = 91 }

</bundles_post_ra>
